<compile_context>
chip_gen: v5e
topology: v5e:2x2
jax: 0.10.0
libtpu: 0.0.40
codegen_flags: <defaults>
</compile_context>

<pallas_src>
import functools

import jax
import jax.numpy as jnp
from jax.experimental import pallas as pl
from jax.experimental.pallas import tpu as pltpu


# ---------------------------------------------------------------------------
# Fused Pallas kernel: one batch element per grid step.
# ---------------------------------------------------------------------------

def _fused_kernel(x0_ref, x1g_ref, wupf_ref, bupf_ref, wfsb_ref,
                  wtail_ref, btail_ref, o_ref,
                  x0p, ysub, col, *, H, W, C):
    HW = H * W
    zf = jnp.float32

    # ---- halo zeroing only (interiors are fully overwritten below) --------
    x0p[0:1, :, :] = jnp.zeros((1, W + 2, C), zf)
    x0p[H + 1:H + 2, :, :] = jnp.zeros((1, W + 2, C), zf)
    x0p[:, 0:1, :] = jnp.zeros((H + 2, 1, C), zf)
    x0p[:, W + 1:W + 2, :] = jnp.zeros((H + 2, 1, C), zf)
    ysub[:, 0:1, :, :] = jnp.zeros((9, 1, W + 2, C), zf)
    ysub[:, H + 1:H + 2, :, :] = jnp.zeros((9, 1, W + 2, C), zf)
    ysub[:, :, 0:1, :] = jnp.zeros((9, H + 2, 1, C), zf)
    ysub[:, :, W + 1:W + 2, :] = jnp.zeros((9, H + 2, 1, C), zf)

    # ---- stage 1: 3x3 up-conv with wfs_a / bup / bfs folded in ------------
    # Single K = 9C im2col matmul; up columns ordered (sub-pixel t, channel).
    x0p[1:H + 1, 1:W + 1, :] = x0_ref[0]
    for tap in range(9):
        dy, dx = tap // 3, tap % 3
        col[:, tap * C:(tap + 1) * C] = (
            x0p[dy:dy + H, dx:dx + W, :].reshape(HW, C))
    up = jnp.dot(col[...], wupf_ref[...],
                 preferred_element_type=jnp.float32) + bupf_ref[...]   # (HW, 9C)

    # ---- stage 2: x1 half of the 1x1; scatter-free pixel shuffle ----------
    # x1 arrives grouped by sub-pixel: rows ordered (t, h, w).
    yx1 = jnp.dot(x1g_ref[0], wfsb_ref[...],
                  preferred_element_type=jnp.float32)                  # (9HW, C)
    for t in range(9):
        y_t = up[:, t * C:(t + 1) * C] + yx1[t * HW:(t + 1) * HW, :]
        ysub[t, 1:H + 1, 1:W + 1, :] = y_t.reshape(H, W, C)

    # ---- stage 3: final 3x3 conv evaluated in sub-pixel space -------------
    # Output pixel (3h+i, 3w+j); its tap (kh,kw) neighbour lives in sub-pixel
    # group (i2,j2) at low-res offset (dh,dw).  Zero padding == zero halo.
    for i in range(3):
        for j in range(3):
            for kh in range(3):
                a = i + kh - 1
                i2 = a % 3
                dh = (a - i2) // 3
                for kw in range(3):
                    b = j + kw - 1
                    j2 = b % 3
                    dw = (b - j2) // 3
                    tap = kh * 3 + kw
                    col[:, tap * C:(tap + 1) * C] = (
                        ysub[i2 * 3 + j2,
                             1 + dh:1 + dh + H,
                             1 + dw:1 + dw + W, :].reshape(HW, C))
            out_t = jnp.dot(col[...], wtail_ref[...],
                            preferred_element_type=jnp.float32) + btail_ref[...]
            o_ref[0, i * 3 + j] = out_t                                # (HW, 3)


# ---------------------------------------------------------------------------
# Wrapper: one fused pallas_call; only tiny layout plumbing stays in XLA.
# ---------------------------------------------------------------------------

def reconstruction3_forward(x0_nchw, x1_nchw, consts):
    N, C, H, W = x0_nchw.shape
    HW = H * W
    RH, RW = 3 * H, 3 * W
    wupf, bupf, wfsbT, wtailm, btail_row = consts

    x0_cl = jnp.transpose(x0_nchw, (0, 2, 3, 1))                       # (N,H,W,C)
    # group x1 by output sub-pixel: rows ordered (i, j, h, w)
    x1g = jnp.transpose(x1_nchw, (0, 2, 3, 1))                         # (N,RH,RW,C)
    x1g = x1g.reshape(N, H, 3, W, 3, C).transpose(0, 2, 4, 1, 3, 5)
    x1g = x1g.reshape(N, 9 * HW, C)

    kernel = functools.partial(_fused_kernel, H=H, W=W, C=C)

    out = pl.pallas_call(
        kernel,
        out_shape=jax.ShapeDtypeStruct((N, 9, HW, 3), jnp.float32),
        grid=(N,),
        in_specs=[
            pl.BlockSpec((1, H, W, C), lambda n: (n, 0, 0, 0)),        # x0
            pl.BlockSpec((1, 9 * HW, C), lambda n: (n, 0, 0)),         # x1 grouped
            pl.BlockSpec((9 * C, 9 * C), lambda n: (0, 0)),            # folded up W
            pl.BlockSpec((1, 9 * C), lambda n: (0, 0)),                # folded up b
            pl.BlockSpec((C, C), lambda n: (0, 0)),                    # wfs_b^T
            pl.BlockSpec((9 * C, 3), lambda n: (0, 0)),                # tail W
            pl.BlockSpec((1, 3), lambda n: (0, 0)),                    # tail b
        ],
        out_specs=pl.BlockSpec((1, 9, HW, 3), lambda n: (n, 0, 0, 0)),
        scratch_shapes=[
            pltpu.VMEM((H + 2, W + 2, C), jnp.float32),                # padded x0
            pltpu.VMEM((9, H + 2, W + 2, C), jnp.float32),             # per-subpixel y
            pltpu.VMEM((HW, 9 * C), jnp.float32),                      # im2col (reused)
        ],
        compiler_params=pltpu.CompilerParams(
            dimension_semantics=("parallel",)),
    )(x0_cl, x1g, wupf, bupf, wfsbT, wtailm, btail_row)

    # un-shuffle sub-pixel groups: (N, t=(i,j), (h,w), o) -> (N, o, 3h+i, 3w+j)
    out = out.reshape(N, 3, 3, H, W, 3)                 # [n, i, j, h, w, o]
    out = jnp.transpose(out, (0, 5, 3, 1, 4, 2))        # [n, o, h, i, w, j]
    return out.reshape(N, 3, RH, RW)


# ---------------------------------------------------------------------------
# One-time constant preparation (pure JAX, outside the hot path).
# ---------------------------------------------------------------------------

def prepare_constants(params):
    wup, bup = params["wup"], params["bup"]           # (9C,C,3,3), (9C,)
    wfs, bfs = params["wfs"], params["bfs"]           # (C,2C,1,1), (C,)
    wtail, btail = params["wtail"], params["btail"]   # (3,C,3,3),  (3,)
    C = wup.shape[1]

    wfs_a = wfs[:, :C, 0, 0]                          # (C,C): [cy, c]  (up half)
    wfs_b = wfs[:, C:, 0, 0]                          # (C,C): [cy, c]  (x1 half)

    # Folded up-conv weight: rows (tap, cin), cols (sub-pixel t, cy).
    #   wupf[(tap,cin),(t,cy)] = sum_c wfs_a[cy,c] * wup[c*9+t, cin, kh, kw]
    w5 = wup.reshape(C, 9, C, 3, 3)                             # [c, t, cin, kh, kw]
    w5 = jnp.einsum("ctikl,yc->klity", w5, wfs_a)               # [kh, kw, cin, t, cy]
    wupf = w5.reshape(9 * C, 9 * C)
    # Folded bias: wfs_a @ (per-sub-pixel up-conv bias) + bfs.
    bupf = (jnp.einsum("yc,ct->ty", wfs_a, bup.reshape(C, 9))
            + bfs[None, :]).reshape(1, 9 * C)

    wfsbT = jnp.transpose(wfs_b)                                # (C, C): [c, cy]

    wtailm = jnp.transpose(wtail, (2, 3, 1, 0)).reshape(9 * C, 3)   # rows (tap, cy)
    btail_row = btail.reshape(1, 3)
    return (wupf, bupf, wfsbT, wtailm, btail_row)


# ---------------------------------------------------------------------------
# Pure-JAX reference (lax.conv) for correctness checking.
# ---------------------------------------------------------------------------

def reference_forward(x0, x1, params):
    def conv(x, w, b, pad):
        y = jax.lax.conv_general_dilated(
            x, w, (1, 1), [(pad, pad), (pad, pad)],
            dimension_numbers=("NCHW", "OIHW", "NCHW"),
            precision=jax.lax.Precision.HIGHEST)
        return y + b[None, :, None, None]

    def pixel_shuffle(x, r):
        N, C9, Hh, Ww = x.shape
        Cc = C9 // (r * r)
        x = x.reshape(N, Cc, r, r, Hh, Ww)
        x = jnp.transpose(x, (0, 1, 4, 2, 5, 3))
        return x.reshape(N, Cc, Hh * r, Ww * r)

    up = pixel_shuffle(conv(x0, params["wup"], params["bup"], 1), 3)
    cat = jnp.concatenate([up, x1], axis=1)
    y = conv(cat, params["wfs"], params["bfs"], 0)
    return conv(y, params["wtail"], params["btail"], 1)


# ---------------------------------------------------------------------------

if __name__ == "__main__":
    key = jax.random.PRNGKey(0)
    N, n_feats, H, W = 2, 8, 8, 8
    scale = 3
    ks = jax.random.split(key, 8)

    def init(k, shape, fan_in):
        bound = 1.0 / (fan_in ** 0.5)
        return jax.random.uniform(k, shape, jnp.float32, -bound, bound)

    # PyTorch Conv2d weight layout: OIHW
    params = {
        "wup": init(ks[0], (9 * n_feats, n_feats, 3, 3), n_feats * 9),
        "bup": init(ks[1], (9 * n_feats,), n_feats * 9),
        "wfs": init(ks[2], (n_feats, 2 * n_feats, 1, 1), 2 * n_feats),
        "bfs": init(ks[3], (n_feats,), 2 * n_feats),
        "wtail": init(ks[4], (3, n_feats, 3, 3), n_feats * 9),
        "btail": init(ks[5], (3,), n_feats * 9),
    }
    consts = prepare_constants(params)

    # Inputs (PyTorch NCHW convention): x[0] low-res feats, x[1] high-res feats
    x0 = jax.random.normal(ks[6], (N, n_feats, H, W), jnp.float32)
    x1 = jax.random.normal(ks[7], (N, n_feats, scale * H, scale * W), jnp.float32)

    fwd = jax.jit(reconstruction3_forward)
    out = fwd(x0, x1, consts)
    jax.block_until_ready(out)

    ref = reference_forward(x0, x1, params)
    assert out.shape == (N, 3, scale * H, scale * W)
    err = float(jnp.max(jnp.abs(out - ref)))
    assert jnp.allclose(out, ref, atol=1e-2, rtol=1e-2), err

    print("KERNEL_OK")
</pallas_src>

<mosaic_0001>
module attributes {stable_mosaic.version = 11 : i64} {
  func.func @_fused_kernel(%arg0: i32, %arg1: memref<1x8x8x8xf32, #tpu.memory_space<vmem>>, %arg2: memref<1x576x8xf32, #tpu.memory_space<vmem>>, %arg3: memref<72x72xf32, #tpu.memory_space<vmem>>, %arg4: memref<1x72xf32, #tpu.memory_space<vmem>>, %arg5: memref<8x8xf32, #tpu.memory_space<vmem>>, %arg6: memref<72x3xf32, #tpu.memory_space<vmem>>, %arg7: memref<1x3xf32, #tpu.memory_space<vmem>>, %arg8: memref<1x9x64x3xf32, #tpu.memory_space<vmem>>, %arg9: memref<10x10x8xf32, #tpu.memory_space<vmem>>, %arg10: memref<9x10x10x8xf32, #tpu.memory_space<vmem>>, %arg11: memref<64x72xf32, #tpu.memory_space<vmem>>) attributes {dimension_semantics = [#tpu.dimension_semantics<parallel>], iteration_bounds = array<i64: 2>, scalar_prefetch = 0 : i64, scratch_operands = 3 : i64, tpu.core_type = #tpu.core_type<tc>, window_params = [{transform_indices = @transform_0, window_bounds = array<i64: 1, 8, 8, 8>}, {transform_indices = @transform_1, window_bounds = array<i64: 1, 576, 8>}, {pipeline_mode = #tpu.pipeline_mode<synchronous>, transform_indices = @transform_2, window_bounds = array<i64: 72, 72>}, {pipeline_mode = #tpu.pipeline_mode<synchronous>, transform_indices = @transform_3, window_bounds = array<i64: 1, 72>}, {pipeline_mode = #tpu.pipeline_mode<synchronous>, transform_indices = @transform_4, window_bounds = array<i64: 8, 8>}, {pipeline_mode = #tpu.pipeline_mode<synchronous>, transform_indices = @transform_5, window_bounds = array<i64: 72, 3>}, {pipeline_mode = #tpu.pipeline_mode<synchronous>, transform_indices = @transform_6, window_bounds = array<i64: 1, 3>}, {transform_indices = @transform_7, window_bounds = array<i64: 1, 9, 64, 3>}]} {
    %cst = arith.constant 0.000000e+00 : f32
    %0 = vector.broadcast %cst : f32 to vector<1x10x8xf32>
    %c0 = arith.constant 0 : index
    %c0_0 = arith.constant 0 : index
    %c0_1 = arith.constant 0 : index
    %1 = vector.load %arg9[%c0, %c0_0, %c0_1] : memref<10x10x8xf32, #tpu.memory_space<vmem>>, vector<1x10x8xf32>
    tpu.vector_store %arg9[%c0, %c0_0, %c0_1], %0 {strides = array<i32>} : memref<10x10x8xf32, #tpu.memory_space<vmem>>, vector<1x10x8xf32>,
    %cst_2 = arith.constant 0.000000e+00 : f32
    %2 = vector.broadcast %cst_2 : f32 to vector<1x10x8xf32>
    %c9 = arith.constant 9 : index
    %c0_3 = arith.constant 0 : index
    %c0_4 = arith.constant 0 : index
    %3 = vector.load %arg9[%c9, %c0_3, %c0_4] : memref<10x10x8xf32, #tpu.memory_space<vmem>>, vector<1x10x8xf32>
    tpu.vector_store %arg9[%c9, %c0_3, %c0_4], %2 {strides = array<i32>} : memref<10x10x8xf32, #tpu.memory_space<vmem>>, vector<1x10x8xf32>,
    %cst_5 = arith.constant 0.000000e+00 : f32
    %4 = vector.broadcast %cst_5 : f32 to vector<10x1x8xf32>
    %c0_6 = arith.constant 0 : index
    %c0_7 = arith.constant 0 : index
    %c0_8 = arith.constant 0 : index
    %5 = vector.load %arg9[%c0_6, %c0_7, %c0_8] : memref<10x10x8xf32, #tpu.memory_space<vmem>>, vector<10x1x8xf32>
    tpu.vector_store %arg9[%c0_6, %c0_7, %c0_8], %4 {strides = array<i32>} : memref<10x10x8xf32, #tpu.memory_space<vmem>>, vector<10x1x8xf32>,
    %cst_9 = arith.constant 0.000000e+00 : f32
    %6 = vector.broadcast %cst_9 : f32 to vector<10x1x8xf32>
    %c0_10 = arith.constant 0 : index
    %c9_11 = arith.constant 9 : index
    %c0_12 = arith.constant 0 : index
    %7 = vector.load %arg9[%c0_10, %c9_11, %c0_12] : memref<10x10x8xf32, #tpu.memory_space<vmem>>, vector<10x1x8xf32>
    tpu.vector_store %arg9[%c0_10, %c9_11, %c0_12], %6 {strides = array<i32>} : memref<10x10x8xf32, #tpu.memory_space<vmem>>, vector<10x1x8xf32>,
    %cst_13 = arith.constant 0.000000e+00 : f32
    %8 = vector.broadcast %cst_13 : f32 to vector<9x1x10x8xf32>
    %c0_14 = arith.constant 0 : index
    %c0_15 = arith.constant 0 : index
    %c0_16 = arith.constant 0 : index
    %c0_17 = arith.constant 0 : index
    %9 = vector.load %arg10[%c0_14, %c0_15, %c0_16, %c0_17] : memref<9x10x10x8xf32, #tpu.memory_space<vmem>>, vector<9x1x10x8xf32>
    tpu.vector_store %arg10[%c0_14, %c0_15, %c0_16, %c0_17], %8 {strides = array<i32>} : memref<9x10x10x8xf32, #tpu.memory_space<vmem>>, vector<9x1x10x8xf32>,
    %cst_18 = arith.constant 0.000000e+00 : f32
    %10 = vector.broadcast %cst_18 : f32 to vector<9x1x10x8xf32>
    %c0_19 = arith.constant 0 : index
    %c9_20 = arith.constant 9 : index
    %c0_21 = arith.constant 0 : index
    %c0_22 = arith.constant 0 : index
    %11 = vector.load %arg10[%c0_19, %c9_20, %c0_21, %c0_22] : memref<9x10x10x8xf32, #tpu.memory_space<vmem>>, vector<9x1x10x8xf32>
    tpu.vector_store %arg10[%c0_19, %c9_20, %c0_21, %c0_22], %10 {strides = array<i32>} : memref<9x10x10x8xf32, #tpu.memory_space<vmem>>, vector<9x1x10x8xf32>,
    %cst_23 = arith.constant 0.000000e+00 : f32
    %12 = vector.broadcast %cst_23 : f32 to vector<9x10x1x8xf32>
    %c0_24 = arith.constant 0 : index
    %c0_25 = arith.constant 0 : index
    %c0_26 = arith.constant 0 : index
    %c0_27 = arith.constant 0 : index
    %13 = vector.load %arg10[%c0_24, %c0_25, %c0_26, %c0_27] : memref<9x10x10x8xf32, #tpu.memory_space<vmem>>, vector<9x10x1x8xf32>
    tpu.vector_store %arg10[%c0_24, %c0_25, %c0_26, %c0_27], %12 {strides = array<i32>} : memref<9x10x10x8xf32, #tpu.memory_space<vmem>>, vector<9x10x1x8xf32>,
    %cst_28 = arith.constant 0.000000e+00 : f32
    %14 = vector.broadcast %cst_28 : f32 to vector<9x10x1x8xf32>
    %c0_29 = arith.constant 0 : index
    %c0_30 = arith.constant 0 : index
    %c9_31 = arith.constant 9 : index
    %c0_32 = arith.constant 0 : index
    %15 = vector.load %arg10[%c0_29, %c0_30, %c9_31, %c0_32] : memref<9x10x10x8xf32, #tpu.memory_space<vmem>>, vector<9x10x1x8xf32>
    tpu.vector_store %arg10[%c0_29, %c0_30, %c9_31, %c0_32], %14 {strides = array<i32>} : memref<9x10x10x8xf32, #tpu.memory_space<vmem>>, vector<9x10x1x8xf32>,
    %c0_33 = arith.constant 0 : index
    %c0_34 = arith.constant 0 : index
    %c0_35 = arith.constant 0 : index
    %c0_36 = arith.constant 0 : index
    %16 = vector.load %arg1[%c0_33, %c0_34, %c0_35, %c0_36] : memref<1x8x8x8xf32, #tpu.memory_space<vmem>>, vector<1x8x8x8xf32>
    %17 = vector.shape_cast %16 : vector<1x8x8x8xf32> to vector<8x8x8xf32>
    %c1 = arith.constant 1 : index
    %c1_37 = arith.constant 1 : index
    %c0_38 = arith.constant 0 : index
    %18 = vector.load %arg9[%c1, %c1_37, %c0_38] : memref<10x10x8xf32, #tpu.memory_space<vmem>>, vector<8x8x8xf32>
    tpu.vector_store %arg9[%c1, %c1_37, %c0_38], %17 {strides = array<i32>} : memref<10x10x8xf32, #tpu.memory_space<vmem>>, vector<8x8x8xf32>,
    %c0_39 = arith.constant 0 : index
    %c0_40 = arith.constant 0 : index
    %c0_41 = arith.constant 0 : index
    %19 = vector.load %arg9[%c0_39, %c0_40, %c0_41] : memref<10x10x8xf32, #tpu.memory_space<vmem>>, vector<8x8x8xf32>
    %20 = vector.shape_cast %19 : vector<8x8x8xf32> to vector<64x8xf32>
    %c0_42 = arith.constant 0 : index
    %c0_43 = arith.constant 0 : index
    %21 = vector.load %arg11[%c0_42, %c0_43] : memref<64x72xf32, #tpu.memory_space<vmem>>, vector<64x8xf32>
    tpu.vector_store %arg11[%c0_42, %c0_43], %20 {strides = array<i32>} : memref<64x72xf32, #tpu.memory_space<vmem>>, vector<64x8xf32>,
    %c0_44 = arith.constant 0 : index
    %c1_45 = arith.constant 1 : index
    %c0_46 = arith.constant 0 : index
    %22 = vector.load %arg9[%c0_44, %c1_45, %c0_46] : memref<10x10x8xf32, #tpu.memory_space<vmem>>, vector<8x8x8xf32>
    %23 = vector.shape_cast %22 : vector<8x8x8xf32> to vector<64x8xf32>
    %c0_47 = arith.constant 0 : index
    %c8 = arith.constant 8 : index
    %24 = vector.load %arg11[%c0_47, %c8] : memref<64x72xf32, #tpu.memory_space<vmem>>, vector<64x8xf32>
    tpu.vector_store %arg11[%c0_47, %c8], %23 {strides = array<i32>} : memref<64x72xf32, #tpu.memory_space<vmem>>, vector<64x8xf32>,
    %c0_48 = arith.constant 0 : index
    %c2 = arith.constant 2 : index
    %c0_49 = arith.constant 0 : index
    %25 = vector.load %arg9[%c0_48, %c2, %c0_49] : memref<10x10x8xf32, #tpu.memory_space<vmem>>, vector<8x8x8xf32>
    %26 = vector.shape_cast %25 : vector<8x8x8xf32> to vector<64x8xf32>
    %c0_50 = arith.constant 0 : index
    %c16 = arith.constant 16 : index
    %27 = vector.load %arg11[%c0_50, %c16] : memref<64x72xf32, #tpu.memory_space<vmem>>, vector<64x8xf32>
    tpu.vector_store %arg11[%c0_50, %c16], %26 {strides = array<i32>} : memref<64x72xf32, #tpu.memory_space<vmem>>, vector<64x8xf32>,
    %c1_51 = arith.constant 1 : index
    %c0_52 = arith.constant 0 : index
    %c0_53 = arith.constant 0 : index
    %28 = vector.load %arg9[%c1_51, %c0_52, %c0_53] : memref<10x10x8xf32, #tpu.memory_space<vmem>>, vector<8x8x8xf32>
    %29 = vector.shape_cast %28 : vector<8x8x8xf32> to vector<64x8xf32>
    %c0_54 = arith.constant 0 : index
    %c24 = arith.constant 24 : index
    %30 = vector.load %arg11[%c0_54, %c24] : memref<64x72xf32, #tpu.memory_space<vmem>>, vector<64x8xf32>
    tpu.vector_store %arg11[%c0_54, %c24], %29 {strides = array<i32>} : memref<64x72xf32, #tpu.memory_space<vmem>>, vector<64x8xf32>,
    %c1_55 = arith.constant 1 : index
    %c1_56 = arith.constant 1 : index
    %c0_57 = arith.constant 0 : index
    %31 = vector.load %arg9[%c1_55, %c1_56, %c0_57] : memref<10x10x8xf32, #tpu.memory_space<vmem>>, vector<8x8x8xf32>
    %32 = vector.shape_cast %31 : vector<8x8x8xf32> to vector<64x8xf32>
    %c0_58 = arith.constant 0 : index
    %c32 = arith.constant 32 : index
    %33 = vector.load %arg11[%c0_58, %c32] : memref<64x72xf32, #tpu.memory_space<vmem>>, vector<64x8xf32>
    tpu.vector_store %arg11[%c0_58, %c32], %32 {strides = array<i32>} : memref<64x72xf32, #tpu.memory_space<vmem>>, vector<64x8xf32>,
    %c1_59 = arith.constant 1 : index
    %c2_60 = arith.constant 2 : index
    %c0_61 = arith.constant 0 : index
    %34 = vector.load %arg9[%c1_59, %c2_60, %c0_61] : memref<10x10x8xf32, #tpu.memory_space<vmem>>, vector<8x8x8xf32>
    %35 = vector.shape_cast %34 : vector<8x8x8xf32> to vector<64x8xf32>
    %c0_62 = arith.constant 0 : index
    %c40 = arith.constant 40 : index
    %36 = vector.load %arg11[%c0_62, %c40] : memref<64x72xf32, #tpu.memory_space<vmem>>, vector<64x8xf32>
    tpu.vector_store %arg11[%c0_62, %c40], %35 {strides = array<i32>} : memref<64x72xf32, #tpu.memory_space<vmem>>, vector<64x8xf32>,
    %c2_63 = arith.constant 2 : index
    %c0_64 = arith.constant 0 : index
    %c0_65 = arith.constant 0 : index
    %37 = vector.load %arg9[%c2_63, %c0_64, %c0_65] : memref<10x10x8xf32, #tpu.memory_space<vmem>>, vector<8x8x8xf32>
    %38 = vector.shape_cast %37 : vector<8x8x8xf32> to vector<64x8xf32>
    %c0_66 = arith.constant 0 : index
    %c48 = arith.constant 48 : index
    %39 = vector.load %arg11[%c0_66, %c48] : memref<64x72xf32, #tpu.memory_space<vmem>>, vector<64x8xf32>
    tpu.vector_store %arg11[%c0_66, %c48], %38 {strides = array<i32>} : memref<64x72xf32, #tpu.memory_space<vmem>>, vector<64x8xf32>,
    %c2_67 = arith.constant 2 : index
    %c1_68 = arith.constant 1 : index
    %c0_69 = arith.constant 0 : index
    %40 = vector.load %arg9[%c2_67, %c1_68, %c0_69] : memref<10x10x8xf32, #tpu.memory_space<vmem>>, vector<8x8x8xf32>
    %41 = vector.shape_cast %40 : vector<8x8x8xf32> to vector<64x8xf32>
    %c0_70 = arith.constant 0 : index
    %c56 = arith.constant 56 : index
    %42 = vector.load %arg11[%c0_70, %c56] : memref<64x72xf32, #tpu.memory_space<vmem>>, vector<64x8xf32>
    tpu.vector_store %arg11[%c0_70, %c56], %41 {strides = array<i32>} : memref<64x72xf32, #tpu.memory_space<vmem>>, vector<64x8xf32>,
    %c2_71 = arith.constant 2 : index
    %c2_72 = arith.constant 2 : index
    %c0_73 = arith.constant 0 : index
    %43 = vector.load %arg9[%c2_71, %c2_72, %c0_73] : memref<10x10x8xf32, #tpu.memory_space<vmem>>, vector<8x8x8xf32>
    %44 = vector.shape_cast %43 : vector<8x8x8xf32> to vector<64x8xf32>
    %c0_74 = arith.constant 0 : index
    %c64 = arith.constant 64 : index
    %45 = vector.load %arg11[%c0_74, %c64] : memref<64x72xf32, #tpu.memory_space<vmem>>, vector<64x8xf32>
    tpu.vector_store %arg11[%c0_74, %c64], %44 {strides = array<i32>} : memref<64x72xf32, #tpu.memory_space<vmem>>, vector<64x8xf32>,
    %c0_75 = arith.constant 0 : index
    %c0_76 = arith.constant 0 : index
    %46 = vector.load %arg11[%c0_75, %c0_76] : memref<64x72xf32, #tpu.memory_space<vmem>>, vector<64x72xf32>
    %c0_77 = arith.constant 0 : index
    %c0_78 = arith.constant 0 : index
    %47 = vector.load %arg3[%c0_77, %c0_78] : memref<72x72xf32, #tpu.memory_space<vmem>>, vector<72x72xf32>
    %cst_79 = arith.constant dense<0.000000e+00> : vector<64x72xf32>
    %48 = tpu.matmul %46, %47, %cst_79 {dimension_numbers = #tpu.dot_dimension_numbers<[1], [0], [0], [1], [0, 0, 1, 1], [], []>} : vector<64x72xf32>, vector<72x72xf32>, vector<64x72xf32> -> vector<64x72xf32>
    %c0_80 = arith.constant 0 : index
    %c0_81 = arith.constant 0 : index
    %49 = vector.load %arg4[%c0_80, %c0_81] : memref<1x72xf32, #tpu.memory_space<vmem>>, vector<1x72xf32>
    %50 = vector.broadcast %49 : vector<1x72xf32> to vector<64x72xf32>
    %51 = arith.addf %48, %50 : vector<64x72xf32>
    %c0_82 = arith.constant 0 : index
    %c0_83 = arith.constant 0 : index
    %c0_84 = arith.constant 0 : index
    %52 = vector.load %arg2[%c0_82, %c0_83, %c0_84] : memref<1x576x8xf32, #tpu.memory_space<vmem>>, vector<1x576x8xf32>
    %53 = vector.shape_cast %52 : vector<1x576x8xf32> to vector<576x8xf32>
    %c0_85 = arith.constant 0 : index
    %c0_86 = arith.constant 0 : index
    %54 = vector.load %arg5[%c0_85, %c0_86] : memref<8x8xf32, #tpu.memory_space<vmem>>, vector<8x8xf32>
    %cst_87 = arith.constant dense<0.000000e+00> : vector<576x8xf32>
    %55 = tpu.matmul %53, %54, %cst_87 {dimension_numbers = #tpu.dot_dimension_numbers<[1], [0], [0], [1], [0, 0, 1, 1], [], []>} : vector<576x8xf32>, vector<8x8xf32>, vector<576x8xf32> -> vector<576x8xf32>
    %56 = vector.extract_strided_slice %51 {offsets = [0, 0], sizes = [64, 8], strides = [1, 1]} : vector<64x72xf32> to vector<64x8xf32>
    %57 = vector.extract_strided_slice %55 {offsets = [0, 0], sizes = [64, 8], strides = [1, 1]} : vector<576x8xf32> to vector<64x8xf32>
    %58 = arith.addf %56, %57 : vector<64x8xf32>
    %59 = vector.shape_cast %58 : vector<64x8xf32> to vector<8x8x8xf32>
    %c0_88 = arith.constant 0 : index
    %c1_89 = arith.constant 1 : index
    %c1_90 = arith.constant 1 : index
    %c0_91 = arith.constant 0 : index
    %60 = vector.load %arg10[%c0_88, %c1_89, %c1_90, %c0_91] : memref<9x10x10x8xf32, #tpu.memory_space<vmem>>, vector<1x8x8x8xf32>
    %61 = vector.shape_cast %60 : vector<1x8x8x8xf32> to vector<8x8x8xf32>
    %62 = vector.shape_cast %59 : vector<8x8x8xf32> to vector<1x8x8x8xf32>
    tpu.vector_store %arg10[%c0_88, %c1_89, %c1_90, %c0_91], %62 {strides = array<i32>} : memref<9x10x10x8xf32, #tpu.memory_space<vmem>>, vector<1x8x8x8xf32>,
    %63 = vector.extract_strided_slice %51 {offsets = [0, 8], sizes = [64, 8], strides = [1, 1]} : vector<64x72xf32> to vector<64x8xf32>
    %64 = vector.extract_strided_slice %55 {offsets = [64, 0], sizes = [64, 8], strides = [1, 1]} : vector<576x8xf32> to vector<64x8xf32>
    %65 = arith.addf %63, %64 : vector<64x8xf32>
    %66 = vector.shape_cast %65 : vector<64x8xf32> to vector<8x8x8xf32>
    %c1_92 = arith.constant 1 : index
    %c1_93 = arith.constant 1 : index
    %c1_94 = arith.constant 1 : index
    %c0_95 = arith.constant 0 : index
    %67 = vector.load %arg10[%c1_92, %c1_93, %c1_94, %c0_95] : memref<9x10x10x8xf32, #tpu.memory_space<vmem>>, vector<1x8x8x8xf32>
    %68 = vector.shape_cast %67 : vector<1x8x8x8xf32> to vector<8x8x8xf32>
    %69 = vector.shape_cast %66 : vector<8x8x8xf32> to vector<1x8x8x8xf32>
    tpu.vector_store %arg10[%c1_92, %c1_93, %c1_94, %c0_95], %69 {strides = array<i32>} : memref<9x10x10x8xf32, #tpu.memory_space<vmem>>, vector<1x8x8x8xf32>,
    %70 = vector.extract_strided_slice %51 {offsets = [0, 16], sizes = [64, 8], strides = [1, 1]} : vector<64x72xf32> to vector<64x8xf32>
    %71 = vector.extract_strided_slice %55 {offsets = [128, 0], sizes = [64, 8], strides = [1, 1]} : vector<576x8xf32> to vector<64x8xf32>
    %72 = arith.addf %70, %71 : vector<64x8xf32>
    %73 = vector.shape_cast %72 : vector<64x8xf32> to vector<8x8x8xf32>
    %c2_96 = arith.constant 2 : index
    %c1_97 = arith.constant 1 : index
    %c1_98 = arith.constant 1 : index
    %c0_99 = arith.constant 0 : index
    %74 = vector.load %arg10[%c2_96, %c1_97, %c1_98, %c0_99] : memref<9x10x10x8xf32, #tpu.memory_space<vmem>>, vector<1x8x8x8xf32>
    %75 = vector.shape_cast %74 : vector<1x8x8x8xf32> to vector<8x8x8xf32>
    %76 = vector.shape_cast %73 : vector<8x8x8xf32> to vector<1x8x8x8xf32>
    tpu.vector_store %arg10[%c2_96, %c1_97, %c1_98, %c0_99], %76 {strides = array<i32>} : memref<9x10x10x8xf32, #tpu.memory_space<vmem>>, vector<1x8x8x8xf32>,
    %77 = vector.extract_strided_slice %51 {offsets = [0, 24], sizes = [64, 8], strides = [1, 1]} : vector<64x72xf32> to vector<64x8xf32>
    %78 = vector.extract_strided_slice %55 {offsets = [192, 0], sizes = [64, 8], strides = [1, 1]} : vector<576x8xf32> to vector<64x8xf32>
    %79 = arith.addf %77, %78 : vector<64x8xf32>
    %80 = vector.shape_cast %79 : vector<64x8xf32> to vector<8x8x8xf32>
    %c3 = arith.constant 3 : index
    %c1_100 = arith.constant 1 : index
    %c1_101 = arith.constant 1 : index
    %c0_102 = arith.constant 0 : index
    %81 = vector.load %arg10[%c3, %c1_100, %c1_101, %c0_102] : memref<9x10x10x8xf32, #tpu.memory_space<vmem>>, vector<1x8x8x8xf32>
    %82 = vector.shape_cast %81 : vector<1x8x8x8xf32> to vector<8x8x8xf32>
    %83 = vector.shape_cast %80 : vector<8x8x8xf32> to vector<1x8x8x8xf32>
    tpu.vector_store %arg10[%c3, %c1_100, %c1_101, %c0_102], %83 {strides = array<i32>} : memref<9x10x10x8xf32, #tpu.memory_space<vmem>>, vector<1x8x8x8xf32>,
    %84 = vector.extract_strided_slice %51 {offsets = [0, 32], sizes = [64, 8], strides = [1, 1]} : vector<64x72xf32> to vector<64x8xf32>
    %85 = vector.extract_strided_slice %55 {offsets = [256, 0], sizes = [64, 8], strides = [1, 1]} : vector<576x8xf32> to vector<64x8xf32>
    %86 = arith.addf %84, %85 : vector<64x8xf32>
    %87 = vector.shape_cast %86 : vector<64x8xf32> to vector<8x8x8xf32>
    %c4 = arith.constant 4 : index
    %c1_103 = arith.constant 1 : index
    %c1_104 = arith.constant 1 : index
    %c0_105 = arith.constant 0 : index
    %88 = vector.load %arg10[%c4, %c1_103, %c1_104, %c0_105] : memref<9x10x10x8xf32, #tpu.memory_space<vmem>>, vector<1x8x8x8xf32>
    %89 = vector.shape_cast %88 : vector<1x8x8x8xf32> to vector<8x8x8xf32>
    %90 = vector.shape_cast %87 : vector<8x8x8xf32> to vector<1x8x8x8xf32>
    tpu.vector_store %arg10[%c4, %c1_103, %c1_104, %c0_105], %90 {strides = array<i32>} : memref<9x10x10x8xf32, #tpu.memory_space<vmem>>, vector<1x8x8x8xf32>,
    %91 = vector.extract_strided_slice %51 {offsets = [0, 40], sizes = [64, 8], strides = [1, 1]} : vector<64x72xf32> to vector<64x8xf32>
    %92 = vector.extract_strided_slice %55 {offsets = [320, 0], sizes = [64, 8], strides = [1, 1]} : vector<576x8xf32> to vector<64x8xf32>
    %93 = arith.addf %91, %92 : vector<64x8xf32>
    %94 = vector.shape_cast %93 : vector<64x8xf32> to vector<8x8x8xf32>
    %c5 = arith.constant 5 : index
    %c1_106 = arith.constant 1 : index
    %c1_107 = arith.constant 1 : index
    %c0_108 = arith.constant 0 : index
    %95 = vector.load %arg10[%c5, %c1_106, %c1_107, %c0_108] : memref<9x10x10x8xf32, #tpu.memory_space<vmem>>, vector<1x8x8x8xf32>
    %96 = vector.shape_cast %95 : vector<1x8x8x8xf32> to vector<8x8x8xf32>
    %97 = vector.shape_cast %94 : vector<8x8x8xf32> to vector<1x8x8x8xf32>
    tpu.vector_store %arg10[%c5, %c1_106, %c1_107, %c0_108], %97 {strides = array<i32>} : memref<9x10x10x8xf32, #tpu.memory_space<vmem>>, vector<1x8x8x8xf32>,
    %98 = vector.extract_strided_slice %51 {offsets = [0, 48], sizes = [64, 8], strides = [1, 1]} : vector<64x72xf32> to vector<64x8xf32>
    %99 = vector.extract_strided_slice %55 {offsets = [384, 0], sizes = [64, 8], strides = [1, 1]} : vector<576x8xf32> to vector<64x8xf32>
    %100 = arith.addf %98, %99 : vector<64x8xf32>
    %101 = vector.shape_cast %100 : vector<64x8xf32> to vector<8x8x8xf32>
    %c6 = arith.constant 6 : index
    %c1_109 = arith.constant 1 : index
    %c1_110 = arith.constant 1 : index
    %c0_111 = arith.constant 0 : index
    %102 = vector.load %arg10[%c6, %c1_109, %c1_110, %c0_111] : memref<9x10x10x8xf32, #tpu.memory_space<vmem>>, vector<1x8x8x8xf32>
    %103 = vector.shape_cast %102 : vector<1x8x8x8xf32> to vector<8x8x8xf32>
    %104 = vector.shape_cast %101 : vector<8x8x8xf32> to vector<1x8x8x8xf32>
    tpu.vector_store %arg10[%c6, %c1_109, %c1_110, %c0_111], %104 {strides = array<i32>} : memref<9x10x10x8xf32, #tpu.memory_space<vmem>>, vector<1x8x8x8xf32>,
    %105 = vector.extract_strided_slice %51 {offsets = [0, 56], sizes = [64, 8], strides = [1, 1]} : vector<64x72xf32> to vector<64x8xf32>
    %106 = vector.extract_strided_slice %55 {offsets = [448, 0], sizes = [64, 8], strides = [1, 1]} : vector<576x8xf32> to vector<64x8xf32>
    %107 = arith.addf %105, %106 : vector<64x8xf32>
    %108 = vector.shape_cast %107 : vector<64x8xf32> to vector<8x8x8xf32>
    %c7 = arith.constant 7 : index
    %c1_112 = arith.constant 1 : index
    %c1_113 = arith.constant 1 : index
    %c0_114 = arith.constant 0 : index
    %109 = vector.load %arg10[%c7, %c1_112, %c1_113, %c0_114] : memref<9x10x10x8xf32, #tpu.memory_space<vmem>>, vector<1x8x8x8xf32>
    %110 = vector.shape_cast %109 : vector<1x8x8x8xf32> to vector<8x8x8xf32>
    %111 = vector.shape_cast %108 : vector<8x8x8xf32> to vector<1x8x8x8xf32>
    tpu.vector_store %arg10[%c7, %c1_112, %c1_113, %c0_114], %111 {strides = array<i32>} : memref<9x10x10x8xf32, #tpu.memory_space<vmem>>, vector<1x8x8x8xf32>,
    %112 = vector.extract_strided_slice %51 {offsets = [0, 64], sizes = [64, 8], strides = [1, 1]} : vector<64x72xf32> to vector<64x8xf32>
    %113 = vector.extract_strided_slice %55 {offsets = [512, 0], sizes = [64, 8], strides = [1, 1]} : vector<576x8xf32> to vector<64x8xf32>
    %114 = arith.addf %112, %113 : vector<64x8xf32>
    %115 = vector.shape_cast %114 : vector<64x8xf32> to vector<8x8x8xf32>
    %c8_115 = arith.constant 8 : index
    %c1_116 = arith.constant 1 : index
    %c1_117 = arith.constant 1 : index
    %c0_118 = arith.constant 0 : index
    %116 = vector.load %arg10[%c8_115, %c1_116, %c1_117, %c0_118] : memref<9x10x10x8xf32, #tpu.memory_space<vmem>>, vector<1x8x8x8xf32>
    %117 = vector.shape_cast %116 : vector<1x8x8x8xf32> to vector<8x8x8xf32>
    %118 = vector.shape_cast %115 : vector<8x8x8xf32> to vector<1x8x8x8xf32>
    tpu.vector_store %arg10[%c8_115, %c1_116, %c1_117, %c0_118], %118 {strides = array<i32>} : memref<9x10x10x8xf32, #tpu.memory_space<vmem>>, vector<1x8x8x8xf32>,
    %c8_119 = arith.constant 8 : index
    %c0_120 = arith.constant 0 : index
    %c0_121 = arith.constant 0 : index
    %c0_122 = arith.constant 0 : index
    %119 = vector.load %arg10[%c8_119, %c0_120, %c0_121, %c0_122] : memref<9x10x10x8xf32, #tpu.memory_space<vmem>>, vector<1x8x8x8xf32>
    %120 = vector.shape_cast %119 : vector<1x8x8x8xf32> to vector<8x8x8xf32>
    %121 = vector.shape_cast %120 : vector<8x8x8xf32> to vector<64x8xf32>
    %c0_123 = arith.constant 0 : index
    %c0_124 = arith.constant 0 : index
    %122 = vector.load %arg11[%c0_123, %c0_124] : memref<64x72xf32, #tpu.memory_space<vmem>>, vector<64x8xf32>
    tpu.vector_store %arg11[%c0_123, %c0_124], %121 {strides = array<i32>} : memref<64x72xf32, #tpu.memory_space<vmem>>, vector<64x8xf32>,
    %c6_125 = arith.constant 6 : index
    %c0_126 = arith.constant 0 : index
    %c1_127 = arith.constant 1 : index
    %c0_128 = arith.constant 0 : index
    %123 = vector.load %arg10[%c6_125, %c0_126, %c1_127, %c0_128] : memref<9x10x10x8xf32, #tpu.memory_space<vmem>>, vector<1x8x8x8xf32>
    %124 = vector.shape_cast %123 : vector<1x8x8x8xf32> to vector<8x8x8xf32>
    %125 = vector.shape_cast %124 : vector<8x8x8xf32> to vector<64x8xf32>
    %c0_129 = arith.constant 0 : index
    %c8_130 = arith.constant 8 : index
    %126 = vector.load %arg11[%c0_129, %c8_130] : memref<64x72xf32, #tpu.memory_space<vmem>>, vector<64x8xf32>
    tpu.vector_store %arg11[%c0_129, %c8_130], %125 {strides = array<i32>} : memref<64x72xf32, #tpu.memory_space<vmem>>, vector<64x8xf32>,
    %c7_131 = arith.constant 7 : index
    %c0_132 = arith.constant 0 : index
    %c1_133 = arith.constant 1 : index
    %c0_134 = arith.constant 0 : index
    %127 = vector.load %arg10[%c7_131, %c0_132, %c1_133, %c0_134] : memref<9x10x10x8xf32, #tpu.memory_space<vmem>>, vector<1x8x8x8xf32>
    %128 = vector.shape_cast %127 : vector<1x8x8x8xf32> to vector<8x8x8xf32>
    %129 = vector.shape_cast %128 : vector<8x8x8xf32> to vector<64x8xf32>
    %c0_135 = arith.constant 0 : index
    %c16_136 = arith.constant 16 : index
    %130 = vector.load %arg11[%c0_135, %c16_136] : memref<64x72xf32, #tpu.memory_space<vmem>>, vector<64x8xf32>
    tpu.vector_store %arg11[%c0_135, %c16_136], %129 {strides = array<i32>} : memref<64x72xf32, #tpu.memory_space<vmem>>, vector<64x8xf32>,
    %c2_137 = arith.constant 2 : index
    %c1_138 = arith.constant 1 : index
    %c0_139 = arith.constant 0 : index
    %c0_140 = arith.constant 0 : index
    %131 = vector.load %arg10[%c2_137, %c1_138, %c0_139, %c0_140] : memref<9x10x10x8xf32, #tpu.memory_space<vmem>>, vector<1x8x8x8xf32>
    %132 = vector.shape_cast %131 : vector<1x8x8x8xf32> to vector<8x8x8xf32>
    %133 = vector.shape_cast %132 : vector<8x8x8xf32> to vector<64x8xf32>
    %c0_141 = arith.constant 0 : index
    %c24_142 = arith.constant 24 : index
    %134 = vector.load %arg11[%c0_141, %c24_142] : memref<64x72xf32, #tpu.memory_space<vmem>>, vector<64x8xf32>
    tpu.vector_store %arg11[%c0_141, %c24_142], %133 {strides = array<i32>} : memref<64x72xf32, #tpu.memory_space<vmem>>, vector<64x8xf32>,
    %c0_143 = arith.constant 0 : index
    %c1_144 = arith.constant 1 : index
    %c1_145 = arith.constant 1 : index
    %c0_146 = arith.constant 0 : index
    %135 = vector.load %arg10[%c0_143, %c1_144, %c1_145, %c0_146] : memref<9x10x10x8xf32, #tpu.memory_space<vmem>>, vector<1x8x8x8xf32>
    %136 = vector.shape_cast %135 : vector<1x8x8x8xf32> to vector<8x8x8xf32>
    %137 = vector.shape_cast %136 : vector<8x8x8xf32> to vector<64x8xf32>
    %c0_147 = arith.constant 0 : index
    %c32_148 = arith.constant 32 : index
    %138 = vector.load %arg11[%c0_147, %c32_148] : memref<64x72xf32, #tpu.memory_space<vmem>>, vector<64x8xf32>
    tpu.vector_store %arg11[%c0_147, %c32_148], %137 {strides = array<i32>} : memref<64x72xf32, #tpu.memory_space<vmem>>, vector<64x8xf32>,
    %c1_149 = arith.constant 1 : index
    %c1_150 = arith.constant 1 : index
    %c1_151 = arith.constant 1 : index
    %c0_152 = arith.constant 0 : index
    %139 = vector.load %arg10[%c1_149, %c1_150, %c1_151, %c0_152] : memref<9x10x10x8xf32, #tpu.memory_space<vmem>>, vector<1x8x8x8xf32>
    %140 = vector.shape_cast %139 : vector<1x8x8x8xf32> to vector<8x8x8xf32>
    %141 = vector.shape_cast %140 : vector<8x8x8xf32> to vector<64x8xf32>
    %c0_153 = arith.constant 0 : index
    %c40_154 = arith.constant 40 : index
    %142 = vector.load %arg11[%c0_153, %c40_154] : memref<64x72xf32, #tpu.memory_space<vmem>>, vector<64x8xf32>
    tpu.vector_store %arg11[%c0_153, %c40_154], %141 {strides = array<i32>} : memref<64x72xf32, #tpu.memory_space<vmem>>, vector<64x8xf32>,
    %c5_155 = arith.constant 5 : index
    %c1_156 = arith.constant 1 : index
    %c0_157 = arith.constant 0 : index
    %c0_158 = arith.constant 0 : index
    %143 = vector.load %arg10[%c5_155, %c1_156, %c0_157, %c0_158] : memref<9x10x10x8xf32, #tpu.memory_space<vmem>>, vector<1x8x8x8xf32>
    %144 = vector.shape_cast %143 : vector<1x8x8x8xf32> to vector<8x8x8xf32>
    %145 = vector.shape_cast %144 : vector<8x8x8xf32> to vector<64x8xf32>
    %c0_159 = arith.constant 0 : index
    %c48_160 = arith.constant 48 : index
    %146 = vector.load %arg11[%c0_159, %c48_160] : memref<64x72xf32, #tpu.memory_space<vmem>>, vector<64x8xf32>
    tpu.vector_store %arg11[%c0_159, %c48_160], %145 {strides = array<i32>} : memref<64x72xf32, #tpu.memory_space<vmem>>, vector<64x8xf32>,
    %c3_161 = arith.constant 3 : index
    %c1_162 = arith.constant 1 : index
    %c1_163 = arith.constant 1 : index
    %c0_164 = arith.constant 0 : index
    %147 = vector.load %arg10[%c3_161, %c1_162, %c1_163, %c0_164] : memref<9x10x10x8xf32, #tpu.memory_space<vmem>>, vector<1x8x8x8xf32>
    %148 = vector.shape_cast %147 : vector<1x8x8x8xf32> to vector<8x8x8xf32>
    %149 = vector.shape_cast %148 : vector<8x8x8xf32> to vector<64x8xf32>
    %c0_165 = arith.constant 0 : index
    %c56_166 = arith.constant 56 : index
    %150 = vector.load %arg11[%c0_165, %c56_166] : memref<64x72xf32, #tpu.memory_space<vmem>>, vector<64x8xf32>
    tpu.vector_store %arg11[%c0_165, %c56_166], %149 {strides = array<i32>} : memref<64x72xf32, #tpu.memory_space<vmem>>, vector<64x8xf32>,
    %c4_167 = arith.constant 4 : index
    %c1_168 = arith.constant 1 : index
    %c1_169 = arith.constant 1 : index
    %c0_170 = arith.constant 0 : index
    %151 = vector.load %arg10[%c4_167, %c1_168, %c1_169, %c0_170] : memref<9x10x10x8xf32, #tpu.memory_space<vmem>>, vector<1x8x8x8xf32>
    %152 = vector.shape_cast %151 : vector<1x8x8x8xf32> to vector<8x8x8xf32>
    %153 = vector.shape_cast %152 : vector<8x8x8xf32> to vector<64x8xf32>
    %c0_171 = arith.constant 0 : index
    %c64_172 = arith.constant 64 : index
    %154 = vector.load %arg11[%c0_171, %c64_172] : memref<64x72xf32, #tpu.memory_space<vmem>>, vector<64x8xf32>
    tpu.vector_store %arg11[%c0_171, %c64_172], %153 {strides = array<i32>} : memref<64x72xf32, #tpu.memory_space<vmem>>, vector<64x8xf32>,
    %c0_173 = arith.constant 0 : index
    %c0_174 = arith.constant 0 : index
    %155 = vector.load %arg11[%c0_173, %c0_174] : memref<64x72xf32, #tpu.memory_space<vmem>>, vector<64x72xf32>
    %c0_175 = arith.constant 0 : index
    %c0_176 = arith.constant 0 : index
    %156 = vector.load %arg6[%c0_175, %c0_176] : memref<72x3xf32, #tpu.memory_space<vmem>>, vector<72x3xf32>
    %cst_177 = arith.constant dense<0.000000e+00> : vector<64x3xf32>
    %157 = tpu.matmul %155, %156, %cst_177 {dimension_numbers = #tpu.dot_dimension_numbers<[1], [0], [0], [1], [0, 0, 1, 1], [], []>} : vector<64x72xf32>, vector<72x3xf32>, vector<64x3xf32> -> vector<64x3xf32>
    %c0_178 = arith.constant 0 : index
    %c0_179 = arith.constant 0 : index
    %158 = vector.load %arg7[%c0_178, %c0_179] : memref<1x3xf32, #tpu.memory_space<vmem>>, vector<1x3xf32>
    %159 = vector.broadcast %158 : vector<1x3xf32> to vector<64x3xf32>
    %160 = arith.addf %157, %159 : vector<64x3xf32>
    %c0_180 = arith.constant 0 : index
    %c0_181 = arith.constant 0 : index
    %c0_182 = arith.constant 0 : index
    %c0_183 = arith.constant 0 : index
    %161 = vector.load %arg8[%c0_180, %c0_181, %c0_182, %c0_183] : memref<1x9x64x3xf32, #tpu.memory_space<vmem>>, vector<1x1x64x3xf32>
    %162 = vector.shape_cast %161 : vector<1x1x64x3xf32> to vector<64x3xf32>
    %163 = vector.shape_cast %160 : vector<64x3xf32> to vector<1x1x64x3xf32>
    tpu.vector_store %arg8[%c0_180, %c0_181, %c0_182, %c0_183], %163 {strides = array<i32>} : memref<1x9x64x3xf32, #tpu.memory_space<vmem>>, vector<1x1x64x3xf32>,
    %c6_184 = arith.constant 6 : index
    %c0_185 = arith.constant 0 : index
    %c1_186 = arith.constant 1 : index
    %c0_187 = arith.constant 0 : index
    %164 = vector.load %arg10[%c6_184, %c0_185, %c1_186, %c0_187] : memref<9x10x10x8xf32, #tpu.memory_space<vmem>>, vector<1x8x8x8xf32>
    %165 = vector.shape_cast %164 : vector<1x8x8x8xf32> to vector<8x8x8xf32>
    %166 = vector.shape_cast %165 : vector<8x8x8xf32> to vector<64x8xf32>
    %c0_188 = arith.constant 0 : index
    %c0_189 = arith.constant 0 : index
    %167 = vector.load %arg11[%c0_188, %c0_189] : memref<64x72xf32, #tpu.memory_space<vmem>>, vector<64x8xf32>
    tpu.vector_store %arg11[%c0_188, %c0_189], %166 {strides = array<i32>} : memref<64x72xf32, #tpu.memory_space<vmem>>, vector<64x8xf32>,
    %c7_190 = arith.constant 7 : index
    %c0_191 = arith.constant 0 : index
    %c1_192 = arith.constant 1 : index
    %c0_193 = arith.constant 0 : index
    %168 = vector.load %arg10[%c7_190, %c0_191, %c1_192, %c0_193] : memref<9x10x10x8xf32, #tpu.memory_space<vmem>>, vector<1x8x8x8xf32>
    %169 = vector.shape_cast %168 : vector<1x8x8x8xf32> to vector<8x8x8xf32>
    %170 = vector.shape_cast %169 : vector<8x8x8xf32> to vector<64x8xf32>
    %c0_194 = arith.constant 0 : index
    %c8_195 = arith.constant 8 : index
    %171 = vector.load %arg11[%c0_194, %c8_195] : memref<64x72xf32, #tpu.memory_space<vmem>>, vector<64x8xf32>
    tpu.vector_store %arg11[%c0_194, %c8_195], %170 {strides = array<i32>} : memref<64x72xf32, #tpu.memory_space<vmem>>, vector<64x8xf32>,
    %c8_196 = arith.constant 8 : index
    %c0_197 = arith.constant 0 : index
    %c1_198 = arith.constant 1 : index
    %c0_199 = arith.constant 0 : index
    %172 = vector.load %arg10[%c8_196, %c0_197, %c1_198, %c0_199] : memref<9x10x10x8xf32, #tpu.memory_space<vmem>>, vector<1x8x8x8xf32>
    %173 = vector.shape_cast %172 : vector<1x8x8x8xf32> to vector<8x8x8xf32>
    %174 = vector.shape_cast %173 : vector<8x8x8xf32> to vector<64x8xf32>
    %c0_200 = arith.constant 0 : index
    %c16_201 = arith.constant 16 : index
    %175 = vector.load %arg11[%c0_200, %c16_201] : memref<64x72xf32, #tpu.memory_space<vmem>>, vector<64x8xf32>
    tpu.vector_store %arg11[%c0_200, %c16_201], %174 {strides = array<i32>} : memref<64x72xf32, #tpu.memory_space<vmem>>, vector<64x8xf32>,
    %c0_202 = arith.constant 0 : index
    %c1_203 = arith.constant 1 : index
    %c1_204 = arith.constant 1 : index
    %c0_205 = arith.constant 0 : index
    %176 = vector.load %arg10[%c0_202, %c1_203, %c1_204, %c0_205] : memref<9x10x10x8xf32, #tpu.memory_space<vmem>>, vector<1x8x8x8xf32>
    %177 = vector.shape_cast %176 : vector<1x8x8x8xf32> to vector<8x8x8xf32>
    %178 = vector.shape_cast %177 : vector<8x8x8xf32> to vector<64x8xf32>
    %c0_206 = arith.constant 0 : index
    %c24_207 = arith.constant 24 : index
    %179 = vector.load %arg11[%c0_206, %c24_207] : memref<64x72xf32, #tpu.memory_space<vmem>>, vector<64x8xf32>
    tpu.vector_store %arg11[%c0_206, %c24_207], %178 {strides = array<i32>} : memref<64x72xf32, #tpu.memory_space<vmem>>, vector<64x8xf32>,
    %c1_208 = arith.constant 1 : index
    %c1_209 = arith.constant 1 : index
    %c1_210 = arith.constant 1 : index
    %c0_211 = arith.constant 0 : index
    %180 = vector.load %arg10[%c1_208, %c1_209, %c1_210, %c0_211] : memref<9x10x10x8xf32, #tpu.memory_space<vmem>>, vector<1x8x8x8xf32>
    %181 = vector.shape_cast %180 : vector<1x8x8x8xf32> to vector<8x8x8xf32>
    %182 = vector.shape_cast %181 : vector<8x8x8xf32> to vector<64x8xf32>
    %c0_212 = arith.constant 0 : index
    %c32_213 = arith.constant 32 : index
    %183 = vector.load %arg11[%c0_212, %c32_213] : memref<64x72xf32, #tpu.memory_space<vmem>>, vector<64x8xf32>
    tpu.vector_store %arg11[%c0_212, %c32_213], %182 {strides = array<i32>} : memref<64x72xf32, #tpu.memory_space<vmem>>, vector<64x8xf32>,
    %c2_214 = arith.constant 2 : index
    %c1_215 = arith.constant 1 : index
    %c1_216 = arith.constant 1 : index
    %c0_217 = arith.constant 0 : index
    %184 = vector.load %arg10[%c2_214, %c1_215, %c1_216, %c0_217] : memref<9x10x10x8xf32, #tpu.memory_space<vmem>>, vector<1x8x8x8xf32>
    %185 = vector.shape_cast %184 : vector<1x8x8x8xf32> to vector<8x8x8xf32>
    %186 = vector.shape_cast %185 : vector<8x8x8xf32> to vector<64x8xf32>
    %c0_218 = arith.constant 0 : index
    %c40_219 = arith.constant 40 : index
    %187 = vector.load %arg11[%c0_218, %c40_219] : memref<64x72xf32, #tpu.memory_space<vmem>>, vector<64x8xf32>
    tpu.vector_store %arg11[%c0_218, %c40_219], %186 {strides = array<i32>} : memref<64x72xf32, #tpu.memory_space<vmem>>, vector<64x8xf32>,
    %c3_220 = arith.constant 3 : index
    %c1_221 = arith.constant 1 : index
    %c1_222 = arith.constant 1 : index
    %c0_223 = arith.constant 0 : index
    %188 = vector.load %arg10[%c3_220, %c1_221, %c1_222, %c0_223] : memref<9x10x10x8xf32, #tpu.memory_space<vmem>>, vector<1x8x8x8xf32>
    %189 = vector.shape_cast %188 : vector<1x8x8x8xf32> to vector<8x8x8xf32>
    %190 = vector.shape_cast %189 : vector<8x8x8xf32> to vector<64x8xf32>
    %c0_224 = arith.constant 0 : index
    %c48_225 = arith.constant 48 : index
    %191 = vector.load %arg11[%c0_224, %c48_225] : memref<64x72xf32, #tpu.memory_space<vmem>>, vector<64x8xf32>
    tpu.vector_store %arg11[%c0_224, %c48_225], %190 {strides = array<i32>} : memref<64x72xf32, #tpu.memory_space<vmem>>, vector<64x8xf32>,
    %c4_226 = arith.constant 4 : index
    %c1_227 = arith.constant 1 : index
    %c1_228 = arith.constant 1 : index
    %c0_229 = arith.constant 0 : index
    %192 = vector.load %arg10[%c4_226, %c1_227, %c1_228, %c0_229] : memref<9x10x10x8xf32, #tpu.memory_space<vmem>>, vector<1x8x8x8xf32>
    %193 = vector.shape_cast %192 : vector<1x8x8x8xf32> to vector<8x8x8xf32>
    %194 = vector.shape_cast %193 : vector<8x8x8xf32> to vector<64x8xf32>
    %c0_230 = arith.constant 0 : index
    %c56_231 = arith.constant 56 : index
    %195 = vector.load %arg11[%c0_230, %c56_231] : memref<64x72xf32, #tpu.memory_space<vmem>>, vector<64x8xf32>
    tpu.vector_store %arg11[%c0_230, %c56_231], %194 {strides = array<i32>} : memref<64x72xf32, #tpu.memory_space<vmem>>, vector<64x8xf32>,
    %c5_232 = arith.constant 5 : index
    %c1_233 = arith.constant 1 : index
    %c1_234 = arith.constant 1 : index
    %c0_235 = arith.constant 0 : index
    %196 = vector.load %arg10[%c5_232, %c1_233, %c1_234, %c0_235] : memref<9x10x10x8xf32, #tpu.memory_space<vmem>>, vector<1x8x8x8xf32>
    %197 = vector.shape_cast %196 : vector<1x8x8x8xf32> to vector<8x8x8xf32>
    %198 = vector.shape_cast %197 : vector<8x8x8xf32> to vector<64x8xf32>
    %c0_236 = arith.constant 0 : index
    %c64_237 = arith.constant 64 : index
    %199 = vector.load %arg11[%c0_236, %c64_237] : memref<64x72xf32, #tpu.memory_space<vmem>>, vector<64x8xf32>
    tpu.vector_store %arg11[%c0_236, %c64_237], %198 {strides = array<i32>} : memref<64x72xf32, #tpu.memory_space<vmem>>, vector<64x8xf32>,
    %c0_238 = arith.constant 0 : index
    %c0_239 = arith.constant 0 : index
    %200 = vector.load %arg11[%c0_238, %c0_239] : memref<64x72xf32, #tpu.memory_space<vmem>>, vector<64x72xf32>
    %c0_240 = arith.constant 0 : index
    %c0_241 = arith.constant 0 : index
    %201 = vector.load %arg6[%c0_240, %c0_241] : memref<72x3xf32, #tpu.memory_space<vmem>>, vector<72x3xf32>
    %cst_242 = arith.constant dense<0.000000e+00> : vector<64x3xf32>
    %202 = tpu.matmul %200, %201, %cst_242 {dimension_numbers = #tpu.dot_dimension_numbers<[1], [0], [0], [1], [0, 0, 1, 1], [], []>} : vector<64x72xf32>, vector<72x3xf32>, vector<64x3xf32> -> vector<64x3xf32>
    %c0_243 = arith.constant 0 : index
    %c0_244 = arith.constant 0 : index
    %203 = vector.load %arg7[%c0_243, %c0_244] : memref<1x3xf32, #tpu.memory_space<vmem>>, vector<1x3xf32>
    %204 = vector.broadcast %203 : vector<1x3xf32> to vector<64x3xf32>
    %205 = arith.addf %202, %204 : vector<64x3xf32>
    %c0_245 = arith.constant 0 : index
    %c1_246 = arith.constant 1 : index
    %c0_247 = arith.constant 0 : index
    %c0_248 = arith.constant 0 : index
    %206 = vector.load %arg8[%c0_245, %c1_246, %c0_247, %c0_248] : memref<1x9x64x3xf32, #tpu.memory_space<vmem>>, vector<1x1x64x3xf32>
    %207 = vector.shape_cast %206 : vector<1x1x64x3xf32> to vector<64x3xf32>
    %208 = vector.shape_cast %205 : vector<64x3xf32> to vector<1x1x64x3xf32>
    tpu.vector_store %arg8[%c0_245, %c1_246, %c0_247, %c0_248], %208 {strides = array<i32>} : memref<1x9x64x3xf32, #tpu.memory_space<vmem>>, vector<1x1x64x3xf32>,
    %c7_249 = arith.constant 7 : index
    %c0_250 = arith.constant 0 : index
    %c1_251 = arith.constant 1 : index
    %c0_252 = arith.constant 0 : index
    %209 = vector.load %arg10[%c7_249, %c0_250, %c1_251, %c0_252] : memref<9x10x10x8xf32, #tpu.memory_space<vmem>>, vector<1x8x8x8xf32>
    %210 = vector.shape_cast %209 : vector<1x8x8x8xf32> to vector<8x8x8xf32>
    %211 = vector.shape_cast %210 : vector<8x8x8xf32> to vector<64x8xf32>
    %c0_253 = arith.constant 0 : index
    %c0_254 = arith.constant 0 : index
    %212 = vector.load %arg11[%c0_253, %c0_254] : memref<64x72xf32, #tpu.memory_space<vmem>>, vector<64x8xf32>
    tpu.vector_store %arg11[%c0_253, %c0_254], %211 {strides = array<i32>} : memref<64x72xf32, #tpu.memory_space<vmem>>, vector<64x8xf32>,
    %c8_255 = arith.constant 8 : index
    %c0_256 = arith.constant 0 : index
    %c1_257 = arith.constant 1 : index
    %c0_258 = arith.constant 0 : index
    %213 = vector.load %arg10[%c8_255, %c0_256, %c1_257, %c0_258] : memref<9x10x10x8xf32, #tpu.memory_space<vmem>>, vector<1x8x8x8xf32>
    %214 = vector.shape_cast %213 : vector<1x8x8x8xf32> to vector<8x8x8xf32>
    %215 = vector.shape_cast %214 : vector<8x8x8xf32> to vector<64x8xf32>
    %c0_259 = arith.constant 0 : index
    %c8_260 = arith.constant 8 : index
    %216 = vector.load %arg11[%c0_259, %c8_260] : memref<64x72xf32, #tpu.memory_space<vmem>>, vector<64x8xf32>
    tpu.vector_store %arg11[%c0_259, %c8_260], %215 {strides = array<i32>} : memref<64x72xf32, #tpu.memory_space<vmem>>, vector<64x8xf32>,
    %c6_261 = arith.constant 6 : index
    %c0_262 = arith.constant 0 : index
    %c2_263 = arith.constant 2 : index
    %c0_264 = arith.constant 0 : index
    %217 = vector.load %arg10[%c6_261, %c0_262, %c2_263, %c0_264] : memref<9x10x10x8xf32, #tpu.memory_space<vmem>>, vector<1x8x8x8xf32>
    %218 = vector.shape_cast %217 : vector<1x8x8x8xf32> to vector<8x8x8xf32>
    %219 = vector.shape_cast %218 : vector<8x8x8xf32> to vector<64x8xf32>
    %c0_265 = arith.constant 0 : index
    %c16_266 = arith.constant 16 : index
    %220 = vector.load %arg11[%c0_265, %c16_266] : memref<64x72xf32, #tpu.memory_space<vmem>>, vector<64x8xf32>
    tpu.vector_store %arg11[%c0_265, %c16_266], %219 {strides = array<i32>} : memref<64x72xf32, #tpu.memory_space<vmem>>, vector<64x8xf32>,
    %c1_267 = arith.constant 1 : index
    %c1_268 = arith.constant 1 : index
    %c1_269 = arith.constant 1 : index
    %c0_270 = arith.constant 0 : index
    %221 = vector.load %arg10[%c1_267, %c1_268, %c1_269, %c0_270] : memref<9x10x10x8xf32, #tpu.memory_space<vmem>>, vector<1x8x8x8xf32>
    %222 = vector.shape_cast %221 : vector<1x8x8x8xf32> to vector<8x8x8xf32>
    %223 = vector.shape_cast %222 : vector<8x8x8xf32> to vector<64x8xf32>
    %c0_271 = arith.constant 0 : index
    %c24_272 = arith.constant 24 : index
    %224 = vector.load %arg11[%c0_271, %c24_272] : memref<64x72xf32, #tpu.memory_space<vmem>>, vector<64x8xf32>
    tpu.vector_store %arg11[%c0_271, %c24_272], %223 {strides = array<i32>} : memref<64x72xf32, #tpu.memory_space<vmem>>, vector<64x8xf32>,
    %c2_273 = arith.constant 2 : index
    %c1_274 = arith.constant 1 : index
    %c1_275 = arith.constant 1 : index
    %c0_276 = arith.constant 0 : index
    %225 = vector.load %arg10[%c2_273, %c1_274, %c1_275, %c0_276] : memref<9x10x10x8xf32, #tpu.memory_space<vmem>>, vector<1x8x8x8xf32>
    %226 = vector.shape_cast %225 : vector<1x8x8x8xf32> to vector<8x8x8xf32>
    %227 = vector.shape_cast %226 : vector<8x8x8xf32> to vector<64x8xf32>
    %c0_277 = arith.constant 0 : index
    %c32_278 = arith.constant 32 : index
    %228 = vector.load %arg11[%c0_277, %c32_278] : memref<64x72xf32, #tpu.memory_space<vmem>>, vector<64x8xf32>
    tpu.vector_store %arg11[%c0_277, %c32_278], %227 {strides = array<i32>} : memref<64x72xf32, #tpu.memory_space<vmem>>, vector<64x8xf32>,
    %c0_279 = arith.constant 0 : index
    %c1_280 = arith.constant 1 : index
    %c2_281 = arith.constant 2 : index
    %c0_282 = arith.constant 0 : index
    %229 = vector.load %arg10[%c0_279, %c1_280, %c2_281, %c0_282] : memref<9x10x10x8xf32, #tpu.memory_space<vmem>>, vector<1x8x8x8xf32>
    %230 = vector.shape_cast %229 : vector<1x8x8x8xf32> to vector<8x8x8xf32>
    %231 = vector.shape_cast %230 : vector<8x8x8xf32> to vector<64x8xf32>
    %c0_283 = arith.constant 0 : index
    %c40_284 = arith.constant 40 : index
    %232 = vector.load %arg11[%c0_283, %c40_284] : memref<64x72xf32, #tpu.memory_space<vmem>>, vector<64x8xf32>
    tpu.vector_store %arg11[%c0_283, %c40_284], %231 {strides = array<i32>} : memref<64x72xf32, #tpu.memory_space<vmem>>, vector<64x8xf32>,
    %c4_285 = arith.constant 4 : index
    %c1_286 = arith.constant 1 : index
    %c1_287 = arith.constant 1 : index
    %c0_288 = arith.constant 0 : index
    %233 = vector.load %arg10[%c4_285, %c1_286, %c1_287, %c0_288] : memref<9x10x10x8xf32, #tpu.memory_space<vmem>>, vector<1x8x8x8xf32>
    %234 = vector.shape_cast %233 : vector<1x8x8x8xf32> to vector<8x8x8xf32>
    %235 = vector.shape_cast %234 : vector<8x8x8xf32> to vector<64x8xf32>
    %c0_289 = arith.constant 0 : index
    %c48_290 = arith.constant 48 : index
    %236 = vector.load %arg11[%c0_289, %c48_290] : memref<64x72xf32, #tpu.memory_space<vmem>>, vector<64x8xf32>
    tpu.vector_store %arg11[%c0_289, %c48_290], %235 {strides = array<i32>} : memref<64x72xf32, #tpu.memory_space<vmem>>, vector<64x8xf32>,
    %c5_291 = arith.constant 5 : index
    %c1_292 = arith.constant 1 : index
    %c1_293 = arith.constant 1 : index
    %c0_294 = arith.constant 0 : index
    %237 = vector.load %arg10[%c5_291, %c1_292, %c1_293, %c0_294] : memref<9x10x10x8xf32, #tpu.memory_space<vmem>>, vector<1x8x8x8xf32>
    %238 = vector.shape_cast %237 : vector<1x8x8x8xf32> to vector<8x8x8xf32>
    %239 = vector.shape_cast %238 : vector<8x8x8xf32> to vector<64x8xf32>
    %c0_295 = arith.constant 0 : index
    %c56_296 = arith.constant 56 : index
    %240 = vector.load %arg11[%c0_295, %c56_296] : memref<64x72xf32, #tpu.memory_space<vmem>>, vector<64x8xf32>
    tpu.vector_store %arg11[%c0_295, %c56_296], %239 {strides = array<i32>} : memref<64x72xf32, #tpu.memory_space<vmem>>, vector<64x8xf32>,
    %c3_297 = arith.constant 3 : index
    %c1_298 = arith.constant 1 : index
    %c2_299 = arith.constant 2 : index
    %c0_300 = arith.constant 0 : index
    %241 = vector.load %arg10[%c3_297, %c1_298, %c2_299, %c0_300] : memref<9x10x10x8xf32, #tpu.memory_space<vmem>>, vector<1x8x8x8xf32>
    %242 = vector.shape_cast %241 : vector<1x8x8x8xf32> to vector<8x8x8xf32>
    %243 = vector.shape_cast %242 : vector<8x8x8xf32> to vector<64x8xf32>
    %c0_301 = arith.constant 0 : index
    %c64_302 = arith.constant 64 : index
    %244 = vector.load %arg11[%c0_301, %c64_302] : memref<64x72xf32, #tpu.memory_space<vmem>>, vector<64x8xf32>
    tpu.vector_store %arg11[%c0_301, %c64_302], %243 {strides = array<i32>} : memref<64x72xf32, #tpu.memory_space<vmem>>, vector<64x8xf32>,
    %c0_303 = arith.constant 0 : index
    %c0_304 = arith.constant 0 : index
    %245 = vector.load %arg11[%c0_303, %c0_304] : memref<64x72xf32, #tpu.memory_space<vmem>>, vector<64x72xf32>
    %c0_305 = arith.constant 0 : index
    %c0_306 = arith.constant 0 : index
    %246 = vector.load %arg6[%c0_305, %c0_306] : memref<72x3xf32, #tpu.memory_space<vmem>>, vector<72x3xf32>
    %cst_307 = arith.constant dense<0.000000e+00> : vector<64x3xf32>
    %247 = tpu.matmul %245, %246, %cst_307 {dimension_numbers = #tpu.dot_dimension_numbers<[1], [0], [0], [1], [0, 0, 1, 1], [], []>} : vector<64x72xf32>, vector<72x3xf32>, vector<64x3xf32> -> vector<64x3xf32>
    %c0_308 = arith.constant 0 : index
    %c0_309 = arith.constant 0 : index
    %248 = vector.load %arg7[%c0_308, %c0_309] : memref<1x3xf32, #tpu.memory_space<vmem>>, vector<1x3xf32>
    %249 = vector.broadcast %248 : vector<1x3xf32> to vector<64x3xf32>
    %250 = arith.addf %247, %249 : vector<64x3xf32>
    %c0_310 = arith.constant 0 : index
    %c2_311 = arith.constant 2 : index
    %c0_312 = arith.constant 0 : index
    %c0_313 = arith.constant 0 : index
    %251 = vector.load %arg8[%c0_310, %c2_311, %c0_312, %c0_313] : memref<1x9x64x3xf32, #tpu.memory_space<vmem>>, vector<1x1x64x3xf32>
    %252 = vector.shape_cast %251 : vector<1x1x64x3xf32> to vector<64x3xf32>
    %253 = vector.shape_cast %250 : vector<64x3xf32> to vector<1x1x64x3xf32>
    tpu.vector_store %arg8[%c0_310, %c2_311, %c0_312, %c0_313], %253 {strides = array<i32>} : memref<1x9x64x3xf32, #tpu.memory_space<vmem>>, vector<1x1x64x3xf32>,
    %c2_314 = arith.constant 2 : index
    %c1_315 = arith.constant 1 : index
    %c0_316 = arith.constant 0 : index
    %c0_317 = arith.constant 0 : index
    %254 = vector.load %arg10[%c2_314, %c1_315, %c0_316, %c0_317] : memref<9x10x10x8xf32, #tpu.memory_space<vmem>>, vector<1x8x8x8xf32>
    %255 = vector.shape_cast %254 : vector<1x8x8x8xf32> to vector<8x8x8xf32>
    %256 = vector.shape_cast %255 : vector<8x8x8xf32> to vector<64x8xf32>
    %c0_318 = arith.constant 0 : index
    %c0_319 = arith.constant 0 : index
    %257 = vector.load %arg11[%c0_318, %c0_319] : memref<64x72xf32, #tpu.memory_space<vmem>>, vector<64x8xf32>
    tpu.vector_store %arg11[%c0_318, %c0_319], %256 {strides = array<i32>} : memref<64x72xf32, #tpu.memory_space<vmem>>, vector<64x8xf32>,
    %c0_320 = arith.constant 0 : index
    %c1_321 = arith.constant 1 : index
    %c1_322 = arith.constant 1 : index
    %c0_323 = arith.constant 0 : index
    %258 = vector.load %arg10[%c0_320, %c1_321, %c1_322, %c0_323] : memref<9x10x10x8xf32, #tpu.memory_space<vmem>>, vector<1x8x8x8xf32>
    %259 = vector.shape_cast %258 : vector<1x8x8x8xf32> to vector<8x8x8xf32>
    %260 = vector.shape_cast %259 : vector<8x8x8xf32> to vector<64x8xf32>
    %c0_324 = arith.constant 0 : index
    %c8_325 = arith.constant 8 : index
    %261 = vector.load %arg11[%c0_324, %c8_325] : memref<64x72xf32, #tpu.memory_space<vmem>>, vector<64x8xf32>
    tpu.vector_store %arg11[%c0_324, %c8_325], %260 {strides = array<i32>} : memref<64x72xf32, #tpu.memory_space<vmem>>, vector<64x8xf32>,
    %c1_326 = arith.constant 1 : index
    %c1_327 = arith.constant 1 : index
    %c1_328 = arith.constant 1 : index
    %c0_329 = arith.constant 0 : index
    %262 = vector.load %arg10[%c1_326, %c1_327, %c1_328, %c0_329] : memref<9x10x10x8xf32, #tpu.memory_space<vmem>>, vector<1x8x8x8xf32>
    %263 = vector.shape_cast %262 : vector<1x8x8x8xf32> to vector<8x8x8xf32>
    %264 = vector.shape_cast %263 : vector<8x8x8xf32> to vector<64x8xf32>
    %c0_330 = arith.constant 0 : index
    %c16_331 = arith.constant 16 : index
    %265 = vector.load %arg11[%c0_330, %c16_331] : memref<64x72xf32, #tpu.memory_space<vmem>>, vector<64x8xf32>
    tpu.vector_store %arg11[%c0_330, %c16_331], %264 {strides = array<i32>} : memref<64x72xf32, #tpu.memory_space<vmem>>, vector<64x8xf32>,
    %c5_332 = arith.constant 5 : index
    %c1_333 = arith.constant 1 : index
    %c0_334 = arith.constant 0 : index
    %c0_335 = arith.constant 0 : index
    %266 = vector.load %arg10[%c5_332, %c1_333, %c0_334, %c0_335] : memref<9x10x10x8xf32, #tpu.memory_space<vmem>>, vector<1x8x8x8xf32>
    %267 = vector.shape_cast %266 : vector<1x8x8x8xf32> to vector<8x8x8xf32>
    %268 = vector.shape_cast %267 : vector<8x8x8xf32> to vector<64x8xf32>
    %c0_336 = arith.constant 0 : index
    %c24_337 = arith.constant 24 : index
    %269 = vector.load %arg11[%c0_336, %c24_337] : memref<64x72xf32, #tpu.memory_space<vmem>>, vector<64x8xf32>
    tpu.vector_store %arg11[%c0_336, %c24_337], %268 {strides = array<i32>} : memref<64x72xf32, #tpu.memory_space<vmem>>, vector<64x8xf32>,
    %c3_338 = arith.constant 3 : index
    %c1_339 = arith.constant 1 : index
    %c1_340 = arith.constant 1 : index
    %c0_341 = arith.constant 0 : index
    %270 = vector.load %arg10[%c3_338, %c1_339, %c1_340, %c0_341] : memref<9x10x10x8xf32, #tpu.memory_space<vmem>>, vector<1x8x8x8xf32>
    %271 = vector.shape_cast %270 : vector<1x8x8x8xf32> to vector<8x8x8xf32>
    %272 = vector.shape_cast %271 : vector<8x8x8xf32> to vector<64x8xf32>
    %c0_342 = arith.constant 0 : index
    %c32_343 = arith.constant 32 : index
    %273 = vector.load %arg11[%c0_342, %c32_343] : memref<64x72xf32, #tpu.memory_space<vmem>>, vector<64x8xf32>
    tpu.vector_store %arg11[%c0_342, %c32_343], %272 {strides = array<i32>} : memref<64x72xf32, #tpu.memory_space<vmem>>, vector<64x8xf32>,
    %c4_344 = arith.constant 4 : index
    %c1_345 = arith.constant 1 : index
    %c1_346 = arith.constant 1 : index
    %c0_347 = arith.constant 0 : index
    %274 = vector.load %arg10[%c4_344, %c1_345, %c1_346, %c0_347] : memref<9x10x10x8xf32, #tpu.memory_space<vmem>>, vector<1x8x8x8xf32>
    %275 = vector.shape_cast %274 : vector<1x8x8x8xf32> to vector<8x8x8xf32>
    %276 = vector.shape_cast %275 : vector<8x8x8xf32> to vector<64x8xf32>
    %c0_348 = arith.constant 0 : index
    %c40_349 = arith.constant 40 : index
    %277 = vector.load %arg11[%c0_348, %c40_349] : memref<64x72xf32, #tpu.memory_space<vmem>>, vector<64x8xf32>
    tpu.vector_store %arg11[%c0_348, %c40_349], %276 {strides = array<i32>} : memref<64x72xf32, #tpu.memory_space<vmem>>, vector<64x8xf32>,
    %c8_350 = arith.constant 8 : index
    %c1_351 = arith.constant 1 : index
    %c0_352 = arith.constant 0 : index
    %c0_353 = arith.constant 0 : index
    %278 = vector.load %arg10[%c8_350, %c1_351, %c0_352, %c0_353] : memref<9x10x10x8xf32, #tpu.memory_space<vmem>>, vector<1x8x8x8xf32>
    %279 = vector.shape_cast %278 : vector<1x8x8x8xf32> to vector<8x8x8xf32>
    %280 = vector.shape_cast %279 : vector<8x8x8xf32> to vector<64x8xf32>
    %c0_354 = arith.constant 0 : index
    %c48_355 = arith.constant 48 : index
    %281 = vector.load %arg11[%c0_354, %c48_355] : memref<64x72xf32, #tpu.memory_space<vmem>>, vector<64x8xf32>
    tpu.vector_store %arg11[%c0_354, %c48_355], %280 {strides = array<i32>} : memref<64x72xf32, #tpu.memory_space<vmem>>, vector<64x8xf32>,
    %c6_356 = arith.constant 6 : index
    %c1_357 = arith.constant 1 : index
    %c1_358 = arith.constant 1 : index
    %c0_359 = arith.constant 0 : index
    %282 = vector.load %arg10[%c6_356, %c1_357, %c1_358, %c0_359] : memref<9x10x10x8xf32, #tpu.memory_space<vmem>>, vector<1x8x8x8xf32>
    %283 = vector.shape_cast %282 : vector<1x8x8x8xf32> to vector<8x8x8xf32>
    %284 = vector.shape_cast %283 : vector<8x8x8xf32> to vector<64x8xf32>
    %c0_360 = arith.constant 0 : index
    %c56_361 = arith.constant 56 : index
    %285 = vector.load %arg11[%c0_360, %c56_361] : memref<64x72xf32, #tpu.memory_space<vmem>>, vector<64x8xf32>
    tpu.vector_store %arg11[%c0_360, %c56_361], %284 {strides = array<i32>} : memref<64x72xf32, #tpu.memory_space<vmem>>, vector<64x8xf32>,
    %c7_362 = arith.constant 7 : index
    %c1_363 = arith.constant 1 : index
    %c1_364 = arith.constant 1 : index
    %c0_365 = arith.constant 0 : index
    %286 = vector.load %arg10[%c7_362, %c1_363, %c1_364, %c0_365] : memref<9x10x10x8xf32, #tpu.memory_space<vmem>>, vector<1x8x8x8xf32>
    %287 = vector.shape_cast %286 : vector<1x8x8x8xf32> to vector<8x8x8xf32>
    %288 = vector.shape_cast %287 : vector<8x8x8xf32> to vector<64x8xf32>
    %c0_366 = arith.constant 0 : index
    %c64_367 = arith.constant 64 : index
    %289 = vector.load %arg11[%c0_366, %c64_367] : memref<64x72xf32, #tpu.memory_space<vmem>>, vector<64x8xf32>
    tpu.vector_store %arg11[%c0_366, %c64_367], %288 {strides = array<i32>} : memref<64x72xf32, #tpu.memory_space<vmem>>, vector<64x8xf32>,
    %c0_368 = arith.constant 0 : index
    %c0_369 = arith.constant 0 : index
    %290 = vector.load %arg11[%c0_368, %c0_369] : memref<64x72xf32, #tpu.memory_space<vmem>>, vector<64x72xf32>
    %c0_370 = arith.constant 0 : index
    %c0_371 = arith.constant 0 : index
    %291 = vector.load %arg6[%c0_370, %c0_371] : memref<72x3xf32, #tpu.memory_space<vmem>>, vector<72x3xf32>
    %cst_372 = arith.constant dense<0.000000e+00> : vector<64x3xf32>
    %292 = tpu.matmul %290, %291, %cst_372 {dimension_numbers = #tpu.dot_dimension_numbers<[1], [0], [0], [1], [0, 0, 1, 1], [], []>} : vector<64x72xf32>, vector<72x3xf32>, vector<64x3xf32> -> vector<64x3xf32>
    %c0_373 = arith.constant 0 : index
    %c0_374 = arith.constant 0 : index
    %293 = vector.load %arg7[%c0_373, %c0_374] : memref<1x3xf32, #tpu.memory_space<vmem>>, vector<1x3xf32>
    %294 = vector.broadcast %293 : vector<1x3xf32> to vector<64x3xf32>
    %295 = arith.addf %292, %294 : vector<64x3xf32>
    %c0_375 = arith.constant 0 : index
    %c3_376 = arith.constant 3 : index
    %c0_377 = arith.constant 0 : index
    %c0_378 = arith.constant 0 : index
    %296 = vector.load %arg8[%c0_375, %c3_376, %c0_377, %c0_378] : memref<1x9x64x3xf32, #tpu.memory_space<vmem>>, vector<1x1x64x3xf32>
    %297 = vector.shape_cast %296 : vector<1x1x64x3xf32> to vector<64x3xf32>
    %298 = vector.shape_cast %295 : vector<64x3xf32> to vector<1x1x64x3xf32>
    tpu.vector_store %arg8[%c0_375, %c3_376, %c0_377, %c0_378], %298 {strides = array<i32>} : memref<1x9x64x3xf32, #tpu.memory_space<vmem>>, vector<1x1x64x3xf32>,
    %c0_379 = arith.constant 0 : index
    %c1_380 = arith.constant 1 : index
    %c1_381 = arith.constant 1 : index
    %c0_382 = arith.constant 0 : index
    %299 = vector.load %arg10[%c0_379, %c1_380, %c1_381, %c0_382] : memref<9x10x10x8xf32, #tpu.memory_space<vmem>>, vector<1x8x8x8xf32>
    %300 = vector.shape_cast %299 : vector<1x8x8x8xf32> to vector<8x8x8xf32>
    %301 = vector.shape_cast %300 : vector<8x8x8xf32> to vector<64x8xf32>
    %c0_383 = arith.constant 0 : index
    %c0_384 = arith.constant 0 : index
    %302 = vector.load %arg11[%c0_383, %c0_384] : memref<64x72xf32, #tpu.memory_space<vmem>>, vector<64x8xf32>
    tpu.vector_store %arg11[%c0_383, %c0_384], %301 {strides = array<i32>} : memref<64x72xf32, #tpu.memory_space<vmem>>, vector<64x8xf32>,
    %c1_385 = arith.constant 1 : index
    %c1_386 = arith.constant 1 : index
    %c1_387 = arith.constant 1 : index
    %c0_388 = arith.constant 0 : index
    %303 = vector.load %arg10[%c1_385, %c1_386, %c1_387, %c0_388] : memref<9x10x10x8xf32, #tpu.memory_space<vmem>>, vector<1x8x8x8xf32>
    %304 = vector.shape_cast %303 : vector<1x8x8x8xf32> to vector<8x8x8xf32>
    %305 = vector.shape_cast %304 : vector<8x8x8xf32> to vector<64x8xf32>
    %c0_389 = arith.constant 0 : index
    %c8_390 = arith.constant 8 : index
    %306 = vector.load %arg11[%c0_389, %c8_390] : memref<64x72xf32, #tpu.memory_space<vmem>>, vector<64x8xf32>
    tpu.vector_store %arg11[%c0_389, %c8_390], %305 {strides = array<i32>} : memref<64x72xf32, #tpu.memory_space<vmem>>, vector<64x8xf32>,
    %c2_391 = arith.constant 2 : index
    %c1_392 = arith.constant 1 : index
    %c1_393 = arith.constant 1 : index
    %c0_394 = arith.constant 0 : index
    %307 = vector.load %arg10[%c2_391, %c1_392, %c1_393, %c0_394] : memref<9x10x10x8xf32, #tpu.memory_space<vmem>>, vector<1x8x8x8xf32>
    %308 = vector.shape_cast %307 : vector<1x8x8x8xf32> to vector<8x8x8xf32>
    %309 = vector.shape_cast %308 : vector<8x8x8xf32> to vector<64x8xf32>
    %c0_395 = arith.constant 0 : index
    %c16_396 = arith.constant 16 : index
    %310 = vector.load %arg11[%c0_395, %c16_396] : memref<64x72xf32, #tpu.memory_space<vmem>>, vector<64x8xf32>
    tpu.vector_store %arg11[%c0_395, %c16_396], %309 {strides = array<i32>} : memref<64x72xf32, #tpu.memory_space<vmem>>, vector<64x8xf32>,
    %c3_397 = arith.constant 3 : index
    %c1_398 = arith.constant 1 : index
    %c1_399 = arith.constant 1 : index
    %c0_400 = arith.constant 0 : index
    %311 = vector.load %arg10[%c3_397, %c1_398, %c1_399, %c0_400] : memref<9x10x10x8xf32, #tpu.memory_space<vmem>>, vector<1x8x8x8xf32>
    %312 = vector.shape_cast %311 : vector<1x8x8x8xf32> to vector<8x8x8xf32>
    %313 = vector.shape_cast %312 : vector<8x8x8xf32> to vector<64x8xf32>
    %c0_401 = arith.constant 0 : index
    %c24_402 = arith.constant 24 : index
    %314 = vector.load %arg11[%c0_401, %c24_402] : memref<64x72xf32, #tpu.memory_space<vmem>>, vector<64x8xf32>
    tpu.vector_store %arg11[%c0_401, %c24_402], %313 {strides = array<i32>} : memref<64x72xf32, #tpu.memory_space<vmem>>, vector<64x8xf32>,
    %c4_403 = arith.constant 4 : index
    %c1_404 = arith.constant 1 : index
    %c1_405 = arith.constant 1 : index
    %c0_406 = arith.constant 0 : index
    %315 = vector.load %arg10[%c4_403, %c1_404, %c1_405, %c0_406] : memref<9x10x10x8xf32, #tpu.memory_space<vmem>>, vector<1x8x8x8xf32>
    %316 = vector.shape_cast %315 : vector<1x8x8x8xf32> to vector<8x8x8xf32>
    %317 = vector.shape_cast %316 : vector<8x8x8xf32> to vector<64x8xf32>
    %c0_407 = arith.constant 0 : index
    %c32_408 = arith.constant 32 : index
    %318 = vector.load %arg11[%c0_407, %c32_408] : memref<64x72xf32, #tpu.memory_space<vmem>>, vector<64x8xf32>
    tpu.vector_store %arg11[%c0_407, %c32_408], %317 {strides = array<i32>} : memref<64x72xf32, #tpu.memory_space<vmem>>, vector<64x8xf32>,
    %c5_409 = arith.constant 5 : index
    %c1_410 = arith.constant 1 : index
    %c1_411 = arith.constant 1 : index
    %c0_412 = arith.constant 0 : index
    %319 = vector.load %arg10[%c5_409, %c1_410, %c1_411, %c0_412] : memref<9x10x10x8xf32, #tpu.memory_space<vmem>>, vector<1x8x8x8xf32>
    %320 = vector.shape_cast %319 : vector<1x8x8x8xf32> to vector<8x8x8xf32>
    %321 = vector.shape_cast %320 : vector<8x8x8xf32> to vector<64x8xf32>
    %c0_413 = arith.constant 0 : index
    %c40_414 = arith.constant 40 : index
    %322 = vector.load %arg11[%c0_413, %c40_414] : memref<64x72xf32, #tpu.memory_space<vmem>>, vector<64x8xf32>
    tpu.vector_store %arg11[%c0_413, %c40_414], %321 {strides = array<i32>} : memref<64x72xf32, #tpu.memory_space<vmem>>, vector<64x8xf32>,
    %c6_415 = arith.constant 6 : index
    %c1_416 = arith.constant 1 : index
    %c1_417 = arith.constant 1 : index
    %c0_418 = arith.constant 0 : index
    %323 = vector.load %arg10[%c6_415, %c1_416, %c1_417, %c0_418] : memref<9x10x10x8xf32, #tpu.memory_space<vmem>>, vector<1x8x8x8xf32>
    %324 = vector.shape_cast %323 : vector<1x8x8x8xf32> to vector<8x8x8xf32>
    %325 = vector.shape_cast %324 : vector<8x8x8xf32> to vector<64x8xf32>
    %c0_419 = arith.constant 0 : index
    %c48_420 = arith.constant 48 : index
    %326 = vector.load %arg11[%c0_419, %c48_420] : memref<64x72xf32, #tpu.memory_space<vmem>>, vector<64x8xf32>
    tpu.vector_store %arg11[%c0_419, %c48_420], %325 {strides = array<i32>} : memref<64x72xf32, #tpu.memory_space<vmem>>, vector<64x8xf32>,
    %c7_421 = arith.constant 7 : index
    %c1_422 = arith.constant 1 : index
    %c1_423 = arith.constant 1 : index
    %c0_424 = arith.constant 0 : index
    %327 = vector.load %arg10[%c7_421, %c1_422, %c1_423, %c0_424] : memref<9x10x10x8xf32, #tpu.memory_space<vmem>>, vector<1x8x8x8xf32>
    %328 = vector.shape_cast %327 : vector<1x8x8x8xf32> to vector<8x8x8xf32>
    %329 = vector.shape_cast %328 : vector<8x8x8xf32> to vector<64x8xf32>
    %c0_425 = arith.constant 0 : index
    %c56_426 = arith.constant 56 : index
    %330 = vector.load %arg11[%c0_425, %c56_426] : memref<64x72xf32, #tpu.memory_space<vmem>>, vector<64x8xf32>
    tpu.vector_store %arg11[%c0_425, %c56_426], %329 {strides = array<i32>} : memref<64x72xf32, #tpu.memory_space<vmem>>, vector<64x8xf32>,
    %c8_427 = arith.constant 8 : index
    %c1_428 = arith.constant 1 : index
    %c1_429 = arith.constant 1 : index
    %c0_430 = arith.constant 0 : index
    %331 = vector.load %arg10[%c8_427, %c1_428, %c1_429, %c0_430] : memref<9x10x10x8xf32, #tpu.memory_space<vmem>>, vector<1x8x8x8xf32>
    %332 = vector.shape_cast %331 : vector<1x8x8x8xf32> to vector<8x8x8xf32>
    %333 = vector.shape_cast %332 : vector<8x8x8xf32> to vector<64x8xf32>
    %c0_431 = arith.constant 0 : index
    %c64_432 = arith.constant 64 : index
    %334 = vector.load %arg11[%c0_431, %c64_432] : memref<64x72xf32, #tpu.memory_space<vmem>>, vector<64x8xf32>
    tpu.vector_store %arg11[%c0_431, %c64_432], %333 {strides = array<i32>} : memref<64x72xf32, #tpu.memory_space<vmem>>, vector<64x8xf32>,
    %c0_433 = arith.constant 0 : index
    %c0_434 = arith.constant 0 : index
    %335 = vector.load %arg11[%c0_433, %c0_434] : memref<64x72xf32, #tpu.memory_space<vmem>>, vector<64x72xf32>
    %c0_435 = arith.constant 0 : index
    %c0_436 = arith.constant 0 : index
    %336 = vector.load %arg6[%c0_435, %c0_436] : memref<72x3xf32, #tpu.memory_space<vmem>>, vector<72x3xf32>
    %cst_437 = arith.constant dense<0.000000e+00> : vector<64x3xf32>
    %337 = tpu.matmul %335, %336, %cst_437 {dimension_numbers = #tpu.dot_dimension_numbers<[1], [0], [0], [1], [0, 0, 1, 1], [], []>} : vector<64x72xf32>, vector<72x3xf32>, vector<64x3xf32> -> vector<64x3xf32>
    %c0_438 = arith.constant 0 : index
    %c0_439 = arith.constant 0 : index
    %338 = vector.load %arg7[%c0_438, %c0_439] : memref<1x3xf32, #tpu.memory_space<vmem>>, vector<1x3xf32>
    %339 = vector.broadcast %338 : vector<1x3xf32> to vector<64x3xf32>
    %340 = arith.addf %337, %339 : vector<64x3xf32>
    %c0_440 = arith.constant 0 : index
    %c4_441 = arith.constant 4 : index
    %c0_442 = arith.constant 0 : index
    %c0_443 = arith.constant 0 : index
    %341 = vector.load %arg8[%c0_440, %c4_441, %c0_442, %c0_443] : memref<1x9x64x3xf32, #tpu.memory_space<vmem>>, vector<1x1x64x3xf32>
    %342 = vector.shape_cast %341 : vector<1x1x64x3xf32> to vector<64x3xf32>
    %343 = vector.shape_cast %340 : vector<64x3xf32> to vector<1x1x64x3xf32>
    tpu.vector_store %arg8[%c0_440, %c4_441, %c0_442, %c0_443], %343 {strides = array<i32>} : memref<1x9x64x3xf32, #tpu.memory_space<vmem>>, vector<1x1x64x3xf32>,
    %c1_444 = arith.constant 1 : index
    %c1_445 = arith.constant 1 : index
    %c1_446 = arith.constant 1 : index
    %c0_447 = arith.constant 0 : index
    %344 = vector.load %arg10[%c1_444, %c1_445, %c1_446, %c0_447] : memref<9x10x10x8xf32, #tpu.memory_space<vmem>>, vector<1x8x8x8xf32>
    %345 = vector.shape_cast %344 : vector<1x8x8x8xf32> to vector<8x8x8xf32>
    %346 = vector.shape_cast %345 : vector<8x8x8xf32> to vector<64x8xf32>
    %c0_448 = arith.constant 0 : index
    %c0_449 = arith.constant 0 : index
    %347 = vector.load %arg11[%c0_448, %c0_449] : memref<64x72xf32, #tpu.memory_space<vmem>>, vector<64x8xf32>
    tpu.vector_store %arg11[%c0_448, %c0_449], %346 {strides = array<i32>} : memref<64x72xf32, #tpu.memory_space<vmem>>, vector<64x8xf32>,
    %c2_450 = arith.constant 2 : index
    %c1_451 = arith.constant 1 : index
    %c1_452 = arith.constant 1 : index
    %c0_453 = arith.constant 0 : index
    %348 = vector.load %arg10[%c2_450, %c1_451, %c1_452, %c0_453] : memref<9x10x10x8xf32, #tpu.memory_space<vmem>>, vector<1x8x8x8xf32>
    %349 = vector.shape_cast %348 : vector<1x8x8x8xf32> to vector<8x8x8xf32>
    %350 = vector.shape_cast %349 : vector<8x8x8xf32> to vector<64x8xf32>
    %c0_454 = arith.constant 0 : index
    %c8_455 = arith.constant 8 : index
    %351 = vector.load %arg11[%c0_454, %c8_455] : memref<64x72xf32, #tpu.memory_space<vmem>>, vector<64x8xf32>
    tpu.vector_store %arg11[%c0_454, %c8_455], %350 {strides = array<i32>} : memref<64x72xf32, #tpu.memory_space<vmem>>, vector<64x8xf32>,
    %c0_456 = arith.constant 0 : index
    %c1_457 = arith.constant 1 : index
    %c2_458 = arith.constant 2 : index
    %c0_459 = arith.constant 0 : index
    %352 = vector.load %arg10[%c0_456, %c1_457, %c2_458, %c0_459] : memref<9x10x10x8xf32, #tpu.memory_space<vmem>>, vector<1x8x8x8xf32>
    %353 = vector.shape_cast %352 : vector<1x8x8x8xf32> to vector<8x8x8xf32>
    %354 = vector.shape_cast %353 : vector<8x8x8xf32> to vector<64x8xf32>
    %c0_460 = arith.constant 0 : index
    %c16_461 = arith.constant 16 : index
    %355 = vector.load %arg11[%c0_460, %c16_461] : memref<64x72xf32, #tpu.memory_space<vmem>>, vector<64x8xf32>
    tpu.vector_store %arg11[%c0_460, %c16_461], %354 {strides = array<i32>} : memref<64x72xf32, #tpu.memory_space<vmem>>, vector<64x8xf32>,
    %c4_462 = arith.constant 4 : index
    %c1_463 = arith.constant 1 : index
    %c1_464 = arith.constant 1 : index
    %c0_465 = arith.constant 0 : index
    %356 = vector.load %arg10[%c4_462, %c1_463, %c1_464, %c0_465] : memref<9x10x10x8xf32, #tpu.memory_space<vmem>>, vector<1x8x8x8xf32>
    %357 = vector.shape_cast %356 : vector<1x8x8x8xf32> to vector<8x8x8xf32>
    %358 = vector.shape_cast %357 : vector<8x8x8xf32> to vector<64x8xf32>
    %c0_466 = arith.constant 0 : index
    %c24_467 = arith.constant 24 : index
    %359 = vector.load %arg11[%c0_466, %c24_467] : memref<64x72xf32, #tpu.memory_space<vmem>>, vector<64x8xf32>
    tpu.vector_store %arg11[%c0_466, %c24_467], %358 {strides = array<i32>} : memref<64x72xf32, #tpu.memory_space<vmem>>, vector<64x8xf32>,
    %c5_468 = arith.constant 5 : index
    %c1_469 = arith.constant 1 : index
    %c1_470 = arith.constant 1 : index
    %c0_471 = arith.constant 0 : index
    %360 = vector.load %arg10[%c5_468, %c1_469, %c1_470, %c0_471] : memref<9x10x10x8xf32, #tpu.memory_space<vmem>>, vector<1x8x8x8xf32>
    %361 = vector.shape_cast %360 : vector<1x8x8x8xf32> to vector<8x8x8xf32>
    %362 = vector.shape_cast %361 : vector<8x8x8xf32> to vector<64x8xf32>
    %c0_472 = arith.constant 0 : index
    %c32_473 = arith.constant 32 : index
    %363 = vector.load %arg11[%c0_472, %c32_473] : memref<64x72xf32, #tpu.memory_space<vmem>>, vector<64x8xf32>
    tpu.vector_store %arg11[%c0_472, %c32_473], %362 {strides = array<i32>} : memref<64x72xf32, #tpu.memory_space<vmem>>, vector<64x8xf32>,
    %c3_474 = arith.constant 3 : index
    %c1_475 = arith.constant 1 : index
    %c2_476 = arith.constant 2 : index
    %c0_477 = arith.constant 0 : index
    %364 = vector.load %arg10[%c3_474, %c1_475, %c2_476, %c0_477] : memref<9x10x10x8xf32, #tpu.memory_space<vmem>>, vector<1x8x8x8xf32>
    %365 = vector.shape_cast %364 : vector<1x8x8x8xf32> to vector<8x8x8xf32>
    %366 = vector.shape_cast %365 : vector<8x8x8xf32> to vector<64x8xf32>
    %c0_478 = arith.constant 0 : index
    %c40_479 = arith.constant 40 : index
    %367 = vector.load %arg11[%c0_478, %c40_479] : memref<64x72xf32, #tpu.memory_space<vmem>>, vector<64x8xf32>
    tpu.vector_store %arg11[%c0_478, %c40_479], %366 {strides = array<i32>} : memref<64x72xf32, #tpu.memory_space<vmem>>, vector<64x8xf32>,
    %c7_480 = arith.constant 7 : index
    %c1_481 = arith.constant 1 : index
    %c1_482 = arith.constant 1 : index
    %c0_483 = arith.constant 0 : index
    %368 = vector.load %arg10[%c7_480, %c1_481, %c1_482, %c0_483] : memref<9x10x10x8xf32, #tpu.memory_space<vmem>>, vector<1x8x8x8xf32>
    %369 = vector.shape_cast %368 : vector<1x8x8x8xf32> to vector<8x8x8xf32>
    %370 = vector.shape_cast %369 : vector<8x8x8xf32> to vector<64x8xf32>
    %c0_484 = arith.constant 0 : index
    %c48_485 = arith.constant 48 : index
    %371 = vector.load %arg11[%c0_484, %c48_485] : memref<64x72xf32, #tpu.memory_space<vmem>>, vector<64x8xf32>
    tpu.vector_store %arg11[%c0_484, %c48_485], %370 {strides = array<i32>} : memref<64x72xf32, #tpu.memory_space<vmem>>, vector<64x8xf32>,
    %c8_486 = arith.constant 8 : index
    %c1_487 = arith.constant 1 : index
    %c1_488 = arith.constant 1 : index
    %c0_489 = arith.constant 0 : index
    %372 = vector.load %arg10[%c8_486, %c1_487, %c1_488, %c0_489] : memref<9x10x10x8xf32, #tpu.memory_space<vmem>>, vector<1x8x8x8xf32>
    %373 = vector.shape_cast %372 : vector<1x8x8x8xf32> to vector<8x8x8xf32>
    %374 = vector.shape_cast %373 : vector<8x8x8xf32> to vector<64x8xf32>
    %c0_490 = arith.constant 0 : index
    %c56_491 = arith.constant 56 : index
    %375 = vector.load %arg11[%c0_490, %c56_491] : memref<64x72xf32, #tpu.memory_space<vmem>>, vector<64x8xf32>
    tpu.vector_store %arg11[%c0_490, %c56_491], %374 {strides = array<i32>} : memref<64x72xf32, #tpu.memory_space<vmem>>, vector<64x8xf32>,
    %c6_492 = arith.constant 6 : index
    %c1_493 = arith.constant 1 : index
    %c2_494 = arith.constant 2 : index
    %c0_495 = arith.constant 0 : index
    %376 = vector.load %arg10[%c6_492, %c1_493, %c2_494, %c0_495] : memref<9x10x10x8xf32, #tpu.memory_space<vmem>>, vector<1x8x8x8xf32>
    %377 = vector.shape_cast %376 : vector<1x8x8x8xf32> to vector<8x8x8xf32>
    %378 = vector.shape_cast %377 : vector<8x8x8xf32> to vector<64x8xf32>
    %c0_496 = arith.constant 0 : index
    %c64_497 = arith.constant 64 : index
    %379 = vector.load %arg11[%c0_496, %c64_497] : memref<64x72xf32, #tpu.memory_space<vmem>>, vector<64x8xf32>
    tpu.vector_store %arg11[%c0_496, %c64_497], %378 {strides = array<i32>} : memref<64x72xf32, #tpu.memory_space<vmem>>, vector<64x8xf32>,
    %c0_498 = arith.constant 0 : index
    %c0_499 = arith.constant 0 : index
    %380 = vector.load %arg11[%c0_498, %c0_499] : memref<64x72xf32, #tpu.memory_space<vmem>>, vector<64x72xf32>
    %c0_500 = arith.constant 0 : index
    %c0_501 = arith.constant 0 : index
    %381 = vector.load %arg6[%c0_500, %c0_501] : memref<72x3xf32, #tpu.memory_space<vmem>>, vector<72x3xf32>
    %cst_502 = arith.constant dense<0.000000e+00> : vector<64x3xf32>
    %382 = tpu.matmul %380, %381, %cst_502 {dimension_numbers = #tpu.dot_dimension_numbers<[1], [0], [0], [1], [0, 0, 1, 1], [], []>} : vector<64x72xf32>, vector<72x3xf32>, vector<64x3xf32> -> vector<64x3xf32>
    %c0_503 = arith.constant 0 : index
    %c0_504 = arith.constant 0 : index
    %383 = vector.load %arg7[%c0_503, %c0_504] : memref<1x3xf32, #tpu.memory_space<vmem>>, vector<1x3xf32>
    %384 = vector.broadcast %383 : vector<1x3xf32> to vector<64x3xf32>
    %385 = arith.addf %382, %384 : vector<64x3xf32>
    %c0_505 = arith.constant 0 : index
    %c5_506 = arith.constant 5 : index
    %c0_507 = arith.constant 0 : index
    %c0_508 = arith.constant 0 : index
    %386 = vector.load %arg8[%c0_505, %c5_506, %c0_507, %c0_508] : memref<1x9x64x3xf32, #tpu.memory_space<vmem>>, vector<1x1x64x3xf32>
    %387 = vector.shape_cast %386 : vector<1x1x64x3xf32> to vector<64x3xf32>
    %388 = vector.shape_cast %385 : vector<64x3xf32> to vector<1x1x64x3xf32>
    tpu.vector_store %arg8[%c0_505, %c5_506, %c0_507, %c0_508], %388 {strides = array<i32>} : memref<1x9x64x3xf32, #tpu.memory_space<vmem>>, vector<1x1x64x3xf32>,
    %c5_509 = arith.constant 5 : index
    %c1_510 = arith.constant 1 : index
    %c0_511 = arith.constant 0 : index
    %c0_512 = arith.constant 0 : index
    %389 = vector.load %arg10[%c5_509, %c1_510, %c0_511, %c0_512] : memref<9x10x10x8xf32, #tpu.memory_space<vmem>>, vector<1x8x8x8xf32>
    %390 = vector.shape_cast %389 : vector<1x8x8x8xf32> to vector<8x8x8xf32>
    %391 = vector.shape_cast %390 : vector<8x8x8xf32> to vector<64x8xf32>
    %c0_513 = arith.constant 0 : index
    %c0_514 = arith.constant 0 : index
    %392 = vector.load %arg11[%c0_513, %c0_514] : memref<64x72xf32, #tpu.memory_space<vmem>>, vector<64x8xf32>
    tpu.vector_store %arg11[%c0_513, %c0_514], %391 {strides = array<i32>} : memref<64x72xf32, #tpu.memory_space<vmem>>, vector<64x8xf32>,
    %c3_515 = arith.constant 3 : index
    %c1_516 = arith.constant 1 : index
    %c1_517 = arith.constant 1 : index
    %c0_518 = arith.constant 0 : index
    %393 = vector.load %arg10[%c3_515, %c1_516, %c1_517, %c0_518] : memref<9x10x10x8xf32, #tpu.memory_space<vmem>>, vector<1x8x8x8xf32>
    %394 = vector.shape_cast %393 : vector<1x8x8x8xf32> to vector<8x8x8xf32>
    %395 = vector.shape_cast %394 : vector<8x8x8xf32> to vector<64x8xf32>
    %c0_519 = arith.constant 0 : index
    %c8_520 = arith.constant 8 : index
    %396 = vector.load %arg11[%c0_519, %c8_520] : memref<64x72xf32, #tpu.memory_space<vmem>>, vector<64x8xf32>
    tpu.vector_store %arg11[%c0_519, %c8_520], %395 {strides = array<i32>} : memref<64x72xf32, #tpu.memory_space<vmem>>, vector<64x8xf32>,
    %c4_521 = arith.constant 4 : index
    %c1_522 = arith.constant 1 : index
    %c1_523 = arith.constant 1 : index
    %c0_524 = arith.constant 0 : index
    %397 = vector.load %arg10[%c4_521, %c1_522, %c1_523, %c0_524] : memref<9x10x10x8xf32, #tpu.memory_space<vmem>>, vector<1x8x8x8xf32>
    %398 = vector.shape_cast %397 : vector<1x8x8x8xf32> to vector<8x8x8xf32>
    %399 = vector.shape_cast %398 : vector<8x8x8xf32> to vector<64x8xf32>
    %c0_525 = arith.constant 0 : index
    %c16_526 = arith.constant 16 : index
    %400 = vector.load %arg11[%c0_525, %c16_526] : memref<64x72xf32, #tpu.memory_space<vmem>>, vector<64x8xf32>
    tpu.vector_store %arg11[%c0_525, %c16_526], %399 {strides = array<i32>} : memref<64x72xf32, #tpu.memory_space<vmem>>, vector<64x8xf32>,
    %c8_527 = arith.constant 8 : index
    %c1_528 = arith.constant 1 : index
    %c0_529 = arith.constant 0 : index
    %c0_530 = arith.constant 0 : index
    %401 = vector.load %arg10[%c8_527, %c1_528, %c0_529, %c0_530] : memref<9x10x10x8xf32, #tpu.memory_space<vmem>>, vector<1x8x8x8xf32>
    %402 = vector.shape_cast %401 : vector<1x8x8x8xf32> to vector<8x8x8xf32>
    %403 = vector.shape_cast %402 : vector<8x8x8xf32> to vector<64x8xf32>
    %c0_531 = arith.constant 0 : index
    %c24_532 = arith.constant 24 : index
    %404 = vector.load %arg11[%c0_531, %c24_532] : memref<64x72xf32, #tpu.memory_space<vmem>>, vector<64x8xf32>
    tpu.vector_store %arg11[%c0_531, %c24_532], %403 {strides = array<i32>} : memref<64x72xf32, #tpu.memory_space<vmem>>, vector<64x8xf32>,
    %c6_533 = arith.constant 6 : index
    %c1_534 = arith.constant 1 : index
    %c1_535 = arith.constant 1 : index
    %c0_536 = arith.constant 0 : index
    %405 = vector.load %arg10[%c6_533, %c1_534, %c1_535, %c0_536] : memref<9x10x10x8xf32, #tpu.memory_space<vmem>>, vector<1x8x8x8xf32>
    %406 = vector.shape_cast %405 : vector<1x8x8x8xf32> to vector<8x8x8xf32>
    %407 = vector.shape_cast %406 : vector<8x8x8xf32> to vector<64x8xf32>
    %c0_537 = arith.constant 0 : index
    %c32_538 = arith.constant 32 : index
    %408 = vector.load %arg11[%c0_537, %c32_538] : memref<64x72xf32, #tpu.memory_space<vmem>>, vector<64x8xf32>
    tpu.vector_store %arg11[%c0_537, %c32_538], %407 {strides = array<i32>} : memref<64x72xf32, #tpu.memory_space<vmem>>, vector<64x8xf32>,
    %c7_539 = arith.constant 7 : index
    %c1_540 = arith.constant 1 : index
    %c1_541 = arith.constant 1 : index
    %c0_542 = arith.constant 0 : index
    %409 = vector.load %arg10[%c7_539, %c1_540, %c1_541, %c0_542] : memref<9x10x10x8xf32, #tpu.memory_space<vmem>>, vector<1x8x8x8xf32>
    %410 = vector.shape_cast %409 : vector<1x8x8x8xf32> to vector<8x8x8xf32>
    %411 = vector.shape_cast %410 : vector<8x8x8xf32> to vector<64x8xf32>
    %c0_543 = arith.constant 0 : index
    %c40_544 = arith.constant 40 : index
    %412 = vector.load %arg11[%c0_543, %c40_544] : memref<64x72xf32, #tpu.memory_space<vmem>>, vector<64x8xf32>
    tpu.vector_store %arg11[%c0_543, %c40_544], %411 {strides = array<i32>} : memref<64x72xf32, #tpu.memory_space<vmem>>, vector<64x8xf32>,
    %c2_545 = arith.constant 2 : index
    %c2_546 = arith.constant 2 : index
    %c0_547 = arith.constant 0 : index
    %c0_548 = arith.constant 0 : index
    %413 = vector.load %arg10[%c2_545, %c2_546, %c0_547, %c0_548] : memref<9x10x10x8xf32, #tpu.memory_space<vmem>>, vector<1x8x8x8xf32>
    %414 = vector.shape_cast %413 : vector<1x8x8x8xf32> to vector<8x8x8xf32>
    %415 = vector.shape_cast %414 : vector<8x8x8xf32> to vector<64x8xf32>
    %c0_549 = arith.constant 0 : index
    %c48_550 = arith.constant 48 : index
    %416 = vector.load %arg11[%c0_549, %c48_550] : memref<64x72xf32, #tpu.memory_space<vmem>>, vector<64x8xf32>
    tpu.vector_store %arg11[%c0_549, %c48_550], %415 {strides = array<i32>} : memref<64x72xf32, #tpu.memory_space<vmem>>, vector<64x8xf32>,
    %c0_551 = arith.constant 0 : index
    %c2_552 = arith.constant 2 : index
    %c1_553 = arith.constant 1 : index
    %c0_554 = arith.constant 0 : index
    %417 = vector.load %arg10[%c0_551, %c2_552, %c1_553, %c0_554] : memref<9x10x10x8xf32, #tpu.memory_space<vmem>>, vector<1x8x8x8xf32>
    %418 = vector.shape_cast %417 : vector<1x8x8x8xf32> to vector<8x8x8xf32>
    %419 = vector.shape_cast %418 : vector<8x8x8xf32> to vector<64x8xf32>
    %c0_555 = arith.constant 0 : index
    %c56_556 = arith.constant 56 : index
    %420 = vector.load %arg11[%c0_555, %c56_556] : memref<64x72xf32, #tpu.memory_space<vmem>>, vector<64x8xf32>
    tpu.vector_store %arg11[%c0_555, %c56_556], %419 {strides = array<i32>} : memref<64x72xf32, #tpu.memory_space<vmem>>, vector<64x8xf32>,
    %c1_557 = arith.constant 1 : index
    %c2_558 = arith.constant 2 : index
    %c1_559 = arith.constant 1 : index
    %c0_560 = arith.constant 0 : index
    %421 = vector.load %arg10[%c1_557, %c2_558, %c1_559, %c0_560] : memref<9x10x10x8xf32, #tpu.memory_space<vmem>>, vector<1x8x8x8xf32>
    %422 = vector.shape_cast %421 : vector<1x8x8x8xf32> to vector<8x8x8xf32>
    %423 = vector.shape_cast %422 : vector<8x8x8xf32> to vector<64x8xf32>
    %c0_561 = arith.constant 0 : index
    %c64_562 = arith.constant 64 : index
    %424 = vector.load %arg11[%c0_561, %c64_562] : memref<64x72xf32, #tpu.memory_space<vmem>>, vector<64x8xf32>
    tpu.vector_store %arg11[%c0_561, %c64_562], %423 {strides = array<i32>} : memref<64x72xf32, #tpu.memory_space<vmem>>, vector<64x8xf32>,
    %c0_563 = arith.constant 0 : index
    %c0_564 = arith.constant 0 : index
    %425 = vector.load %arg11[%c0_563, %c0_564] : memref<64x72xf32, #tpu.memory_space<vmem>>, vector<64x72xf32>
    %c0_565 = arith.constant 0 : index
    %c0_566 = arith.constant 0 : index
    %426 = vector.load %arg6[%c0_565, %c0_566] : memref<72x3xf32, #tpu.memory_space<vmem>>, vector<72x3xf32>
    %cst_567 = arith.constant dense<0.000000e+00> : vector<64x3xf32>
    %427 = tpu.matmul %425, %426, %cst_567 {dimension_numbers = #tpu.dot_dimension_numbers<[1], [0], [0], [1], [0, 0, 1, 1], [], []>} : vector<64x72xf32>, vector<72x3xf32>, vector<64x3xf32> -> vector<64x3xf32>
    %c0_568 = arith.constant 0 : index
    %c0_569 = arith.constant 0 : index
    %428 = vector.load %arg7[%c0_568, %c0_569] : memref<1x3xf32, #tpu.memory_space<vmem>>, vector<1x3xf32>
    %429 = vector.broadcast %428 : vector<1x3xf32> to vector<64x3xf32>
    %430 = arith.addf %427, %429 : vector<64x3xf32>
    %c0_570 = arith.constant 0 : index
    %c6_571 = arith.constant 6 : index
    %c0_572 = arith.constant 0 : index
    %c0_573 = arith.constant 0 : index
    %431 = vector.load %arg8[%c0_570, %c6_571, %c0_572, %c0_573] : memref<1x9x64x3xf32, #tpu.memory_space<vmem>>, vector<1x1x64x3xf32>
    %432 = vector.shape_cast %431 : vector<1x1x64x3xf32> to vector<64x3xf32>
    %433 = vector.shape_cast %430 : vector<64x3xf32> to vector<1x1x64x3xf32>
    tpu.vector_store %arg8[%c0_570, %c6_571, %c0_572, %c0_573], %433 {strides = array<i32>} : memref<1x9x64x3xf32, #tpu.memory_space<vmem>>, vector<1x1x64x3xf32>,
    %c3_574 = arith.constant 3 : index
    %c1_575 = arith.constant 1 : index
    %c1_576 = arith.constant 1 : index
    %c0_577 = arith.constant 0 : index
    %434 = vector.load %arg10[%c3_574, %c1_575, %c1_576, %c0_577] : memref<9x10x10x8xf32, #tpu.memory_space<vmem>>, vector<1x8x8x8xf32>
    %435 = vector.shape_cast %434 : vector<1x8x8x8xf32> to vector<8x8x8xf32>
    %436 = vector.shape_cast %435 : vector<8x8x8xf32> to vector<64x8xf32>
    %c0_578 = arith.constant 0 : index
    %c0_579 = arith.constant 0 : index
    %437 = vector.load %arg11[%c0_578, %c0_579] : memref<64x72xf32, #tpu.memory_space<vmem>>, vector<64x8xf32>
    tpu.vector_store %arg11[%c0_578, %c0_579], %436 {strides = array<i32>} : memref<64x72xf32, #tpu.memory_space<vmem>>, vector<64x8xf32>,
    %c4_580 = arith.constant 4 : index
    %c1_581 = arith.constant 1 : index
    %c1_582 = arith.constant 1 : index
    %c0_583 = arith.constant 0 : index
    %438 = vector.load %arg10[%c4_580, %c1_581, %c1_582, %c0_583] : memref<9x10x10x8xf32, #tpu.memory_space<vmem>>, vector<1x8x8x8xf32>
    %439 = vector.shape_cast %438 : vector<1x8x8x8xf32> to vector<8x8x8xf32>
    %440 = vector.shape_cast %439 : vector<8x8x8xf32> to vector<64x8xf32>
    %c0_584 = arith.constant 0 : index
    %c8_585 = arith.constant 8 : index
    %441 = vector.load %arg11[%c0_584, %c8_585] : memref<64x72xf32, #tpu.memory_space<vmem>>, vector<64x8xf32>
    tpu.vector_store %arg11[%c0_584, %c8_585], %440 {strides = array<i32>} : memref<64x72xf32, #tpu.memory_space<vmem>>, vector<64x8xf32>,
    %c5_586 = arith.constant 5 : index
    %c1_587 = arith.constant 1 : index
    %c1_588 = arith.constant 1 : index
    %c0_589 = arith.constant 0 : index
    %442 = vector.load %arg10[%c5_586, %c1_587, %c1_588, %c0_589] : memref<9x10x10x8xf32, #tpu.memory_space<vmem>>, vector<1x8x8x8xf32>
    %443 = vector.shape_cast %442 : vector<1x8x8x8xf32> to vector<8x8x8xf32>
    %444 = vector.shape_cast %443 : vector<8x8x8xf32> to vector<64x8xf32>
    %c0_590 = arith.constant 0 : index
    %c16_591 = arith.constant 16 : index
    %445 = vector.load %arg11[%c0_590, %c16_591] : memref<64x72xf32, #tpu.memory_space<vmem>>, vector<64x8xf32>
    tpu.vector_store %arg11[%c0_590, %c16_591], %444 {strides = array<i32>} : memref<64x72xf32, #tpu.memory_space<vmem>>, vector<64x8xf32>,
    %c6_592 = arith.constant 6 : index
    %c1_593 = arith.constant 1 : index
    %c1_594 = arith.constant 1 : index
    %c0_595 = arith.constant 0 : index
    %446 = vector.load %arg10[%c6_592, %c1_593, %c1_594, %c0_595] : memref<9x10x10x8xf32, #tpu.memory_space<vmem>>, vector<1x8x8x8xf32>
    %447 = vector.shape_cast %446 : vector<1x8x8x8xf32> to vector<8x8x8xf32>
    %448 = vector.shape_cast %447 : vector<8x8x8xf32> to vector<64x8xf32>
    %c0_596 = arith.constant 0 : index
    %c24_597 = arith.constant 24 : index
    %449 = vector.load %arg11[%c0_596, %c24_597] : memref<64x72xf32, #tpu.memory_space<vmem>>, vector<64x8xf32>
    tpu.vector_store %arg11[%c0_596, %c24_597], %448 {strides = array<i32>} : memref<64x72xf32, #tpu.memory_space<vmem>>, vector<64x8xf32>,
    %c7_598 = arith.constant 7 : index
    %c1_599 = arith.constant 1 : index
    %c1_600 = arith.constant 1 : index
    %c0_601 = arith.constant 0 : index
    %450 = vector.load %arg10[%c7_598, %c1_599, %c1_600, %c0_601] : memref<9x10x10x8xf32, #tpu.memory_space<vmem>>, vector<1x8x8x8xf32>
    %451 = vector.shape_cast %450 : vector<1x8x8x8xf32> to vector<8x8x8xf32>
    %452 = vector.shape_cast %451 : vector<8x8x8xf32> to vector<64x8xf32>
    %c0_602 = arith.constant 0 : index
    %c32_603 = arith.constant 32 : index
    %453 = vector.load %arg11[%c0_602, %c32_603] : memref<64x72xf32, #tpu.memory_space<vmem>>, vector<64x8xf32>
    tpu.vector_store %arg11[%c0_602, %c32_603], %452 {strides = array<i32>} : memref<64x72xf32, #tpu.memory_space<vmem>>, vector<64x8xf32>,
    %c8_604 = arith.constant 8 : index
    %c1_605 = arith.constant 1 : index
    %c1_606 = arith.constant 1 : index
    %c0_607 = arith.constant 0 : index
    %454 = vector.load %arg10[%c8_604, %c1_605, %c1_606, %c0_607] : memref<9x10x10x8xf32, #tpu.memory_space<vmem>>, vector<1x8x8x8xf32>
    %455 = vector.shape_cast %454 : vector<1x8x8x8xf32> to vector<8x8x8xf32>
    %456 = vector.shape_cast %455 : vector<8x8x8xf32> to vector<64x8xf32>
    %c0_608 = arith.constant 0 : index
    %c40_609 = arith.constant 40 : index
    %457 = vector.load %arg11[%c0_608, %c40_609] : memref<64x72xf32, #tpu.memory_space<vmem>>, vector<64x8xf32>
    tpu.vector_store %arg11[%c0_608, %c40_609], %456 {strides = array<i32>} : memref<64x72xf32, #tpu.memory_space<vmem>>, vector<64x8xf32>,
    %c0_610 = arith.constant 0 : index
    %c2_611 = arith.constant 2 : index
    %c1_612 = arith.constant 1 : index
    %c0_613 = arith.constant 0 : index
    %458 = vector.load %arg10[%c0_610, %c2_611, %c1_612, %c0_613] : memref<9x10x10x8xf32, #tpu.memory_space<vmem>>, vector<1x8x8x8xf32>
    %459 = vector.shape_cast %458 : vector<1x8x8x8xf32> to vector<8x8x8xf32>
    %460 = vector.shape_cast %459 : vector<8x8x8xf32> to vector<64x8xf32>
    %c0_614 = arith.constant 0 : index
    %c48_615 = arith.constant 48 : index
    %461 = vector.load %arg11[%c0_614, %c48_615] : memref<64x72xf32, #tpu.memory_space<vmem>>, vector<64x8xf32>
    tpu.vector_store %arg11[%c0_614, %c48_615], %460 {strides = array<i32>} : memref<64x72xf32, #tpu.memory_space<vmem>>, vector<64x8xf32>,
    %c1_616 = arith.constant 1 : index
    %c2_617 = arith.constant 2 : index
    %c1_618 = arith.constant 1 : index
    %c0_619 = arith.constant 0 : index
    %462 = vector.load %arg10[%c1_616, %c2_617, %c1_618, %c0_619] : memref<9x10x10x8xf32, #tpu.memory_space<vmem>>, vector<1x8x8x8xf32>
    %463 = vector.shape_cast %462 : vector<1x8x8x8xf32> to vector<8x8x8xf32>
    %464 = vector.shape_cast %463 : vector<8x8x8xf32> to vector<64x8xf32>
    %c0_620 = arith.constant 0 : index
    %c56_621 = arith.constant 56 : index
    %465 = vector.load %arg11[%c0_620, %c56_621] : memref<64x72xf32, #tpu.memory_space<vmem>>, vector<64x8xf32>
    tpu.vector_store %arg11[%c0_620, %c56_621], %464 {strides = array<i32>} : memref<64x72xf32, #tpu.memory_space<vmem>>, vector<64x8xf32>,
    %c2_622 = arith.constant 2 : index
    %c2_623 = arith.constant 2 : index
    %c1_624 = arith.constant 1 : index
    %c0_625 = arith.constant 0 : index
    %466 = vector.load %arg10[%c2_622, %c2_623, %c1_624, %c0_625] : memref<9x10x10x8xf32, #tpu.memory_space<vmem>>, vector<1x8x8x8xf32>
    %467 = vector.shape_cast %466 : vector<1x8x8x8xf32> to vector<8x8x8xf32>
    %468 = vector.shape_cast %467 : vector<8x8x8xf32> to vector<64x8xf32>
    %c0_626 = arith.constant 0 : index
    %c64_627 = arith.constant 64 : index
    %469 = vector.load %arg11[%c0_626, %c64_627] : memref<64x72xf32, #tpu.memory_space<vmem>>, vector<64x8xf32>
    tpu.vector_store %arg11[%c0_626, %c64_627], %468 {strides = array<i32>} : memref<64x72xf32, #tpu.memory_space<vmem>>, vector<64x8xf32>,
    %c0_628 = arith.constant 0 : index
    %c0_629 = arith.constant 0 : index
    %470 = vector.load %arg11[%c0_628, %c0_629] : memref<64x72xf32, #tpu.memory_space<vmem>>, vector<64x72xf32>
    %c0_630 = arith.constant 0 : index
    %c0_631 = arith.constant 0 : index
    %471 = vector.load %arg6[%c0_630, %c0_631] : memref<72x3xf32, #tpu.memory_space<vmem>>, vector<72x3xf32>
    %cst_632 = arith.constant dense<0.000000e+00> : vector<64x3xf32>
    %472 = tpu.matmul %470, %471, %cst_632 {dimension_numbers = #tpu.dot_dimension_numbers<[1], [0], [0], [1], [0, 0, 1, 1], [], []>} : vector<64x72xf32>, vector<72x3xf32>, vector<64x3xf32> -> vector<64x3xf32>
    %c0_633 = arith.constant 0 : index
    %c0_634 = arith.constant 0 : index
    %473 = vector.load %arg7[%c0_633, %c0_634] : memref<1x3xf32, #tpu.memory_space<vmem>>, vector<1x3xf32>
    %474 = vector.broadcast %473 : vector<1x3xf32> to vector<64x3xf32>
    %475 = arith.addf %472, %474 : vector<64x3xf32>
    %c0_635 = arith.constant 0 : index
    %c7_636 = arith.constant 7 : index
    %c0_637 = arith.constant 0 : index
    %c0_638 = arith.constant 0 : index
    %476 = vector.load %arg8[%c0_635, %c7_636, %c0_637, %c0_638] : memref<1x9x64x3xf32, #tpu.memory_space<vmem>>, vector<1x1x64x3xf32>
    %477 = vector.shape_cast %476 : vector<1x1x64x3xf32> to vector<64x3xf32>
    %478 = vector.shape_cast %475 : vector<64x3xf32> to vector<1x1x64x3xf32>
    tpu.vector_store %arg8[%c0_635, %c7_636, %c0_637, %c0_638], %478 {strides = array<i32>} : memref<1x9x64x3xf32, #tpu.memory_space<vmem>>, vector<1x1x64x3xf32>,
    %c4_639 = arith.constant 4 : index
    %c1_640 = arith.constant 1 : index
    %c1_641 = arith.constant 1 : index
    %c0_642 = arith.constant 0 : index
    %479 = vector.load %arg10[%c4_639, %c1_640, %c1_641, %c0_642] : memref<9x10x10x8xf32, #tpu.memory_space<vmem>>, vector<1x8x8x8xf32>
    %480 = vector.shape_cast %479 : vector<1x8x8x8xf32> to vector<8x8x8xf32>
    %481 = vector.shape_cast %480 : vector<8x8x8xf32> to vector<64x8xf32>
    %c0_643 = arith.constant 0 : index
    %c0_644 = arith.constant 0 : index
    %482 = vector.load %arg11[%c0_643, %c0_644] : memref<64x72xf32, #tpu.memory_space<vmem>>, vector<64x8xf32>
    tpu.vector_store %arg11[%c0_643, %c0_644], %481 {strides = array<i32>} : memref<64x72xf32, #tpu.memory_space<vmem>>, vector<64x8xf32>,
    %c5_645 = arith.constant 5 : index
    %c1_646 = arith.constant 1 : index
    %c1_647 = arith.constant 1 : index
    %c0_648 = arith.constant 0 : index
    %483 = vector.load %arg10[%c5_645, %c1_646, %c1_647, %c0_648] : memref<9x10x10x8xf32, #tpu.memory_space<vmem>>, vector<1x8x8x8xf32>
    %484 = vector.shape_cast %483 : vector<1x8x8x8xf32> to vector<8x8x8xf32>
    %485 = vector.shape_cast %484 : vector<8x8x8xf32> to vector<64x8xf32>
    %c0_649 = arith.constant 0 : index
    %c8_650 = arith.constant 8 : index
    %486 = vector.load %arg11[%c0_649, %c8_650] : memref<64x72xf32, #tpu.memory_space<vmem>>, vector<64x8xf32>
    tpu.vector_store %arg11[%c0_649, %c8_650], %485 {strides = array<i32>} : memref<64x72xf32, #tpu.memory_space<vmem>>, vector<64x8xf32>,
    %c3_651 = arith.constant 3 : index
    %c1_652 = arith.constant 1 : index
    %c2_653 = arith.constant 2 : index
    %c0_654 = arith.constant 0 : index
    %487 = vector.load %arg10[%c3_651, %c1_652, %c2_653, %c0_654] : memref<9x10x10x8xf32, #tpu.memory_space<vmem>>, vector<1x8x8x8xf32>
    %488 = vector.shape_cast %487 : vector<1x8x8x8xf32> to vector<8x8x8xf32>
    %489 = vector.shape_cast %488 : vector<8x8x8xf32> to vector<64x8xf32>
    %c0_655 = arith.constant 0 : index
    %c16_656 = arith.constant 16 : index
    %490 = vector.load %arg11[%c0_655, %c16_656] : memref<64x72xf32, #tpu.memory_space<vmem>>, vector<64x8xf32>
    tpu.vector_store %arg11[%c0_655, %c16_656], %489 {strides = array<i32>} : memref<64x72xf32, #tpu.memory_space<vmem>>, vector<64x8xf32>,
    %c7_657 = arith.constant 7 : index
    %c1_658 = arith.constant 1 : index
    %c1_659 = arith.constant 1 : index
    %c0_660 = arith.constant 0 : index
    %491 = vector.load %arg10[%c7_657, %c1_658, %c1_659, %c0_660] : memref<9x10x10x8xf32, #tpu.memory_space<vmem>>, vector<1x8x8x8xf32>
    %492 = vector.shape_cast %491 : vector<1x8x8x8xf32> to vector<8x8x8xf32>
    %493 = vector.shape_cast %492 : vector<8x8x8xf32> to vector<64x8xf32>
    %c0_661 = arith.constant 0 : index
    %c24_662 = arith.constant 24 : index
    %494 = vector.load %arg11[%c0_661, %c24_662] : memref<64x72xf32, #tpu.memory_space<vmem>>, vector<64x8xf32>
    tpu.vector_store %arg11[%c0_661, %c24_662], %493 {strides = array<i32>} : memref<64x72xf32, #tpu.memory_space<vmem>>, vector<64x8xf32>,
    %c8_663 = arith.constant 8 : index
    %c1_664 = arith.constant 1 : index
    %c1_665 = arith.constant 1 : index
    %c0_666 = arith.constant 0 : index
    %495 = vector.load %arg10[%c8_663, %c1_664, %c1_665, %c0_666] : memref<9x10x10x8xf32, #tpu.memory_space<vmem>>, vector<1x8x8x8xf32>
    %496 = vector.shape_cast %495 : vector<1x8x8x8xf32> to vector<8x8x8xf32>
    %497 = vector.shape_cast %496 : vector<8x8x8xf32> to vector<64x8xf32>
    %c0_667 = arith.constant 0 : index
    %c32_668 = arith.constant 32 : index
    %498 = vector.load %arg11[%c0_667, %c32_668] : memref<64x72xf32, #tpu.memory_space<vmem>>, vector<64x8xf32>
    tpu.vector_store %arg11[%c0_667, %c32_668], %497 {strides = array<i32>} : memref<64x72xf32, #tpu.memory_space<vmem>>, vector<64x8xf32>,
    %c6_669 = arith.constant 6 : index
    %c1_670 = arith.constant 1 : index
    %c2_671 = arith.constant 2 : index
    %c0_672 = arith.constant 0 : index
    %499 = vector.load %arg10[%c6_669, %c1_670, %c2_671, %c0_672] : memref<9x10x10x8xf32, #tpu.memory_space<vmem>>, vector<1x8x8x8xf32>
    %500 = vector.shape_cast %499 : vector<1x8x8x8xf32> to vector<8x8x8xf32>
    %501 = vector.shape_cast %500 : vector<8x8x8xf32> to vector<64x8xf32>
    %c0_673 = arith.constant 0 : index
    %c40_674 = arith.constant 40 : index
    %502 = vector.load %arg11[%c0_673, %c40_674] : memref<64x72xf32, #tpu.memory_space<vmem>>, vector<64x8xf32>
    tpu.vector_store %arg11[%c0_673, %c40_674], %501 {strides = array<i32>} : memref<64x72xf32, #tpu.memory_space<vmem>>, vector<64x8xf32>,
    %c1_675 = arith.constant 1 : index
    %c2_676 = arith.constant 2 : index
    %c1_677 = arith.constant 1 : index
    %c0_678 = arith.constant 0 : index
    %503 = vector.load %arg10[%c1_675, %c2_676, %c1_677, %c0_678] : memref<9x10x10x8xf32, #tpu.memory_space<vmem>>, vector<1x8x8x8xf32>
    %504 = vector.shape_cast %503 : vector<1x8x8x8xf32> to vector<8x8x8xf32>
    %505 = vector.shape_cast %504 : vector<8x8x8xf32> to vector<64x8xf32>
    %c0_679 = arith.constant 0 : index
    %c48_680 = arith.constant 48 : index
    %506 = vector.load %arg11[%c0_679, %c48_680] : memref<64x72xf32, #tpu.memory_space<vmem>>, vector<64x8xf32>
    tpu.vector_store %arg11[%c0_679, %c48_680], %505 {strides = array<i32>} : memref<64x72xf32, #tpu.memory_space<vmem>>, vector<64x8xf32>,
    %c2_681 = arith.constant 2 : index
    %c2_682 = arith.constant 2 : index
    %c1_683 = arith.constant 1 : index
    %c0_684 = arith.constant 0 : index
    %507 = vector.load %arg10[%c2_681, %c2_682, %c1_683, %c0_684] : memref<9x10x10x8xf32, #tpu.memory_space<vmem>>, vector<1x8x8x8xf32>
    %508 = vector.shape_cast %507 : vector<1x8x8x8xf32> to vector<8x8x8xf32>
    %509 = vector.shape_cast %508 : vector<8x8x8xf32> to vector<64x8xf32>
    %c0_685 = arith.constant 0 : index
    %c56_686 = arith.constant 56 : index
    %510 = vector.load %arg11[%c0_685, %c56_686] : memref<64x72xf32, #tpu.memory_space<vmem>>, vector<64x8xf32>
    tpu.vector_store %arg11[%c0_685, %c56_686], %509 {strides = array<i32>} : memref<64x72xf32, #tpu.memory_space<vmem>>, vector<64x8xf32>,
    %c0_687 = arith.constant 0 : index
    %c2_688 = arith.constant 2 : index
    %c2_689 = arith.constant 2 : index
    %c0_690 = arith.constant 0 : index
    %511 = vector.load %arg10[%c0_687, %c2_688, %c2_689, %c0_690] : memref<9x10x10x8xf32, #tpu.memory_space<vmem>>, vector<1x8x8x8xf32>
    %512 = vector.shape_cast %511 : vector<1x8x8x8xf32> to vector<8x8x8xf32>
    %513 = vector.shape_cast %512 : vector<8x8x8xf32> to vector<64x8xf32>
    %c0_691 = arith.constant 0 : index
    %c64_692 = arith.constant 64 : index
    %514 = vector.load %arg11[%c0_691, %c64_692] : memref<64x72xf32, #tpu.memory_space<vmem>>, vector<64x8xf32>
    tpu.vector_store %arg11[%c0_691, %c64_692], %513 {strides = array<i32>} : memref<64x72xf32, #tpu.memory_space<vmem>>, vector<64x8xf32>,
    %c0_693 = arith.constant 0 : index
    %c0_694 = arith.constant 0 : index
    %515 = vector.load %arg11[%c0_693, %c0_694] : memref<64x72xf32, #tpu.memory_space<vmem>>, vector<64x72xf32>
    %c0_695 = arith.constant 0 : index
    %c0_696 = arith.constant 0 : index
    %516 = vector.load %arg6[%c0_695, %c0_696] : memref<72x3xf32, #tpu.memory_space<vmem>>, vector<72x3xf32>
    %cst_697 = arith.constant dense<0.000000e+00> : vector<64x3xf32>
    %517 = tpu.matmul %515, %516, %cst_697 {dimension_numbers = #tpu.dot_dimension_numbers<[1], [0], [0], [1], [0, 0, 1, 1], [], []>} : vector<64x72xf32>, vector<72x3xf32>, vector<64x3xf32> -> vector<64x3xf32>
    %c0_698 = arith.constant 0 : index
    %c0_699 = arith.constant 0 : index
    %518 = vector.load %arg7[%c0_698, %c0_699] : memref<1x3xf32, #tpu.memory_space<vmem>>, vector<1x3xf32>
    %519 = vector.broadcast %518 : vector<1x3xf32> to vector<64x3xf32>
    %520 = arith.addf %517, %519 : vector<64x3xf32>
    %c0_700 = arith.constant 0 : index
    %c8_701 = arith.constant 8 : index
    %c0_702 = arith.constant 0 : index
    %c0_703 = arith.constant 0 : index
    %521 = vector.load %arg8[%c0_700, %c8_701, %c0_702, %c0_703] : memref<1x9x64x3xf32, #tpu.memory_space<vmem>>, vector<1x1x64x3xf32>
    %522 = vector.shape_cast %521 : vector<1x1x64x3xf32> to vector<64x3xf32>
    %523 = vector.shape_cast %520 : vector<64x3xf32> to vector<1x1x64x3xf32>
    tpu.vector_store %arg8[%c0_700, %c8_701, %c0_702, %c0_703], %523 {strides = array<i32>} : memref<1x9x64x3xf32, #tpu.memory_space<vmem>>, vector<1x1x64x3xf32>,
    return
  }
  func.func @transform_0(%arg0: i32) -> (i32, i32, i32, i32) {
    %c0_i32 = arith.constant 0 : i32
    %c0_i32_0 = arith.constant 0 : i32
    %c0_i32_1 = arith.constant 0 : i32
    %c0_i32_2 = arith.constant 0 : i32
    return %arg0, %c0_i32, %c0_i32_0, %c0_i32_1 : i32, i32, i32, i32
  }
  func.func @transform_1(%arg0: i32) -> (i32, i32, i32) {
    %c0_i32 = arith.constant 0 : i32
    %c0_i32_0 = arith.constant 0 : i32
    %c0_i32_1 = arith.constant 0 : i32
    return %arg0, %c0_i32, %c0_i32_0 : i32, i32, i32
  }
  func.func @transform_2(%arg0: i32) -> (i32, i32) {
    %c0_i32 = arith.constant 0 : i32
    %c0_i32_0 = arith.constant 0 : i32
    %c0_i32_1 = arith.constant 0 : i32
    return %c0_i32, %c0_i32_0 : i32, i32
  }
  func.func @transform_3(%arg0: i32) -> (i32, i32) {
    %c0_i32 = arith.constant 0 : i32
    %c0_i32_0 = arith.constant 0 : i32
    %c0_i32_1 = arith.constant 0 : i32
    return %c0_i32, %c0_i32_0 : i32, i32
  }
  func.func @transform_4(%arg0: i32) -> (i32, i32) {
    %c0_i32 = arith.constant 0 : i32
    %c0_i32_0 = arith.constant 0 : i32
    %c0_i32_1 = arith.constant 0 : i32
    return %c0_i32, %c0_i32_0 : i32, i32
  }
  func.func @transform_5(%arg0: i32) -> (i32, i32) {
    %c0_i32 = arith.constant 0 : i32
    %c0_i32_0 = arith.constant 0 : i32
    %c0_i32_1 = arith.constant 0 : i32
    return %c0_i32, %c0_i32_0 : i32, i32
  }
  func.func @transform_6(%arg0: i32) -> (i32, i32) {
    %c0_i32 = arith.constant 0 : i32
    %c0_i32_0 = arith.constant 0 : i32
    %c0_i32_1 = arith.constant 0 : i32
    return %c0_i32, %c0_i32_0 : i32, i32
  }
  func.func @transform_7(%arg0: i32) -> (i32, i32, i32, i32) {
    %c0_i32 = arith.constant 0 : i32
    %c0_i32_0 = arith.constant 0 : i32
    %c0_i32_1 = arith.constant 0 : i32
    %c0_i32_2 = arith.constant 0 : i32
    return %arg0, %c0_i32, %c0_i32_0, %c0_i32_1 : i32, i32, i32, i32
  }
}

</mosaic_0001>

<bundles_post_ra>
// kernel: reconstruction3_forward.1
= control target key start
LH: loop header
LB: loop body
LE: loop exit
PB: predicated region body
PF: predicated region fallthrough
CT: control target
= control target key end

     0   :  { %s7102_s24 = smov 0   ;;  %s10705_s0 = inlined_call_operand.vmem [shape: f32[2,8,8,8], index: 0, kind: input, shape index: {}]   ;;  %s10706_s1 = inlined_call_operand.vmem [shape: f32[2,576,8], index: 1, kind: input, shape index: {}]   ;;  %s10707_s2 = inlined_call_operand.vmem [shape: f32[72,72], index: 2, kind: input, shape index: {}]   ;;  %s10708_s3 = inlined_call_operand.vmem [shape: f32[1,72], index: 3, kind: input, shape index: {}]   ;;  %s10709_s4 = inlined_call_operand.vmem [shape: f32[8,8], index: 4, kind: input, shape index: {}]   ;;  %s10710_s5 = inlined_call_operand.vmem [shape: f32[72,3], index: 5, kind: input, shape index: {}]   ;;  %s10711_s6 = inlined_call_operand.vmem [shape: f32[1,3], index: 6, kind: input, shape index: {}]   ;;  %s10712_s7 = inlined_call_operand.vmem [shape: f32[2,9,64,3], index: 7, kind: output, shape index: {}]  }
   0x1 LB: > { %s6772_s25 = sadd.s32 4294967295, %s7044_s24   ;;  %p6776_p0 = scmp.ge.s32.totalorder %s7044_s24, 1  ;;  %s7044_s24 = sphi %s7102_s24, %s17_s24  }
   0x2   : > { %p247_p1 = scmp.lt.s32.totalorder %s7044_s24, 3 }
   0x4   : > { %p248_p2 = pnand %p6776_p0, %p247_p1 }
   0x5   : > { %s7047_s26 = smov (!%p248_p2), 8   ;;  %p284_p3 = scmp.lt.s32.totalorder (!%p248_p2), %s6772_s25, 1 }
   0x6   : > { %251 = sbr.rel (%p248_p2) target bundleno = 2625 (0xa41), region = 48  ;;  %s7048_s14 = smov (!%p248_p2), 16  }
   0x7   : > { %s7049_s15 = smov (!%p248_p2), 24   ;;  %s7050_s16 = smov (!%p248_p2), 32  }
   0x8   : > { %s7051_s17 = smov (!%p248_p2), 40   ;;  %s7052_s18 = smov (!%p248_p2), 48  }
   0x9   : > { %s7053_s19 = smov (!%p248_p2), 56   ;;  %s7054_s20 = smov (!%p248_p2), 64  }
   0xa   : > { %s7055_s12 = smov (!%p248_p2), 88   ;;  %s7056_s13 = smov (!%p248_p2), 120  }
   0xb   : > { %vm299_vm0 = vcmask 64512   ;;  %vm301_vm1 = vcmask 58368   ;;  %v7046_v0 = vmov 0.0   ;;  %vm306_vm2 = vcmask 57344   ;;  %s10714_s25 = smov (!%p284_p3, %s6772_s25), 1  ;;  %v7321_v8 = vld [vmem:[%s10709_s4] sm:$0xff] }
   0xc   : > { %300 = vst.msk [vmem:[#allocation2] sm:$0xff] %vm299_vm0, %v7046_v0  ;;  %s6999_s27 = sshll.u32 %s10714_s25, 6  ;;  %s7003_s8 = smul.u32 576, %s10714_s25  ;;  %7001 = vmatpush.msra.mxu2 %v7321_v8  ;;  %7000 = vmatpush.msra.mxu1 %v7321_v8  ;;  %vm617_vm3 = vcmask 130112   ;;  %vm666_vm4 = vcmask 195712   ;;  %vm715_vm5 = vcmask 261312  }
   0xd   : > { %302 = vst.msk [vmem:[#allocation2 + $0x8] sm:$0x3] %vm301_vm1, %v7046_v0  ;;  %s7285_s30 = scalar_lea.vmem %s10705_s0, %s6999_s27  ;;  %7002 = vmatpush.msra.mxu3 %v7321_v8  ;;  %vm764_vm6 = vcmask 326912   ;;  %vm813_vm7 = vcmask 392512   ;;  %vm863_vm8 = vcmask 458112   ;;  %vm912_vm9 = vcmask 523712  }
   0xe   : > { %307 = vst.msk [vmem:[#allocation2] sm:$0x1] %vm306_vm2, %v7046_v0  ;;  %v545_v2 = vld [vmem:[%s7285_s30 + $0x8] sm:$0xff]  ;;  %s7309_s11 = scalar_lea.vmem %s10706_s1, %s7003_s8  ;;  %v544_v4 = vld [vmem:[%s7285_s30] sm:$0xff]  ;;  %v546_v5 = vld [vmem:[%s7285_s30 + $0x10] sm:$0xff]  ;;  %vm961_vm10 = vcmask 589312  }
   0xf   : > { %304 = vst.msk [vmem:[#allocation2 + $0x90] sm:$0xff] %vm299_vm0, %v7046_v0  ;;  %v549_v6 = vld [vmem:[%s7285_s30 + $0x28] sm:$0xff]  ;;  %v547_v7 = vld [vmem:[%s7285_s30 + $0x18] sm:$0xff]  ;;  %v1099_v9 = vld [vmem:[%s7309_s11 + $0x150] sm:$0xff]  ;;  %vm991_vm11 = vcmask 588800   ;;  %s7057_s21 = smov 80  }
  0x10   : > { %305 = vst.msk [vmem:[#allocation2 + $0x98] sm:$0x3] %vm301_vm1, %v7046_v0  ;;  %v550_v10 = vld [vmem:[%s7285_s30 + $0x30] sm:$0xff]  ;;  %v548_v11 = vld [vmem:[%s7285_s30 + $0x20] sm:$0xff]  ;;  %6831 = vmatmul.msk.f32.vlgmr.msra.gmra.mxu2 %vm299_vm0, %v1099_v9  ;;  %v1060_v14 = vld [vmem:[%s7309_s11 + $0x18] sm:$0xff]  ;;  %s7059_s22 = smov 72  }
  0x11   : > { %308 = vst.msk [vmem:[#allocation2 + $0x10] sm:$0x1] %vm306_vm2, %v7046_v0  ;;  %v1100_v15 = vld [vmem:[%s7309_s11 + $0x158] sm:$0xff]  ;;  %6792 = vmatmul.msk.f32.vlgmr.msra.gmra.mxu1 %vm299_vm0, %v1060_v14  ;;  %v1061_v22 = vld [vmem:[%s7309_s11 + $0x20] sm:$0xff]  ;;  %v1062_v29 = vld [vmem:[%s7309_s11 + $0x28] sm:$0xff]  ;;  %s7060_s23 = smov 104  }
  0x12   : > { %309 = vst.msk [vmem:[#allocation2 + $0x20] sm:$0x1] %vm306_vm2, %v7046_v0  ;;  %v1101_v23 = vld [vmem:[%s7309_s11 + $0x160] sm:$0xff]  ;;  %v1102_v30 = vld [vmem:[%s7309_s11 + $0x168] sm:$0xff]  ;;  %v1063_v36 = vld [vmem:[%s7309_s11 + $0x30] sm:$0xff]  ;;  %s7061_s27 = smov 96  }
  0x13   : > { %310 = vst.msk [vmem:[#allocation2 + $0x30] sm:$0x1] %vm306_vm2, %v7046_v0  ;;  %v1103_v37 = vld [vmem:[%s7309_s11 + $0x170] sm:$0xff]  ;;  %v551_v40 = vld [vmem:[%s7285_s30 + $0x38] sm:$0xff]  ;;  %v1065_v44 = vld [vmem:[%s7309_s11 + $0x40] sm:$0xff]  ;;  %vm2733_vm12 = vcmask 23552  }
  0x14   : > { %v577_v1 = vld [vmem:[#allocation2 + $0x1] sm:$0xff]  ;;  %311 = vst.msk [vmem:[#allocation2 + $0x40] sm:$0x1] %vm306_vm2, %v7046_v0  ;;  %v1064_v42 = vld [vmem:[%s7309_s11 + $0x38] sm:$0xff]  ;;  %v1067_v49 = vld [vmem:[%s7309_s11 + $0x50] sm:$0xff] }
  0x15   : > { %593 = vrot.lane.b32.xlu0 %v577_v1, %s7047_s26  ;;  %312 = vst.msk [vmem:[#allocation2 + $0x50] sm:$0x1] %vm306_vm2, %v7046_v0  ;;  %v1104_v43 = vld [vmem:[%s7309_s11 + $0x178] sm:$0xff]  ;;  %v1105_v45 = vld [vmem:[%s7309_s11 + $0x180] sm:$0xff]  ;;  %v1066_v46 = vld [vmem:[%s7309_s11 + $0x48] sm:$0xff] }
  0x16   : > { %313 = vst.msk [vmem:[#allocation2 + $0x60] sm:$0x1] %vm306_vm2, %v7046_v0  ;;  %v1106_v47 = vld [vmem:[%s7309_s11 + $0x188] sm:$0xff]  ;;  %v1107_v50 = vld [vmem:[%s7309_s11 + $0x190] sm:$0xff]  ;;  %v1068_v51 = vld [vmem:[%s7309_s11 + $0x58] sm:$0xff] }
  0x17   : > { %314 = vst.msk [vmem:[#allocation2 + $0x70] sm:$0x1] %vm306_vm2, %v7046_v0  ;;  %v1108_v52 = vld [vmem:[%s7309_s11 + $0x198] sm:$0xff]  ;;  %v561_v55 = vld [vmem:[#allocation2] sm:$0xff]  ;;  %v1114_v58 = vld [vmem:[%s7309_s11 + $0x1c8] sm:$0xff] }
  0x18   : > { %315 = vst.msk [vmem:[#allocation2 + $0x80] sm:$0x1] %vm306_vm2, %v7046_v0  ;;  %6832 = vmatmul.msk.f32.gmra.mxu2 %vm299_vm0, %v1100_v15  ;;  %v1069_v56 = vld [vmem:[%s7309_s11 + $0x60] sm:$0xff]  ;;  %6846 = vmatmul.msk.f32.vlgmr.msra.gmra.mxu3 %vm299_vm0, %v1114_v58  ;;  %v1070_v59 = vld [vmem:[%s7309_s11 + $0x68] sm:$0xff]  ;;  %v1115_v61 = vld [vmem:[%s7309_s11 + $0x1d0] sm:$0xff] }
  0x19   : > { %317 = vst.msk [vmem:[#allocation2 + $0x9] sm:$0x1] %vm306_vm2, %v7046_v0  ;;  %6793 = vmatmul.msk.f32.gmra.mxu1 %vm299_vm0, %v1061_v22  ;;  %v1109_v57 = vld [vmem:[%s7309_s11 + $0x1a0] sm:$0xff]  ;;  %v1110_v60 = vld [vmem:[%s7309_s11 + $0x1a8] sm:$0xff]  ;;  %v1071_v63 = vld [vmem:[%s7309_s11 + $0x70] sm:$0xff] }
  0x1a   : > { %318 = vst.msk [vmem:[#allocation2 + $0x19] sm:$0x1] %vm306_vm2, %v7046_v0  ;;  %v1116_v1 = vld [vmem:[%s7309_s11 + $0x1d8] sm:$0xff]  ;;  %v1113_v9 = vld [vmem:[%s7309_s11 + $0x1c0] sm:$0xff] }
  0x1b   : > { %319 = vst.msk [vmem:[#allocation2 + $0x29] sm:$0x1] %vm306_vm2, %v7046_v0 }
  0x1c   : > { %320 = vst.msk [vmem:[#allocation2 + $0x39] sm:$0x1] %vm306_vm2, %v7046_v0 }
  0x1d   : > { %321 = vst.msk [vmem:[#allocation2 + $0x49] sm:$0x1] %vm306_vm2, %v7046_v0 }
  0x1e   : > { %322 = vst.msk [vmem:[#allocation2 + $0x59] sm:$0x1] %vm306_vm2, %v7046_v0 }
  0x1f   : > { %323 = vst.msk [vmem:[#allocation2 + $0x69] sm:$0x1] %vm306_vm2, %v7046_v0 }
  0x20   : > { %324 = vst.msk [vmem:[#allocation2 + $0x79] sm:$0x1] %vm306_vm2, %v7046_v0  ;;  %6833 = vmatmul.msk.f32.gmra.mxu2 %vm299_vm0, %v1101_v23  ;;  %v626_v28 = vld [vmem:[#allocation2 + $0x2] sm:$0xff]  ;;  %6847 = vmatmul.msk.f32.gmra.mxu3 %vm299_vm0, %v1115_v61 }
  0x21   : > { %325 = vst.msk [vmem:[#allocation2 + $0x89] sm:$0x1] %vm306_vm2, %v7046_v0  ;;  %6794 = vmatmul.msk.f32.gmra.mxu1 %vm299_vm0, %v1062_v29 }
  0x22   : > { %339 = vst.msk [vmem:[#allocation3 + $0x3c0] sm:$0xff] %vm299_vm0, %v7046_v0 }
  0x23   : > { %340 = vst.msk [vmem:[#allocation3 + $0x3c8] sm:$0x3] %vm301_vm1, %v7046_v0 }
  0x24   : > { %341 = vst.msk [vmem:[#allocation3 + $0x460] sm:$0xff] %vm299_vm0, %v7046_v0 }
  0x25   : > { %342 = vst.msk [vmem:[#allocation3 + $0x468] sm:$0x3] %vm301_vm1, %v7046_v0 }
  0x26   : > { %343 = vst.msk [vmem:[#allocation3 + $0x500] sm:$0xff] %vm299_vm0, %v7046_v0 }
  0x27   : > { %344 = vst.msk [vmem:[#allocation3 + $0x508] sm:$0x3] %vm301_vm1, %v7046_v0 }
  0x28   : > { %346 = vst.msk [vmem:[#allocation3 + $0x90] sm:$0xff] %vm299_vm0, %v7046_v0  ;;  %6834 = vmatmul.msk.f32.gmra.mxu2 %vm299_vm0, %v1102_v30  ;;  %6848 = vmatmul.msk.f32.gmra.mxu3 %vm299_vm0, %v1116_v1  ;;  %v1118_v30 = vld [vmem:[%s7309_s11 + $0x1e8] sm:$0xff] }
  0x29   : > { %347 = vst.msk [vmem:[#allocation3 + $0x98] sm:$0x3] %vm301_vm1, %v7046_v0  ;;  %6795 = vmatmul.msk.f32.gmra.mxu1 %vm299_vm0, %v1063_v36  ;;  %v1076_v36 = vld [vmem:[%s7309_s11 + $0x98] sm:$0xff] }
  0x2a   : > { %348 = vst.msk [vmem:[#allocation3 + $0x130] sm:$0xff] %vm299_vm0, %v7046_v0 }
  0x2b   : > { %349 = vst.msk [vmem:[#allocation3 + $0x138] sm:$0x3] %vm301_vm1, %v7046_v0 }
  0x2c   : > { %350 = vst.msk [vmem:[#allocation3 + $0x1d0] sm:$0xff] %vm299_vm0, %v7046_v0 }
  0x2d   : > { %351 = vst.msk [vmem:[#allocation3 + $0x1d8] sm:$0x3] %vm301_vm1, %v7046_v0 }
  0x2e   : > { %385 = vst.msk [vmem:[#allocation3 + $0x150] sm:$0x1] %vm306_vm2, %v7046_v0 }
  0x2f   : > { %386 = vst.msk [vmem:[#allocation3 + $0x160] sm:$0x1] %vm306_vm2, %v7046_v0 }
  0x30   : > { %387 = vst.msk [vmem:[#allocation3 + $0x170] sm:$0x1] %vm306_vm2, %v7046_v0  ;;  %6835 = vmatmul.msk.f32.gmra.mxu2 %vm299_vm0, %v1103_v37 }
  0x31   : > { %388 = vst.msk [vmem:[#allocation3 + $0x180] sm:$0x1] %vm306_vm2, %v7046_v0  ;;  %6796 = vmatmul.msk.f32.gmra.mxu1 %vm299_vm0, %v1064_v42 }
  0x32   : > { %389 = vst.msk [vmem:[#allocation3 + $0x190] sm:$0x1] %vm306_vm2, %v7046_v0 }
  0x33   : > { %390 = vst.msk [vmem:[#allocation3 + $0x1a0] sm:$0x1] %vm306_vm2, %v7046_v0 }
  0x34   : > { %391 = vst.msk [vmem:[#allocation3 + $0x1b0] sm:$0x1] %vm306_vm2, %v7046_v0 }
  0x35   : > { %392 = vst.msk [vmem:[#allocation3 + $0x1c0] sm:$0x1] %vm306_vm2, %v7046_v0 }
  0x36   : > { %415 = vst.msk [vmem:[#allocation3 + $0x330] sm:$0x1] %vm306_vm2, %v7046_v0 }
  0x37   : > { %416 = vst.msk [vmem:[#allocation3 + $0x340] sm:$0x1] %vm306_vm2, %v7046_v0 }
  0x38   : > { %417 = vst.msk [vmem:[#allocation3 + $0x350] sm:$0x1] %vm306_vm2, %v7046_v0  ;;  %6836 = vmatmul.msk.f32.gmra.mxu2 %vm299_vm0, %v1104_v43 }
  0x39   : > { %418 = vst.msk [vmem:[#allocation3 + $0x360] sm:$0x1] %vm306_vm2, %v7046_v0  ;;  %6797 = vmatmul.msk.f32.gmra.mxu1 %vm299_vm0, %v1065_v44  ;;  %v1077_v44 = vld [vmem:[%s7309_s11 + $0xa0] sm:$0xff] }
  0x3a   : > { %419 = vst.msk [vmem:[#allocation3 + $0x370] sm:$0x1] %vm306_vm2, %v7046_v0 }
  0x3b   : > { %420 = vst.msk [vmem:[#allocation3 + $0x380] sm:$0x1] %vm306_vm2, %v7046_v0 }
  0x3c   : > { %421 = vst.msk [vmem:[#allocation3 + $0x390] sm:$0x1] %vm306_vm2, %v7046_v0 }
  0x3d   : > { %422 = vst.msk [vmem:[#allocation3 + $0x3a0] sm:$0x1] %vm306_vm2, %v7046_v0 }
  0x3e   : > { %445 = vst.msk [vmem:[#allocation3 + $0x510] sm:$0x1] %vm306_vm2, %v7046_v0 }
  0x3f   : > { %446 = vst.msk [vmem:[#allocation3 + $0x520] sm:$0x1] %vm306_vm2, %v7046_v0 }
  0x40   : > { %447 = vst.msk [vmem:[#allocation3 + $0x530] sm:$0x1] %vm306_vm2, %v7046_v0  ;;  %6837 = vmatmul.msk.f32.gmra.mxu2 %vm299_vm0, %v1105_v45 }
  0x41   : > { %448 = vst.msk [vmem:[#allocation3 + $0x540] sm:$0x1] %vm306_vm2, %v7046_v0  ;;  %6798 = vmatmul.msk.f32.gmra.mxu1 %vm299_vm0, %v1066_v46  ;;  %v1120_v46 = vld [vmem:[%s7309_s11 + $0x1f8] sm:$0xff] }
  0x42   : > { %449 = vst.msk [vmem:[#allocation3 + $0x550] sm:$0x1] %vm306_vm2, %v7046_v0 }
  0x43   : > { %450 = vst.msk [vmem:[#allocation3 + $0x560] sm:$0x1] %vm306_vm2, %v7046_v0 }
  0x44   : > { %451 = vst.msk [vmem:[#allocation3 + $0x570] sm:$0x1] %vm306_vm2, %v7046_v0 }
  0x45   : > { %452 = vst.msk [vmem:[#allocation3 + $0x580] sm:$0x1] %vm306_vm2, %v7046_v0 }
  0x46   : > { %455 = vst.msk [vmem:[#allocation3 + $0x19] sm:$0x1] %vm306_vm2, %v7046_v0 }
  0x47   : > { %456 = vst.msk [vmem:[#allocation3 + $0x29] sm:$0x1] %vm306_vm2, %v7046_v0 }
  0x48   : > { %457 = vst.msk [vmem:[#allocation3 + $0x39] sm:$0x1] %vm306_vm2, %v7046_v0  ;;  %6838 = vmatmul.msk.f32.gmra.mxu2 %vm299_vm0, %v1106_v47 }
  0x49   : > { %458 = vst.msk [vmem:[#allocation3 + $0x49] sm:$0x1] %vm306_vm2, %v7046_v0  ;;  %6799 = vmatmul.msk.f32.gmra.mxu1 %vm299_vm0, %v1067_v49  ;;  %v1078_v49 = vld [vmem:[%s7309_s11 + $0xa8] sm:$0xff] }
  0x4a   : > { %459 = vst.msk [vmem:[#allocation3 + $0x59] sm:$0x1] %vm306_vm2, %v7046_v0 }
  0x4b   : > { %460 = vst.msk [vmem:[#allocation3 + $0x69] sm:$0x1] %vm306_vm2, %v7046_v0 }
  0x4c   : > { %461 = vst.msk [vmem:[#allocation3 + $0x79] sm:$0x1] %vm306_vm2, %v7046_v0 }
  0x4d   : > { %462 = vst.msk [vmem:[#allocation3 + $0x89] sm:$0x1] %vm306_vm2, %v7046_v0 }
  0x4e   : > { %485 = vst.msk [vmem:[#allocation3 + $0x1f9] sm:$0x1] %vm306_vm2, %v7046_v0 }
  0x4f   : > { %486 = vst.msk [vmem:[#allocation3 + $0x209] sm:$0x1] %vm306_vm2, %v7046_v0 }
  0x50   : > { %487 = vst.msk [vmem:[#allocation3 + $0x219] sm:$0x1] %vm306_vm2, %v7046_v0  ;;  %6839 = vmatmul.msk.f32.gmra.mxu2 %vm299_vm0, %v1107_v50 }
  0x51   : > { %488 = vst.msk [vmem:[#allocation3 + $0x229] sm:$0x1] %vm306_vm2, %v7046_v0  ;;  %6800 = vmatmul.msk.f32.gmra.mxu1 %vm299_vm0, %v1068_v51 }
  0x52   : > { %489 = vst.msk [vmem:[#allocation3 + $0x239] sm:$0x1] %vm306_vm2, %v7046_v0 }
  0x53   : > { %490 = vst.msk [vmem:[#allocation3 + $0x249] sm:$0x1] %vm306_vm2, %v7046_v0 }
  0x54   : > { %491 = vst.msk [vmem:[#allocation3 + $0x259] sm:$0x1] %vm306_vm2, %v7046_v0 }
  0x55   : > { %492 = vst.msk [vmem:[#allocation3 + $0x269] sm:$0x1] %vm306_vm2, %v7046_v0 }
  0x56   : > { %515 = vst.msk [vmem:[#allocation3 + $0x3d9] sm:$0x1] %vm306_vm2, %v7046_v0 }
  0x57   : > { %516 = vst.msk [vmem:[#allocation3 + $0x3e9] sm:$0x1] %vm306_vm2, %v7046_v0 }
  0x58   : > { %517 = vst.msk [vmem:[#allocation3 + $0x3f9] sm:$0x1] %vm306_vm2, %v7046_v0  ;;  %6840 = vmatmul.msk.f32.gmra.mxu2 %vm299_vm0, %v1108_v52 }
  0x59   : > { %518 = vst.msk [vmem:[#allocation3 + $0x409] sm:$0x1] %vm306_vm2, %v7046_v0  ;;  %6801 = vmatmul.msk.f32.gmra.mxu1 %vm299_vm0, %v1069_v56 }
  0x5a   : > { %519 = vst.msk [vmem:[#allocation3 + $0x419] sm:$0x1] %vm306_vm2, %v7046_v0 }
  0x5b   : > { %520 = vst.msk [vmem:[#allocation3 + $0x429] sm:$0x1] %vm306_vm2, %v7046_v0 }
  0x5c   : > { %521 = vst.msk [vmem:[#allocation3 + $0x439] sm:$0x1] %vm306_vm2, %v7046_v0 }
  0x5d   : > { %522 = vst.msk [vmem:[#allocation3 + $0x449] sm:$0x1] %vm306_vm2, %v7046_v0 }
  0x5e   : > { %554 = vst.msk [vmem:[#allocation2 + $0x21] sm:$0xff] %vm299_vm0, %v545_v2 }
  0x5f   : > { %316 = vst.msk [vmem:[#allocation2 + $0x90] sm:$0x1] %vm306_vm2, %v7046_v0 }
  0x60   : > { %326 = vst.msk [vmem:[#allocation2 + $0x99] sm:$0x1] %vm306_vm2, %v7046_v0  ;;  %6841 = vmatmul.msk.f32.gmra.mxu2 %vm299_vm0, %v1109_v57 }
  0x61   : > { %393 = vst.msk [vmem:[#allocation3 + $0x1d0] sm:$0x1] %vm306_vm2, %v7046_v0  ;;  %6802 = vmatmul.msk.f32.gmra.mxu1 %vm299_vm0, %v1070_v59 }
  0x62   : > { %444 = vst.msk [vmem:[#allocation3 + $0x500] sm:$0x1] %vm306_vm2, %v7046_v0 }
  0x63   : > { %463 = vst.msk [vmem:[#allocation3 + $0x99] sm:$0x1] %vm306_vm2, %v7046_v0 }
  0x64   : > { %514 = vst.msk [vmem:[#allocation3 + $0x3c9] sm:$0x1] %vm306_vm2, %v7046_v0  ;;  %v1111_v0 = vld [vmem:[%s7309_s11 + $0x1b0] sm:$0xff] }
  0x65   : > { %v7293_v3 = vld [vmem:[#allocation2 + $0x21] sm:$0xff]  ;;  %553 = vst.msk [vmem:[#allocation2 + $0x11] sm:$0xff] %vm299_vm0, %v544_v4 }
  0x66   : > { %597 = vrot.lane.b32.xlu1 %v7293_v3, %s7047_s26  ;;  %555 = vst.msk [vmem:[#allocation2 + $0x31] sm:$0xff] %vm299_vm0, %v546_v5  ;;  %v7382_v27 = vld [vmem:[#allocation2 + $0x22] sm:$0xff]  ;;  %v1112_v5 = vld [vmem:[%s7309_s11 + $0x1b8] sm:$0xff] }
  0x67   : > { %558 = vst.msk [vmem:[#allocation2 + $0x61] sm:$0xff] %vm299_vm0, %v549_v6  ;;  %v7388_v31 = vld [vmem:[#allocation2 + $0x20] sm:$0xff]  ;;  %v928_v52 = vld [vmem:[#allocation2 + $0x92] sm:$0xff] }
  0x68   : > { %556 = vst.msk [vmem:[#allocation2 + $0x41] sm:$0xff] %vm299_vm0, %v547_v7  ;;  %6842 = vmatmul.msk.f32.gmra.mxu2 %vm299_vm0, %v1110_v60  ;;  %v1072_v7 = vld [vmem:[%s7309_s11 + $0x78] sm:$0xff] }
  0x69   : > { %559 = vst.msk [vmem:[#allocation2 + $0x71] sm:$0xff] %vm299_vm0, %v550_v10  ;;  %6803 = vmatmul.msk.f32.gmra.mxu1 %vm299_vm0, %v1071_v63 }
  0x6a   : > { %557 = vst.msk [vmem:[#allocation2 + $0x51] sm:$0xff] %vm299_vm0, %v548_v11  ;;  %v1073_v11 = vld [vmem:[%s7309_s11 + $0x80] sm:$0xff] }
  0x6b   : > { %571 = vst.msk [vmem:[#allocation4 + $0x10] sm:$0xff] %vm299_vm0, %v7388_v31 }
  0x6c   : > { %v7335_v12 = vld [vmem:[#allocation2 + $0x11] sm:$0xff]  ;;  %560 = vst.msk [vmem:[#allocation2 + $0x81] sm:$0xff] %vm299_vm0, %v551_v40 }
  0x6d   : > { %595 = vrot.lane.b32.xlu0 %v7335_v12, %s7047_s26  ;;  %v7339_v13 = vld [vmem:[#allocation2 + $0x31] sm:$0xff]  ;;  %569 = vst.msk [vmem:[#allocation4] sm:$0xff] %vm299_vm0, %v561_v55 }
  0x6e   : > { %599 = vrot.lane.b32.xlu1 %v7339_v13, %s7047_s26  ;;  %v675_v16 = vld [vmem:[#allocation2 + $0x10] sm:$0xff]  ;;  %v7356_v19 = vld [vmem:[#allocation2 + $0x61] sm:$0xff] }
  0x6f   : > { %v7346_v17 = vld [vmem:[#allocation2 + $0x41] sm:$0xff]  ;;  %v7349_v18 = vld [vmem:[#allocation2 + $0x30] sm:$0xff]  ;;  %570 = vst.msk [vmem:[#allocation4 + $0x8] sm:$0xff] %vm299_vm0, %v675_v16 }
  0x70   : > { %601 = vrot.lane.b32.xlu2 %v7346_v17, %s7047_s26  ;;  %572 = vst.msk [vmem:[#allocation4 + $0x18] sm:$0xff] %vm299_vm0, %v7349_v18  ;;  %v7358_v20 = vld [vmem:[#allocation2 + $0x71] sm:$0xff]  ;;  %v7369_v24 = vld [vmem:[#allocation2 + $0x40] sm:$0xff]  ;;  %6843 = vmatmul.msk.f32.gmra.mxu2 %vm299_vm0, %v1111_v0 }
  0x71   : > { %v7362_v21 = vld [vmem:[#allocation2 + $0x51] sm:$0xff]  ;;  %v7372_v25 = vld [vmem:[#allocation2 + $0x60] sm:$0xff]  ;;  %573 = vst.msk [vmem:[#allocation4 + $0x20] sm:$0xff] %vm299_vm0, %v7369_v24  ;;  %6804 = vmatmul.msk.f32.gmra.mxu1 %vm299_vm0, %v1072_v7 }
  0x72   : > { %575 = vst.msk [vmem:[#allocation4 + $0x30] sm:$0xff] %vm299_vm0, %v7372_v25  ;;  %v7380_v26 = vld [vmem:[#allocation2 + $0x12] sm:$0xff]  ;;  %v7401_v33 = vld [vmem:[#allocation2 + $0x42] sm:$0xff] }
  0x73   : > { %v7393_v32 = vld [vmem:[#allocation2 + $0x70] sm:$0xff]  ;;  %v7426_v41 = vld [vmem:[#allocation2 + $0x62] sm:$0xff] }
  0x74   : > { %576 = vst.msk [vmem:[#allocation4 + $0x38] sm:$0xff] %vm299_vm0, %v7393_v32  ;;  %v7403_v34 = vld [vmem:[#allocation2 + $0x52] sm:$0xff]  ;;  %v7458_v48 = vld [vmem:[#allocation2 + $0x80] sm:$0xff] }
  0x75   : > { %605 = vrot.lane.b32.xlu0 %v7356_v19, %s7047_s26  ;;  %v7405_v35 = vld [vmem:[#allocation2 + $0x32] sm:$0xff]  ;;  %v7478_v53 = vld [vmem:[#allocation2 + $0x81] sm:$0xff] }
  0x76   : > { %607 = vrot.lane.b32.xlu1 %v7358_v20, %s7047_s26  ;;  %v7411_v38 = vld [vmem:[#allocation2 + $0x50] sm:$0xff]  ;;  %v7519_v2 = vld [vmem:[#allocation2 + $0x82] sm:$0xff] }
  0x77   : > { %574 = vst.msk [vmem:[#allocation4 + $0x28] sm:$0xff] %vm299_vm0, %v7411_v38  ;;  %v7421_v39 = vld [vmem:[#allocation2 + $0x72] sm:$0xff] }
  0x78   : > { %603 = vrot.lane.b32.xlu2 %v7362_v21, %s7047_s26  ;;  %6844 = vmatmul.msk.f32.gmra.mxu2 %vm299_vm0, %v1112_v5  ;;  %v1079_v5 = vld [vmem:[%s7309_s11 + $0xb0] sm:$0xff] }
  0x79   : > { %6805 = vmatmul.msk.f32.gmra.mxu1 %vm299_vm0, %v1073_v11 }
  0x7d   : > { %644 = vrot.lane.b32.xlu0 %v7380_v26, %s7048_s14 }
  0x7e   : > { %646 = vrot.lane.b32.xlu1 %v7382_v27, %s7048_s14 }
  0x80   : > { %642 = vrot.lane.b32.xlu2 %v626_v28, %s7048_s14  ;;  %6845 = vmatmul.msk.f32.gmra.mxu2 %vm299_vm0, %v1113_v9 }
  0x85   : > { %650 = vrot.lane.b32.xlu0 %v7401_v33, %s7048_s14 }
  0x86   : > { %652 = vrot.lane.b32.xlu1 %v7403_v34, %s7048_s14 }
  0x87   : > { %v594_v54 = vpop.permute.xlu0 %593 }
  0x88   : > { %648 = vrot.lane.b32.xlu2 %v7405_v35, %s7048_s14  ;;  %618 = vst.msk [vmem:[#allocation4] sm:$0xff] %vm617_vm3, %v594_v54 }
  0x8d   : > { %656 = vrot.lane.b32.xlu0 %v7421_v39, %s7048_s14 }
  0x8e   : > { %691 = vrot.lane.b32.xlu1 %v675_v16, %s7049_s15  ;;  %v1074_v16 = vld [vmem:[%s7309_s11 + $0x88] sm:$0xff] }
  0x8f   : > { %6806 = vmatmul.msk.f32.gmra.mxu1 %vm299_vm0, %v1074_v16 }
  0x90   : > { %654 = vrot.lane.b32.xlu2 %v7426_v41, %s7048_s14 }
  0x95   : > { %695 = vrot.lane.b32.xlu0 %v7349_v18, %s7049_s15 }
  0x96   : > { %697 = vrot.lane.b32.xlu1 %v7369_v24, %s7049_s15 }
  0x98   : > { %693 = vrot.lane.b32.xlu2 %v7388_v31, %s7049_s15 }
  0x9d   : > { %701 = vrot.lane.b32.xlu0 %v7372_v25, %s7049_s15 }
  0x9e   : > { %703 = vrot.lane.b32.xlu1 %v7393_v32, %s7049_s15 }
  0xa0   : > { %699 = vrot.lane.b32.xlu2 %v7411_v38, %s7049_s15 }
  0xa5   : > { %740 = vrot.lane.b32.xlu0 %v7335_v12, %s7050_s16 }
  0xa6   : > { %742 = vrot.lane.b32.xlu1 %v7293_v3, %s7050_s16 }
  0xa8   : > { %705 = vrot.lane.b32.xlu2 %v7458_v48, %s7049_s15 }
  0xad   : > { %746 = vrot.lane.b32.xlu0 %v7346_v17, %s7050_s16 }
  0xae   : > { %748 = vrot.lane.b32.xlu1 %v7362_v21, %s7050_s16 }
  0xb0   : > { %744 = vrot.lane.b32.xlu2 %v7339_v13, %s7050_s16 }
  0xb5   : > { %752 = vrot.lane.b32.xlu0 %v7358_v20, %s7050_s16 }
  0xb6   : > { %754 = vrot.lane.b32.xlu1 %v7478_v53, %s7050_s16 }
  0xb8   : > { %750 = vrot.lane.b32.xlu2 %v7356_v19, %s7050_s16 }
  0xbd   : > { %791 = vrot.lane.b32.xlu0 %v7382_v27, %s7051_s17 }
  0xbe   : > { %793 = vrot.lane.b32.xlu1 %v7405_v35, %s7051_s17 }
  0xc0   : > { %789 = vrot.lane.b32.xlu2 %v7380_v26, %s7051_s17  ;;  %v1075_v26 = vld [vmem:[%s7309_s11 + $0x90] sm:$0xff] }
  0xc1   : > { %6807 = vmatmul.msk.f32.gmra.mxu1 %vm299_vm0, %v1075_v26 }
  0xc5   : > { %797 = vrot.lane.b32.xlu0 %v7403_v34, %s7051_s17 }
  0xc6   : > { %799 = vrot.lane.b32.xlu1 %v7426_v41, %s7051_s17 }
  0xc8   : > { %795 = vrot.lane.b32.xlu2 %v7401_v33, %s7051_s17 }
  0xc9   : > { %6808 = vmatmul.msk.f32.gmra.mxu1 %vm299_vm0, %v1076_v36 }
  0xca   : > { %v602_v4 = vpop.permute.xlu2 %601 }
  0xcb   : > { %622 = vst.msk [vmem:[#allocation4 + $0x20] sm:$0xff] %vm617_vm3, %v602_v4 }
  0xcd   : > { %803 = vrot.lane.b32.xlu0 %v7519_v2, %s7051_s17 }
  0xce   : > { %839 = vrot.lane.b32.xlu1 %v7388_v31, %s7052_s18 }
  0xd0   : > { %801 = vrot.lane.b32.xlu2 %v7421_v39, %s7051_s17 }
  0xd1   : > { %6809 = vmatmul.msk.f32.gmra.mxu1 %vm299_vm0, %v1077_v44  ;;  %v980_v44 = vld [vmem:[%s10707_s2 + $0x10] sm:$0xff] }
  0xd2   : > { %v604_v6 = vpop.permute.xlu2 %603 }
  0xd3   : > { %623 = vst.msk [vmem:[#allocation4 + $0x28] sm:$0xff] %vm617_vm3, %v604_v6 }
  0xd5   : > { %843 = vrot.lane.b32.xlu0 %v7369_v24, %s7052_s18  ;;  %v1117_v24 = vld [vmem:[%s7309_s11 + $0x1e0] sm:$0xff] }
  0xd6   : > { %845 = vrot.lane.b32.xlu1 %v7411_v38, %s7052_s18  ;;  %6849 = vmatmul.msk.f32.gmra.mxu3 %vm299_vm0, %v1117_v24  ;;  %v1119_v38 = vld [vmem:[%s7309_s11 + $0x1f0] sm:$0xff] }
  0xd8   : > { %v598_v62 = vpop.permute.xlu1 %597  ;;  %841 = vrot.lane.b32.xlu2 %v7349_v18, %s7052_s18  ;;  %v830_v18 = vld [vmem:[#allocation2 + $0x90] sm:$0xff] }
  0xd9   : > { %620 = vst.msk [vmem:[#allocation4 + $0x10] sm:$0xff] %vm617_vm3, %v598_v62  ;;  %6810 = vmatmul.msk.f32.gmra.mxu1 %vm299_vm0, %v1078_v49 }
  0xda   : > { %v643_v10 = vpop.permute.xlu2 %642 }
  0xdb   : > { %667 = vst.msk [vmem:[#allocation4] sm:$0xff] %vm666_vm4, %v643_v10 }
  0xdd   : > { %849 = vrot.lane.b32.xlu0 %v7393_v32, %s7052_s18 }
  0xde   : > { %851 = vrot.lane.b32.xlu1 %v7458_v48, %s7052_s18  ;;  %6850 = vmatmul.msk.f32.gmra.mxu3 %vm299_vm0, %v1118_v30  ;;  %v984_v30 = vld [vmem:[%s10707_s2 + $0x30] sm:$0xff] }
  0xdf   : > { %v596_v12 = vpop.permute.xlu0 %595 }
  0xe0   : > { %619 = vst.msk [vmem:[#allocation4 + $0x8] sm:$0xff] %vm617_vm3, %v596_v12  ;;  %v600_v14 = vpop.permute.xlu1 %599  ;;  %847 = vrot.lane.b32.xlu2 %v7372_v25, %s7052_s18 }
  0xe1   : > { %621 = vst.msk [vmem:[#allocation4 + $0x18] sm:$0xff] %vm617_vm3, %v600_v14  ;;  %6811 = vmatmul.msk.f32.gmra.mxu1 %vm299_vm0, %v1079_v5 }
  0xe2   : > { %v649_v15 = vpop.permute.xlu2 %648 }
  0xe3   : > { %670 = vst.msk [vmem:[#allocation4 + $0x18] sm:$0xff] %vm666_vm4, %v649_v15 }
  0xe5   : > { %888 = vrot.lane.b32.xlu0 %v7293_v3, %s7053_s19  ;;  %v7564_v3 = vpop.f32.mrf.mxu2 }
  0xe6   : > { %890 = vrot.lane.b32.xlu1 %v7339_v13, %s7053_s19  ;;  %v7567_v13 = vpop.f32.mrf.mxu1  ;;  %6851 = vmatmul.msk.f32.gmra.mxu3 %vm299_vm0, %v1119_v38 }
  0xe7   : > { %v606_v22 = vpop.permute.xlu0 %605 }
  0xe8   : > { %624 = vst.msk [vmem:[#allocation4 + $0x30] sm:$0xff] %vm617_vm3, %v606_v22  ;;  %v608_v23 = vpop.permute.xlu1 %607  ;;  %853 = vrot.lane.b32.xlu2 %v830_v18, %s7052_s18  ;;  %v986_v22 = vld [vmem:[%s10707_s2 + $0x40] sm:$0xff] }
  0xe9   : > { %625 = vst.msk [vmem:[#allocation4 + $0x38] sm:$0xff] %vm617_vm3, %v608_v23  ;;  %1023 = vmatpush.msra.mxu0 %v986_v22 }
  0xea   : > { %v655_v25 = vpop.permute.xlu2 %654 }
  0xeb   : > { %673 = vst.msk [vmem:[#allocation4 + $0x30] sm:$0xff] %vm666_vm4, %v655_v25 }
  0xed   : > { %894 = vrot.lane.b32.xlu0 %v7362_v21, %s7053_s19  ;;  %v7581_v31 = vpop.f32.mrf.mxu2 }
  0xee   : > { %896 = vrot.lane.b32.xlu1 %v7356_v19, %s7053_s19  ;;  %v879_v19 = vld [vmem:[#allocation2 + $0x91] sm:$0xff]  ;;  %v7584_v32 = vpop.f32.mrf.mxu1  ;;  %6852 = vmatmul.msk.f32.gmra.mxu3 %vm299_vm0, %v1120_v46 }
  0xef   : > { %v645_v28 = vpop.permute.xlu0 %644 }
  0xf0   : > { %668 = vst.msk [vmem:[#allocation4 + $0x8] sm:$0xff] %vm666_vm4, %v645_v28  ;;  %v647_v29 = vpop.permute.xlu1 %646  ;;  %892 = vrot.lane.b32.xlu2 %v7346_v17, %s7053_s19 }
  0xf1   : > { %669 = vst.msk [vmem:[#allocation4 + $0x10] sm:$0xff] %vm666_vm4, %v647_v29  ;;  %v985_v29 = vld [vmem:[%s10707_s2 + $0x38] sm:$0xff] }
  0xf2   : > { %v694_v21 = vpop.permute.xlu2 %693  ;;  %1024 = vmatpush.msra.mxu0 %v985_v29 }
  0xf3   : > { %717 = vst.msk [vmem:[#allocation4 + $0x8] sm:$0xff] %vm715_vm5, %v694_v21 }
  0xf4   : > { %1025 = vmatpush.msra.mxu0 %v984_v30  ;;  %v1086_v30 = vld [vmem:[%s7309_s11 + $0xe8] sm:$0xff] }
  0xf5   : > { %900 = vrot.lane.b32.xlu0 %v7478_v53, %s7053_s19  ;;  %v1495_v42 = vpop.f32.mrf.mxu2 }
  0xf6   : > { %902 = vrot.lane.b32.xlu1 %v879_v19, %s7053_s19  ;;  %v7598_v43 = vpop.f32.mrf.mxu1 }
  0xf7   : > { %v651_v17 = vpop.permute.xlu0 %650 }
  0xf8   : > { %671 = vst.msk [vmem:[#allocation4 + $0x20] sm:$0xff] %vm666_vm4, %v651_v17  ;;  %v653_v37 = vpop.permute.xlu1 %652  ;;  %898 = vrot.lane.b32.xlu2 %v7358_v20, %s7053_s19 }
  0xf9   : > { %672 = vst.msk [vmem:[#allocation4 + $0x28] sm:$0xff] %vm666_vm4, %v653_v37  ;;  %v982_v37 = vld [vmem:[%s10707_s2 + $0x20] sm:$0xff] }
  0xfa   : > { %v700_v40 = vpop.permute.xlu2 %699 }
  0xfb   : > { %720 = vst.msk [vmem:[#allocation4 + $0x20] sm:$0xff] %vm715_vm5, %v700_v40 }
  0xfd   : > { %939 = vrot.lane.b32.xlu0 %v7405_v35, %s7054_s20  ;;  %v1498_v35 = vpop.f32.mrf.mxu2 }
  0xfe   : > { %941 = vrot.lane.b32.xlu1 %v7401_v33, %s7054_s20  ;;  %v7613_v33 = vpop.f32.mrf.mxu1 }
  0xff   : > { %v657_v20 = vpop.permute.xlu0 %656 }
 0x100   : > { %674 = vst.msk [vmem:[#allocation4 + $0x38] sm:$0xff] %vm666_vm4, %v657_v20  ;;  %v692_v45 = vpop.permute.xlu1 %691  ;;  %937 = vrot.lane.b32.xlu2 %v7382_v27, %s7054_s20 }
 0x101   : > { %716 = vst.msk [vmem:[#allocation4] sm:$0xff] %vm715_vm5, %v692_v45  ;;  %v979_v45 = vld [vmem:[%s10707_s2 + $0x8] sm:$0xff] }
 0x102   : > { %v706_v47 = vpop.permute.xlu2 %705 }
 0x103   : > { %723 = vst.msk [vmem:[#allocation4 + $0x38] sm:$0xff] %vm715_vm5, %v706_v47 }
 0x105   : > { %945 = vrot.lane.b32.xlu0 %v7426_v41, %s7054_s20  ;;  %v1501_v51 = vpop.f32.mrf.mxu2 }
 0x106   : > { %947 = vrot.lane.b32.xlu1 %v7421_v39, %s7054_s20  ;;  %v7626_v41 = vpop.f32.mrf.mxu1 }
 0x107   : > { %v696_v48 = vpop.permute.xlu0 %695 }
 0x108   : > { %718 = vst.msk [vmem:[#allocation4 + $0x10] sm:$0xff] %vm715_vm5, %v696_v48  ;;  %v698_v27 = vpop.permute.xlu1 %697  ;;  %943 = vrot.lane.b32.xlu2 %v7403_v34, %s7054_s20 }
 0x109   : > { %719 = vst.msk [vmem:[#allocation4 + $0x18] sm:$0xff] %vm715_vm5, %v698_v27 }
 0x10a   : > { %v745_v50 = vpop.permute.xlu2 %744 }
 0x10b   : > { %767 = vst.msk [vmem:[#allocation4 + $0x10] sm:$0xff] %vm764_vm6, %v745_v50 }
 0x10d   : > { %951 = vrot.lane.b32.xlu0 %v928_v52, %s7054_s20  ;;  %v1504_v54 = vpop.f32.mrf.mxu2 }
 0x10e   : > { %v1387_v55 = vpop.f32.mrf.mxu1 }
 0x10f   : > { %v702_v39 = vpop.permute.xlu0 %701  ;;  %1604 = vrot.lane.b32.xlu1 %v1387_v55, %s7047_s26 }
 0x110   : > { %721 = vst.msk [vmem:[#allocation4 + $0x28] sm:$0xff] %vm715_vm5, %v702_v39  ;;  %v704_v53 = vpop.permute.xlu1 %703  ;;  %949 = vrot.lane.b32.xlu2 %v7519_v2, %s7054_s20 }
 0x111   : > { %722 = vst.msk [vmem:[#allocation4 + $0x30] sm:$0xff] %vm715_vm5, %v704_v53 }
 0x112   : > { %v751_v34 = vpop.permute.xlu2 %750 }
 0x113   : > { %770 = vst.msk [vmem:[#allocation4 + $0x28] sm:$0xff] %vm764_vm6, %v751_v34 }
 0x115   : > { %1936 = vrot.lane.b32.xlu0 %v1495_v42, %s7051_s17  ;;  %v1507_v59 = vpop.f32.mrf.mxu2  ;;  %v981_v42 = vld [vmem:[%s10707_s2 + $0x18] sm:$0xff] }
 0x116   : > { %v1390_v60 = vpop.f32.mrf.mxu1 }
 0x117   : > { %v741_v56 = vpop.permute.xlu0 %740  ;;  %1932 = vrot.lane.b32.xlu1 %v7564_v3, %s7051_s17  ;;  %v1534_v3 = vpop.f32.mrf.mxu3 }
 0x118   : > { %765 = vst.msk [vmem:[#allocation4] sm:$0xff] %vm764_vm6, %v741_v56  ;;  %v743_v57 = vpop.permute.xlu1 %742  ;;  %1934 = vrot.lane.b32.xlu2 %v7581_v31, %s7051_s17  ;;  %v983_v31 = vld [vmem:[%s10707_s2 + $0x28] sm:$0xff] }
 0x119   : > { %766 = vst.msk [vmem:[#allocation4 + $0x8] sm:$0xff] %vm764_vm6, %v743_v57  ;;  %1026 = vmatpush.msra.mxu0 %v983_v31 }
 0x11a   : > { %v790_v58 = vpop.permute.xlu2 %789 }
 0x11b   : > { %814 = vst.msk [vmem:[#allocation4] sm:$0xff] %vm813_vm7, %v790_v58  ;;  %1027 = vmatpush.msra.mxu0 %v982_v37  ;;  %v1058_v37 = vld [vmem:[%s7309_s11 + $0x8] sm:$0xff] }
 0x11d   : > { %v1510_v0 = vpop.f32.mrf.mxu2  ;;  %1028 = vmatpush.msra.mxu0 %v981_v42  ;;  %v1090_v42 = vld [vmem:[%s7309_s11 + $0x108] sm:$0xff] }
 0x11e   : > { %v1393_v1 = vpop.f32.mrf.mxu1 }
 0x11f   : > { %v747_v61 = vpop.permute.xlu0 %746  ;;  %1938 = vrot.lane.b32.xlu1 %v1498_v35, %s7051_s17  ;;  %1608 = vrot.lane.b32.xlu0 %v1393_v1, %s7047_s26  ;;  %v1537_v17 = vpop.f32.mrf.mxu3  ;;  %v978_v35 = vld [vmem:[%s10707_s2] sm:$0xff] }
 0x120   : > { %768 = vst.msk [vmem:[#allocation4 + $0x18] sm:$0xff] %vm764_vm6, %v747_v61  ;;  %v749_v62 = vpop.permute.xlu1 %748  ;;  %1606 = vrot.lane.b32.xlu2 %v1390_v60, %s7047_s26  ;;  %1029 = vmatpush.msra.mxu0 %v980_v44  ;;  %v1080_v61 = vld [vmem:[%s7309_s11 + $0xb8] sm:$0xff]  ;;  %v1091_v44 = vld [vmem:[%s7309_s11 + $0x110] sm:$0xff] }
 0x121   : > { %769 = vst.msk [vmem:[#allocation4 + $0x20] sm:$0xff] %vm764_vm6, %v749_v62  ;;  %6812 = vmatmul.msk.f32.gmra.mxu1 %vm299_vm0, %v1080_v61 }
 0x122   : > { %v796_v63 = vpop.permute.xlu2 %795  ;;  %1030 = vmatpush.msra.mxu0 %v979_v45  ;;  %v1093_v45 = vld [vmem:[%s7309_s11 + $0x120] sm:$0xff] }
 0x123   : > { %817 = vst.msk [vmem:[#allocation4 + $0x18] sm:$0xff] %vm813_vm7, %v796_v63 }
 0x124   : > { %1031 = vmatpush.msra.mxu0 %v978_v35 }
 0x125   : > { %v1513_v7 = vpop.f32.mrf.mxu2 }
 0x126   : > { %v1396_v9 = vpop.f32.mrf.mxu1  ;;  %1361 = vmatpush.msrb.mxu0 %v7321_v8 }
 0x127   : > { %v753_v2 = vpop.permute.xlu0 %752  ;;  %1610 = vrot.lane.b32.xlu1 %v1396_v9, %s7047_s26  ;;  %1942 = vrot.lane.b32.xlu0 %v1504_v54, %s7051_s17  ;;  %v1540_v47 = vpop.f32.mrf.mxu3 }
 0x128   : > { %771 = vst.msk [vmem:[#allocation4 + $0x30] sm:$0xff] %vm764_vm6, %v753_v2  ;;  %v755_v4 = vpop.permute.xlu1 %754  ;;  %1940 = vrot.lane.b32.xlu2 %v1501_v51, %s7051_s17  ;;  %v1081_v2 = vld [vmem:[%s7309_s11 + $0xc0] sm:$0xff] }
 0x129   : > { %772 = vst.msk [vmem:[#allocation4 + $0x38] sm:$0xff] %vm764_vm6, %v755_v4  ;;  %6813 = vmatmul.msk.f32.gmra.mxu1 %vm299_vm0, %v1081_v2 }
 0x12a   : > { %v802_v6 = vpop.permute.xlu2 %801 }
 0x12b   : > { %820 = vst.msk [vmem:[#allocation4 + $0x30] sm:$0xff] %vm813_vm7, %v802_v6 }
 0x12d   : > { %v1516_v14 = vpop.f32.mrf.mxu2 }
 0x12e   : > { %v1399_v15 = vpop.f32.mrf.mxu1 }
 0x12f   : > { %v792_v10 = vpop.permute.xlu0 %791  ;;  %2011 = vrot.lane.b32.xlu1 %v1510_v0, %s7052_s18  ;;  %2009 = vrot.lane.b32.xlu0 %v1507_v59, %s7052_s18 }
 0x130   : > { %815 = vst.msk [vmem:[#allocation4 + $0x8] sm:$0xff] %vm813_vm7, %v792_v10  ;;  %v794_v11 = vpop.permute.xlu1 %793  ;;  %2013 = vrot.lane.b32.xlu2 %v1513_v7, %s7052_s18 }
 0x131   : > { %816 = vst.msk [vmem:[#allocation4 + $0x10] sm:$0xff] %vm813_vm7, %v794_v11  ;;  %v1082_v11 = vld [vmem:[%s7309_s11 + $0xc8] sm:$0xff] }
 0x132   : > { %v842_v12 = vpop.permute.xlu2 %841  ;;  %6814 = vmatmul.msk.f32.gmra.mxu1 %vm299_vm0, %v1082_v11 }
 0x133   : > { %865 = vst.msk [vmem:[#allocation4 + $0x8] sm:$0xff] %vm863_vm8, %v842_v12 }
 0x135   : > { %v1519_v24 = vpop.f32.mrf.mxu2 }
 0x136   : > { %v1402_v25 = vpop.f32.mrf.mxu1 }
 0x137   : > { %v798_v16 = vpop.permute.xlu0 %797  ;;  %2017 = vrot.lane.b32.xlu1 %v1519_v24, %s7052_s18  ;;  %1614 = vrot.lane.b32.xlu0 %v1402_v25, %s7047_s26  ;;  %v1083_v24 = vld [vmem:[%s7309_s11 + $0xd0] sm:$0xff] }
 0x138   : > { %818 = vst.msk [vmem:[#allocation4 + $0x20] sm:$0xff] %vm813_vm7, %v798_v16  ;;  %v800_v18 = vpop.permute.xlu1 %799  ;;  %1612 = vrot.lane.b32.xlu2 %v1399_v15, %s7047_s26 }
 0x139   : > { %819 = vst.msk [vmem:[#allocation4 + $0x28] sm:$0xff] %vm813_vm7, %v800_v18 }
 0x13a   : > { %v848_v23 = vpop.permute.xlu2 %847  ;;  %6815 = vmatmul.msk.f32.gmra.mxu1 %vm299_vm0, %v1083_v24 }
 0x13b   : > { %868 = vst.msk [vmem:[#allocation4 + $0x20] sm:$0xff] %vm863_vm8, %v848_v23 }
 0x13d   : > { %v1522_v36 = vpop.f32.mrf.mxu2 }
 0x13e   : > { %v1405_v19 = vpop.f32.mrf.mxu1 }
 0x13f   : > { %v804_v26 = vpop.permute.xlu0 %803  ;;  %1616 = vrot.lane.b32.xlu1 %v1405_v19, %s7047_s26  ;;  %2015 = vrot.lane.b32.xlu0 %v1516_v14, %s7052_s18  ;;  %v1087_v19 = vld [vmem:[%s7309_s11 + $0xf0] sm:$0xff] }
 0x140   : > { %821 = vst.msk [vmem:[#allocation4 + $0x38] sm:$0xff] %vm813_vm7, %v804_v26  ;;  %v840_v28 = vpop.permute.xlu1 %839  ;;  %2092 = vrot.lane.b32.xlu2 %v1534_v3, %s7053_s19  ;;  %v1084_v3 = vld [vmem:[%s7309_s11 + $0xd8] sm:$0xff] }
 0x141   : > { %864 = vst.msk [vmem:[#allocation4] sm:$0xff] %vm863_vm8, %v840_v28  ;;  %v1085_v28 = vld [vmem:[%s7309_s11 + $0xe0] sm:$0xff] }
 0x142   : > { %v854_v21 = vpop.permute.xlu2 %853  ;;  %6816 = vmatmul.msk.f32.gmra.mxu1 %vm299_vm0, %v1084_v3 }
 0x143   : > { %871 = vst.msk [vmem:[#allocation4 + $0x38] sm:$0xff] %vm863_vm8, %v854_v21 }
 0x145   : > { %v1525_v46 = vpop.f32.mrf.mxu2 }
 0x146   : > { %v1408_v50 = vpop.f32.mrf.mxu1 }
 0x147   : > { %v844_v38 = vpop.permute.xlu0 %843  ;;  %2094 = vrot.lane.b32.xlu0 %v1537_v17, %s7053_s19  ;;  %2096 = vrot.lane.b32.xlu1 %v1540_v47, %s7053_s19  ;;  %v1088_v17 = vld [vmem:[%s7309_s11 + $0xf8] sm:$0xff]  ;;  %v1094_v47 = vld [vmem:[%s7309_s11 + $0x128] sm:$0xff] }
 0x148   : > { %866 = vst.msk [vmem:[#allocation4 + $0x10] sm:$0xff] %vm863_vm8, %v844_v38  ;;  %v846_v40 = vpop.permute.xlu1 %845  ;;  %2019 = vrot.lane.b32.xlu2 %v1522_v36, %s7052_s18  ;;  %v1057_v36 = vld [vmem:[%s7309_s11] sm:$0xff] }
 0x149   : > { %867 = vst.msk [vmem:[#allocation4 + $0x18] sm:$0xff] %vm863_vm8, %v846_v40  ;;  %v1089_v38 = vld [vmem:[%s7309_s11 + $0x100] sm:$0xff]  ;;  %v1059_v40 = vld [vmem:[%s7309_s11 + $0x10] sm:$0xff] }
 0x14a   : > { %v893_v20 = vpop.permute.xlu2 %892  ;;  %6817 = vmatmul.msk.f32.gmra.mxu1 %vm299_vm0, %v1085_v28 }
 0x14b   : > { %915 = vst.msk [vmem:[#allocation4 + $0x10] sm:$0xff] %vm912_vm9, %v893_v20  ;;  %v1092_v20 = vld [vmem:[%s7309_s11 + $0x118] sm:$0xff] }
 0x14d   : > { %v1528_v51 = vpop.f32.mrf.mxu2 }
 0x14e   : > { %v1411_v53 = vpop.f32.mrf.mxu1 }
 0x14f   : > { %v850_v48 = vpop.permute.xlu0 %849  ;;  %2021 = vrot.lane.b32.xlu0 %v1525_v46, %s7052_s18  ;;  %2023 = vrot.lane.b32.xlu1 %v1528_v51, %s7052_s18  ;;  %v1121_v46 = vld [vmem:[%s7309_s11 + $0x200] sm:$0xff] }
 0x150   : > { %869 = vst.msk [vmem:[#allocation4 + $0x28] sm:$0xff] %vm863_vm8, %v850_v48  ;;  %v852_v27 = vpop.permute.xlu1 %851  ;;  %1618 = vrot.lane.b32.xlu2 %v1408_v50, %s7047_s26  ;;  %6853 = vmatmul.msk.f32.gmra.mxu3 %vm299_vm0, %v1121_v46  ;;  %v1122_v48 = vld [vmem:[%s7309_s11 + $0x208] sm:$0xff] }
 0x151   : > { %870 = vst.msk [vmem:[#allocation4 + $0x30] sm:$0xff] %vm863_vm8, %v852_v27 }
 0x152   : > { %v899_v49 = vpop.permute.xlu2 %898  ;;  %6818 = vmatmul.msk.f32.gmra.mxu1 %vm299_vm0, %v1086_v30 }
 0x153   : > { %918 = vst.msk [vmem:[#allocation4 + $0x28] sm:$0xff] %vm912_vm9, %v899_v49  ;;  %v1095_v49 = vld [vmem:[%s7309_s11 + $0x130] sm:$0xff] }
 0x155   : > { %v1531_v34 = vpop.f32.mrf.mxu2 }
 0x156   : > { %v1414_v58 = vpop.f32.mrf.mxu1 }
 0x157   : > { %v889_v52 = vpop.permute.xlu0 %888  ;;  %2090 = vrot.lane.b32.xlu1 %v1531_v34, %s7053_s19  ;;  %1687 = vrot.lane.b32.xlu0 %v1414_v58, %s7048_s14  ;;  %v1096_v34 = vld [vmem:[%s7309_s11 + $0x138] sm:$0xff] }
 0x158   : > { %913 = vst.msk [vmem:[#allocation4] sm:$0xff] %vm912_vm9, %v889_v52  ;;  %v891_v39 = vpop.permute.xlu1 %890  ;;  %1685 = vrot.lane.b32.xlu2 %v1411_v53, %s7048_s14  ;;  %6854 = vmatmul.msk.f32.gmra.mxu3 %vm299_vm0, %v1122_v48 }
 0x159   : > { %914 = vst.msk [vmem:[#allocation4 + $0x8] sm:$0xff] %vm912_vm9, %v891_v39  ;;  %v1543_v63 = vpop.f32.mrf.mxu3  ;;  %v1123_v39 = vld [vmem:[%s7309_s11 + $0x210] sm:$0xff] }
 0x15a   : > { %v938_v8 = vpop.permute.xlu2 %937  ;;  %6819 = vmatmul.msk.f32.gmra.mxu1 %vm299_vm0, %v1087_v19 }
 0x15b   : > { %962 = vst.msk [vmem:[#allocation4] sm:$0xff] %vm961_vm10, %v938_v8 }
 0x15e   : > { %v1417_v62 = vpop.f32.mrf.mxu1 }
 0x15f   : > { %v895_v54 = vpop.permute.xlu0 %894  ;;  %1689 = vrot.lane.b32.xlu1 %v1417_v62, %s7048_s14 }
 0x160   : > { %916 = vst.msk [vmem:[#allocation4 + $0x18] sm:$0xff] %vm912_vm9, %v895_v54  ;;  %v897_v55 = vpop.permute.xlu1 %896  ;;  %2098 = vrot.lane.b32.xlu2 %v1543_v63, %s7053_s19  ;;  %6855 = vmatmul.msk.f32.gmra.mxu3 %vm299_vm0, %v1123_v39  ;;  %v7797_v54 = vld [vmem:[%s10708_s3] ss:$0 sm:$0xff] }
 0x161   : > { %917 = vst.msk [vmem:[#allocation4 + $0x20] sm:$0xff] %vm912_vm9, %v897_v55  ;;  %v1546_v6 = vpop.f32.mrf.mxu3  ;;  %v1097_v63 = vld [vmem:[%s7309_s11 + $0x140] sm:$0xff] }
 0x162   : > { %v970_v56 = vld [vmem:[#allocation4] sm:$0xff]  ;;  %v944_v57 = vpop.permute.xlu2 %943  ;;  %2100 = vrot.lane.b32.xlu0 %v1546_v6, %s7053_s19  ;;  %6820 = vmatmul.msk.f32.gmra.mxu1 %vm299_vm0, %v1088_v17 }
 0x163   : > { %6781 = vmatmul.msk.f32.vlgmr.msra.gmra.mxu0 %vm991_vm11, %v970_v56  ;;  %965 = vst.msk [vmem:[#allocation4 + $0x18] sm:$0xff] %vm961_vm10, %v944_v57  ;;  %v1124_v57 = vld [vmem:[%s7309_s11 + $0x218] sm:$0xff] }
 0x166   : > { %v1420_v5 = vpop.f32.mrf.mxu1 }
 0x167   : > { %v901_v59 = vpop.permute.xlu0 %900 }
 0x168   : > { %919 = vst.msk [vmem:[#allocation4 + $0x30] sm:$0xff] %vm912_vm9, %v901_v59  ;;  %v903_v60 = vpop.permute.xlu1 %902  ;;  %6856 = vmatmul.msk.f32.gmra.mxu3 %vm299_vm0, %v1124_v57 }
 0x169   : > { %920 = vst.msk [vmem:[#allocation4 + $0x38] sm:$0xff] %vm912_vm9, %v903_v60  ;;  %v1549_v14 = vpop.f32.mrf.mxu3 }
 0x16a   : > { %v950_v4 = vpop.permute.xlu2 %949  ;;  %2102 = vrot.lane.b32.xlu1 %v1549_v14, %s7053_s19  ;;  %v973_v22 = vld [vmem:[#allocation4 + $0x18] sm:$0xff]  ;;  %6821 = vmatmul.msk.f32.gmra.mxu1 %vm299_vm0, %v1089_v38 }
 0x16b   : > { %968 = vst.msk [vmem:[#allocation4 + $0x30] sm:$0xff] %vm961_vm10, %v950_v4  ;;  %v1125_v4 = vld [vmem:[%s7309_s11 + $0x220] sm:$0xff] }
 0x16e   : > { %v1423_v12 = vpop.f32.mrf.mxu1 }
 0x16f   : > { %v940_v0 = vpop.permute.xlu0 %939  ;;  %1693 = vrot.lane.b32.xlu0 %v1423_v12, %s7048_s14 }
 0x170   : > { %963 = vst.msk [vmem:[#allocation4 + $0x8] sm:$0xff] %vm961_vm10, %v940_v0  ;;  %v942_v1 = vpop.permute.xlu1 %941  ;;  %6857 = vmatmul.msk.f32.gmra.mxu3 %vm299_vm0, %v1125_v4 }
 0x171   : > { %964 = vst.msk [vmem:[#allocation4 + $0x10] sm:$0xff] %vm961_vm10, %v942_v1  ;;  %v1552_v18 = vpop.f32.mrf.mxu3 }
 0x172   : > { %2104 = vrot.lane.b32.xlu2 %v1552_v18, %s7053_s19  ;;  %v976_v29 = vld [vmem:[#allocation4 + $0x30] sm:$0xff]  ;;  %6822 = vmatmul.msk.f32.gmra.mxu1 %vm299_vm0, %v1090_v42  ;;  %v1935_v27 = vpop.permute.xlu2 %1934 }
 0x176   : > { %v1426_v23 = vpop.f32.mrf.mxu1 }
 0x177   : > { %v971_v7 = vld [vmem:[#allocation4 + $0x8] sm:$0xff]  ;;  %v946_v9 = vpop.permute.xlu0 %945  ;;  %1695 = vrot.lane.b32.xlu1 %v1426_v23, %s7048_s14 }
 0x178   : > { %6782 = vmatmul.msk.f32.gmra.mxu0 %vm991_vm11, %v971_v7  ;;  %966 = vst.msk [vmem:[#allocation4 + $0x20] sm:$0xff] %vm961_vm10, %v946_v9  ;;  %v948_v10 = vpop.permute.xlu1 %947  ;;  %v972_v15 = vld [vmem:[#allocation4 + $0x10] sm:$0xff] }
 0x179   : > { %967 = vst.msk [vmem:[#allocation4 + $0x28] sm:$0xff] %vm961_vm10, %v948_v10  ;;  %v1098_v10 = vld [vmem:[%s7309_s11 + $0x148] sm:$0xff] }
 0x17a   : > { %1691 = vrot.lane.b32.xlu2 %v1420_v5, %s7048_s14  ;;  %6823 = vmatmul.msk.f32.gmra.mxu1 %vm299_vm0, %v1091_v44  ;;  %v1607_v8 = vpop.permute.xlu2 %1606 }
 0x17e   : > { %v1429_v31 = vpop.f32.mrf.mxu1 }
 0x17f   : > { %v952_v16 = vpop.permute.xlu0 %951  ;;  %v974_v25 = vld [vmem:[#allocation4 + $0x20] sm:$0xff] }
 0x180   : > { %6783 = vmatmul.msk.f32.gmra.mxu0 %vm991_vm11, %v972_v15  ;;  %969 = vst.msk [vmem:[#allocation4 + $0x38] sm:$0xff] %vm961_vm10, %v952_v16  ;;  %v975_v26 = vld [vmem:[#allocation4 + $0x28] sm:$0xff] }
 0x181   : > { %v1605_v50 = vpop.permute.xlu1 %1604 }
 0x182   : > { %1697 = vrot.lane.b32.xlu2 %v1429_v31, %s7048_s14  ;;  %6824 = vmatmul.msk.f32.gmra.mxu1 %vm299_vm0, %v1092_v20  ;;  %v1941_v61 = vpop.permute.xlu2 %1940 }
 0x187   : > { %v977_v21 = vld [vmem:[#allocation4 + $0x38] sm:$0xff]  ;;  %v1937_v53 = vpop.permute.xlu0 %1936 }
 0x188   : > { %6784 = vmatmul.msk.f32.gmra.mxu0 %vm991_vm11, %v973_v22 }
 0x189   : > { %v1933_v58 = vpop.permute.xlu1 %1932 }
 0x18a   : > { %6825 = vmatmul.msk.f32.gmra.mxu1 %vm299_vm0, %v1093_v45  ;;  %v2014_v11 = vpop.permute.xlu2 %2013 }
 0x190   : > { %6785 = vmatmul.msk.f32.gmra.mxu0 %vm991_vm11, %v974_v25 }
 0x191   : > { %v1609_v62 = vpop.permute.xlu0 %1608  ;;  %v1939_v25 = vpop.permute.xlu1 %1938 }
 0x192   : > { %6826 = vmatmul.msk.f32.gmra.mxu1 %vm299_vm0, %v1094_v47 }
 0x198   : > { %6786 = vmatmul.msk.f32.gmra.mxu0 %vm991_vm11, %v975_v26  ;;  %v1613_v26 = vpop.permute.xlu2 %1612 }
 0x199   : > { %v1943_v12 = vpop.permute.xlu0 %1942  ;;  %v1611_v19 = vpop.permute.xlu1 %1610 }
 0x19a   : > { %6827 = vmatmul.msk.f32.gmra.mxu1 %vm299_vm0, %v1095_v49 }
 0x19e   : > { %v1432_v52 = vpop.f32.mrf.mxu1 }
 0x1a0   : > { %6787 = vmatmul.msk.f32.gmra.mxu0 %vm991_vm11, %v976_v29  ;;  %v1127_v29 = vld [vmem:[%s7309_s11 + $0x230] sm:$0xff]  ;;  %v7859_v38 = vpop.permute.xlu2 %2092 }
 0x1a1   : > { %v2010_v30 = vpop.permute.xlu0 %2009  ;;  %v2012_v47 = vpop.permute.xlu1 %2011 }
 0x1a2   : > { %6828 = vmatmul.msk.f32.gmra.mxu1 %vm299_vm0, %v1096_v34 }
 0x1a6   : > { %v1435_v59 = vpop.f32.mrf.mxu1 }
 0x1a8   : > { %6788 = vmatmul.msk.f32.gmra.mxu0 %vm991_vm11, %v977_v21 }
 0x1a9   : > { %v1615_v49 = vpop.permute.xlu0 %1614 }
 0x1aa   : > { %6829 = vmatmul.msk.f32.gmra.mxu1 %vm299_vm0, %v1097_v63 }
 0x1af   : > { %v1438_v7 = vpop.f32.mrf.mxu1 }
 0x1b0   : > { %6789 = vmatmul.msk.f32.vlgmr.msrb.gmra.mxu0 %vm299_vm0, %v1057_v36 }
 0x1b1   : > { %v2016_v57 = vpop.permute.xlu0 %2015 }
 0x1b2   : > { %6830 = vmatmul.msk.f32.gmra.mxu1 %vm299_vm0, %v1098_v10 }
 0x1b7   : > { %v1441_v23 = vpop.f32.mrf.mxu1 }
 0x1b8   : > { %6790 = vmatmul.msk.f32.gmra.mxu0 %vm299_vm0, %v1058_v37  ;;  %v1128_v37 = vld [vmem:[%s7309_s11 + $0x238] sm:$0xff] }
 0x1bf   : > { %v1444_v31 = vpop.f32.mrf.mxu1 }
 0x1c0   : > { %6791 = vmatmul.msk.f32.gmra.mxu0 %vm299_vm0, %v1059_v40 }
 0x1c7   : > { %v1447_v45 = vpop.f32.mrf.mxu1 }
 0x1e0   : > { %v1033_v35 = vpop.f32.mrf.mxu0 }
 0x1e1   : > { %v7809_v0 = vadd.f32 %v7797_v54, %v1033_v35 }
 0x1e3   : > { %v1628_v6 = vadd.f32 %v1605_v50, %v7809_v0 }
 0x1f5   : > { %v1036_v51 = vpop.f32.mrf.mxu0 }
 0x1f6   : > { %v7827_v14 = vadd.f32 %v7797_v54, %v1036_v51  ;;  %v1450_v51 = vpop.f32.mrf.mxu1 }
 0x1f8   : > { %v1629_v22 = vadd.f32 %v1607_v8, %v7827_v14  ;;  %v2034_v35 = vadd.f32 %v2012_v47, %v7827_v14  ;;  %v2018_v8 = vpop.permute.xlu1 %2017 }
 0x1fd   : > { %v1039_v55 = vpop.f32.mrf.mxu0 }
 0x1fe   : > { %v7801_v56 = vadd.f32 %v7797_v54, %v1039_v55 }
 0x200   : > { %v1954_v60 = vadd.f32 %v1933_v58, %v7801_v56  ;;  %v1630_v40 = vadd.f32 %v1609_v62, %v7801_v56  ;;  %v2035_v48 = vadd.f32 %v2014_v11, %v7801_v56  ;;  %v1453_v58 = vpop.f32.mrf.mxu1 }
 0x202   : > { %1972 = vrot.lane.b32.xlu0 %v1954_v60, %s7055_s12  ;;  %v1617_v60 = vpop.permute.xlu1 %1616 }
 0x205   : > { %v1042_v1 = vpop.f32.mrf.mxu0 }
 0x206   : > { %v7813_v2 = vadd.f32 %v7797_v54, %v1042_v1 }
 0x208   : > { %v1955_v5 = vadd.f32 %v1935_v27, %v7813_v2  ;;  %v1582_v9 = vadd.f32 %v7567_v13, %v7813_v2  ;;  %v1126_v13 = vld [vmem:[%s7309_s11 + $0x228] sm:$0xff]  ;;  %v2020_v27 = vpop.permute.xlu2 %2019  ;;  %s7058_s11 = smov 112  }
 0x209   : > { %6858 = vmatmul.msk.f32.gmra.mxu3 %vm299_vm0, %v1126_v13 }
 0x20a   : > { %1974 = vrot.lane.b32.xlu1 %v1955_v5, %s7055_s12  ;;  %1644 = vrot.lane.b32.xlu0 %v1628_v6, %s7056_s13  ;;  %1591 = vst.msk [vmem:[#allocation3 + $0x41] sm:$0xff] %vm299_vm0, %v1582_v9  ;;  %v2095_v5 = vpop.permute.xlu0 %2094  ;;  %v2097_v9 = vpop.permute.xlu1 %2096 }
 0x20d   : > { %v1045_v15 = vpop.f32.mrf.mxu0 }
 0x20e   : > { %v7830_v16 = vadd.f32 %v7797_v54, %v1045_v15 }
 0x210   : > { %v1956_v18 = vadd.f32 %v1937_v53, %v7830_v16  ;;  %v1583_v24 = vadd.f32 %v7584_v32, %v7830_v16  ;;  %v2033_v32 = vadd.f32 %v2010_v30, %v7809_v0  ;;  %v1632_v53 = vadd.f32 %v1613_v26, %v7830_v16  ;;  %v1619_v34 = vpop.permute.xlu2 %1618 }
 0x211   : > { %6859 = vmatmul.msk.f32.gmra.mxu3 %vm299_vm0, %v1127_v29  ;;  %v2037_v4 = vadd.f32 %v2018_v8, %v7830_v16 }
 0x212   : > { %1976 = vrot.lane.b32.xlu2 %v1956_v18, %s7055_s12  ;;  %1699 = vrot.lane.b32.xlu0 %v1432_v52, %s7048_s14  ;;  %1592 = vst.msk [vmem:[#allocation3 + $0x51] sm:$0xff] %vm299_vm0, %v1583_v24  ;;  %v2022_v15 = vpop.permute.xlu0 %2021  ;;  %v2024_v18 = vpop.permute.xlu1 %2023 }
 0x213   : > { %1646 = vrot.lane.b32.xlu1 %v1629_v22, %s7056_s13 }
 0x215   : > { %v1048_v3 = vpop.f32.mrf.mxu0 }
 0x216   : > { %v7843_v28 = vadd.f32 %v7797_v54, %v1048_v3 }
 0x218   : > { %v1584_v21 = vadd.f32 %v7598_v43, %v7843_v28  ;;  %v1957_v43 = vadd.f32 %v1939_v25, %v7843_v28  ;;  %v1686_v62 = vpop.permute.xlu2 %1685  ;;  %v1633_v1 = vadd.f32 %v1615_v49, %v7843_v28  ;;  %v2038_v6 = vadd.f32 %v2020_v27, %v7843_v28 }
 0x219   : > { %6860 = vmatmul.msk.f32.gmra.mxu3 %vm299_vm0, %v1128_v37 }
 0x21a   : > { %2049 = vrot.lane.b32.xlu2 %v2033_v32, %s7057_s21  ;;  %1766 = vrot.lane.b32.xlu0 %v1435_v59, %s7049_s15  ;;  %1593 = vst.msk [vmem:[#allocation3 + $0x61] sm:$0xff] %vm299_vm0, %v1584_v21  ;;  %v2036_v59 = vadd.f32 %v2016_v57, %v7813_v2  ;;  %v1688_v25 = vpop.permute.xlu0 %1687  ;;  %v2091_v30 = vpop.permute.xlu1 %2090 }
 0x21b   : > { %1768 = vrot.lane.b32.xlu1 %v1438_v7, %s7049_s15  ;;  %v1456_v7 = vpop.f32.mrf.mxu1  ;;  %v1710_v26 = vadd.f32 %v1688_v25, %v7827_v14 }
 0x21d   : > { %v1051_v36 = vpop.f32.mrf.mxu0 }
 0x21e   : > { %v7855_v17 = vadd.f32 %v7797_v54, %v1051_v36 }
 0x220   : > { %v1958_v42 = vadd.f32 %v1941_v61, %v7855_v17  ;;  %v1585_v44 = vadd.f32 %v7613_v33, %v7855_v17  ;;  %v7903_v10 = vpop.permute.xlu2 %2098  ;;  %v1634_v11 = vadd.f32 %v1617_v60, %v7855_v17  ;;  %v2039_v22 = vadd.f32 %v2022_v15, %v7855_v17 }
 0x222   : > { %1978 = vrot.lane.b32.xlu0 %v1957_v43, %s7055_s12  ;;  %1648 = vrot.lane.b32.xlu2 %v1630_v40, %s7056_s13  ;;  %1594 = vst.msk [vmem:[#allocation3 + $0x71] sm:$0xff] %vm299_vm0, %v1585_v44  ;;  %v1690_v36 = vpop.permute.xlu1 %1689  ;;  %v2101_v37 = vpop.permute.xlu0 %2100  ;;  %v2115_v44 = vadd.f32 %v7859_v38, %v7827_v14 }
 0x223   : > { %1980 = vrot.lane.b32.xlu1 %v1958_v42, %s7055_s12  ;;  %v1459_v13 = vpop.f32.mrf.mxu1  ;;  %v1711_v40 = vadd.f32 %v1690_v36, %v7801_v56 }
 0x225   : > { %v1054_v20 = vpop.f32.mrf.mxu0 }
 0x226   : > { %v7871_v46 = vadd.f32 %v7797_v54, %v1054_v20 }
 0x228   : > { %v1586_v33 = vadd.f32 %v7626_v41, %v7871_v46  ;;  %v1959_v39 = vadd.f32 %v1943_v12, %v7871_v46  ;;  %v1631_v41 = vadd.f32 %v1611_v19, %v7813_v2  ;;  %v1635_v12 = vadd.f32 %v1619_v34, %v7871_v46  ;;  %v7912_v24 = vpop.permute.xlu2 %2104 }
 0x229   : > { %v2040_v29 = vadd.f32 %v2024_v18, %v7871_v46  ;;  %v2116_v19 = vadd.f32 %v2095_v5, %v7801_v56 }
 0x22a   : > { %1770 = vrot.lane.b32.xlu2 %v1441_v23, %s7049_s15  ;;  %2051 = vrot.lane.b32.xlu0 %v2034_v35, %s7057_s21  ;;  %1595 = vst.msk [vmem:[#allocation3 + $0x81] sm:$0xff] %vm299_vm0, %v1586_v33  ;;  %v1709_v23 = vadd.f32 %v1686_v62, %v7809_v0  ;;  %v2103_v42 = vpop.permute.xlu1 %2102 }
 0x22b   : > { %2053 = vrot.lane.b32.xlu1 %v2035_v48, %s7057_s21  ;;  %v1462_v3 = vpop.f32.mrf.mxu1 }
 0x22d   : > { %v1363_v50 = vpop.f32.mrf.mxu0 }
 0x22e   : > { %v1579_v52 = vadd.f32 %v1363_v50, %v7809_v0  ;;  %v2117_v50 = vadd.f32 %v2097_v9, %v7813_v2 }
 0x230   : > { %1588 = vst.msk [vmem:[#allocation3 + $0x11] sm:$0xff] %vm299_vm0, %v1579_v52  ;;  %v1692_v32 = vpop.permute.xlu2 %1691  ;;  %v1555_v52 = vpop.f32.mrf.mxu3 }
 0x231   : > { %v1712_v48 = vadd.f32 %v1692_v32, %v7813_v2 }
 0x232   : > { %1982 = vrot.lane.b32.xlu2 %v1959_v39, %s7055_s12  ;;  %1650 = vrot.lane.b32.xlu0 %v1631_v41, %s7056_s13  ;;  %v1696_v38 = vpop.permute.xlu1 %1695 }
 0x233   : > { %1652 = vrot.lane.b32.xlu1 %v1632_v53, %s7056_s13  ;;  %v1465_v21 = vpop.f32.mrf.mxu1  ;;  %v1714_v34 = vadd.f32 %v1696_v38, %v7843_v28 }
 0x235   : > { %v1366_v54 = vpop.f32.mrf.mxu0 }
 0x236   : > { %v1580_v55 = vadd.f32 %v1366_v54, %v7827_v14  ;;  %v2118_v54 = vadd.f32 %v7903_v10, %v7830_v16 }
 0x238   : > { %1589 = vst.msk [vmem:[#allocation3 + $0x21] sm:$0xff] %vm299_vm0, %v1580_v55  ;;  %v1698_v43 = vpop.permute.xlu2 %1697  ;;  %v1558_v55 = vpop.f32.mrf.mxu3 }
 0x239   : > { %v1715_v62 = vadd.f32 %v1698_v43, %v7855_v17 }
 0x23a   : > { %2055 = vrot.lane.b32.xlu2 %v2036_v59, %s7057_s21  ;;  %1772 = vrot.lane.b32.xlu0 %v1444_v31, %s7049_s15  ;;  %v2114_v31 = vadd.f32 %v2091_v30, %v7809_v0 }
 0x23b   : > { %1774 = vrot.lane.b32.xlu1 %v1447_v45, %s7049_s15  ;;  %v1468_v20 = vpop.f32.mrf.mxu1  ;;  %v1694_v45 = vpop.permute.xlu0 %1693 }
 0x23c   : > { %v1713_v35 = vadd.f32 %v1694_v45, %v7830_v16 }
 0x23d   : > { %v1369_v61 = vpop.f32.mrf.mxu0 }
 0x23e   : > { %v1581_v63 = vadd.f32 %v1369_v61, %v7801_v56 }
 0x240   : > { %1590 = vst.msk [vmem:[#allocation3 + $0x31] sm:$0xff] %vm299_vm0, %v1581_v63 }
 0x242   : > { %1654 = vrot.lane.b32.xlu2 %v1633_v1, %s7056_s13  ;;  %2057 = vrot.lane.b32.xlu0 %v2037_v4, %s7057_s21  ;;  %v1561_v1 = vpop.f32.mrf.mxu3 }
 0x243   : > { %2059 = vrot.lane.b32.xlu1 %v2038_v6, %s7057_s21  ;;  %v1471_v33 = vpop.f32.mrf.mxu1  ;;  %v2120_v6 = vadd.f32 %v2103_v42, %v7855_v17 }
 0x24a   : > { %1776 = vrot.lane.b32.xlu2 %v1450_v51, %s7049_s15  ;;  %1656 = vrot.lane.b32.xlu0 %v1634_v11, %s7056_s13  ;;  %v2119_v51 = vadd.f32 %v2101_v37, %v7843_v28 }
 0x24b   : > { %1658 = vrot.lane.b32.xlu1 %v1635_v12, %s7056_s13  ;;  %v1474_v53 = vpop.f32.mrf.mxu1  ;;  %v1564_v12 = vpop.f32.mrf.mxu3 }
 0x252   : > { %2061 = vrot.lane.b32.xlu2 %v2039_v22, %s7057_s21  ;;  %1778 = vrot.lane.b32.xlu0 %v1453_v58, %s7049_s15 }
 0x253   : > { %1725 = vrot.lane.b32.xlu1 %v1709_v23, %s7058_s11  ;;  %v1477_v61 = vpop.f32.mrf.mxu1 }
 0x25a   : > { %2063 = vrot.lane.b32.xlu0 %v2040_v29, %s7057_s21  ;;  %1727 = vrot.lane.b32.xlu2 %v1710_v26, %s7058_s11 }
 0x25b   : > { %1780 = vrot.lane.b32.xlu1 %v1456_v7, %s7049_s15  ;;  %v1480_v7 = vpop.f32.mrf.mxu1 }
 0x262   : > { %2130 = vrot.lane.b32.xlu0 %v2114_v31, %s7059_s22  ;;  %2134 = vrot.lane.b32.xlu2 %v2116_v19, %s7059_s22 }
 0x263   : > { %1847 = vrot.lane.b32.xlu1 %v1459_v13, %s7050_s16  ;;  %v2121_v13 = vadd.f32 %v7912_v24, %v7871_v46  ;;  %v1483_v22 = vpop.f32.mrf.mxu1  ;;  %v1567_v24 = vpop.f32.mrf.mxu3 }
 0x26a   : > { %1729 = vrot.lane.b32.xlu0 %v1711_v40, %s7058_s11  ;;  %1849 = vrot.lane.b32.xlu2 %v1462_v3, %s7050_s16 }
 0x26b   : > { %2132 = vrot.lane.b32.xlu1 %v2115_v44, %s7059_s22  ;;  %v1486_v32 = vpop.f32.mrf.mxu1 }
 0x26c   : > { %v1977_v47 = vpop.permute.xlu2 %1976 }
 0x26d   : > { %1997 = vst.msk [vmem:[#allocation3 + $0x371] sm:$0xff] %vm299_vm0, %v1977_v47 }
 0x272   : > { %1851 = vrot.lane.b32.xlu0 %v1465_v21, %s7050_s16  ;;  %1733 = vrot.lane.b32.xlu2 %v1713_v35, %s7058_s11 }
 0x273   : > { %1731 = vrot.lane.b32.xlu1 %v1712_v48, %s7058_s11 }
 0x274   : > { %v2050_v27 = vpop.permute.xlu2 %2049  ;;  %v1973_v49 = vpop.permute.xlu0 %1972 }
 0x275   : > { %2074 = vst.msk [vmem:[#allocation3 + $0x3d1] sm:$0xff] %vm299_vm0, %v2050_v27 }
 0x276   : > { %1995 = vst.msk [vmem:[#allocation3 + $0x351] sm:$0xff] %vm299_vm0, %v1973_v49 }
 0x27a   : > { %2136 = vrot.lane.b32.xlu0 %v2117_v50, %s7059_s22  ;;  %2140 = vrot.lane.b32.xlu2 %v2119_v51, %s7059_s22 }
 0x27b   : > { %1853 = vrot.lane.b32.xlu1 %v1468_v20, %s7050_s16 }
 0x27c   : > { %v1975_v39 = vpop.permute.xlu1 %1974  ;;  %v1645_v41 = vpop.permute.xlu0 %1644 }
 0x27d   : > { %1996 = vst.msk [vmem:[#allocation3 + $0x361] sm:$0xff] %vm299_vm0, %v1975_v39  ;;  %v1649_v8 = vpop.permute.xlu2 %1648 }
 0x27e   : > { %1669 = vst.msk [vmem:[#allocation3 + $0xb1] sm:$0xff] %vm299_vm0, %v1645_v41 }
 0x27f   : > { %1671 = vst.msk [vmem:[#allocation3 + $0xd1] sm:$0xff] %vm299_vm0, %v1649_v8 }
 0x282   : > { %1735 = vrot.lane.b32.xlu0 %v1714_v34, %s7058_s11  ;;  %1855 = vrot.lane.b32.xlu2 %v1471_v33, %s7050_s16 }
 0x283   : > { %2138 = vrot.lane.b32.xlu1 %v2118_v54, %s7059_s22 }
 0x284   : > { %v1700_v57 = vpop.permute.xlu0 %1699 }
 0x285   : > { %v1771_v58 = vpop.permute.xlu2 %1770  ;;  %v1647_v59 = vpop.permute.xlu1 %1646  ;;  %v1716_v60 = vadd.f32 %v1700_v57, %v7871_v46 }
 0x286   : > { %1670 = vst.msk [vmem:[#allocation3 + $0xc1] sm:$0xff] %vm299_vm0, %v1647_v59  ;;  %v1792_v21 = vadd.f32 %v1771_v58, %v7801_v56 }
 0x28a   : > { %1857 = vrot.lane.b32.xlu0 %v1474_v53, %s7050_s16  ;;  %1739 = vrot.lane.b32.xlu2 %v1716_v60, %s7058_s11 }
 0x28b   : > { %1737 = vrot.lane.b32.xlu1 %v1715_v62, %s7058_s11 }
 0x28c   : > { %v1767_v63 = vpop.permute.xlu0 %1766  ;;  %v1570_v31 = vpop.f32.mrf.mxu3 }
 0x28d   : > { %v1983_v4 = vpop.permute.xlu2 %1982  ;;  %v1769_v5 = vpop.permute.xlu1 %1768  ;;  %v1790_v15 = vadd.f32 %v1767_v63, %v7809_v0 }
 0x28e   : > { %2000 = vst.msk [vmem:[#allocation3 + $0x3a1] sm:$0xff] %vm299_vm0, %v1983_v4  ;;  %v1791_v3 = vadd.f32 %v1769_v5, %v7827_v14 }
 0x292   : > { %2142 = vrot.lane.b32.xlu0 %v2120_v6, %s7059_s22  ;;  %2171 = vrot.lane.b32.xlu2 %v1555_v52, %s7054_s20 }
 0x293   : > { %1859 = vrot.lane.b32.xlu1 %v1477_v61, %s7050_s16 }
 0x294   : > { %v1979_v9 = vpop.permute.xlu0 %1978  ;;  %v1573_v40 = vpop.f32.mrf.mxu3 }
 0x295   : > { %1998 = vst.msk [vmem:[#allocation3 + $0x381] sm:$0xff] %vm299_vm0, %v1979_v9  ;;  %v2056_v10 = vpop.permute.xlu2 %2055  ;;  %v1981_v11 = vpop.permute.xlu1 %1980 }
 0x296   : > { %2077 = vst.msk [vmem:[#allocation3 + $0x401] sm:$0xff] %vm299_vm0, %v2056_v10 }
 0x297   : > { %1999 = vst.msk [vmem:[#allocation3 + $0x391] sm:$0xff] %vm299_vm0, %v1981_v11 }
 0x29a   : > { %2173 = vrot.lane.b32.xlu0 %v1558_v55, %s7054_s20  ;;  %1806 = vrot.lane.b32.xlu2 %v1790_v15, %s7060_s23 }
 0x29b   : > { %2144 = vrot.lane.b32.xlu1 %v2121_v13, %s7059_s22 }
 0x29c   : > { %v2052_v18 = vpop.permute.xlu0 %2051  ;;  %v1576_v38 = vpop.f32.mrf.mxu3 }
 0x29d   : > { %v1655_v23 = vpop.permute.xlu2 %1654  ;;  %2075 = vst.msk [vmem:[#allocation3 + $0x3e1] sm:$0xff] %vm299_vm0, %v2052_v18  ;;  %v2054_v25 = vpop.permute.xlu1 %2053 }
 0x29e   : > { %1674 = vst.msk [vmem:[#allocation3 + $0x101] sm:$0xff] %vm299_vm0, %v1655_v23 }
 0x29f   : > { %2076 = vst.msk [vmem:[#allocation3 + $0x3f1] sm:$0xff] %vm299_vm0, %v2054_v25 }
 0x2a2   : > { %1861 = vrot.lane.b32.xlu2 %v1480_v7, %s7050_s16  ;;  %1808 = vrot.lane.b32.xlu0 %v1791_v3, %s7060_s23 }
 0x2a3   : > { %2175 = vrot.lane.b32.xlu1 %v1561_v1, %s7054_s20 }
 0x2a4   : > { %v1651_v26 = vpop.permute.xlu0 %1650 }
 0x2a5   : > { %v7982_v29 = vpop.permute.xlu2 %1776  ;;  %1672 = vst.msk [vmem:[#allocation3 + $0xe1] sm:$0xff] %vm299_vm0, %v1651_v26  ;;  %v1653_v30 = vpop.permute.xlu1 %1652 }
 0x2a6   : > { %1673 = vst.msk [vmem:[#allocation3 + $0xf1] sm:$0xff] %vm299_vm0, %v1653_v30  ;;  %v1795_v5 = vadd.f32 %v7982_v29, %v7843_v28 }
 0x2aa   : > { %1928 = vrot.lane.b32.xlu2 %v1483_v22, %s7051_s17  ;;  %1930 = vrot.lane.b32.xlu0 %v1486_v32, %s7051_s17 }
 0x2ab   : > { %1810 = vrot.lane.b32.xlu1 %v1792_v21, %s7060_s23 }
 0x2ac   : > { %v1773_v19 = vpop.permute.xlu0 %1772 }
 0x2ad   : > { %v2062_v36 = vpop.permute.xlu2 %2061  ;;  %v1775_v37 = vpop.permute.xlu1 %1774  ;;  %v1793_v20 = vadd.f32 %v1773_v19, %v7813_v2 }
 0x2ae   : > { %2080 = vst.msk [vmem:[#allocation3 + $0x431] sm:$0xff] %vm299_vm0, %v2062_v36  ;;  %v1794_v45 = vadd.f32 %v1775_v37, %v7830_v16 }
 0x2b2   : > { %2177 = vrot.lane.b32.xlu2 %v1564_v12, %s7054_s20  ;;  %2179 = vrot.lane.b32.xlu0 %v1567_v24, %s7054_s20 }
 0x2b3   : > { %2181 = vrot.lane.b32.xlu1 %v1570_v31, %s7054_s20 }
 0x2b4   : > { %v2058_v43 = vpop.permute.xlu0 %2057 }
 0x2b5   : > { %2078 = vst.msk [vmem:[#allocation3 + $0x411] sm:$0xff] %vm299_vm0, %v2058_v43  ;;  %v1728_v42 = vpop.permute.xlu2 %1727  ;;  %v2060_v44 = vpop.permute.xlu1 %2059 }
 0x2b6   : > { %1751 = vst.msk [vmem:[#allocation3 + $0x161] sm:$0xff] %vm299_vm0, %v1728_v42 }
 0x2b7   : > { %2079 = vst.msk [vmem:[#allocation3 + $0x421] sm:$0xff] %vm299_vm0, %v2060_v44 }
 0x2ba   : > { %1812 = vrot.lane.b32.xlu2 %v1793_v20, %s7060_s23  ;;  %1814 = vrot.lane.b32.xlu0 %v1794_v45, %s7060_s23 }
 0x2bc   : > { %v1657_v47 = vpop.permute.xlu0 %1656 }
 0x2bd   : > { %1675 = vst.msk [vmem:[#allocation3 + $0x111] sm:$0xff] %vm299_vm0, %v1657_v47  ;;  %v2135_v35 = vpop.permute.xlu2 %2134  ;;  %v1659_v48 = vpop.permute.xlu1 %1658 }
 0x2be   : > { %2157 = vst.msk [vmem:[#allocation3 + $0x491] sm:$0xff] %vm299_vm0, %v2135_v35 }
 0x2bf   : > { %1676 = vst.msk [vmem:[#allocation3 + $0x121] sm:$0xff] %vm299_vm0, %v1659_v48  ;;  %v8075_v48 = vld [vmem:[#allocation3 + $0x3c1] sm:$0xff] }
 0x2c2   : > { %2183 = vrot.lane.b32.xlu2 %v1573_v40, %s7054_s20  ;;  %2185 = vrot.lane.b32.xlu0 %v1576_v38, %s7054_s20  ;;  %v8062_v40 = vld [vmem:[#allocation3 + $0x3d1] sm:$0xff]  ;;  %v8077_v38 = vld [vmem:[#allocation3 + $0x401] sm:$0xff] }
 0x2c4   : > { %v1779_v33 = vpop.permute.xlu0 %1778 }
 0x2c5   : > { %v8006_v27 = vpop.permute.xlu2 %1849  ;;  %v1726_v49 = vpop.permute.xlu1 %1725  ;;  %v1796_v3 = vadd.f32 %v1779_v33, %v7855_v17 }
 0x2c6   : > { %1750 = vst.msk [vmem:[#allocation3 + $0x151] sm:$0xff] %vm299_vm0, %v1726_v49  ;;  %v1872_v20 = vadd.f32 %v8006_v27, %v7827_v14  ;;  %v8086_v27 = vld [vmem:[#allocation3 + $0x3e1] sm:$0xff]  ;;  %v8088_v49 = vld [vmem:[#allocation3 + $0x431] sm:$0xff] }
 0x2cc   : > { %v2064_v50 = vpop.permute.xlu0 %2063 }
 0x2cd   : > { %2081 = vst.msk [vmem:[#allocation3 + $0x441] sm:$0xff] %vm299_vm0, %v2064_v50  ;;  %v1734_v51 = vpop.permute.xlu2 %1733  ;;  %v1781_v52 = vpop.permute.xlu1 %1780 }
 0x2ce   : > { %1754 = vst.msk [vmem:[#allocation3 + $0x191] sm:$0xff] %vm299_vm0, %v1734_v51  ;;  %v1797_v31 = vadd.f32 %v1781_v52, %v7871_v46  ;;  %v8105_v52 = vld [vmem:[#allocation3 + $0x411] sm:$0xff] }
 0x2d4   : > { %v2131_v39 = vpop.permute.xlu0 %2130 }
 0x2d5   : > { %2155 = vst.msk [vmem:[#allocation3 + $0x471] sm:$0xff] %vm299_vm0, %v2131_v39  ;;  %v2141_v41 = vpop.permute.xlu2 %2140  ;;  %v1848_v8 = vpop.permute.xlu1 %1847 }
 0x2d6   : > { %2160 = vst.msk [vmem:[#allocation3 + $0x4c1] sm:$0xff] %vm299_vm0, %v2141_v41  ;;  %v1871_v43 = vadd.f32 %v1848_v8, %v7809_v0 }
 0x2dc   : > { %v1730_v53 = vpop.permute.xlu0 %1729 }
 0x2dd   : > { %1752 = vst.msk [vmem:[#allocation3 + $0x171] sm:$0xff] %vm299_vm0, %v1730_v53  ;;  %v8014_v34 = vpop.permute.xlu2 %1855  ;;  %v2133_v54 = vpop.permute.xlu1 %2132 }
 0x2de   : > { %2156 = vst.msk [vmem:[#allocation3 + $0x481] sm:$0xff] %vm299_vm0, %v2133_v54  ;;  %v1875_v51 = vadd.f32 %v8014_v34, %v7830_v16  ;;  %v8133_v54 = vld [vmem:[#allocation3 + $0x471] sm:$0xff] }
 0x2e4   : > { %v8017_v55 = vpop.permute.xlu0 %1851 }
 0x2e5   : > { %v1740_v57 = vpop.permute.xlu2 %1739  ;;  %v1732_v58 = vpop.permute.xlu1 %1731  ;;  %v1873_v50 = vadd.f32 %v8017_v55, %v7801_v56  ;;  %v8109_v39 = vld [vmem:[#allocation3 + $0x481] sm:$0xff] }
 0x2e6   : > { %1757 = vst.msk [vmem:[#allocation3 + $0x1c1] sm:$0xff] %vm299_vm0, %v1740_v57  ;;  %v8141_v57 = vld [vmem:[#allocation3 + $0x491] sm:$0xff] }
 0x2e7   : > { %1753 = vst.msk [vmem:[#allocation3 + $0x181] sm:$0xff] %vm299_vm0, %v1732_v58 }
 0x2ec   : > { %v2137_v59 = vpop.permute.xlu0 %2136 }
 0x2ed   : > { %2158 = vst.msk [vmem:[#allocation3 + $0x4a1] sm:$0xff] %vm299_vm0, %v2137_v59  ;;  %v2172_v60 = vpop.permute.xlu2 %2171  ;;  %v8022_v61 = vpop.permute.xlu1 %1853 }
 0x2ee   : > { %v2195_v62 = vadd.f32 %v2172_v60, %v7809_v0  ;;  %v1874_v33 = vadd.f32 %v8022_v61, %v7813_v2  ;;  %v2359_v60 = vld [vmem:[#allocation3 + $0x150] sm:$0xff] }
 0x2f0   : > { %2211 = vrot.lane.b32.xlu1 %v2195_v62, %s7054_s20 }
 0x2f4   : > { %v1736_v63 = vpop.permute.xlu0 %1735 }
 0x2f5   : > { %1755 = vst.msk [vmem:[#allocation3 + $0x1a1] sm:$0xff] %vm299_vm0, %v1736_v63  ;;  %v1807_v1 = vpop.permute.xlu2 %1806  ;;  %v2139_v4 = vpop.permute.xlu1 %2138 }
 0x2f6   : > { %1831 = vst.msk [vmem:[#allocation3 + $0x1f1] sm:$0xff] %vm299_vm0, %v1807_v1  ;;  %v2360_v1 = vld [vmem:[#allocation3 + $0x160] sm:$0xff] }
 0x2f7   : > { %2159 = vst.msk [vmem:[#allocation3 + $0x4b1] sm:$0xff] %vm299_vm0, %v2139_v4  ;;  %v2362_v4 = vld [vmem:[#allocation3 + $0x180] sm:$0xff] }
 0x2f8   : > { %1816 = vrot.lane.b32.xlu1 %v1795_v5, %s7060_s23  ;;  %v2361_v5 = vld [vmem:[#allocation3 + $0x170] sm:$0xff] }
 0x2fc   : > { %v8032_v6 = vpop.permute.xlu0 %1857 }
 0x2fd   : > { %v8034_v7 = vpop.permute.xlu2 %1861  ;;  %v1738_v9 = vpop.permute.xlu1 %1737  ;;  %v1876_v53 = vadd.f32 %v8032_v6, %v7843_v28 }
 0x2fe   : > { %1756 = vst.msk [vmem:[#allocation3 + $0x1b1] sm:$0xff] %vm299_vm0, %v1738_v9  ;;  %v8123_v8 = vld [vmem:[#allocation3 + $0x4b1] sm:$0xff]  ;;  %v1878_v34 = vadd.f32 %v8034_v7, %v7871_v46  ;;  %v2364_v9 = vld [vmem:[#allocation3 + $0x1a0] sm:$0xff] }
 0x304   : > { %v2143_v10 = vpop.permute.xlu0 %2142 }
 0x305   : > { %2161 = vst.msk [vmem:[#allocation3 + $0x4d1] sm:$0xff] %vm299_vm0, %v2143_v10  ;;  %v8038_v11 = vpop.permute.xlu2 %1928  ;;  %v8040_v12 = vpop.permute.xlu1 %1859  ;;  %v2365_v7 = vld [vmem:[#allocation3 + $0x1b0] sm:$0xff] }
 0x306   : > { %v1877_v41 = vadd.f32 %v8040_v12, %v7855_v17  ;;  %v1952_v55 = vadd.f32 %v8038_v11, %v7809_v0  ;;  %v8153_v0 = vld [vmem:[#allocation3 + $0x4c1] sm:$0xff]  ;;  %v2363_v12 = vld [vmem:[#allocation3 + $0x190] sm:$0xff] }
 0x30c   : > { %v2174_v15 = vpop.permute.xlu0 %2173  ;;  %v8157_v61 = vld [vmem:[#allocation3 + $0x4d1] sm:$0xff] }
 0x30d   : > { %v2196_v13 = vadd.f32 %v2174_v15, %v7827_v14  ;;  %v2178_v18 = vpop.permute.xlu2 %2177  ;;  %v2145_v22 = vpop.permute.xlu1 %2144  ;;  %v8175_v15 = vld [vmem:[#allocation3 + $0x11] sm:$0xff] }
 0x30e   : > { %v2198_v23 = vadd.f32 %v2178_v18, %v7813_v2  ;;  %2162 = vst.msk [vmem:[#allocation3 + $0x4e1] sm:$0xff] %vm299_vm0, %v2145_v22  ;;  %v8100_v2 = vld [vmem:[#allocation3 + $0x3f1] sm:$0xff]  ;;  %v2245_v22 = vld [vmem:[#allocation3 + $0x500] sm:$0xff] }
 0x30f   : > { %2213 = vrot.lane.b32.xlu2 %v2196_v13, %s7054_s20  ;;  %2253 = vst.msk [vmem:[#allocation4] sm:$0xff] %vm299_vm0, %v2245_v22 }
 0x310   : > { %2217 = vrot.lane.b32.xlu1 %v2198_v23, %s7054_s20 }
 0x314   : > { %v1809_v25 = vpop.permute.xlu0 %1808 }
 0x315   : > { %v1813_v24 = vpop.permute.xlu2 %1812  ;;  %1832 = vst.msk [vmem:[#allocation3 + $0x201] sm:$0xff] %vm299_vm0, %v1809_v25  ;;  %v2176_v26 = vpop.permute.xlu1 %2175  ;;  %v2366_v25 = vld [vmem:[#allocation3 + $0x1c0] sm:$0xff] }
 0x316   : > { %1834 = vst.msk [vmem:[#allocation3 + $0x221] sm:$0xff] %vm299_vm0, %v1813_v24  ;;  %v2197_v29 = vadd.f32 %v2176_v26, %v7801_v56  ;;  %v8111_v56 = vld [vmem:[#allocation3 + $0x421] sm:$0xff]  ;;  %v8190_v24 = vld [vmem:[#allocation3 + $0x51] sm:$0xff] }
 0x317   : > { %1818 = vrot.lane.b32.xlu2 %v1796_v3, %s7060_s23  ;;  %v8188_v3 = vld [vmem:[#allocation3 + $0x41] sm:$0xff] }
 0x318   : > { %2215 = vrot.lane.b32.xlu0 %v2197_v29, %s7054_s20 }
 0x31c   : > { %v8053_v30 = vpop.permute.xlu0 %1930 }
 0x31d   : > { %v2184_v32 = vpop.permute.xlu2 %2183  ;;  %v1811_v21 = vpop.permute.xlu1 %1810  ;;  %v1953_v6 = vadd.f32 %v8053_v30, %v7827_v14  ;;  %v8177_v14 = vld [vmem:[#allocation3 + $0x21] sm:$0xff] }
 0x31e   : > { %v2201_v19 = vadd.f32 %v2184_v32, %v7855_v17  ;;  %1833 = vst.msk [vmem:[#allocation3 + $0x211] sm:$0xff] %vm299_vm0, %v1811_v21  ;;  %v8200_v21 = vld [vmem:[#allocation3 + $0x31] sm:$0xff] }
 0x320   : > { %2223 = vrot.lane.b32.xlu1 %v2201_v19, %s7054_s20  ;;  %1820 = vrot.lane.b32.xlu0 %v1797_v31, %s7060_s23  ;;  %v8204_v31 = vld [vmem:[#allocation3 + $0x71] sm:$0xff]  ;;  %v8206_v19 = vld [vmem:[#allocation3 + $0x81] sm:$0xff]  ;;  %s8739_s23 = scalar_lea.vmem %s10712_s7, %s7003_s8 }
 0x324   : > { %v2180_v36 = vpop.permute.xlu0 %2179 }
 0x325   : > { %v2199_v37 = vadd.f32 %v2180_v36, %v7830_v16  ;;  %v2182_v42 = vpop.permute.xlu1 %2181  ;;  %v8117_v16 = vld [vmem:[#allocation3 + $0x461] sm:$0xff] }
 0x326   : > { %v2200_v45 = vadd.f32 %v2182_v42, %v7843_v28  ;;  %v8145_v28 = vld [vmem:[#allocation3 + $0x4a1] sm:$0xff] }
 0x327   : > { %2219 = vrot.lane.b32.xlu2 %v2199_v37, %s7054_s20 }
 0x328   : > { %2280 = vrot.lane.b32.xlu1 %v8062_v40, %s7047_s26  ;;  %1887 = vrot.lane.b32.xlu0 %v1871_v43, %s7061_s27 }
 0x32c   : > { %v1815_v44 = vpop.permute.xlu0 %1814 }
 0x32d   : > { %1835 = vst.msk [vmem:[#allocation3 + $0x231] sm:$0xff] %vm299_vm0, %v1815_v44  ;;  %v8216_v44 = vld [vmem:[#allocation3 + $0x61] sm:$0xff] }
 0x330   : > { %1889 = vrot.lane.b32.xlu1 %v1872_v20, %s7061_s27  ;;  %2221 = vrot.lane.b32.xlu0 %v2200_v45, %s7054_s20  ;;  %v8220_v20 = vld [vmem:[#allocation3 + $0xc1] sm:$0xff]  ;;  %v8222_v45 = vld [vmem:[#allocation3 + $0xd1] sm:$0xff] }
 0x334   : > { %v2186_v47 = vpop.permute.xlu0 %2185 }
 0x335   : > { %v2202_v35 = vadd.f32 %v2186_v47, %v7871_v46 }
 0x337   : > { %2225 = vrot.lane.b32.xlu2 %v2202_v35, %s7054_s20 }
 0x338   : > { %2286 = vrot.lane.b32.xlu1 %v8077_v38, %s7047_s26  ;;  %2278 = vrot.lane.b32.xlu0 %v8075_v48, %s7047_s26 }
 0x33f   : > { %2282 = vrot.lane.b32.xlu2 %v8086_v27, %s7047_s26 }
 0x340   : > { %2292 = vrot.lane.b32.xlu1 %v8088_v49, %s7047_s26  ;;  %1893 = vrot.lane.b32.xlu0 %v1874_v33, %s7061_s27 }
 0x347   : > { %1891 = vrot.lane.b32.xlu2 %v1873_v50, %s7061_s27  ;;  %v8231_v50 = vld [vmem:[#allocation3 + $0xb1] sm:$0xff] }
 0x348   : > { %1895 = vrot.lane.b32.xlu1 %v1875_v51, %s7061_s27  ;;  %2284 = vrot.lane.b32.xlu0 %v8100_v2, %s7047_s26  ;;  %v8235_v51 = vld [vmem:[#allocation3 + $0xf1] sm:$0xff] }
 0x34f   : > { %2288 = vrot.lane.b32.xlu2 %v8105_v52, %s7047_s26 }
 0x350   : > { %2331 = vrot.lane.b32.xlu1 %v8109_v39, %s7048_s14  ;;  %2290 = vrot.lane.b32.xlu0 %v8111_v56, %s7047_s26 }
 0x357   : > { %2327 = vrot.lane.b32.xlu2 %v8117_v16, %s7048_s14 }
 0x358   : > { %2337 = vrot.lane.b32.xlu1 %v8123_v8, %s7048_s14  ;;  %1899 = vrot.lane.b32.xlu0 %v1877_v41, %s7061_s27  ;;  %v8237_v41 = vld [vmem:[#allocation3 + $0x101] sm:$0xff] }
 0x35f   : > { %1897 = vrot.lane.b32.xlu2 %v1876_v53, %s7061_s27 }
 0x360   : > { %1901 = vrot.lane.b32.xlu1 %v1878_v34, %s7061_s27  ;;  %2329 = vrot.lane.b32.xlu0 %v8133_v54, %s7048_s14 }
 0x362   : > { %v2212_v17 = vpop.permute.xlu1 %2211 }
 0x363   : > { %2236 = vst.msk [vmem:[#allocation3 + $0x511] sm:$0xff] %vm299_vm0, %v2212_v17 }
 0x367   : > { %2333 = vrot.lane.b32.xlu2 %v8141_v57, %s7048_s14 }
 0x368   : > { %1968 = vrot.lane.b32.xlu1 %v1952_v55, %s7055_s12  ;;  %2335 = vrot.lane.b32.xlu0 %v8145_v28, %s7048_s14 }
 0x369   : > { %v2214_v46 = vpop.permute.xlu2 %2213 }
 0x36a   : > { %2237 = vst.msk [vmem:[#allocation3 + $0x521] sm:$0xff] %vm299_vm0, %v2214_v46  ;;  %v1817_v58 = vpop.permute.xlu1 %1816  ;;  %v2246_v59 = vld [vmem:[#allocation3 + $0x510] sm:$0xff]  ;;  %v8247_v46 = vld [vmem:[#allocation3 + $0xe1] sm:$0xff] }
 0x36b   : > { %1836 = vst.msk [vmem:[#allocation3 + $0x241] sm:$0xff] %vm299_vm0, %v1817_v58  ;;  %v8251_v58 = vld [vmem:[#allocation3 + $0x121] sm:$0xff] }
 0x36c   : > { %2254 = vst.msk [vmem:[#allocation4 + $0x8] sm:$0xff] %vm299_vm0, %v2246_v59  ;;  %v2506_v59 = vld [vmem:[#allocation3 + $0x360] sm:$0xff] }
 0x36f   : > { %2339 = vrot.lane.b32.xlu2 %v8153_v0, %s7048_s14 }
 0x370   : > { %2375 = vrot.lane.b32.xlu1 %v2359_v60, %s7049_s15  ;;  %2341 = vrot.lane.b32.xlu0 %v8157_v61, %s7048_s14 }
 0x371   : > { %v1819_v62 = vpop.permute.xlu2 %1818  ;;  %v2247_v63 = vld [vmem:[#allocation3 + $0x520] sm:$0xff] }
 0x372   : > { %1837 = vst.msk [vmem:[#allocation3 + $0x251] sm:$0xff] %vm299_vm0, %v1819_v62 }
 0x373   : > { %2255 = vst.msk [vmem:[#allocation4 + $0x10] sm:$0xff] %vm299_vm0, %v2247_v63 }
 0x377   : > { %2377 = vrot.lane.b32.xlu2 %v2360_v1, %s7049_s15  ;;  %v8259_v1 = vld [vmem:[#allocation3 + $0x111] sm:$0xff] }
 0x378   : > { %2381 = vrot.lane.b32.xlu1 %v2362_v4, %s7049_s15  ;;  %2379 = vrot.lane.b32.xlu0 %v2361_v5, %s7049_s15  ;;  %v2505_v4 = vld [vmem:[#allocation3 + $0x350] sm:$0xff] }
 0x379   : > { %v2509_v5 = vld [vmem:[#allocation3 + $0x390] sm:$0xff] }
 0x37f   : > { %1970 = vrot.lane.b32.xlu2 %v1953_v6, %s7055_s12 }
 0x380   : > { %2387 = vrot.lane.b32.xlu1 %v2365_v7, %s7049_s15  ;;  %2385 = vrot.lane.b32.xlu0 %v2364_v9, %s7049_s15 }
 0x381   : > { %v2220_v10 = vpop.permute.xlu2 %2219 }
 0x382   : > { %2240 = vst.msk [vmem:[#allocation3 + $0x551] sm:$0xff] %vm299_vm0, %v2220_v10  ;;  %v2218_v11 = vpop.permute.xlu1 %2217  ;;  %v2507_v10 = vld [vmem:[#allocation3 + $0x370] sm:$0xff] }
 0x383   : > { %2239 = vst.msk [vmem:[#allocation3 + $0x541] sm:$0xff] %vm299_vm0, %v2218_v11  ;;  %v2508_v11 = vld [vmem:[#allocation3 + $0x380] sm:$0xff] }
 0x387   : > { %2383 = vrot.lane.b32.xlu2 %v2363_v12, %s7049_s15  ;;  %v8269_v12 = vld [vmem:[#allocation3 + $0x201] sm:$0xff] }
 0x388   : > { %2423 = vrot.lane.b32.xlu0 %v8175_v15, %s7050_s16  ;;  %2425 = vrot.lane.b32.xlu1 %v8177_v14, %s7050_s16 }
 0x389   : > { %v2250_v13 = vld [vmem:[#allocation3 + $0x550] sm:$0xff] }
 0x38a   : > { %v2216_v18 = vpop.permute.xlu0 %2215  ;;  %2258 = vst.msk [vmem:[#allocation4 + $0x28] sm:$0xff] %vm299_vm0, %v2250_v13  ;;  %v2249_v23 = vld [vmem:[#allocation3 + $0x540] sm:$0xff] }
 0x38b   : > { %2238 = vst.msk [vmem:[#allocation3 + $0x531] sm:$0xff] %vm299_vm0, %v2216_v18 }
 0x38c   : > { %2257 = vst.msk [vmem:[#allocation4 + $0x20] sm:$0xff] %vm299_vm0, %v2249_v23  ;;  %v2510_v23 = vld [vmem:[#allocation3 + $0x3a0] sm:$0xff] }
 0x38f   : > { %2389 = vrot.lane.b32.xlu2 %v2366_v25, %s7049_s15  ;;  %v8278_v25 = vld [vmem:[#allocation3 + $0x1f1] sm:$0xff] }
 0x390   : > { %2429 = vrot.lane.b32.xlu0 %v8188_v3, %s7050_s16  ;;  %2431 = vrot.lane.b32.xlu1 %v8190_v24, %s7050_s16 }
 0x391   : > { %v2226_v26 = vpop.permute.xlu2 %2225 }
 0x392   : > { %2243 = vst.msk [vmem:[#allocation3 + $0x581] sm:$0xff] %vm299_vm0, %v2226_v26  ;;  %v1821_v29 = vpop.permute.xlu0 %1820  ;;  %v2224_v30 = vpop.permute.xlu1 %2223  ;;  %v2248_v32 = vld [vmem:[#allocation3 + $0x530] sm:$0xff] }
 0x393   : > { %1838 = vst.msk [vmem:[#allocation3 + $0x261] sm:$0xff] %vm299_vm0, %v1821_v29  ;;  %v8280_v26 = vld [vmem:[#allocation3 + $0x231] sm:$0xff] }
 0x394   : > { %2242 = vst.msk [vmem:[#allocation3 + $0x571] sm:$0xff] %vm299_vm0, %v2224_v30 }
 0x395   : > { %2256 = vst.msk [vmem:[#allocation4 + $0x18] sm:$0xff] %vm299_vm0, %v2248_v32 }
 0x397   : > { %2427 = vrot.lane.b32.xlu2 %v8200_v21, %s7050_s16 }
 0x398   : > { %2435 = vrot.lane.b32.xlu0 %v8204_v31, %s7050_s16  ;;  %2437 = vrot.lane.b32.xlu1 %v8206_v19, %s7050_s16 }
 0x399   : > { %v2283_v36 = vpop.permute.xlu2 %2282 }
 0x39a   : > { %2304 = vst.msk [vmem:[#allocation4 + $0x10] sm:$0xff] %vm617_vm3, %v2283_v36  ;;  %v1888_v37 = vpop.permute.xlu0 %1887  ;;  %v2281_v43 = vpop.permute.xlu1 %2280  ;;  %v8289_v36 = vld [vmem:[#allocation3 + $0x211] sm:$0xff] }
 0x39b   : > { %1912 = vst.msk [vmem:[#allocation3 + $0x291] sm:$0xff] %vm299_vm0, %v1888_v37  ;;  %v2252_v42 = vld [vmem:[#allocation3 + $0x570] sm:$0xff]  ;;  %v8293_v37 = vld [vmem:[#allocation3 + $0x221] sm:$0xff] }
 0x39c   : > { %2303 = vst.msk [vmem:[#allocation4 + $0x8] sm:$0xff] %vm617_vm3, %v2281_v43  ;;  %v8295_v43 = vld [vmem:[#allocation3 + $0x261] sm:$0xff] }
 0x39d   : > { %2260 = vst.msk [vmem:[#allocation4 + $0x38] sm:$0xff] %vm299_vm0, %v2252_v42 }
 0x39f   : > { %2433 = vrot.lane.b32.xlu2 %v8216_v44, %s7050_s16 }
 0x3a0   : > { %2473 = vrot.lane.b32.xlu0 %v8220_v20, %s7051_s17  ;;  %2475 = vrot.lane.b32.xlu1 %v8222_v45, %s7051_s17 }
 0x3a1   : > { %v1892_v47 = vpop.permute.xlu2 %1891 }
 0x3a2   : > { %1914 = vst.msk [vmem:[#allocation3 + $0x2b1] sm:$0xff] %vm299_vm0, %v1892_v47  ;;  %v2222_v35 = vpop.permute.xlu0 %2221  ;;  %v1890_v33 = vpop.permute.xlu1 %1889 }
 0x3a3   : > { %2241 = vst.msk [vmem:[#allocation3 + $0x561] sm:$0xff] %vm299_vm0, %v2222_v35 }
 0x3a4   : > { %1913 = vst.msk [vmem:[#allocation3 + $0x2a1] sm:$0xff] %vm299_vm0, %v1890_v33  ;;  %v8304_v33 = vld [vmem:[#allocation3 + $0x241] sm:$0xff] }
 0x3a7   : > { %2471 = vrot.lane.b32.xlu2 %v8231_v50, %s7051_s17 }
 0x3a8   : > { %2479 = vrot.lane.b32.xlu0 %v8235_v51, %s7051_s17  ;;  %2481 = vrot.lane.b32.xlu1 %v8237_v41, %s7051_s17 }
 0x3a9   : > { %v2289_v53 = vpop.permute.xlu2 %2288 }
 0x3aa   : > { %2307 = vst.msk [vmem:[#allocation4 + $0x28] sm:$0xff] %vm617_vm3, %v2289_v53  ;;  %v2279_v34 = vpop.permute.xlu0 %2278  ;;  %v2287_v17 = vpop.permute.xlu1 %2286  ;;  %v2251_v55 = vld [vmem:[#allocation3 + $0x560] sm:$0xff]  ;;  %v8306_v53 = vld [vmem:[#allocation3 + $0x251] sm:$0xff] }
 0x3ab   : > { %2302 = vst.msk [vmem:[#allocation4] sm:$0xff] %vm617_vm3, %v2279_v34  ;;  %v8310_v34 = vld [vmem:[#allocation3 + $0x2b1] sm:$0xff] }
 0x3ac   : > { %2306 = vst.msk [vmem:[#allocation4 + $0x20] sm:$0xff] %vm617_vm3, %v2287_v17 }
 0x3ad   : > { %2259 = vst.msk [vmem:[#allocation4 + $0x30] sm:$0xff] %vm299_vm0, %v2251_v55 }
 0x3af   : > { %2477 = vrot.lane.b32.xlu2 %v8247_v46, %s7051_s17 }
 0x3b0   : > { %2485 = vrot.lane.b32.xlu0 %v8251_v58, %s7051_s17  ;;  %2525 = vrot.lane.b32.xlu1 %v2506_v59, %s7052_s18 }
 0x3b1   : > { %v2328_v60 = vpop.permute.xlu2 %2327 }
 0x3b2   : > { %2351 = vst.msk [vmem:[#allocation4] sm:$0xff] %vm666_vm4, %v2328_v60  ;;  %v1894_v62 = vpop.permute.xlu0 %1893  ;;  %v2293_v63 = vpop.permute.xlu1 %2292  ;;  %v8319_v60 = vld [vmem:[#allocation3 + $0x291] sm:$0xff] }
 0x3b3   : > { %1915 = vst.msk [vmem:[#allocation3 + $0x2c1] sm:$0xff] %vm299_vm0, %v1894_v62  ;;  %v8323_v62 = vld [vmem:[#allocation3 + $0x2a1] sm:$0xff] }
 0x3b4   : > { %2309 = vst.msk [vmem:[#allocation4 + $0x38] sm:$0xff] %vm617_vm3, %v2293_v63 }
 0x3b7   : > { %2483 = vrot.lane.b32.xlu2 %v8259_v1, %s7051_s17 }
 0x3b8   : > { %2523 = vrot.lane.b32.xlu0 %v2505_v4, %s7052_s18  ;;  %2531 = vrot.lane.b32.xlu1 %v2509_v5, %s7052_s18 }
 0x3b9   : > { %v1898_v6 = vpop.permute.xlu2 %1897 }
 0x3ba   : > { %1917 = vst.msk [vmem:[#allocation3 + $0x2e1] sm:$0xff] %vm299_vm0, %v1898_v6  ;;  %v2285_v7 = vpop.permute.xlu0 %2284  ;;  %v1896_v9 = vpop.permute.xlu1 %1895 }
 0x3bb   : > { %2305 = vst.msk [vmem:[#allocation4 + $0x18] sm:$0xff] %vm617_vm3, %v2285_v7  ;;  %v8331_v7 = vld [vmem:[#allocation3 + $0x2c1] sm:$0xff] }
 0x3bc   : > { %1916 = vst.msk [vmem:[#allocation3 + $0x2d1] sm:$0xff] %vm299_vm0, %v1896_v9 }
 0x3bf   : > { %2527 = vrot.lane.b32.xlu2 %v2507_v10, %s7052_s18 }
 0x3c0   : > { %2529 = vrot.lane.b32.xlu0 %v2508_v11, %s7052_s18  ;;  %2569 = vrot.lane.b32.xlu1 %v8269_v12, %s7053_s19 }
 0x3c1   : > { %v2334_v13 = vpop.permute.xlu2 %2333 }
 0x3c2   : > { %2354 = vst.msk [vmem:[#allocation4 + $0x18] sm:$0xff] %vm666_vm4, %v2334_v13  ;;  %v2291_v18 = vpop.permute.xlu0 %2290  ;;  %v2332_v22 = vpop.permute.xlu1 %2331 }
 0x3c3   : > { %2308 = vst.msk [vmem:[#allocation4 + $0x30] sm:$0xff] %vm617_vm3, %v2291_v18  ;;  %v8335_v9 = vld [vmem:[#allocation3 + $0x2d1] sm:$0xff]  ;;  %v8341_v18 = vld [vmem:[#allocation3 + $0x2e1] sm:$0xff] }
 0x3c4   : > { %2353 = vst.msk [vmem:[#allocation4 + $0x10] sm:$0xff] %vm666_vm4, %v2332_v22 }
 0x3c7   : > { %2533 = vrot.lane.b32.xlu2 %v2510_v23, %s7052_s18 }
 0x3c8   : > { %2567 = vrot.lane.b32.xlu0 %v8278_v25, %s7053_s19  ;;  %2575 = vrot.lane.b32.xlu1 %v8280_v26, %s7053_s19 }
 0x3c9   : > { %v2340_v29 = vpop.permute.xlu2 %2339 }
 0x3ca   : > { %2357 = vst.msk [vmem:[#allocation4 + $0x30] sm:$0xff] %vm666_vm4, %v2340_v29  ;;  %v1900_v30 = vpop.permute.xlu0 %1899  ;;  %v2338_v32 = vpop.permute.xlu1 %2337 }
 0x3cb   : > { %1918 = vst.msk [vmem:[#allocation3 + $0x2f1] sm:$0xff] %vm299_vm0, %v1900_v30 }
 0x3cc   : > { %2356 = vst.msk [vmem:[#allocation4 + $0x28] sm:$0xff] %vm666_vm4, %v2338_v32 }
 0x3cf   : > { %2571 = vrot.lane.b32.xlu2 %v8289_v36, %s7053_s19 }
 0x3d0   : > { %2573 = vrot.lane.b32.xlu0 %v8293_v37, %s7053_s19  ;;  %2581 = vrot.lane.b32.xlu1 %v8295_v43, %s7053_s19 }
 0x3d1   : > { %v2378_v42 = vpop.permute.xlu2 %2377 }
 0x3d2   : > { %v2330_v47 = vpop.permute.xlu0 %2329  ;;  %v1902_v35 = vpop.permute.xlu1 %1901  ;;  %v8346_v22 = vld [vmem:[#allocation3 + $0x2f1] sm:$0xff] }
 0x3d3   : > { %2352 = vst.msk [vmem:[#allocation4 + $0x8] sm:$0xff] %vm666_vm4, %v2330_v47 }
 0x3d4   : > { %2400 = vst.msk [vmem:[#allocation4 + $0x8] sm:$0xff] %vm715_vm5, %v2378_v42 }
 0x3d5   : > { %1919 = vst.msk [vmem:[#allocation3 + $0x301] sm:$0xff] %vm299_vm0, %v1902_v35 }
 0x3d7   : > { %2577 = vrot.lane.b32.xlu2 %v8304_v33, %s7053_s19 }
 0x3d8   : > { %2579 = vrot.lane.b32.xlu0 %v8306_v53, %s7053_s19  ;;  %2619 = vrot.lane.b32.xlu1 %v8310_v34, %s7054_s20 }
 0x3d9   : > { %v1971_v17 = vpop.permute.xlu2 %1970 }
 0x3da   : > { %1994 = vst.msk [vmem:[#allocation3 + $0x341] sm:$0xff] %vm299_vm0, %v1971_v17  ;;  %v2336_v55 = vpop.permute.xlu0 %2335  ;;  %v1969_v59 = vpop.permute.xlu1 %1968 }
 0x3db   : > { %2355 = vst.msk [vmem:[#allocation4 + $0x20] sm:$0xff] %vm666_vm4, %v2336_v55 }
 0x3dc   : > { %1993 = vst.msk [vmem:[#allocation3 + $0x331] sm:$0xff] %vm299_vm0, %v1969_v59  ;;  %v8350_v23 = vld [vmem:[#allocation3 + $0x301] sm:$0xff] }
 0x3dd   : > { %v8376_v59 = vld [vmem:[#allocation3 + $0x501] sm:$0xff] }
 0x3df   : > { %2615 = vrot.lane.b32.xlu2 %v8319_v60, %s7054_s20 }
 0x3e0   : > { %2617 = vrot.lane.b32.xlu0 %v8323_v62, %s7054_s20 }
 0x3e1   : > { %v2384_v63 = vpop.permute.xlu2 %2383  ;;  %v2504_v42 = vld [vmem:[#allocation3 + $0x340] sm:$0xff] }
 0x3e2   : > { %2403 = vst.msk [vmem:[#allocation4 + $0x20] sm:$0xff] %vm715_vm5, %v2384_v63  ;;  %v2342_v4 = vpop.permute.xlu0 %2341  ;;  %v2376_v5 = vpop.permute.xlu1 %2375  ;;  %v8384_v63 = vld [vmem:[#allocation3 + $0x511] sm:$0xff] }
 0x3e3   : > { %2358 = vst.msk [vmem:[#allocation4 + $0x38] sm:$0xff] %vm666_vm4, %v2342_v4  ;;  %v2503_v6 = vld [vmem:[#allocation3 + $0x330] sm:$0xff] }
 0x3e4   : > { %2399 = vst.msk [vmem:[#allocation4] sm:$0xff] %vm715_vm5, %v2376_v5  ;;  %2519 = vrot.lane.b32.xlu1 %v2503_v6, %s7052_s18  ;;  %v8397_v6 = vld [vmem:[#allocation3 + $0x541] sm:$0xff] }
 0x3e7   : > { %2621 = vrot.lane.b32.xlu2 %v8331_v7, %s7054_s20 }
 0x3e8   : > { %2623 = vrot.lane.b32.xlu0 %v8335_v9, %s7054_s20 }
 0x3e9   : > { %v2390_v10 = vpop.permute.xlu2 %2389 }
 0x3ea   : > { %2406 = vst.msk [vmem:[#allocation4 + $0x38] sm:$0xff] %vm715_vm5, %v2390_v10  ;;  %v2380_v11 = vpop.permute.xlu0 %2379  ;;  %v2382_v13 = vpop.permute.xlu1 %2381  ;;  %v8406_v10 = vld [vmem:[#allocation3 + $0x561] sm:$0xff] }
 0x3eb   : > { %2401 = vst.msk [vmem:[#allocation4 + $0x10] sm:$0xff] %vm715_vm5, %v2380_v11 }
 0x3ec   : > { %2402 = vst.msk [vmem:[#allocation4 + $0x18] sm:$0xff] %vm715_vm5, %v2382_v13  ;;  %2625 = vrot.lane.b32.xlu1 %v8341_v18, %s7054_s20 }
 0x3ef   : > { %2627 = vrot.lane.b32.xlu2 %v8346_v22, %s7054_s20 }
 0x3f0   : > { %2629 = vrot.lane.b32.xlu0 %v8350_v23, %s7054_s20 }
 0x3f1   : > { %v2428_v29 = vpop.permute.xlu2 %2427 }
 0x3f2   : > { %2449 = vst.msk [vmem:[#allocation4 + $0x10] sm:$0xff] %vm764_vm6, %v2428_v29  ;;  %v2386_v30 = vpop.permute.xlu0 %2385  ;;  %v2388_v32 = vpop.permute.xlu1 %2387 }
 0x3f3   : > { %2404 = vst.msk [vmem:[#allocation4 + $0x28] sm:$0xff] %vm715_vm5, %v2386_v30  ;;  %v8411_v30 = vld [vmem:[#allocation3 + $0x571] sm:$0xff] }
 0x3f4   : > { %2405 = vst.msk [vmem:[#allocation4 + $0x30] sm:$0xff] %vm715_vm5, %v2388_v32  ;;  %2774 = vrot.lane.b32.xlu1 %v8117_v16, %s7047_s26  ;;  %v8417_v32 = vld [vmem:[#allocation3 + $0x551] sm:$0xff] }
 0x3f7   : > { %2521 = vrot.lane.b32.xlu2 %v2504_v42, %s7052_s18 }
 0x3f8   : > { %2778 = vrot.lane.b32.xlu0 %v8109_v39, %s7047_s26 }
 0x3f9   : > { %v2434_v47 = vpop.permute.xlu2 %2433 }
 0x3fa   : > { %2452 = vst.msk [vmem:[#allocation4 + $0x28] sm:$0xff] %vm764_vm6, %v2434_v47  ;;  %v2424_v35 = vpop.permute.xlu0 %2423  ;;  %v2426_v17 = vpop.permute.xlu1 %2425 }
 0x3fb   : > { %2447 = vst.msk [vmem:[#allocation4] sm:$0xff] %vm764_vm6, %v2424_v35 }
 0x3fc   : > { %2448 = vst.msk [vmem:[#allocation4 + $0x8] sm:$0xff] %vm764_vm6, %v2426_v17  ;;  %2780 = vrot.lane.b32.xlu1 %v8141_v57, %s7047_s26 }
 0x3ff   : > { %2776 = vrot.lane.b32.xlu2 %v8133_v54, %s7047_s26 }
 0x400   : > { %2784 = vrot.lane.b32.xlu0 %v8123_v8, %s7047_s26 }
 0x401   : > { %v2472_v16 = vpop.permute.xlu2 %2471 }
 0x402   : > { %2495 = vst.msk [vmem:[#allocation4] sm:$0xff] %vm813_vm7, %v2472_v16  ;;  %v2430_v39 = vpop.permute.xlu0 %2429  ;;  %v2432_v55 = vpop.permute.xlu1 %2431 }
 0x403   : > { %2450 = vst.msk [vmem:[#allocation4 + $0x18] sm:$0xff] %vm764_vm6, %v2430_v39 }
 0x404   : > { %2451 = vst.msk [vmem:[#allocation4 + $0x20] sm:$0xff] %vm764_vm6, %v2432_v55  ;;  %2786 = vrot.lane.b32.xlu1 %v8153_v0, %s7047_s26  ;;  %v2659_v55 = vld [vmem:[%s10710_s5 + $0x20] sm:$0xff] }
 0x407   : > { %2782 = vrot.lane.b32.xlu2 %v8145_v28, %s7047_s26  ;;  %v8391_v28 = vld [vmem:[#allocation3 + $0x531] sm:$0xff] }
 0x408   : > { %2822 = vrot.lane.b32.xlu0 %v8376_v59, %s7048_s14 }
 0x409   : > { %v2478_v8 = vpop.permute.xlu2 %2477 }
 0x40a   : > { %2498 = vst.msk [vmem:[#allocation4 + $0x18] sm:$0xff] %vm813_vm7, %v2478_v8  ;;  %v2436_v54 = vpop.permute.xlu0 %2435  ;;  %v2438_v57 = vpop.permute.xlu1 %2437 }
 0x40b   : > { %2453 = vst.msk [vmem:[#allocation4 + $0x30] sm:$0xff] %vm764_vm6, %v2436_v54  ;;  %v2658_v54 = vld [vmem:[%s10710_s5 + $0x18] sm:$0xff] }
 0x40c   : > { %2454 = vst.msk [vmem:[#allocation4 + $0x38] sm:$0xff] %vm764_vm6, %v2438_v57  ;;  %2824 = vrot.lane.b32.xlu1 %v8384_v63, %s7048_s14 }
 0x40f   : > { %2788 = vrot.lane.b32.xlu2 %v8157_v61, %s7047_s26  ;;  %v8402_v61 = vld [vmem:[#allocation3 + $0x521] sm:$0xff] }
 0x410   : > { %2828 = vrot.lane.b32.xlu0 %v8391_v28, %s7048_s14 }
 0x411   : > { %v2484_v0 = vpop.permute.xlu2 %2483 }
 0x412   : > { %2501 = vst.msk [vmem:[#allocation4 + $0x30] sm:$0xff] %vm813_vm7, %v2484_v0  ;;  %v2474_v4 = vpop.permute.xlu0 %2473  ;;  %v2476_v5 = vpop.permute.xlu1 %2475 }
 0x413   : > { %2496 = vst.msk [vmem:[#allocation4 + $0x8] sm:$0xff] %vm813_vm7, %v2474_v4  ;;  %v2655_v4 = vld [vmem:[%s10710_s5] sm:$0xff] }
 0x414   : > { %2497 = vst.msk [vmem:[#allocation4 + $0x10] sm:$0xff] %vm813_vm7, %v2476_v5  ;;  %2830 = vrot.lane.b32.xlu1 %v8397_v6, %s7048_s14 }
 0x417   : > { %2826 = vrot.lane.b32.xlu2 %v8402_v61, %s7048_s14 }
 0x418   : > { %2834 = vrot.lane.b32.xlu0 %v8406_v10, %s7048_s14 }
 0x419   : > { %v2528_v11 = vpop.permute.xlu2 %2527 }
 0x41a   : > { %v2480_v13 = vpop.permute.xlu0 %2479  ;;  %v2482_v29 = vpop.permute.xlu1 %2481 }
 0x41b   : > { %2499 = vst.msk [vmem:[#allocation4 + $0x20] sm:$0xff] %vm813_vm7, %v2480_v13 }
 0x41c   : > { %2547 = vst.msk [vmem:[#allocation4 + $0x20] sm:$0xff] %vm863_vm8, %v2528_v11  ;;  %2836 = vrot.lane.b32.xlu1 %v8411_v30, %s7048_s14 }
 0x41d   : > { %2500 = vst.msk [vmem:[#allocation4 + $0x28] sm:$0xff] %vm813_vm7, %v2482_v29  ;;  %v8490_v29 = vld [vmem:[#allocation3 + $0x151] sm:$0xff] }
 0x41f   : > { %2832 = vrot.lane.b32.xlu2 %v8417_v32, %s7048_s14 }
 0x420   : > { %2872 = vrot.lane.b32.xlu0 %v8177_v14, %s7049_s15 }
 0x421   : > { %v2534_v42 = vpop.permute.xlu2 %2533 }
 0x422   : > { %v2486_v47 = vpop.permute.xlu0 %2485  ;;  %v2526_v35 = vpop.permute.xlu1 %2525 }
 0x423   : > { %2502 = vst.msk [vmem:[#allocation4 + $0x38] sm:$0xff] %vm813_vm7, %v2486_v47 }
 0x424   : > { %2550 = vst.msk [vmem:[#allocation4 + $0x38] sm:$0xff] %vm863_vm8, %v2534_v42  ;;  %2874 = vrot.lane.b32.xlu1 %v8200_v21, %s7049_s15  ;;  %v2663_v21 = vld [vmem:[%s10710_s5 + $0x40] sm:$0xff] }
 0x425   : > { %2546 = vst.msk [vmem:[#allocation4 + $0x18] sm:$0xff] %vm863_vm8, %v2526_v35  ;;  %2699 = vmatpush.msrb.mxu2 %v2663_v21  ;;  %3194 = vmatpush.msrb.mxu3 %v2663_v21  ;;  %v8495_v35 = vld [vmem:[#allocation3 + $0x161] sm:$0xff] }
 0x427   : > { %2870 = vrot.lane.b32.xlu2 %v8175_v15, %s7049_s15  ;;  %v2662_v15 = vld [vmem:[%s10710_s5 + $0x38] sm:$0xff] }
 0x428   : > { %2878 = vrot.lane.b32.xlu0 %v8190_v24, %s7049_s15  ;;  %2700 = vmatpush.msrb.mxu2 %v2662_v15 }
 0x429   : > { %v2572_v17 = vpop.permute.xlu2 %2571  ;;  %3195 = vmatpush.msrb.mxu3 %v2662_v15  ;;  %v8513_v15 = vld [vmem:[#allocation3 + $0x191] sm:$0xff] }
 0x42a   : > { %v2524_v14 = vpop.permute.xlu0 %2523  ;;  %v2532_v16 = vpop.permute.xlu1 %2531 }
 0x42b   : > { %2545 = vst.msk [vmem:[#allocation4 + $0x10] sm:$0xff] %vm863_vm8, %v2524_v14  ;;  %v8507_v14 = vld [vmem:[#allocation3 + $0x181] sm:$0xff] }
 0x42c   : > { %2593 = vst.msk [vmem:[#allocation4 + $0x10] sm:$0xff] %vm912_vm9, %v2572_v17  ;;  %2880 = vrot.lane.b32.xlu1 %v8216_v44, %s7049_s15 }
 0x42d   : > { %2549 = vst.msk [vmem:[#allocation4 + $0x30] sm:$0xff] %vm863_vm8, %v2532_v16 }
 0x42f   : > { %2876 = vrot.lane.b32.xlu2 %v8188_v3, %s7049_s15  ;;  %v2661_v3 = vld [vmem:[%s10710_s5 + $0x30] sm:$0xff] }
 0x430   : > { %2884 = vrot.lane.b32.xlu0 %v8206_v19, %s7049_s15  ;;  %v2660_v19 = vld [vmem:[%s10710_s5 + $0x28] sm:$0xff]  ;;  %2701 = vmatpush.msrb.mxu2 %v2661_v3 }
 0x431   : > { %v2578_v24 = vpop.permute.xlu2 %2577  ;;  %3196 = vmatpush.msrb.mxu3 %v2661_v3  ;;  %v8522_v3 = vld [vmem:[#allocation3 + $0x171] sm:$0xff] }
 0x432   : > { %v2530_v44 = vpop.permute.xlu0 %2529  ;;  %v2570_v39 = vpop.permute.xlu1 %2569  ;;  %2702 = vmatpush.msrb.mxu2 %v2660_v19 }
 0x433   : > { %2548 = vst.msk [vmem:[#allocation4 + $0x28] sm:$0xff] %vm863_vm8, %v2530_v44  ;;  %3197 = vmatpush.msrb.mxu3 %v2660_v19 }
 0x434   : > { %2596 = vst.msk [vmem:[#allocation4 + $0x28] sm:$0xff] %vm912_vm9, %v2578_v24  ;;  %2918 = vrot.lane.b32.xlu1 %v8231_v50, %s7050_s16  ;;  %2703 = vmatpush.msrb.mxu2 %v2659_v55 }
 0x435   : > { %3198 = vmatpush.msrb.mxu3 %v2659_v55 }
 0x436   : > { %2704 = vmatpush.msrb.mxu2 %v2658_v54 }
 0x437   : > { %2882 = vrot.lane.b32.xlu2 %v8204_v31, %s7049_s15  ;;  %v2657_v31 = vld [vmem:[%s10710_s5 + $0x10] sm:$0xff]  ;;  %3199 = vmatpush.msrb.mxu3 %v2658_v54 }
 0x438   : > { %2922 = vrot.lane.b32.xlu0 %v8222_v45, %s7050_s16  ;;  %2705 = vmatpush.msrb.mxu2 %v2657_v31  ;;  %v2656_v45 = vld [vmem:[%s10710_s5 + $0x8] sm:$0xff] }
 0x439   : > { %v2616_v8 = vpop.permute.xlu2 %2615  ;;  %3200 = vmatpush.msrb.mxu3 %v2657_v31 }
 0x43a   : > { %v2568_v57 = vpop.permute.xlu0 %2567  ;;  %v2576_v0 = vpop.permute.xlu1 %2575  ;;  %2706 = vmatpush.msrb.mxu2 %v2656_v45 }
 0x43b   : > { %2595 = vst.msk [vmem:[#allocation4 + $0x20] sm:$0xff] %vm912_vm9, %v2576_v0  ;;  %3201 = vmatpush.msrb.mxu3 %v2656_v45 }
 0x43c   : > { %2924 = vrot.lane.b32.xlu1 %v8247_v46, %s7050_s16  ;;  %2707 = vmatpush.msrb.mxu2 %v2655_v4 }
 0x43d   : > { %3202 = vmatpush.msrb.mxu3 %v2655_v4 }
 0x43f   : > { %2920 = vrot.lane.b32.xlu2 %v8220_v20, %s7050_s16 }
 0x440   : > { %2928 = vrot.lane.b32.xlu0 %v8237_v41, %s7050_s16 }
 0x441   : > { %v2622_v5 = vpop.permute.xlu2 %2621 }
 0x442   : > { %v2574_v11 = vpop.permute.xlu0 %2573  ;;  %v2582_v13 = vpop.permute.xlu1 %2581 }
 0x443   : > { %2594 = vst.msk [vmem:[#allocation4 + $0x18] sm:$0xff] %vm912_vm9, %v2574_v11 }
 0x444   : > { %2642 = vst.msk [vmem:[#allocation4 + $0x18] sm:$0xff] %vm961_vm10, %v2622_v5  ;;  %2930 = vrot.lane.b32.xlu1 %v8259_v1, %s7050_s16 }
 0x445   : > { %2598 = vst.msk [vmem:[#allocation4 + $0x38] sm:$0xff] %vm912_vm9, %v2582_v13  ;;  %v8631_v13 = vld [vmem:[#allocation3 + $0x371] sm:$0xff] }
 0x447   : > { %2926 = vrot.lane.b32.xlu2 %v8235_v51, %s7050_s16 }
 0x448   : > { %2966 = vrot.lane.b32.xlu0 %v8490_v29, %s7051_s17 }
 0x449   : > { %v2628_v41 = vpop.permute.xlu2 %2627 }
 0x44a   : > { %v2580_v42 = vpop.permute.xlu0 %2579  ;;  %v2620_v47 = vpop.permute.xlu1 %2619 }
 0x44b   : > { %2597 = vst.msk [vmem:[#allocation4 + $0x30] sm:$0xff] %vm912_vm9, %v2580_v42  ;;  %v8497_v17 = vld [vmem:[#allocation4 + $0x18] sm:$0xff] }
 0x44c   : > { %2645 = vst.msk [vmem:[#allocation4 + $0x30] sm:$0xff] %vm961_vm10, %v2628_v41  ;;  %2968 = vrot.lane.b32.xlu1 %v8495_v35, %s7051_s17  ;;  %v8635_v41 = vld [vmem:[#allocation3 + $0x351] sm:$0xff] }
 0x44d   : > { %2641 = vst.msk [vmem:[#allocation4 + $0x10] sm:$0xff] %vm961_vm10, %v2620_v47  ;;  %v8640_v42 = vld [vmem:[#allocation3 + $0x391] sm:$0xff] }
 0x44e   : > { %2753 = vst.msk [vmem:[#allocation4 + $0x18] sm:$0xff] %vm299_vm0, %v8100_v2 }
 0x44f   : > { %2932 = vrot.lane.b32.xlu2 %v8251_v58, %s7050_s16 }
 0x450   : > { %2972 = vrot.lane.b32.xlu0 %v8507_v14, %s7051_s17 }
 0x451   : > { %v2522_v16 = vpop.permute.xlu2 %2521 }
 0x452   : > { %2544 = vst.msk [vmem:[#allocation4 + $0x8] sm:$0xff] %vm863_vm8, %v2522_v16  ;;  %v2618_v21 = vpop.permute.xlu0 %2617  ;;  %v8648_v16 = vld [vmem:[#allocation3 + $0x3a1] sm:$0xff] }
 0x453   : > { %2592 = vst.msk [vmem:[#allocation4 + $0x8] sm:$0xff] %vm912_vm9, %v2570_v39  ;;  %v8515_v24 = vld [vmem:[#allocation4 + $0x30] sm:$0xff] }
 0x454   : > { %2640 = vst.msk [vmem:[#allocation4 + $0x8] sm:$0xff] %vm961_vm10, %v2618_v21  ;;  %2974 = vrot.lane.b32.xlu1 %v8513_v15, %s7051_s17  ;;  %v2649_v2 = vld [vmem:[#allocation4 + $0x10] sm:$0xff] }
 0x455   : > { %2752 = vst.msk [vmem:[#allocation4 + $0x10] sm:$0xff] %vm299_vm0, %v8086_v27  ;;  %v8529_v39 = vld [vmem:[#allocation3 + $0x1b1] sm:$0xff] }
 0x456   : > { %v2520_v44 = vpop.permute.xlu1 %2519  ;;  %2756 = vst.msk [vmem:[#allocation4 + $0x30] sm:$0xff] %vm299_vm0, %v8111_v56  ;;  %v8536_v56 = vld [vmem:[#allocation3 + $0x1c1] sm:$0xff] }
 0x457   : > { %2543 = vst.msk [vmem:[#allocation4] sm:$0xff] %vm863_vm8, %v2520_v44  ;;  %2970 = vrot.lane.b32.xlu2 %v8522_v3, %s7051_s17 }
 0x458   : > { %2591 = vst.msk [vmem:[#allocation4] sm:$0xff] %vm912_vm9, %v2568_v57  ;;  %2978 = vrot.lane.b32.xlu0 %v8529_v39, %s7051_s17  ;;  %v8543_v57 = vld [vmem:[#allocation3 + $0x1a1] sm:$0xff] }
 0x459   : > { %2639 = vst.msk [vmem:[#allocation4] sm:$0xff] %vm961_vm10, %v2616_v8  ;;  %v2777_v27 = vpop.permute.xlu2 %2776 }
 0x45a   : > { %v2624_v19 = vpop.permute.xlu0 %2623 }
 0x45b   : > { %v2648_v55 = vld [vmem:[#allocation4 + $0x8] sm:$0xff]  ;;  %2643 = vst.msk [vmem:[#allocation4 + $0x20] sm:$0xff] %vm961_vm10, %v2624_v19 }
 0x45c   : > { %2751 = vst.msk [vmem:[#allocation4 + $0x8] sm:$0xff] %vm299_vm0, %v8062_v40  ;;  %2980 = vrot.lane.b32.xlu1 %v8536_v56, %s7051_s17 }
 0x45d   : > { %2799 = vst.msk [vmem:[#allocation4 + $0x8] sm:$0xff] %vm617_vm3, %v2777_v27 }
 0x45e   : > { %v2626_v54 = vpop.permute.xlu1 %2625 }
 0x45f   : > { %2644 = vst.msk [vmem:[#allocation4 + $0x28] sm:$0xff] %vm961_vm10, %v2626_v54  ;;  %2976 = vrot.lane.b32.xlu2 %v8543_v57, %s7051_s17 }
 0x460   : > { %3016 = vrot.lane.b32.xlu0 %v8269_v12, %s7052_s18  ;;  %v2647_v8 = vld [vmem:[#allocation4] sm:$0xff] }
 0x461   : > { %6861 = vmatmul.msk.f32.vlgmr.msrb.gmra.mxu2 %vm991_vm11, %v2647_v8  ;;  %v2783_v40 = vpop.permute.xlu2 %2782  ;;  %2750 = vst.msk [vmem:[#allocation4] sm:$0xff] %vm299_vm0, %v8075_v48  ;;  %v3304_v8 = vld [vmem:[#allocation3 + $0x3f2] sm:$0xff] }
 0x462   : > { %v2651_v0 = vld [vmem:[#allocation4 + $0x20] sm:$0xff]  ;;  %v2630_v31 = vpop.permute.xlu0 %2629 }
 0x463   : > { %2754 = vst.msk [vmem:[#allocation4 + $0x20] sm:$0xff] %vm299_vm0, %v8077_v38 }
 0x464   : > { %2802 = vst.msk [vmem:[#allocation4 + $0x20] sm:$0xff] %vm617_vm3, %v2783_v40  ;;  %3018 = vrot.lane.b32.xlu1 %v8289_v36, %s7052_s18 }
 0x465   : > { %2646 = vst.msk [vmem:[#allocation4 + $0x38] sm:$0xff] %vm961_vm10, %v2630_v31  ;;  %v3306_v31 = vld [vmem:[#allocation3 + $0x412] sm:$0xff] }
 0x466   : > { %v2775_v12 = vpop.permute.xlu1 %2774  ;;  %v2652_v45 = vld [vmem:[#allocation4 + $0x28] sm:$0xff] }
 0x467   : > { %2798 = vst.msk [vmem:[#allocation4] sm:$0xff] %vm617_vm3, %v2775_v12  ;;  %3014 = vrot.lane.b32.xlu2 %v8278_v25, %s7052_s18 }
 0x468   : > { %3022 = vrot.lane.b32.xlu0 %v8280_v26, %s7052_s18  ;;  %2755 = vst.msk [vmem:[#allocation4 + $0x28] sm:$0xff] %vm299_vm0, %v8105_v52 }
 0x469   : > { %6862 = vmatmul.msk.f32.gmra.mxu2 %vm991_vm11, %v2648_v55  ;;  %v2789_v48 = vpop.permute.xlu2 %2788 }
 0x46a   : > { %v2779_v38 = vpop.permute.xlu0 %2778 }
 0x46b   : > { %2800 = vst.msk [vmem:[#allocation4 + $0x10] sm:$0xff] %vm617_vm3, %v2779_v38  ;;  %v3305_v38 = vld [vmem:[#allocation3 + $0x402] sm:$0xff] }
 0x46c   : > { %v8568_v36 = vld [vmem:[#allocation4 + $0x38] sm:$0xff]  ;;  %3024 = vrot.lane.b32.xlu1 %v8304_v33, %s7052_s18 }
 0x46d   : > { %2757 = vst.msk [vmem:[#allocation4 + $0x38] sm:$0xff] %vm299_vm0, %v8088_v49 }
 0x46e   : > { %2805 = vst.msk [vmem:[#allocation4 + $0x38] sm:$0xff] %vm617_vm3, %v2789_v48  ;;  %v2781_v25 = vpop.permute.xlu1 %2780 }
 0x46f   : > { %2801 = vst.msk [vmem:[#allocation4 + $0x18] sm:$0xff] %vm617_vm3, %v2781_v25  ;;  %3020 = vrot.lane.b32.xlu2 %v8293_v37, %s7052_s18 }
 0x470   : > { %3028 = vrot.lane.b32.xlu0 %v8295_v43, %s7052_s18 }
 0x471   : > { %6863 = vmatmul.msk.f32.gmra.mxu2 %vm991_vm11, %v2649_v2  ;;  %v2827_v52 = vpop.permute.xlu2 %2826 }
 0x472   : > { %2848 = vst.msk [vmem:[#allocation4 + $0x10] sm:$0xff] %vm666_vm4, %v2827_v52  ;;  %v2785_v26 = vpop.permute.xlu0 %2784 }
 0x473   : > { %2803 = vst.msk [vmem:[#allocation4 + $0x28] sm:$0xff] %vm617_vm3, %v2785_v26  ;;  %v3308_v26 = vld [vmem:[#allocation3 + $0x432] sm:$0xff] }
 0x474   : > { %3062 = vrot.lane.b32.xlu1 %v8319_v60, %s7053_s19 }
 0x476   : > { %v2787_v49 = vpop.permute.xlu1 %2786 }
 0x477   : > { %2804 = vst.msk [vmem:[#allocation4 + $0x30] sm:$0xff] %vm617_vm3, %v2787_v49  ;;  %3026 = vrot.lane.b32.xlu2 %v8306_v53, %s7052_s18 }
 0x478   : > { %3066 = vrot.lane.b32.xlu0 %v8310_v34, %s7053_s19 }
 0x479   : > { %6864 = vmatmul.msk.f32.gmra.mxu2 %vm991_vm11, %v8497_v17  ;;  %v2833_v37 = vpop.permute.xlu2 %2832 }
 0x47a   : > { %2851 = vst.msk [vmem:[#allocation4 + $0x28] sm:$0xff] %vm666_vm4, %v2833_v37  ;;  %v2823_v43 = vpop.permute.xlu0 %2822 }
 0x47b   : > { %2846 = vst.msk [vmem:[#allocation4] sm:$0xff] %vm666_vm4, %v2823_v43 }
 0x47c   : > { %3068 = vrot.lane.b32.xlu1 %v8331_v7, %s7053_s19 }
 0x47e   : > { %v2825_v33 = vpop.permute.xlu1 %2824 }
 0x47f   : > { %2847 = vst.msk [vmem:[#allocation4 + $0x8] sm:$0xff] %vm666_vm4, %v2825_v33  ;;  %3064 = vrot.lane.b32.xlu2 %v8323_v62, %s7053_s19  ;;  %v8609_v62 = vld [vmem:[#allocation3 + $0x331] sm:$0xff]  ;;  %v8720_v33 = vld [vmem:[#allocation3 + $0x101] sm:$0xff] }
 0x480   : > { %3072 = vrot.lane.b32.xlu0 %v8341_v18, %s7053_s19 }
 0x481   : > { %6865 = vmatmul.msk.f32.gmra.mxu2 %vm991_vm11, %v2651_v0  ;;  %v2871_v53 = vpop.permute.xlu2 %2870  ;;  %v3302_v0 = vld [vmem:[#allocation3 + $0x3d2] sm:$0xff] }
 0x482   : > { %2894 = vst.msk [vmem:[#allocation4] sm:$0xff] %vm715_vm5, %v2871_v53  ;;  %v2829_v34 = vpop.permute.xlu0 %2828  ;;  %v8730_v53 = vld [vmem:[%s10711_s6] ss:$0 sm:$0xff] }
 0x483   : > { %2849 = vst.msk [vmem:[#allocation4 + $0x18] sm:$0xff] %vm666_vm4, %v2829_v34 }
 0x484   : > { %3074 = vrot.lane.b32.xlu1 %v8346_v22, %s7053_s19  ;;  %v8616_v22 = vld [vmem:[#allocation3 + $0x341] sm:$0xff] }
 0x486   : > { %v2831_v60 = vpop.permute.xlu1 %2830 }
 0x487   : > { %2850 = vst.msk [vmem:[#allocation4 + $0x20] sm:$0xff] %vm666_vm4, %v2831_v60  ;;  %3070 = vrot.lane.b32.xlu2 %v8335_v9, %s7053_s19  ;;  %v8623_v9 = vld [vmem:[#allocation3 + $0x361] sm:$0xff] }
 0x488   : > { %3110 = vrot.lane.b32.xlu0 %v8609_v62, %s7054_s20 }
 0x489   : > { %6866 = vmatmul.msk.f32.gmra.mxu2 %vm991_vm11, %v2652_v45  ;;  %v2877_v7 = vpop.permute.xlu2 %2876  ;;  %v3307_v45 = vld [vmem:[#allocation3 + $0x422] sm:$0xff] }
 0x48a   : > { %2897 = vst.msk [vmem:[#allocation4 + $0x18] sm:$0xff] %vm715_vm5, %v2877_v7  ;;  %v2835_v18 = vpop.permute.xlu0 %2834 }
 0x48b   : > { %2852 = vst.msk [vmem:[#allocation4 + $0x30] sm:$0xff] %vm666_vm4, %v2835_v18 }
 0x48c   : > { %3112 = vrot.lane.b32.xlu1 %v8616_v22, %s7054_s20 }
 0x48e   : > { %v2837_v4 = vpop.permute.xlu1 %2836 }
 0x48f   : > { %2853 = vst.msk [vmem:[#allocation4 + $0x38] sm:$0xff] %vm666_vm4, %v2837_v4  ;;  %3076 = vrot.lane.b32.xlu2 %v8350_v23, %s7053_s19 }
 0x490   : > { %3116 = vrot.lane.b32.xlu0 %v8623_v9, %s7054_s20 }
 0x491   : > { %6867 = vmatmul.msk.f32.gmra.mxu2 %vm991_vm11, %v8515_v24  ;;  %v2883_v5 = vpop.permute.xlu2 %2882  ;;  %v8652_v24 = vld [vmem:[#allocation3 + $0x381] sm:$0xff] }
 0x492   : > { %2900 = vst.msk [vmem:[#allocation4 + $0x30] sm:$0xff] %vm715_vm5, %v2883_v5  ;;  %v2873_v11 = vpop.permute.xlu0 %2872 }
 0x493   : > { %2895 = vst.msk [vmem:[#allocation4 + $0x8] sm:$0xff] %vm715_vm5, %v2873_v11 }
 0x494   : > { %3118 = vrot.lane.b32.xlu1 %v8631_v13, %s7054_s20 }
 0x496   : > { %v2875_v23 = vpop.permute.xlu1 %2874 }
 0x497   : > { %2896 = vst.msk [vmem:[#allocation4 + $0x10] sm:$0xff] %vm715_vm5, %v2875_v23  ;;  %3114 = vrot.lane.b32.xlu2 %v8635_v41, %s7054_s20 }
 0x498   : > { %3122 = vrot.lane.b32.xlu0 %v8640_v42, %s7054_s20 }
 0x499   : > { %6868 = vmatmul.msk.f32.gmra.mxu2 %vm991_vm11, %v8568_v36  ;;  %v2921_v47 = vpop.permute.xlu2 %2920 }
 0x49a   : > { %2943 = vst.msk [vmem:[#allocation4 + $0x8] sm:$0xff] %vm764_vm6, %v2921_v47  ;;  %v2879_v17 = vpop.permute.xlu0 %2878 }
 0x49b   : > { %2898 = vst.msk [vmem:[#allocation4 + $0x20] sm:$0xff] %vm715_vm5, %v2879_v17 }
 0x49c   : > { %3124 = vrot.lane.b32.xlu1 %v8648_v16, %s7054_s20 }
 0x49e   : > { %v2881_v21 = vpop.permute.xlu1 %2880 }
 0x49f   : > { %2899 = vst.msk [vmem:[#allocation4 + $0x28] sm:$0xff] %vm715_vm5, %v2881_v21  ;;  %3120 = vrot.lane.b32.xlu2 %v8652_v24, %s7054_s20 }
 0x4a0   : > { %3271 = vrot.lane.b32.xlu0 %v8384_v63, %s7047_s26 }
 0x4a1   : > { %v2927_v2 = vpop.permute.xlu2 %2926 }
 0x4a2   : > { %2946 = vst.msk [vmem:[#allocation4 + $0x20] sm:$0xff] %vm764_vm6, %v2927_v2  ;;  %v2885_v44 = vpop.permute.xlu0 %2884  ;;  %v3448_v2 = vld [vmem:[#allocation3 + $0x42] sm:$0xff] }
 0x4a3   : > { %2901 = vst.msk [vmem:[#allocation4 + $0x38] sm:$0xff] %vm715_vm5, %v2885_v44  ;;  %v8777_v44 = vld [vmem:[#allocation3 + $0x481] sm:$0xff] }
 0x4a4   : > { %3273 = vrot.lane.b32.xlu1 %v8402_v61, %s7047_s26 }
 0x4a6   : > { %v2919_v27 = vpop.permute.xlu1 %2918 }
 0x4a7   : > { %2942 = vst.msk [vmem:[#allocation4] sm:$0xff] %vm764_vm6, %v2919_v27  ;;  %3269 = vrot.lane.b32.xlu2 %v8376_v59, %s7047_s26 }
 0x4a8   : > { %3277 = vrot.lane.b32.xlu0 %v8397_v6, %s7047_s26  ;;  %v3301_v6 = vld [vmem:[#allocation3 + $0x3c2] sm:$0xff] }
 0x4a9   : > { %v2933_v19 = vpop.permute.xlu2 %2932 }
 0x4aa   : > { %2949 = vst.msk [vmem:[#allocation4 + $0x38] sm:$0xff] %vm764_vm6, %v2933_v19  ;;  %v2923_v63 = vpop.permute.xlu0 %2922 }
 0x4ab   : > { %2944 = vst.msk [vmem:[#allocation4 + $0x10] sm:$0xff] %vm764_vm6, %v2923_v63  ;;  %v3446_v63 = vld [vmem:[#allocation3 + $0x22] sm:$0xff] }
 0x4ac   : > { %3279 = vrot.lane.b32.xlu1 %v8417_v32, %s7047_s26  ;;  %v3303_v32 = vld [vmem:[#allocation3 + $0x3e2] sm:$0xff] }
 0x4ae   : > { %v2925_v55 = vpop.permute.xlu1 %2924 }
 0x4af   : > { %2945 = vst.msk [vmem:[#allocation4 + $0x18] sm:$0xff] %vm764_vm6, %v2925_v55  ;;  %3275 = vrot.lane.b32.xlu2 %v8391_v28, %s7047_s26  ;;  %v3450_v55 = vld [vmem:[#allocation3 + $0x62] sm:$0xff] }
 0x4b0   : > { %3283 = vrot.lane.b32.xlu0 %v8411_v30, %s7047_s26 }
 0x4b1   : > { %v2971_v59 = vpop.permute.xlu2 %2970 }
 0x4b2   : > { %2992 = vst.msk [vmem:[#allocation4 + $0x10] sm:$0xff] %vm813_vm7, %v2971_v59  ;;  %v2929_v61 = vpop.permute.xlu0 %2928  ;;  %v3237_v59 = vld [vmem:[#allocation3 + $0x461] sm:$0xff] }
 0x4b3   : > { %2947 = vst.msk [vmem:[#allocation4 + $0x28] sm:$0xff] %vm764_vm6, %v2929_v61 }
 0x4b4   : > { %3317 = vrot.lane.b32.xlu1 %v3301_v6, %s7048_s14 }
 0x4b6   : > { %v2931_v54 = vpop.permute.xlu1 %2930 }
 0x4b7   : > { %2948 = vst.msk [vmem:[#allocation4 + $0x30] sm:$0xff] %vm764_vm6, %v2931_v54  ;;  %3281 = vrot.lane.b32.xlu2 %v8406_v10, %s7047_s26  ;;  %v8790_v54 = vld [vmem:[#allocation3 + $0x4b1] sm:$0xff] }
 0x4b8   : > { %3321 = vrot.lane.b32.xlu0 %v3303_v32, %s7048_s14 }
 0x4b9   : > { %v2977_v28 = vpop.permute.xlu2 %2976 }
 0x4ba   : > { %2995 = vst.msk [vmem:[#allocation4 + $0x28] sm:$0xff] %vm813_vm7, %v2977_v28  ;;  %v2967_v30 = vpop.permute.xlu0 %2966 }
 0x4bb   : > { %2990 = vst.msk [vmem:[#allocation4] sm:$0xff] %vm813_vm7, %v2967_v30  ;;  %v3451_v30 = vld [vmem:[#allocation3 + $0x72] sm:$0xff] }
 0x4bc   : > { %3323 = vrot.lane.b32.xlu1 %v3304_v8, %s7048_s14 }
 0x4be   : > { %v2969_v40 = vpop.permute.xlu1 %2968 }
 0x4bf   : > { %2991 = vst.msk [vmem:[#allocation4 + $0x8] sm:$0xff] %vm813_vm7, %v2969_v40  ;;  %3319 = vrot.lane.b32.xlu2 %v3302_v0, %s7048_s14 }
 0x4c0   : > { %3327 = vrot.lane.b32.xlu0 %v3306_v31, %s7048_s14  ;;  %v3449_v31 = vld [vmem:[#allocation3 + $0x52] sm:$0xff] }
 0x4c1   : > { %v3015_v10 = vpop.permute.xlu2 %3014 }
 0x4c2   : > { %3038 = vst.msk [vmem:[#allocation4] sm:$0xff] %vm863_vm8, %v3015_v10  ;;  %v2973_v12 = vpop.permute.xlu0 %2972  ;;  %v8803_v10 = vld [vmem:[#allocation3 + $0x291] sm:$0xff] }
 0x4c3   : > { %2993 = vst.msk [vmem:[#allocation4 + $0x18] sm:$0xff] %vm813_vm7, %v2973_v12 }
 0x4c4   : > { %3329 = vrot.lane.b32.xlu1 %v3307_v45, %s7048_s14  ;;  %v8808_v45 = vld [vmem:[#allocation3 + $0x471] sm:$0xff] }
 0x4c6   : > { %v2975_v48 = vpop.permute.xlu1 %2974 }
 0x4c7   : > { %2994 = vst.msk [vmem:[#allocation4 + $0x20] sm:$0xff] %vm813_vm7, %v2975_v48  ;;  %3325 = vrot.lane.b32.xlu2 %v3305_v38, %s7048_s14 }
 0x4c8   : > { %3365 = vrot.lane.b32.xlu0 %v8231_v50, %s7049_s15 }
 0x4c9   : > { %v3021_v36 = vpop.permute.xlu2 %3020 }
 0x4ca   : > { %3041 = vst.msk [vmem:[#allocation4 + $0x18] sm:$0xff] %vm863_vm8, %v3021_v36  ;;  %v2979_v25 = vpop.permute.xlu0 %2978  ;;  %v8813_v36 = vld [vmem:[#allocation3 + $0x2a1] sm:$0xff] }
 0x4cb   : > { %2996 = vst.msk [vmem:[#allocation4 + $0x30] sm:$0xff] %vm813_vm7, %v2979_v25  ;;  %v8816_v25 = vld [vmem:[#allocation3 + $0x491] sm:$0xff] }
 0x4cc   : > { %3367 = vrot.lane.b32.xlu1 %v8220_v20, %s7049_s15  ;;  %v8709_v20 = vld [vmem:[#allocation3 + $0xd1] sm:$0xff] }
 0x4ce   : > { %v2981_v52 = vpop.permute.xlu1 %2980 }
 0x4cf   : > { %2997 = vst.msk [vmem:[#allocation4 + $0x38] sm:$0xff] %vm813_vm7, %v2981_v52  ;;  %3331 = vrot.lane.b32.xlu2 %v3308_v26, %s7048_s14 }
 0x4d0   : > { %3371 = vrot.lane.b32.xlu0 %v8247_v46, %s7049_s15 }
 0x4d1   : > { %v3027_v49 = vpop.permute.xlu2 %3026 }
 0x4d2   : > { %3044 = vst.msk [vmem:[#allocation4 + $0x30] sm:$0xff] %vm863_vm8, %v3027_v49  ;;  %v3017_v50 = vpop.permute.xlu0 %3016 }
 0x4d3   : > { %3039 = vst.msk [vmem:[#allocation4 + $0x8] sm:$0xff] %vm863_vm8, %v3017_v50 }
 0x4d4   : > { %3373 = vrot.lane.b32.xlu1 %v8235_v51, %s7049_s15 }
 0x4d6   : > { %v3019_v37 = vpop.permute.xlu1 %3018 }
 0x4d7   : > { %3040 = vst.msk [vmem:[#allocation4 + $0x10] sm:$0xff] %vm863_vm8, %v3019_v37  ;;  %3369 = vrot.lane.b32.xlu2 %v8709_v20, %s7049_s15  ;;  %v3452_v37 = vld [vmem:[#allocation3 + $0x82] sm:$0xff] }
 0x4d8   : > { %3377 = vrot.lane.b32.xlu0 %v8259_v1, %s7049_s15 }
 0x4d9   : > { %v3065_v46 = vpop.permute.xlu2 %3064 }
 0x4da   : > { %3087 = vst.msk [vmem:[#allocation4 + $0x8] sm:$0xff] %vm912_vm9, %v3065_v46  ;;  %v3023_v43 = vpop.permute.xlu0 %3022  ;;  %v8827_v46 = vld [vmem:[#allocation3 + $0x2c1] sm:$0xff] }
 0x4db   : > { %3042 = vst.msk [vmem:[#allocation4 + $0x20] sm:$0xff] %vm863_vm8, %v3023_v43 }
 0x4dc   : > { %3379 = vrot.lane.b32.xlu1 %v8251_v58, %s7049_s15 }
 0x4de   : > { %v3025_v51 = vpop.permute.xlu1 %3024 }
 0x4df   : > { %3043 = vst.msk [vmem:[#allocation4 + $0x28] sm:$0xff] %vm863_vm8, %v3025_v51  ;;  %3375 = vrot.lane.b32.xlu2 %v8720_v33, %s7049_s15  ;;  %v8832_v51 = vld [vmem:[#allocation3 + $0x4a1] sm:$0xff] }
 0x4e0   : > { %3415 = vrot.lane.b32.xlu0 %v8495_v35, %s7050_s16 }
 0x4e1   : > { %v3071_v1 = vpop.permute.xlu2 %3070 }
 0x4e2   : > { %3090 = vst.msk [vmem:[#allocation4 + $0x20] sm:$0xff] %vm912_vm9, %v3071_v1  ;;  %v3029_v58 = vpop.permute.xlu0 %3028 }
 0x4e3   : > { %3045 = vst.msk [vmem:[#allocation4 + $0x38] sm:$0xff] %vm863_vm8, %v3029_v58  ;;  %v8836_v58 = vld [vmem:[#allocation3 + $0x4c1] sm:$0xff] }
 0x4e4   : > { %3417 = vrot.lane.b32.xlu1 %v8522_v3, %s7050_s16  ;;  %v2709_v35 = vpop.f32.mrf.mxu2 }
 0x4e5   : > { %v2710_v34 = vadd.f32 %v8730_v53, %v2709_v35 }
 0x4e6   : > { %v3063_v60 = vpop.permute.xlu1 %3062 }
 0x4e7   : > { %2734 = vst.msk [vmem:[%s8739_s23] sm:$0xff] %vm2733_vm12, %v2710_v34  ;;  %3413 = vrot.lane.b32.xlu2 %v8490_v29, %s7050_s16 }
 0x4e8   : > { %3086 = vst.msk [vmem:[#allocation4] sm:$0xff] %vm912_vm9, %v3063_v60  ;;  %3421 = vrot.lane.b32.xlu0 %v8513_v15, %s7050_s16  ;;  %v8840_v60 = vld [vmem:[#allocation3 + $0x2d1] sm:$0xff] }
 0x4e9   : > { %v3077_v7 = vpop.permute.xlu2 %3076 }
 0x4ea   : > { %3093 = vst.msk [vmem:[#allocation4 + $0x38] sm:$0xff] %vm912_vm9, %v3077_v7  ;;  %v3067_v3 = vpop.permute.xlu0 %3066 }
 0x4eb   : > { %3088 = vst.msk [vmem:[#allocation4 + $0x10] sm:$0xff] %vm912_vm9, %v3067_v3 }
 0x4ec   : > { %3423 = vrot.lane.b32.xlu1 %v8543_v57, %s7050_s16  ;;  %v2712_v18 = vpop.f32.mrf.mxu2  ;;  %v3445_v57 = vld [vmem:[#allocation3 + $0x12] sm:$0xff] }
 0x4ed   : > { %v2713_v4 = vadd.f32 %v8730_v53, %v2712_v18 }
 0x4ee   : > { %v3069_v5 = vpop.permute.xlu1 %3068 }
 0x4ef   : > { %2735 = vst.msk [vmem:[%s8739_s23 + $0x8] sm:$0xff] %vm2733_vm12, %v2713_v4  ;;  %3419 = vrot.lane.b32.xlu2 %v8507_v14, %s7050_s16  ;;  %v3447_v14 = vld [vmem:[#allocation3 + $0x32] sm:$0xff] }
 0x4f0   : > { %3089 = vst.msk [vmem:[#allocation4 + $0x18] sm:$0xff] %vm912_vm9, %v3069_v5  ;;  %3427 = vrot.lane.b32.xlu0 %v8536_v56, %s7050_s16  ;;  %v8849_v4 = vld [vmem:[#allocation3 + $0x2b1] sm:$0xff] }
 0x4f1   : > { %v3115_v29 = vpop.permute.xlu2 %3114  ;;  %v8855_v5 = vld [vmem:[#allocation3 + $0x2f1] sm:$0xff] }
 0x4f2   : > { %3136 = vst.msk [vmem:[#allocation4 + $0x10] sm:$0xff] %vm961_vm10, %v3115_v29  ;;  %v3073_v15 = vpop.permute.xlu0 %3072 }
 0x4f3   : > { %3091 = vst.msk [vmem:[#allocation4 + $0x28] sm:$0xff] %vm912_vm9, %v3073_v15  ;;  %v8860_v15 = vld [vmem:[#allocation3 + $0x4d1] sm:$0xff] }
 0x4f4   : > { %3461 = vrot.lane.b32.xlu1 %v3445_v57, %s7051_s17  ;;  %v2715_v11 = vpop.f32.mrf.mxu2 }
 0x4f5   : > { %v2716_v23 = vadd.f32 %v8730_v53, %v2715_v11 }
 0x4f6   : > { %v3075_v47 = vpop.permute.xlu1 %3074 }
 0x4f7   : > { %2736 = vst.msk [vmem:[%s8739_s23 + $0x10] sm:$0xff] %vm2733_vm12, %v2716_v23  ;;  %3425 = vrot.lane.b32.xlu2 %v8529_v39, %s7050_s16  ;;  %v8866_v23 = vld [vmem:[#allocation3 + $0x301] sm:$0xff] }
 0x4f8   : > { %3092 = vst.msk [vmem:[#allocation4 + $0x30] sm:$0xff] %vm912_vm9, %v3075_v47  ;;  %3465 = vrot.lane.b32.xlu0 %v3447_v14, %s7051_s17 }
 0x4f9   : > { %v3121_v56 = vpop.permute.xlu2 %3120  ;;  %v8773_v17 = vld [vmem:[#allocation4 + $0x10] sm:$0xff] }
 0x4fa   : > { %3139 = vst.msk [vmem:[#allocation4 + $0x28] sm:$0xff] %vm961_vm10, %v3121_v56  ;;  %v3111_v21 = vpop.permute.xlu0 %3110 }
 0x4fb   : > { %3134 = vst.msk [vmem:[#allocation4] sm:$0xff] %vm961_vm10, %v3111_v21 }
 0x4fc   : > { %3467 = vrot.lane.b32.xlu1 %v3448_v2, %s7051_s17  ;;  %v2718_v39 = vpop.f32.mrf.mxu2  ;;  %3247 = vst.msk [vmem:[#allocation4 + $0x10] sm:$0xff] %vm299_vm0, %v8777_v44 }
 0x4fd   : > { %v2719_v27 = vadd.f32 %v8730_v53, %v2718_v39 }
 0x4fe   : > { %v3113_v19 = vpop.permute.xlu1 %3112 }
 0x4ff   : > { %2737 = vst.msk [vmem:[%s8739_s23 + $0x18] sm:$0xff] %vm2733_vm12, %v2719_v27  ;;  %3463 = vrot.lane.b32.xlu2 %v3446_v63, %s7051_s17  ;;  %v3589_v27 = vld [vmem:[#allocation3 + $0x1f2] sm:$0xff]  ;;  %v3592_v63 = vld [vmem:[#allocation3 + $0x222] sm:$0xff] }
 0x500   : > { %3135 = vst.msk [vmem:[#allocation4 + $0x8] sm:$0xff] %vm961_vm10, %v3113_v19  ;;  %3471 = vrot.lane.b32.xlu0 %v3450_v55, %s7051_s17 }
 0x501   : > { %v3270_v6 = vpop.permute.xlu2 %3269  ;;  %v8788_v61 = vld [vmem:[#allocation4 + $0x28] sm:$0xff] }
 0x502   : > { %v3142_v32 = vld [vmem:[#allocation4] sm:$0xff]  ;;  %v3117_v28 = vpop.permute.xlu0 %3116  ;;  %3250 = vst.msk [vmem:[#allocation4 + $0x28] sm:$0xff] %vm299_vm0, %v8790_v54 }
 0x503   : > { %3245 = vst.msk [vmem:[#allocation4] sm:$0xff] %vm299_vm0, %v3237_v59  ;;  %6869 = vmatmul.msk.f32.vlgmr.msrb.gmra.mxu3 %vm991_vm11, %v3142_v32  ;;  %v3590_v59 = vld [vmem:[#allocation3 + $0x202] sm:$0xff]  ;;  %v3595_v32 = vld [vmem:[#allocation3 + $0x252] sm:$0xff] }
 0x504   : > { %3293 = vst.msk [vmem:[#allocation4] sm:$0xff] %vm617_vm3, %v3270_v6  ;;  %3473 = vrot.lane.b32.xlu1 %v3451_v30, %s7051_s17  ;;  %v2721_v8 = vpop.f32.mrf.mxu2  ;;  %v3593_v30 = vld [vmem:[#allocation3 + $0x232] sm:$0xff] }
 0x505   : > { %3137 = vst.msk [vmem:[#allocation4 + $0x18] sm:$0xff] %vm961_vm10, %v3117_v28  ;;  %v2722_v40 = vadd.f32 %v8730_v53, %v2721_v8  ;;  %v3748_v8 = vld [vmem:[#allocation3 + $0x11] sm:$0xff] }
 0x506   : > { %v3119_v0 = vpop.permute.xlu1 %3118 }
 0x507   : > { %2738 = vst.msk [vmem:[%s8739_s23 + $0x20] sm:$0xff] %vm2733_vm12, %v2722_v40  ;;  %3469 = vrot.lane.b32.xlu2 %v3449_v31, %s7051_s17  ;;  %v3143_v12 = vld [vmem:[#allocation4 + $0x8] sm:$0xff] }
 0x508   : > { %3138 = vst.msk [vmem:[#allocation4 + $0x20] sm:$0xff] %vm961_vm10, %v3119_v0  ;;  %3509 = vrot.lane.b32.xlu0 %v8803_v10, %s7052_s18  ;;  %v3749_v31 = vld [vmem:[#allocation3 + $0x21] sm:$0xff] }
 0x509   : > { %v3276_v48 = vpop.permute.xlu2 %3275  ;;  %3246 = vst.msk [vmem:[#allocation4 + $0x8] sm:$0xff] %vm299_vm0, %v8808_v45 }
 0x50a   : > { %v3123_v38 = vpop.permute.xlu0 %3122 }
 0x50b   : > { %3140 = vst.msk [vmem:[#allocation4 + $0x30] sm:$0xff] %vm961_vm10, %v3123_v38  ;;  %6870 = vmatmul.msk.f32.gmra.mxu3 %vm991_vm11, %v3143_v12  ;;  %v3751_v38 = vld [vmem:[#allocation3 + $0x41] sm:$0xff] }
 0x50c   : > { %v3145_v52 = vld [vmem:[#allocation4 + $0x18] sm:$0xff]  ;;  %3511 = vrot.lane.b32.xlu1 %v8813_v36, %s7052_s18  ;;  %v2724_v26 = vpop.f32.mrf.mxu2 }
 0x50d   : > { %3248 = vst.msk [vmem:[#allocation4 + $0x18] sm:$0xff] %vm299_vm0, %v8816_v25  ;;  %v2725_v49 = vadd.f32 %v8730_v53, %v2724_v26 }
 0x50e   : > { %3296 = vst.msk [vmem:[#allocation4 + $0x18] sm:$0xff] %vm617_vm3, %v3276_v48  ;;  %v3125_v50 = vpop.permute.xlu1 %3124  ;;  %v3596_v48 = vld [vmem:[#allocation3 + $0x262] sm:$0xff] }
 0x50f   : > { %2739 = vst.msk [vmem:[%s8739_s23 + $0x28] sm:$0xff] %vm2733_vm12, %v2725_v49  ;;  %3475 = vrot.lane.b32.xlu2 %v3452_v37, %s7051_s17  ;;  %v3146_v43 = vld [vmem:[#allocation4 + $0x20] sm:$0xff]  ;;  %v3752_v49 = vld [vmem:[#allocation3 + $0x51] sm:$0xff] }
 0x510   : > { %3141 = vst.msk [vmem:[#allocation4 + $0x38] sm:$0xff] %vm961_vm10, %v3125_v50  ;;  %3515 = vrot.lane.b32.xlu0 %v8827_v46, %s7052_s18  ;;  %v3750_v37 = vld [vmem:[#allocation3 + $0x31] sm:$0xff] }
 0x511   : > { %v3282_v1 = vpop.permute.xlu2 %3281  ;;  %3249 = vst.msk [vmem:[#allocation4 + $0x20] sm:$0xff] %vm299_vm0, %v8832_v51 }
 0x512   : > { %v3148_v35 = vld [vmem:[#allocation4 + $0x30] sm:$0xff]  ;;  %v3272_v34 = vpop.permute.xlu0 %3271 }
 0x513   : > { %3251 = vst.msk [vmem:[#allocation4 + $0x30] sm:$0xff] %vm299_vm0, %v8836_v58  ;;  %6871 = vmatmul.msk.f32.gmra.mxu3 %vm991_vm11, %v8773_v17  ;;  %v8872_v17 = vld [vmem:[#allocation3 + $0x2e1] sm:$0xff] }
 0x514   : > { %3299 = vst.msk [vmem:[#allocation4 + $0x30] sm:$0xff] %vm617_vm3, %v3282_v1  ;;  %3517 = vrot.lane.b32.xlu1 %v8840_v60, %s7052_s18  ;;  %v2727_v7 = vpop.f32.mrf.mxu2 }
 0x515   : > { %3294 = vst.msk [vmem:[#allocation4 + $0x8] sm:$0xff] %vm617_vm3, %v3272_v34  ;;  %v2728_v3 = vadd.f32 %v8730_v53, %v2727_v7  ;;  %v3755_v34 = vld [vmem:[#allocation3 + $0x81] sm:$0xff] }
 0x516   : > { %v3274_v18 = vpop.permute.xlu1 %3273 }
 0x517   : > { %2740 = vst.msk [vmem:[%s8739_s23 + $0x30] sm:$0xff] %vm2733_vm12, %v2728_v3  ;;  %3513 = vrot.lane.b32.xlu2 %v8849_v4, %s7052_s18  ;;  %v3149_v29 = vld [vmem:[#allocation4 + $0x38] sm:$0xff]  ;;  %v3753_v3 = vld [vmem:[#allocation3 + $0x61] sm:$0xff] }
 0x518   : > { %3295 = vst.msk [vmem:[#allocation4 + $0x10] sm:$0xff] %vm617_vm3, %v3274_v18  ;;  %3521 = vrot.lane.b32.xlu0 %v8855_v5, %s7052_s18  ;;  %v8940_v18 = vld [vmem:[#allocation3 + $0xc1] sm:$0xff] }
 0x519   : > { %v3320_v57 = vpop.permute.xlu2 %3319  ;;  %3252 = vst.msk [vmem:[#allocation4 + $0x38] sm:$0xff] %vm299_vm0, %v8860_v15 }
 0x51a   : > { %3342 = vst.msk [vmem:[#allocation4 + $0x8] sm:$0xff] %vm666_vm4, %v3320_v57  ;;  %v3278_v11 = vpop.permute.xlu0 %3277 }
 0x51b   : > { %3297 = vst.msk [vmem:[#allocation4 + $0x20] sm:$0xff] %vm617_vm3, %v3278_v11  ;;  %6872 = vmatmul.msk.f32.gmra.mxu3 %vm991_vm11, %v3145_v52 }
 0x51c   : > { %3523 = vrot.lane.b32.xlu1 %v8866_v23, %s7052_s18  ;;  %v2730_v47 = vpop.f32.mrf.mxu2 }
 0x51d   : > { %v2731_v14 = vadd.f32 %v8730_v53, %v2730_v47  ;;  %v8948_v47 = vld [vmem:[#allocation3 + $0xb1] sm:$0xff] }
 0x51e   : > { %v3280_v56 = vpop.permute.xlu1 %3279 }
 0x51f   : > { %2741 = vst.msk [vmem:[%s8739_s23 + $0x38] sm:$0xff] %vm2733_vm12, %v2731_v14  ;;  %3519 = vrot.lane.b32.xlu2 %v8872_v17, %s7052_s18  ;;  %v8953_v14 = vld [vmem:[#allocation3 + $0xf1] sm:$0xff] }
 0x520   : > { %3298 = vst.msk [vmem:[#allocation4 + $0x28] sm:$0xff] %vm617_vm3, %v3280_v56  ;;  %3559 = vrot.lane.b32.xlu0 %v8616_v22, %s7053_s19 }
 0x521   : > { %v3326_v21 = vpop.permute.xlu2 %3325 }
 0x522   : > { %3345 = vst.msk [vmem:[#allocation4 + $0x20] sm:$0xff] %vm666_vm4, %v3326_v21  ;;  %v3284_v2 = vpop.permute.xlu0 %3283 }
 0x523   : > { %3300 = vst.msk [vmem:[#allocation4 + $0x38] sm:$0xff] %vm617_vm3, %v3284_v2  ;;  %6873 = vmatmul.msk.f32.gmra.mxu3 %vm991_vm11, %v3146_v43  ;;  %v3754_v43 = vld [vmem:[#allocation3 + $0x71] sm:$0xff]  ;;  %v8961_v2 = vld [vmem:[#allocation3 + $0xe1] sm:$0xff] }
 0x524   : > { %3561 = vrot.lane.b32.xlu1 %v8635_v41, %s7053_s19 }
 0x526   : > { %v3318_v53 = vpop.permute.xlu1 %3317 }
 0x527   : > { %3341 = vst.msk [vmem:[#allocation4] sm:$0xff] %vm666_vm4, %v3318_v53  ;;  %3557 = vrot.lane.b32.xlu2 %v8609_v62, %s7053_s19  ;;  %v8966_v53 = vld [vmem:[#allocation3 + $0x121] sm:$0xff] }
 0x528   : > { %3565 = vrot.lane.b32.xlu0 %v8631_v13, %s7053_s19 }
 0x529   : > { %v3332_v22 = vpop.permute.xlu2 %3331 }
 0x52a   : > { %3348 = vst.msk [vmem:[#allocation4 + $0x38] sm:$0xff] %vm666_vm4, %v3332_v22  ;;  %v3322_v39 = vpop.permute.xlu0 %3321 }
 0x52b   : > { %3343 = vst.msk [vmem:[#allocation4 + $0x10] sm:$0xff] %vm666_vm4, %v3322_v39  ;;  %6874 = vmatmul.msk.f32.gmra.mxu3 %vm991_vm11, %v8788_v61 }
 0x52c   : > { %3567 = vrot.lane.b32.xlu1 %v8652_v24, %s7053_s19 }
 0x52e   : > { %v3324_v41 = vpop.permute.xlu1 %3323 }
 0x52f   : > { %3344 = vst.msk [vmem:[#allocation4 + $0x18] sm:$0xff] %vm666_vm4, %v3324_v41  ;;  %3563 = vrot.lane.b32.xlu2 %v8623_v9, %s7053_s19  ;;  %v3591_v9 = vld [vmem:[#allocation3 + $0x212] sm:$0xff] }
 0x530   : > { %3571 = vrot.lane.b32.xlu0 %v8648_v16, %s7053_s19 }
 0x531   : > { %v3370_v62 = vpop.permute.xlu2 %3369 }
 0x532   : > { %3391 = vst.msk [vmem:[#allocation4 + $0x10] sm:$0xff] %vm715_vm5, %v3370_v62  ;;  %v3328_v13 = vpop.permute.xlu0 %3327  ;;  %v8973_v62 = vld [vmem:[#allocation3 + $0x111] sm:$0xff] }
 0x533   : > { %3346 = vst.msk [vmem:[#allocation4 + $0x28] sm:$0xff] %vm666_vm4, %v3328_v13  ;;  %6875 = vmatmul.msk.f32.gmra.mxu3 %vm991_vm11, %v3148_v35  ;;  %v3846_v13 = vld [vmem:[#allocation3 + $0x350] sm:$0xff] }
 0x534   : > { %3605 = vrot.lane.b32.xlu1 %v3589_v27, %s7054_s20 }
 0x536   : > { %v3330_v24 = vpop.permute.xlu1 %3329 }
 0x537   : > { %3347 = vst.msk [vmem:[#allocation4 + $0x30] sm:$0xff] %vm666_vm4, %v3330_v24  ;;  %3569 = vrot.lane.b32.xlu2 %v8640_v42, %s7053_s19  ;;  %v3594_v42 = vld [vmem:[#allocation3 + $0x242] sm:$0xff] }
 0x538   : > { %3609 = vrot.lane.b32.xlu0 %v3591_v9, %s7054_s20  ;;  %v3847_v9 = vld [vmem:[#allocation3 + $0x360] sm:$0xff] }
 0x539   : > { %v3376_v16 = vpop.permute.xlu2 %3375 }
 0x53a   : > { %3394 = vst.msk [vmem:[#allocation4 + $0x28] sm:$0xff] %vm715_vm5, %v3376_v16  ;;  %v3366_v19 = vpop.permute.xlu0 %3365  ;;  %v3653_v16 = vld [vmem:[%s10710_s5 + $0x40] sm:$0xff] }
 0x53b   : > { %3389 = vst.msk [vmem:[#allocation4] sm:$0xff] %vm715_vm5, %v3366_v19  ;;  %6876 = vmatmul.msk.f32.gmra.mxu3 %vm991_vm11, %v3149_v29  ;;  %3689 = vmatpush.msra.mxu0 %v3653_v16 }
 0x53c   : > { %3611 = vrot.lane.b32.xlu1 %v3592_v63, %s7054_s20  ;;  %4184 = vmatpush.msra.mxu2 %v3653_v16  ;;  %v3845_v63 = vld [vmem:[#allocation3 + $0x340] sm:$0xff] }
 0x53e   : > { %v3368_v55 = vpop.permute.xlu1 %3367 }
 0x53f   : > { %3390 = vst.msk [vmem:[#allocation4 + $0x8] sm:$0xff] %vm715_vm5, %v3368_v55  ;;  %3607 = vrot.lane.b32.xlu2 %v3590_v59, %s7054_s20  ;;  %v3849_v55 = vld [vmem:[#allocation3 + $0x380] sm:$0xff] }
 0x540   : > { %3615 = vrot.lane.b32.xlu0 %v3594_v42, %s7054_s20  ;;  %v3652_v42 = vld [vmem:[%s10710_s5 + $0x38] sm:$0xff] }
 0x541   : > { %v3414_v6 = vpop.permute.xlu2 %3413  ;;  %3690 = vmatpush.msra.mxu0 %v3652_v42  ;;  %4185 = vmatpush.msra.mxu2 %v3652_v42 }
 0x542   : > { %3437 = vst.msk [vmem:[#allocation4] sm:$0xff] %vm764_vm6, %v3414_v6  ;;  %v3372_v61 = vpop.permute.xlu0 %3371  ;;  %v3651_v6 = vld [vmem:[%s10710_s5 + $0x30] sm:$0xff] }
 0x543   : > { %3392 = vst.msk [vmem:[#allocation4 + $0x18] sm:$0xff] %vm715_vm5, %v3372_v61  ;;  %3691 = vmatpush.msra.mxu0 %v3651_v6  ;;  %4186 = vmatpush.msra.mxu2 %v3651_v6 }
 0x544   : > { %3617 = vrot.lane.b32.xlu1 %v3595_v32, %s7054_s20  ;;  %v3850_v32 = vld [vmem:[#allocation3 + $0x390] sm:$0xff] }
 0x546   : > { %v3374_v28 = vpop.permute.xlu1 %3373 }
 0x547   : > { %3393 = vst.msk [vmem:[#allocation4 + $0x20] sm:$0xff] %vm715_vm5, %v3374_v28  ;;  %3613 = vrot.lane.b32.xlu2 %v3593_v30, %s7054_s20  ;;  %v8999_v28 = vld [vmem:[%s10711_s6] ss:$0 sm:$0xff]  ;;  %v3650_v30 = vld [vmem:[%s10710_s5 + $0x28] sm:$0xff] }
 0x548   : > { %3764 = vrot.lane.b32.xlu0 %v3748_v8, %s7047_s26  ;;  %v3649_v8 = vld [vmem:[%s10710_s5 + $0x20] sm:$0xff]  ;;  %3692 = vmatpush.msra.mxu0 %v3650_v30 }
 0x549   : > { %v3420_v40 = vpop.permute.xlu2 %3419  ;;  %4187 = vmatpush.msra.mxu2 %v3650_v30  ;;  %v3736_v30 = vld [vmem:[#allocation3 + $0x190] sm:$0xff] }
 0x54a   : > { %3440 = vst.msk [vmem:[#allocation4 + $0x18] sm:$0xff] %vm764_vm6, %v3420_v40  ;;  %v3378_v0 = vpop.permute.xlu0 %3377  ;;  %3693 = vmatpush.msra.mxu0 %v3649_v8 }
 0x54b   : > { %3395 = vst.msk [vmem:[#allocation4 + $0x30] sm:$0xff] %vm715_vm5, %v3378_v0  ;;  %4188 = vmatpush.msra.mxu2 %v3649_v8 }
 0x54c   : > { %3766 = vrot.lane.b32.xlu1 %v3749_v31, %s7047_s26  ;;  %v3848_v31 = vld [vmem:[#allocation3 + $0x370] sm:$0xff] }
 0x54e   : > { %v3380_v12 = vpop.permute.xlu1 %3379 }
 0x54f   : > { %3396 = vst.msk [vmem:[#allocation4 + $0x38] sm:$0xff] %vm715_vm5, %v3380_v12  ;;  %3619 = vrot.lane.b32.xlu2 %v3596_v48, %s7054_s20  ;;  %v9011_v48 = vld [vmem:[#allocation3 + $0x1f1] sm:$0xff] }
 0x550   : > { %3770 = vrot.lane.b32.xlu0 %v3751_v38, %s7047_s26 }
 0x551   : > { %v3426_v52 = vpop.permute.xlu2 %3425 }
 0x552   : > { %3443 = vst.msk [vmem:[#allocation4 + $0x30] sm:$0xff] %vm764_vm6, %v3426_v52  ;;  %v3416_v26 = vpop.permute.xlu0 %3415  ;;  %v3648_v52 = vld [vmem:[%s10710_s5 + $0x18] sm:$0xff] }
 0x553   : > { %3438 = vst.msk [vmem:[#allocation4 + $0x8] sm:$0xff] %vm764_vm6, %v3416_v26  ;;  %v3647_v26 = vld [vmem:[%s10710_s5 + $0x10] sm:$0xff]  ;;  %3694 = vmatpush.msra.mxu0 %v3648_v52  ;;  %4189 = vmatpush.msra.mxu2 %v3648_v52 }
 0x554   : > { %3772 = vrot.lane.b32.xlu1 %v3752_v49, %s7047_s26 }
 0x555   : > { %3695 = vmatpush.msra.mxu0 %v3647_v26  ;;  %4190 = vmatpush.msra.mxu2 %v3647_v26 }
 0x556   : > { %v3418_v50 = vpop.permute.xlu1 %3417 }
 0x557   : > { %3439 = vst.msk [vmem:[#allocation4 + $0x10] sm:$0xff] %vm764_vm6, %v3418_v50  ;;  %3768 = vrot.lane.b32.xlu2 %v3750_v37, %s7047_s26  ;;  %v9025_v50 = vld [vmem:[#allocation3 + $0x201] sm:$0xff] }
 0x558   : > { %3776 = vrot.lane.b32.xlu0 %v3754_v43, %s7047_s26  ;;  %v3646_v37 = vld [vmem:[%s10710_s5 + $0x8] sm:$0xff]  ;;  %v3645_v43 = vld [vmem:[%s10710_s5] sm:$0xff] }
 0x559   : > { %v3464_v1 = vpop.permute.xlu2 %3463  ;;  %3696 = vmatpush.msra.mxu0 %v3646_v37  ;;  %4191 = vmatpush.msra.mxu2 %v3646_v37 }
 0x55a   : > { %3486 = vst.msk [vmem:[#allocation4 + $0x8] sm:$0xff] %vm813_vm7, %v3464_v1  ;;  %v3422_v35 = vpop.permute.xlu0 %3421 }
 0x55b   : > { %3441 = vst.msk [vmem:[#allocation4 + $0x20] sm:$0xff] %vm764_vm6, %v3422_v35  ;;  %3697 = vmatpush.msra.mxu0 %v3645_v43  ;;  %4192 = vmatpush.msra.mxu2 %v3645_v43 }
 0x55c   : > { %3778 = vrot.lane.b32.xlu1 %v3755_v34, %s7047_s26  ;;  %v3851_v34 = vld [vmem:[#allocation3 + $0x3a0] sm:$0xff] }
 0x55e   : > { %v3424_v7 = vpop.permute.xlu1 %3423 }
 0x55f   : > { %3442 = vst.msk [vmem:[#allocation4 + $0x28] sm:$0xff] %vm764_vm6, %v3424_v7  ;;  %3774 = vrot.lane.b32.xlu2 %v3753_v3, %s7047_s26  ;;  %v9038_v3 = vld [vmem:[#allocation3 + $0x221] sm:$0xff] }
 0x560   : > { %3814 = vrot.lane.b32.xlu0 %v8940_v18, %s7048_s14 }
 0x561   : > { %v3470_v29 = vpop.permute.xlu2 %3469 }
 0x562   : > { %3489 = vst.msk [vmem:[#allocation4 + $0x20] sm:$0xff] %vm813_vm7, %v3470_v29  ;;  %v3428_v57 = vpop.permute.xlu0 %3427 }
 0x563   : > { %3444 = vst.msk [vmem:[#allocation4 + $0x38] sm:$0xff] %vm764_vm6, %v3428_v57 }
 0x564   : > { %3816 = vrot.lane.b32.xlu1 %v8709_v20, %s7048_s14 }
 0x566   : > { %v3462_v11 = vpop.permute.xlu1 %3461 }
 0x567   : > { %3485 = vst.msk [vmem:[#allocation4] sm:$0xff] %vm813_vm7, %v3462_v11  ;;  %3812 = vrot.lane.b32.xlu2 %v8948_v47, %s7048_s14  ;;  %v9046_v11 = vld [vmem:[#allocation3 + $0x231] sm:$0xff] }
 0x568   : > { %3820 = vrot.lane.b32.xlu0 %v8953_v14, %s7048_s14 }
 0x569   : > { %v3476_v56 = vpop.permute.xlu2 %3475 }
 0x56a   : > { %3492 = vst.msk [vmem:[#allocation4 + $0x38] sm:$0xff] %vm813_vm7, %v3476_v56  ;;  %v3466_v21 = vpop.permute.xlu0 %3465 }
 0x56b   : > { %3487 = vst.msk [vmem:[#allocation4 + $0x10] sm:$0xff] %vm813_vm7, %v3466_v21 }
 0x56c   : > { %3822 = vrot.lane.b32.xlu1 %v8720_v33, %s7048_s14  ;;  %v3844_v33 = vld [vmem:[#allocation3 + $0x330] sm:$0xff] }
 0x56e   : > { %v3468_v20 = vpop.permute.xlu1 %3467 }
 0x56f   : > { %3488 = vst.msk [vmem:[#allocation4 + $0x18] sm:$0xff] %vm813_vm7, %v3468_v20  ;;  %3818 = vrot.lane.b32.xlu2 %v8961_v2, %s7048_s14  ;;  %v9050_v20 = vld [vmem:[#allocation3 + $0x211] sm:$0xff] }
 0x570   : > { %3826 = vrot.lane.b32.xlu0 %v8966_v53, %s7048_s14 }
 0x571   : > { %v3514_v22 = vpop.permute.xlu2 %3513 }
 0x572   : > { %3535 = vst.msk [vmem:[#allocation4 + $0x10] sm:$0xff] %vm863_vm8, %v3514_v22  ;;  %v3472_v39 = vpop.permute.xlu0 %3471 }
 0x573   : > { %3490 = vst.msk [vmem:[#allocation4 + $0x28] sm:$0xff] %vm813_vm7, %v3472_v39  ;;  %v9056_v39 = vld [vmem:[#allocation3 + $0x251] sm:$0xff] }
 0x574   : > { %3860 = vrot.lane.b32.xlu1 %v3844_v33, %s7049_s15 }
 0x576   : > { %v3474_v41 = vpop.permute.xlu1 %3473 }
 0x577   : > { %3491 = vst.msk [vmem:[#allocation4 + $0x30] sm:$0xff] %vm813_vm7, %v3474_v41  ;;  %3824 = vrot.lane.b32.xlu2 %v8973_v62, %s7048_s14 }
 0x578   : > { %3864 = vrot.lane.b32.xlu0 %v3846_v13, %s7049_s15  ;;  %v9064_v13 = vld [vmem:[#allocation3 + $0x261] sm:$0xff] }
 0x579   : > { %v3520_v27 = vpop.permute.xlu2 %3519 }
 0x57a   : > { %3538 = vst.msk [vmem:[#allocation4 + $0x28] sm:$0xff] %vm863_vm8, %v3520_v27  ;;  %v3510_v24 = vpop.permute.xlu0 %3509 }
 0x57b   : > { %3533 = vst.msk [vmem:[#allocation4] sm:$0xff] %vm863_vm8, %v3510_v24 }
 0x57c   : > { %3866 = vrot.lane.b32.xlu1 %v3847_v9, %s7049_s15  ;;  %v9068_v9 = vld [vmem:[#allocation3 + $0x241] sm:$0xff] }
 0x57e   : > { %v3512_v19 = vpop.permute.xlu1 %3511 }
 0x57f   : > { %3534 = vst.msk [vmem:[#allocation4 + $0x8] sm:$0xff] %vm863_vm8, %v3512_v19  ;;  %3862 = vrot.lane.b32.xlu2 %v3845_v63, %s7049_s15 }
 0x580   : > { %3870 = vrot.lane.b32.xlu0 %v3849_v55, %s7049_s15 }
 0x581   : > { %v3558_v59 = vpop.permute.xlu2 %3557 }
 0x582   : > { %3581 = vst.msk [vmem:[#allocation4] sm:$0xff] %vm912_vm9, %v3558_v59  ;;  %v3516_v61 = vpop.permute.xlu0 %3515  ;;  %v3733_v59 = vld [vmem:[#allocation3 + $0x160] sm:$0xff] }
 0x583   : > { %3536 = vst.msk [vmem:[#allocation4 + $0x18] sm:$0xff] %vm863_vm8, %v3516_v61 }
 0x584   : > { %3872 = vrot.lane.b32.xlu1 %v3850_v32, %s7049_s15 }
 0x586   : > { %v3518_v40 = vpop.permute.xlu1 %3517  ;;  %v3204_v0 = vpop.f32.mrf.mxu3 }
 0x587   : > { %3537 = vst.msk [vmem:[#allocation4 + $0x20] sm:$0xff] %vm863_vm8, %v3518_v40  ;;  %v3205_v12 = vadd.f32 %v8999_v28, %v3204_v0  ;;  %3868 = vrot.lane.b32.xlu2 %v3848_v31, %s7049_s15  ;;  %v3732_v0 = vld [vmem:[#allocation3 + $0x150] sm:$0xff] }
 0x588   : > { %3908 = vrot.lane.b32.xlu0 %v9011_v48, %s7050_s16 }
 0x589   : > { %6877 = vst.msk [vmem:[%s8739_s23 + $0x40] sm:$0xff] %vm2733_vm12, %v3205_v12  ;;  %v3564_v38 = vpop.permute.xlu2 %3563  ;;  %v3739_v12 = vld [vmem:[#allocation3 + $0x1c0] sm:$0xff] }
 0x58a   : > { %3584 = vst.msk [vmem:[#allocation4 + $0x18] sm:$0xff] %vm912_vm9, %v3564_v38  ;;  %v3522_v49 = vpop.permute.xlu0 %3521  ;;  %v3734_v38 = vld [vmem:[#allocation3 + $0x170] sm:$0xff] }
 0x58b   : > { %3539 = vst.msk [vmem:[#allocation4 + $0x30] sm:$0xff] %vm863_vm8, %v3522_v49 }
 0x58c   : > { %3910 = vrot.lane.b32.xlu1 %v9025_v50, %s7050_s16 }
 0x58e   : > { %v3524_v1 = vpop.permute.xlu1 %3523  ;;  %v3207_v35 = vpop.f32.mrf.mxu3 }
 0x58f   : > { %3540 = vst.msk [vmem:[#allocation4 + $0x38] sm:$0xff] %vm863_vm8, %v3524_v1  ;;  %v3208_v7 = vadd.f32 %v8999_v28, %v3207_v35  ;;  %3874 = vrot.lane.b32.xlu2 %v3851_v34, %s7049_s15  ;;  %v3990_v1 = vld [vmem:[#allocation3 + $0x530] sm:$0xff]  ;;  %v3735_v35 = vld [vmem:[#allocation3 + $0x180] sm:$0xff] }
 0x590   : > { %3914 = vrot.lane.b32.xlu0 %v9038_v3, %s7050_s16 }
 0x591   : > { %6878 = vst.msk [vmem:[%s8739_s23 + $0x48] sm:$0xff] %vm2733_vm12, %v3208_v7  ;;  %v3570_v29 = vpop.permute.xlu2 %3569 }
 0x592   : > { %3587 = vst.msk [vmem:[#allocation4 + $0x30] sm:$0xff] %vm912_vm9, %v3570_v29  ;;  %v3560_v57 = vpop.permute.xlu0 %3559  ;;  %v3991_v29 = vld [vmem:[#allocation3 + $0x540] sm:$0xff] }
 0x593   : > { %3582 = vst.msk [vmem:[#allocation4 + $0x8] sm:$0xff] %vm912_vm9, %v3560_v57  ;;  %v3737_v57 = vld [vmem:[#allocation3 + $0x1a0] sm:$0xff] }
 0x594   : > { %3916 = vrot.lane.b32.xlu1 %v9046_v11, %s7050_s16 }
 0x596   : > { %v3562_v56 = vpop.permute.xlu1 %3561  ;;  %v3210_v21 = vpop.f32.mrf.mxu3 }
 0x597   : > { %3583 = vst.msk [vmem:[#allocation4 + $0x10] sm:$0xff] %vm912_vm9, %v3562_v56  ;;  %v3211_v22 = vadd.f32 %v8999_v28, %v3210_v21  ;;  %3912 = vrot.lane.b32.xlu2 %v9050_v20, %s7050_s16 }
 0x598   : > { %3920 = vrot.lane.b32.xlu0 %v9056_v39, %s7050_s16 }
 0x599   : > { %6879 = vst.msk [vmem:[%s8739_s23 + $0x50] sm:$0xff] %vm2733_vm12, %v3211_v22  ;;  %v3608_v33 = vpop.permute.xlu2 %3607  ;;  %v3989_v22 = vld [vmem:[#allocation3 + $0x520] sm:$0xff] }
 0x59a   : > { %3630 = vst.msk [vmem:[#allocation4 + $0x8] sm:$0xff] %vm961_vm10, %v3608_v33  ;;  %v3566_v41 = vpop.permute.xlu0 %3565 }
 0x59b   : > { %3585 = vst.msk [vmem:[#allocation4 + $0x20] sm:$0xff] %vm912_vm9, %v3566_v41 }
 0x59c   : > { %3922 = vrot.lane.b32.xlu1 %v9064_v13, %s7050_s16 }
 0x59e   : > { %v3568_v27 = vpop.permute.xlu1 %3567  ;;  %v3213_v24 = vpop.f32.mrf.mxu3 }
 0x59f   : > { %3586 = vst.msk [vmem:[#allocation4 + $0x28] sm:$0xff] %vm912_vm9, %v3568_v27  ;;  %v3214_v16 = vadd.f32 %v8999_v28, %v3213_v24  ;;  %3918 = vrot.lane.b32.xlu2 %v9068_v9, %s7050_s16  ;;  %v3993_v27 = vld [vmem:[#allocation3 + $0x560] sm:$0xff]  ;;  %v3738_v24 = vld [vmem:[#allocation3 + $0x1b0] sm:$0xff] }
 0x5a0   : > { %3958 = vrot.lane.b32.xlu0 %v8813_v36, %s7051_s17 }
 0x5a1   : > { %6880 = vst.msk [vmem:[%s8739_s23 + $0x58] sm:$0xff] %vm2733_vm12, %v3214_v16  ;;  %v3614_v19 = vpop.permute.xlu2 %3613  ;;  %v3638_v63 = vld [vmem:[#allocation4 + $0x8] sm:$0xff] }
 0x5a2   : > { %3633 = vst.msk [vmem:[#allocation4 + $0x20] sm:$0xff] %vm961_vm10, %v3614_v19  ;;  %v3572_v55 = vpop.permute.xlu0 %3571 }
 0x5a3   : > { %3588 = vst.msk [vmem:[#allocation4 + $0x38] sm:$0xff] %vm912_vm9, %v3572_v55  ;;  %v3992_v55 = vld [vmem:[#allocation3 + $0x550] sm:$0xff] }
 0x5a4   : > { %3960 = vrot.lane.b32.xlu1 %v8849_v4, %s7051_s17  ;;  %3741 = vst.msk [vmem:[#allocation4 + $0x8] sm:$0xff] %vm299_vm0, %v3733_v59  ;;  %v9142_v59 = vld [vmem:[#allocation3 + $0x3d1] sm:$0xff] }
 0x5a6   : > { %v3606_v42 = vpop.permute.xlu1 %3605  ;;  %v3216_v6 = vpop.f32.mrf.mxu3 }
 0x5a7   : > { %3629 = vst.msk [vmem:[#allocation4] sm:$0xff] %vm961_vm10, %v3606_v42  ;;  %v3217_v36 = vadd.f32 %v8999_v28, %v3216_v6  ;;  %3956 = vrot.lane.b32.xlu2 %v8803_v10, %s7051_s17 }
 0x5a8   : > { %3964 = vrot.lane.b32.xlu0 %v8840_v60, %s7051_s17 }
 0x5a9   : > { %6881 = vst.msk [vmem:[%s8739_s23 + $0x60] sm:$0xff] %vm2733_vm12, %v3217_v36  ;;  %v3620_v61 = vpop.permute.xlu2 %3619  ;;  %v9091_v32 = vld [vmem:[#allocation4 + $0x20] sm:$0xff] }
 0x5aa   : > { %3636 = vst.msk [vmem:[#allocation4 + $0x38] sm:$0xff] %vm961_vm10, %v3620_v61  ;;  %v3610_v4 = vpop.permute.xlu0 %3609  ;;  %v9148_v36 = vld [vmem:[#allocation3 + $0x3e1] sm:$0xff] }
 0x5ab   : > { %3631 = vst.msk [vmem:[#allocation4 + $0x10] sm:$0xff] %vm961_vm10, %v3610_v4  ;;  %v3995_v4 = vld [vmem:[#allocation3 + $0x580] sm:$0xff] }
 0x5ac   : > { %3966 = vrot.lane.b32.xlu1 %v8872_v17, %s7051_s17  ;;  %3744 = vst.msk [vmem:[#allocation4 + $0x20] sm:$0xff] %vm299_vm0, %v3736_v30  ;;  %v9156_v30 = vld [vmem:[#allocation3 + $0x401] sm:$0xff] }
 0x5ae   : > { %v3612_v10 = vpop.permute.xlu1 %3611  ;;  %v3219_v8 = vpop.f32.mrf.mxu3  ;;  %v3637_v60 = vld [vmem:[#allocation4] sm:$0xff] }
 0x5af   : > { %3632 = vst.msk [vmem:[#allocation4 + $0x18] sm:$0xff] %vm961_vm10, %v3612_v10  ;;  %v3220_v40 = vadd.f32 %v8999_v28, %v3219_v8  ;;  %6885 = vmatmul.msk.f32.vlgmr.msra.gmra.mxu0 %vm991_vm11, %v3637_v60  ;;  %3962 = vrot.lane.b32.xlu2 %v8827_v46, %s7051_s17  ;;  %v3988_v46 = vld [vmem:[#allocation3 + $0x510] sm:$0xff] }
 0x5b0   : > { %3970 = vrot.lane.b32.xlu0 %v8866_v23, %s7051_s17  ;;  %3740 = vst.msk [vmem:[#allocation4] sm:$0xff] %vm299_vm0, %v3732_v0  ;;  %v9162_v60 = vld [vmem:[#allocation3 + $0x411] sm:$0xff] }
 0x5b1   : > { %6882 = vst.msk [vmem:[%s8739_s23 + $0x68] sm:$0xff] %vm2733_vm12, %v3220_v40  ;;  %v3769_v17 = vpop.permute.xlu2 %3768  ;;  %v9108_v31 = vld [vmem:[#allocation4 + $0x38] sm:$0xff] }
 0x5b2   : > { %v3639_v52 = vld [vmem:[#allocation4 + $0x10] sm:$0xff]  ;;  %v3616_v26 = vpop.permute.xlu0 %3615  ;;  %3747 = vst.msk [vmem:[#allocation4 + $0x38] sm:$0xff] %vm299_vm0, %v3739_v12 }
 0x5b3   : > { %3742 = vst.msk [vmem:[#allocation4 + $0x10] sm:$0xff] %vm299_vm0, %v3734_v38  ;;  %v9172_v0 = vld [vmem:[#allocation3 + $0x431] sm:$0xff]  ;;  %v9178_v38 = vld [vmem:[#allocation3 + $0x441] sm:$0xff] }
 0x5b4   : > { %3790 = vst.msk [vmem:[#allocation4 + $0x10] sm:$0xff] %vm617_vm3, %v3769_v17  ;;  %4004 = vrot.lane.b32.xlu1 %v3988_v46, %s7052_s18 }
 0x5b5   : > { %3634 = vst.msk [vmem:[#allocation4 + $0x28] sm:$0xff] %vm961_vm10, %v3616_v26  ;;  %v9182_v26 = vld [vmem:[#allocation3 + $0x421] sm:$0xff] }
 0x5b6   : > { %v3618_v23 = vpop.permute.xlu1 %3617  ;;  %v3222_v49 = vpop.f32.mrf.mxu3  ;;  %v3640_v37 = vld [vmem:[#allocation4 + $0x18] sm:$0xff] }
 0x5b7   : > { %3635 = vst.msk [vmem:[#allocation4 + $0x30] sm:$0xff] %vm961_vm10, %v3618_v23  ;;  %v3223_v43 = vadd.f32 %v8999_v28, %v3222_v49  ;;  %6886 = vmatmul.msk.f32.gmra.mxu0 %vm991_vm11, %v3638_v63  ;;  %3968 = vrot.lane.b32.xlu2 %v8855_v5, %s7051_s17  ;;  %v3994_v63 = vld [vmem:[#allocation3 + $0x570] sm:$0xff] }
 0x5b8   : > { %4008 = vrot.lane.b32.xlu0 %v3990_v1, %s7052_s18  ;;  %3743 = vst.msk [vmem:[#allocation4 + $0x18] sm:$0xff] %vm299_vm0, %v3735_v35 }
 0x5b9   : > { %6883 = vst.msk [vmem:[%s8739_s23 + $0x70] sm:$0xff] %vm2733_vm12, %v3223_v43  ;;  %v3775_v34 = vpop.permute.xlu2 %3774 }
 0x5ba   : > { %v3765_v7 = vpop.permute.xlu0 %3764 }
 0x5bb   : > { %3788 = vst.msk [vmem:[#allocation4] sm:$0xff] %vm617_vm3, %v3765_v7 }
 0x5bc   : > { %v3642_v56 = vld [vmem:[#allocation4 + $0x28] sm:$0xff]  ;;  %4010 = vrot.lane.b32.xlu1 %v3991_v29, %s7052_s18 }
 0x5bd   : > { %3745 = vst.msk [vmem:[#allocation4 + $0x28] sm:$0xff] %vm299_vm0, %v3737_v57  ;;  %v9241_v57 = vld [vmem:[#allocation3 + $0x161] sm:$0xff] }
 0x5be   : > { %3793 = vst.msk [vmem:[#allocation4 + $0x28] sm:$0xff] %vm617_vm3, %v3775_v34  ;;  %v3767_v5 = vpop.permute.xlu1 %3766  ;;  %v3225_v21 = vpop.f32.mrf.mxu3  ;;  %v3643_v33 = vld [vmem:[#allocation4 + $0x30] sm:$0xff] }
 0x5bf   : > { %3789 = vst.msk [vmem:[#allocation4 + $0x8] sm:$0xff] %vm617_vm3, %v3767_v5  ;;  %v3226_v41 = vadd.f32 %v8999_v28, %v3225_v21  ;;  %6887 = vmatmul.msk.f32.gmra.mxu0 %vm991_vm11, %v3639_v52  ;;  %4006 = vrot.lane.b32.xlu2 %v3989_v22, %s7052_s18  ;;  %v9254_v21 = vld [vmem:[#allocation3 + $0x191] sm:$0xff] }
 0x5c0   : > { %4014 = vrot.lane.b32.xlu0 %v3993_v27, %s7052_s18  ;;  %3746 = vst.msk [vmem:[#allocation4 + $0x30] sm:$0xff] %vm299_vm0, %v3738_v24  ;;  %v9269_v24 = vld [vmem:[#allocation3 + $0x1c1] sm:$0xff] }
 0x5c1   : > { %6884 = vst.msk [vmem:[%s8739_s23 + $0x78] sm:$0xff] %vm2733_vm12, %v3226_v41  ;;  %v3813_v16 = vpop.permute.xlu2 %3812 }
 0x5c2   : > { %3836 = vst.msk [vmem:[#allocation4] sm:$0xff] %vm666_vm4, %v3813_v16  ;;  %v3771_v19 = vpop.permute.xlu0 %3770 }
 0x5c3   : > { %3791 = vst.msk [vmem:[#allocation4 + $0x18] sm:$0xff] %vm617_vm3, %v3771_v19  ;;  %v9273_v19 = vld [vmem:[#allocation3 + $0x1a1] sm:$0xff] }
 0x5c4   : > { %4016 = vrot.lane.b32.xlu1 %v3994_v63, %s7052_s18 }
 0x5c6   : > { %v3773_v28 = vpop.permute.xlu1 %3772 }
 0x5c7   : > { %3792 = vst.msk [vmem:[#allocation4 + $0x20] sm:$0xff] %vm617_vm3, %v3773_v28  ;;  %6888 = vmatmul.msk.f32.gmra.mxu0 %vm991_vm11, %v3640_v37  ;;  %4012 = vrot.lane.b32.xlu2 %v3992_v55, %s7052_s18 }
 0x5c8   : > { %4052 = vrot.lane.b32.xlu0 %v9142_v59, %s7053_s19 }
 0x5c9   : > { %v3819_v42 = vpop.permute.xlu2 %3818 }
 0x5ca   : > { %3839 = vst.msk [vmem:[#allocation4 + $0x18] sm:$0xff] %vm666_vm4, %v3819_v42  ;;  %v3777_v6 = vpop.permute.xlu0 %3776  ;;  %v9292_v42 = vld [vmem:[%s10711_s6] ss:$0 sm:$0xff] }
 0x5cb   : > { %3794 = vst.msk [vmem:[#allocation4 + $0x30] sm:$0xff] %vm617_vm3, %v3777_v6 }
 0x5cc   : > { %4054 = vrot.lane.b32.xlu1 %v9148_v36, %s7053_s19 }
 0x5ce   : > { %v3779_v61 = vpop.permute.xlu1 %3778 }
 0x5cf   : > { %3795 = vst.msk [vmem:[#allocation4 + $0x38] sm:$0xff] %vm617_vm3, %v3779_v61  ;;  %6889 = vmatmul.msk.f32.gmra.mxu0 %vm991_vm11, %v9091_v32  ;;  %4018 = vrot.lane.b32.xlu2 %v3995_v4, %s7052_s18  ;;  %v9166_v32 = vld [vmem:[#allocation3 + $0x3f1] sm:$0xff] }
 0x5d0   : > { %4058 = vrot.lane.b32.xlu0 %v9156_v30, %s7053_s19 }
 0x5d1   : > { %v3825_v10 = vpop.permute.xlu2 %3824 }
 0x5d2   : > { %3842 = vst.msk [vmem:[#allocation4 + $0x30] sm:$0xff] %vm666_vm4, %v3825_v10  ;;  %v3815_v8 = vpop.permute.xlu0 %3814 }
 0x5d3   : > { %3837 = vst.msk [vmem:[#allocation4 + $0x8] sm:$0xff] %vm666_vm4, %v3815_v8 }
 0x5d4   : > { %4060 = vrot.lane.b32.xlu1 %v9162_v60, %s7053_s19 }
 0x5d6   : > { %v3817_v40 = vpop.permute.xlu1 %3816 }
 0x5d7   : > { %3838 = vst.msk [vmem:[#allocation4 + $0x10] sm:$0xff] %vm666_vm4, %v3817_v40  ;;  %6890 = vmatmul.msk.f32.gmra.mxu0 %vm991_vm11, %v3642_v56  ;;  %4056 = vrot.lane.b32.xlu2 %v9166_v32, %s7053_s19 }
 0x5d8   : > { %4064 = vrot.lane.b32.xlu0 %v9172_v0, %s7053_s19 }
 0x5d9   : > { %v3863_v17 = vpop.permute.xlu2 %3862 }
 0x5da   : > { %3885 = vst.msk [vmem:[#allocation4 + $0x8] sm:$0xff] %vm715_vm5, %v3863_v17  ;;  %v3821_v12 = vpop.permute.xlu0 %3820 }
 0x5db   : > { %3840 = vst.msk [vmem:[#allocation4 + $0x20] sm:$0xff] %vm666_vm4, %v3821_v12  ;;  %v9324_v12 = vld [vmem:[#allocation3 + $0x2c1] sm:$0xff] }
 0x5dc   : > { %4066 = vrot.lane.b32.xlu1 %v9178_v38, %s7053_s19 }
 0x5de   : > { %v3823_v52 = vpop.permute.xlu1 %3822 }
 0x5df   : > { %3841 = vst.msk [vmem:[#allocation4 + $0x28] sm:$0xff] %vm666_vm4, %v3823_v52  ;;  %6891 = vmatmul.msk.f32.gmra.mxu0 %vm991_vm11, %v3643_v33  ;;  %4062 = vrot.lane.b32.xlu2 %v9182_v26, %s7053_s19  ;;  %v9258_v33 = vld [vmem:[#allocation3 + $0x171] sm:$0xff] }
 0x5e0   : > { %4102 = vrot.lane.b32.xlu0 %v8777_v44, %s7054_s20 }
 0x5e1   : > { %v3869_v46 = vpop.permute.xlu2 %3868 }
 0x5e2   : > { %3888 = vst.msk [vmem:[#allocation4 + $0x20] sm:$0xff] %vm715_vm5, %v3869_v46  ;;  %v3827_v23 = vpop.permute.xlu0 %3826 }
 0x5e3   : > { %3843 = vst.msk [vmem:[#allocation4 + $0x38] sm:$0xff] %vm666_vm4, %v3827_v23  ;;  %v9329_v23 = vld [vmem:[#allocation3 + $0x2a1] sm:$0xff] }
 0x5e4   : > { %4104 = vrot.lane.b32.xlu1 %v8816_v25, %s7054_s20 }
 0x5e6   : > { %v3861_v49 = vpop.permute.xlu1 %3860 }
 0x5e7   : > { %3884 = vst.msk [vmem:[#allocation4] sm:$0xff] %vm715_vm5, %v3861_v49  ;;  %6892 = vmatmul.msk.f32.gmra.mxu0 %vm991_vm11, %v9108_v31  ;;  %4100 = vrot.lane.b32.xlu2 %v8808_v45, %s7054_s20  ;;  %v9208_v31 = vld [vmem:[#allocation3 + $0x4e1] sm:$0xff] }
 0x5e8   : > { %4108 = vrot.lane.b32.xlu0 %v8790_v54, %s7054_s20  ;;  %v9335_v49 = vld [vmem:[#allocation3 + $0x2e1] sm:$0xff] }
 0x5e9   : > { %v3875_v44 = vpop.permute.xlu2 %3874 }
 0x5ea   : > { %3891 = vst.msk [vmem:[#allocation4 + $0x38] sm:$0xff] %vm715_vm5, %v3875_v44  ;;  %v3865_v37 = vpop.permute.xlu0 %3864 }
 0x5eb   : > { %3886 = vst.msk [vmem:[#allocation4 + $0x10] sm:$0xff] %vm715_vm5, %v3865_v37 }
 0x5ec   : > { %4110 = vrot.lane.b32.xlu1 %v8836_v58, %s7054_s20 }
 0x5ee   : > { %v3867_v25 = vpop.permute.xlu1 %3866 }
 0x5ef   : > { %3887 = vst.msk [vmem:[#allocation4 + $0x18] sm:$0xff] %vm715_vm5, %v3867_v25  ;;  %4106 = vrot.lane.b32.xlu2 %v8832_v51, %s7054_s20  ;;  %v4245_v51 = vld [vmem:[#allocation3 + $0xd1] sm:$0xff] }
 0x5f0   : > { %4114 = vrot.lane.b32.xlu0 %v9208_v31, %s7054_s20  ;;  %v9342_v25 = vld [vmem:[#allocation3 + $0x2f1] sm:$0xff] }
 0x5f1   : > { %v3913_v54 = vpop.permute.xlu2 %3912 }
 0x5f2   : > { %3934 = vst.msk [vmem:[#allocation4 + $0x10] sm:$0xff] %vm764_vm6, %v3913_v54  ;;  %v3871_v45 = vpop.permute.xlu0 %3870 }
 0x5f3   : > { %3889 = vst.msk [vmem:[#allocation4 + $0x28] sm:$0xff] %vm715_vm5, %v3871_v45 }
 0x5f4   : > { %4259 = vrot.lane.b32.xlu1 %v8948_v47, %s7047_s26  ;;  %v4248_v47 = vld [vmem:[#allocation3 + $0x101] sm:$0xff] }
 0x5f6   : > { %v3873_v58 = vpop.permute.xlu1 %3872 }
 0x5f7   : > { %3890 = vst.msk [vmem:[#allocation4 + $0x30] sm:$0xff] %vm715_vm5, %v3873_v58  ;;  %4112 = vrot.lane.b32.xlu2 %v8860_v15, %s7054_s20 }
 0x5f8   : > { %4263 = vrot.lane.b32.xlu0 %v4245_v51, %s7047_s26  ;;  %v9347_v51 = vld [vmem:[#allocation3 + $0x2d1] sm:$0xff] }
 0x5f9   : > { %v3919_v43 = vpop.permute.xlu2 %3918 }
 0x5fa   : > { %3937 = vst.msk [vmem:[#allocation4 + $0x28] sm:$0xff] %vm764_vm6, %v3919_v43  ;;  %v3909_v1 = vpop.permute.xlu0 %3908  ;;  %v9353_v43 = vld [vmem:[#allocation3 + $0x331] sm:$0xff] }
 0x5fb   : > { %3932 = vst.msk [vmem:[#allocation4] sm:$0xff] %vm764_vm6, %v3909_v1 }
 0x5fc   : > { %4265 = vrot.lane.b32.xlu1 %v8961_v2, %s7047_s26  ;;  %v9235_v2 = vld [vmem:[#allocation3 + $0x151] sm:$0xff] }
 0x5fe   : > { %v3911_v35 = vpop.permute.xlu1 %3910 }
 0x5ff   : > { %3933 = vst.msk [vmem:[#allocation4 + $0x8] sm:$0xff] %vm764_vm6, %v3911_v35  ;;  %4261 = vrot.lane.b32.xlu2 %v8940_v18, %s7047_s26 }
 0x600   : > { %4269 = vrot.lane.b32.xlu0 %v4248_v47, %s7047_s26 }
 0x601   : > { %v3957_v15 = vpop.permute.xlu2 %3956 }
 0x602   : > { %3980 = vst.msk [vmem:[#allocation4] sm:$0xff] %vm813_vm7, %v3957_v15  ;;  %v3915_v34 = vpop.permute.xlu0 %3914  ;;  %v9361_v15 = vld [vmem:[#allocation3 + $0x341] sm:$0xff] }
 0x603   : > { %3935 = vst.msk [vmem:[#allocation4 + $0x18] sm:$0xff] %vm764_vm6, %v3915_v34  ;;  %v4227_v34 = vld [vmem:[#allocation3 + $0x11] sm:$0xff] }
 0x604   : > { %4271 = vrot.lane.b32.xlu1 %v8973_v62, %s7047_s26 }
 0x606   : > { %v3917_v7 = vpop.permute.xlu1 %3916 }
 0x607   : > { %3936 = vst.msk [vmem:[#allocation4 + $0x20] sm:$0xff] %vm764_vm6, %v3917_v7  ;;  %4267 = vrot.lane.b32.xlu2 %v8953_v14, %s7047_s26  ;;  %v9248_v14 = vld [vmem:[#allocation3 + $0x181] sm:$0xff] }
 0x608   : > { %4307 = vrot.lane.b32.xlu0 %v9235_v2, %s7048_s14 }
 0x609   : > { %v3963_v18 = vpop.permute.xlu2 %3962 }
 0x60a   : > { %3983 = vst.msk [vmem:[#allocation4 + $0x18] sm:$0xff] %vm813_vm7, %v3963_v18  ;;  %v3921_v29 = vpop.permute.xlu0 %3920 }
 0x60b   : > { %3938 = vst.msk [vmem:[#allocation4 + $0x30] sm:$0xff] %vm764_vm6, %v3921_v29 }
 0x60c   : > { %4309 = vrot.lane.b32.xlu1 %v9241_v57, %s7048_s14 }
 0x60e   : > { %v3923_v62 = vpop.permute.xlu1 %3922 }
 0x60f   : > { %3939 = vst.msk [vmem:[#allocation4 + $0x38] sm:$0xff] %vm764_vm6, %v3923_v62  ;;  %4273 = vrot.lane.b32.xlu2 %v8966_v53, %s7047_s26  ;;  %v9263_v53 = vld [vmem:[#allocation3 + $0x1b1] sm:$0xff]  ;;  %v9367_v62 = vld [vmem:[#allocation3 + $0x301] sm:$0xff] }
 0x610   : > { %4313 = vrot.lane.b32.xlu0 %v9248_v14, %s7048_s14 }
 0x611   : > { %v3969_v56 = vpop.permute.xlu2 %3968 }
 0x612   : > { %3986 = vst.msk [vmem:[#allocation4 + $0x30] sm:$0xff] %vm813_vm7, %v3969_v56  ;;  %v3959_v5 = vpop.permute.xlu0 %3958  ;;  %v9373_v56 = vld [vmem:[#allocation3 + $0x361] sm:$0xff] }
 0x613   : > { %3981 = vst.msk [vmem:[#allocation4 + $0x8] sm:$0xff] %vm813_vm7, %v3959_v5 }
 0x614   : > { %4315 = vrot.lane.b32.xlu1 %v9254_v21, %s7048_s14 }
 0x616   : > { %v3961_v22 = vpop.permute.xlu1 %3960 }
 0x617   : > { %3982 = vst.msk [vmem:[#allocation4 + $0x10] sm:$0xff] %vm813_vm7, %v3961_v22  ;;  %4311 = vrot.lane.b32.xlu2 %v9258_v33, %s7048_s14 }
 0x618   : > { %4319 = vrot.lane.b32.xlu0 %v9263_v53, %s7048_s14 }
 0x619   : > { %v4007_v41 = vpop.permute.xlu2 %4006 }
 0x61a   : > { %4029 = vst.msk [vmem:[#allocation4 + $0x8] sm:$0xff] %vm863_vm8, %v4007_v41  ;;  %v3965_v27 = vpop.permute.xlu0 %3964 }
 0x61b   : > { %3984 = vst.msk [vmem:[#allocation4 + $0x20] sm:$0xff] %vm813_vm7, %v3965_v27  ;;  %v9382_v27 = vld [vmem:[#allocation3 + $0x371] sm:$0xff] }
 0x61c   : > { %4321 = vrot.lane.b32.xlu1 %v9269_v24, %s7048_s14 }
 0x61e   : > { %v3967_v16 = vpop.permute.xlu1 %3966 }
 0x61f   : > { %3985 = vst.msk [vmem:[#allocation4 + $0x28] sm:$0xff] %vm813_vm7, %v3967_v16  ;;  %4317 = vrot.lane.b32.xlu2 %v9273_v19, %s7048_s14  ;;  %v4230_v16 = vld [vmem:[#allocation3 + $0x41] sm:$0xff] }
 0x620   : > { %4357 = vrot.lane.b32.xlu0 %v9025_v50, %s7049_s15 }
 0x621   : > { %v4013_v63 = vpop.permute.xlu2 %4012 }
 0x622   : > { %4032 = vst.msk [vmem:[#allocation4 + $0x20] sm:$0xff] %vm863_vm8, %v4013_v63  ;;  %v3971_v28 = vpop.permute.xlu0 %3970 }
 0x623   : > { %3987 = vst.msk [vmem:[#allocation4 + $0x38] sm:$0xff] %vm813_vm7, %v3971_v28 }
 0x624   : > { %4359 = vrot.lane.b32.xlu1 %v9050_v20, %s7049_s15 }
 0x626   : > { %v4005_v55 = vpop.permute.xlu1 %4004 }
 0x627   : > { %4028 = vst.msk [vmem:[#allocation4] sm:$0xff] %vm863_vm8, %v4005_v55  ;;  %4355 = vrot.lane.b32.xlu2 %v9011_v48, %s7049_s15 }
 0x628   : > { %4363 = vrot.lane.b32.xlu0 %v9046_v11, %s7049_s15 }
 0x629   : > { %v4019_v50 = vpop.permute.xlu2 %4018 }
 0x62a   : > { %4035 = vst.msk [vmem:[#allocation4 + $0x38] sm:$0xff] %vm863_vm8, %v4019_v50  ;;  %v4009_v6 = vpop.permute.xlu0 %4008  ;;  %v9388_v50 = vld [vmem:[#allocation3 + $0x351] sm:$0xff] }
 0x62b   : > { %4030 = vst.msk [vmem:[#allocation4 + $0x10] sm:$0xff] %vm863_vm8, %v4009_v6  ;;  %v9394_v6 = vld [vmem:[#allocation3 + $0x391] sm:$0xff] }
 0x62c   : > { %4365 = vrot.lane.b32.xlu1 %v9068_v9, %s7049_s15  ;;  %v3699_v20 = vpop.f32.mrf.mxu0  ;;  %v9308_v9 = vld [vmem:[#allocation3 + $0x291] sm:$0xff] }
 0x62d   : > { %v3700_v48 = vadd.f32 %v9292_v42, %v3699_v20 }
 0x62e   : > { %v4011_v61 = vpop.permute.xlu1 %4010 }
 0x62f   : > { %6893 = vst.msk [vmem:[%s8739_s23 + $0x80] sm:$0xff] %vm2733_vm12, %v3700_v48  ;;  %4361 = vrot.lane.b32.xlu2 %v9038_v3, %s7049_s15 }
 0x630   : > { %4031 = vst.msk [vmem:[#allocation4 + $0x18] sm:$0xff] %vm863_vm8, %v4011_v61  ;;  %4369 = vrot.lane.b32.xlu0 %v9064_v13, %s7049_s15  ;;  %v9317_v13 = vld [vmem:[#allocation3 + $0x2b1] sm:$0xff] }
 0x631   : > { %v4057_v11 = vpop.permute.xlu2 %4056  ;;  %v4233_v61 = vld [vmem:[#allocation3 + $0x71] sm:$0xff] }
 0x632   : > { %4078 = vst.msk [vmem:[#allocation4 + $0x10] sm:$0xff] %vm912_vm9, %v4057_v11  ;;  %v4015_v4 = vpop.permute.xlu0 %4014  ;;  %v4228_v11 = vld [vmem:[#allocation3 + $0x21] sm:$0xff] }
 0x633   : > { %4033 = vst.msk [vmem:[#allocation4 + $0x28] sm:$0xff] %vm863_vm8, %v4015_v4 }
 0x634   : > { %4403 = vrot.lane.b32.xlu1 %v9308_v9, %s7050_s16  ;;  %v3702_v10 = vpop.f32.mrf.mxu0 }
 0x635   : > { %v3703_v8 = vadd.f32 %v9292_v42, %v3702_v10 }
 0x636   : > { %v4017_v3 = vpop.permute.xlu1 %4016 }
 0x637   : > { %6894 = vst.msk [vmem:[%s8739_s23 + $0x88] sm:$0xff] %vm2733_vm12, %v3703_v8  ;;  %4367 = vrot.lane.b32.xlu2 %v9056_v39, %s7049_s15  ;;  %v9403_v8 = vld [vmem:[#allocation3 + $0x3a1] sm:$0xff] }
 0x638   : > { %4034 = vst.msk [vmem:[#allocation4 + $0x30] sm:$0xff] %vm863_vm8, %v4017_v3  ;;  %4407 = vrot.lane.b32.xlu0 %v9317_v13, %s7050_s16 }
 0x639   : > { %v4063_v40 = vpop.permute.xlu2 %4062 }
 0x63a   : > { %4081 = vst.msk [vmem:[#allocation4 + $0x28] sm:$0xff] %vm912_vm9, %v4063_v40  ;;  %v4053_v17 = vpop.permute.xlu0 %4052 }
 0x63b   : > { %4076 = vst.msk [vmem:[#allocation4] sm:$0xff] %vm912_vm9, %v4053_v17 }
 0x63c   : > { %4409 = vrot.lane.b32.xlu1 %v9324_v12, %s7050_s16  ;;  %v3705_v52 = vpop.f32.mrf.mxu0 }
 0x63d   : > { %v3706_v39 = vadd.f32 %v9292_v42, %v3705_v52  ;;  %v9411_v52 = vld [vmem:[#allocation3 + $0x381] sm:$0xff] }
 0x63e   : > { %v4055_v46 = vpop.permute.xlu1 %4054 }
 0x63f   : > { %6895 = vst.msk [vmem:[%s8739_s23 + $0x90] sm:$0xff] %vm2733_vm12, %v3706_v39  ;;  %4405 = vrot.lane.b32.xlu2 %v9329_v23, %s7050_s16 }
 0x640   : > { %4077 = vst.msk [vmem:[#allocation4 + $0x8] sm:$0xff] %vm912_vm9, %v4055_v46  ;;  %4413 = vrot.lane.b32.xlu0 %v9335_v49, %s7050_s16  ;;  %v4229_v46 = vld [vmem:[#allocation3 + $0x31] sm:$0xff] }
 0x641   : > { %v4101_v44 = vpop.permute.xlu2 %4100 }
 0x642   : > { %4124 = vst.msk [vmem:[#allocation4] sm:$0xff] %vm961_vm10, %v4101_v44  ;;  %v4059_v37 = vpop.permute.xlu0 %4058 }
 0x643   : > { %4079 = vst.msk [vmem:[#allocation4 + $0x18] sm:$0xff] %vm912_vm9, %v4059_v37 }
 0x644   : > { %4415 = vrot.lane.b32.xlu1 %v9342_v25, %s7050_s16  ;;  %v3708_v54 = vpop.f32.mrf.mxu0 }
 0x645   : > { %v3709_v45 = vadd.f32 %v9292_v42, %v3708_v54  ;;  %v4231_v54 = vld [vmem:[#allocation3 + $0x51] sm:$0xff] }
 0x646   : > { %v4061_v58 = vpop.permute.xlu1 %4060 }
 0x647   : > { %6896 = vst.msk [vmem:[%s8739_s23 + $0x98] sm:$0xff] %vm2733_vm12, %v3709_v45  ;;  %4411 = vrot.lane.b32.xlu2 %v9347_v51, %s7050_s16 }
 0x648   : > { %4080 = vst.msk [vmem:[#allocation4 + $0x20] sm:$0xff] %vm912_vm9, %v4061_v58  ;;  %4451 = vrot.lane.b32.xlu0 %v9353_v43, %s7051_s17 }
 0x649   : > { %v4107_v1 = vpop.permute.xlu2 %4106  ;;  %v4132_v35 = vld [vmem:[#allocation4] sm:$0xff] }
 0x64a   : > { %4127 = vst.msk [vmem:[#allocation4 + $0x18] sm:$0xff] %vm961_vm10, %v4107_v1  ;;  %v4065_v47 = vpop.permute.xlu0 %4064  ;;  %6901 = vmatmul.msk.f32.vlgmr.msra.gmra.mxu2 %vm991_vm11, %v4132_v35 }
 0x64b   : > { %4082 = vst.msk [vmem:[#allocation4 + $0x30] sm:$0xff] %vm912_vm9, %v4065_v47 }
 0x64c   : > { %4453 = vrot.lane.b32.xlu1 %v9361_v15, %s7051_s17  ;;  %v3711_v7 = vpop.f32.mrf.mxu0  ;;  %4235 = vst.msk [vmem:[#allocation4] sm:$0xff] %vm299_vm0, %v4227_v34  ;;  %v4234_v34 = vld [vmem:[#allocation3 + $0x81] sm:$0xff] }
 0x64d   : > { %v3712_v18 = vadd.f32 %v9292_v42, %v3711_v7 }
 0x64e   : > { %v4067_v29 = vpop.permute.xlu1 %4066 }
 0x64f   : > { %6897 = vst.msk [vmem:[%s8739_s23 + $0xa0] sm:$0xff] %vm2733_vm12, %v3712_v18  ;;  %4417 = vrot.lane.b32.xlu2 %v9367_v62, %s7050_s16 }
 0x650   : > { %4083 = vst.msk [vmem:[#allocation4 + $0x38] sm:$0xff] %vm912_vm9, %v4067_v29  ;;  %4457 = vrot.lane.b32.xlu0 %v9373_v56, %s7051_s17  ;;  %v9450_v29 = vld [vmem:[#allocation3 + $0x471] sm:$0xff] }
 0x651   : > { %v4113_v5 = vpop.permute.xlu2 %4112  ;;  %v9378_v22 = vld [vmem:[#allocation4 + $0x18] sm:$0xff] }
 0x652   : > { %4130 = vst.msk [vmem:[#allocation4 + $0x30] sm:$0xff] %vm961_vm10, %v4113_v5  ;;  %v4103_v41 = vpop.permute.xlu0 %4102 }
 0x653   : > { %4125 = vst.msk [vmem:[#allocation4 + $0x8] sm:$0xff] %vm961_vm10, %v4103_v41 }
 0x654   : > { %4459 = vrot.lane.b32.xlu1 %v9382_v27, %s7051_s17  ;;  %v3714_v63 = vpop.f32.mrf.mxu0  ;;  %4238 = vst.msk [vmem:[#allocation4 + $0x18] sm:$0xff] %vm299_vm0, %v4230_v16  ;;  %v9474_v16 = vld [vmem:[#allocation3 + $0x4c1] sm:$0xff] }
 0x655   : > { %v3715_v28 = vadd.f32 %v9292_v42, %v3714_v63 }
 0x656   : > { %v4105_v55 = vpop.permute.xlu1 %4104 }
 0x657   : > { %6898 = vst.msk [vmem:[%s8739_s23 + $0xa8] sm:$0xff] %vm2733_vm12, %v3715_v28  ;;  %4455 = vrot.lane.b32.xlu2 %v9388_v50, %s7051_s17 }
 0x658   : > { %4126 = vst.msk [vmem:[#allocation4 + $0x10] sm:$0xff] %vm961_vm10, %v4105_v55  ;;  %4463 = vrot.lane.b32.xlu0 %v9394_v6, %s7051_s17  ;;  %v9480_v55 = vld [vmem:[#allocation3 + $0x4d1] sm:$0xff] }
 0x659   : > { %v4262_v20 = vpop.permute.xlu2 %4261  ;;  %v9399_v48 = vld [vmem:[#allocation4 + $0x30] sm:$0xff] }
 0x65a   : > { %v4133_v4 = vld [vmem:[#allocation4 + $0x8] sm:$0xff]  ;;  %v4109_v10 = vpop.permute.xlu0 %4108  ;;  %4241 = vst.msk [vmem:[#allocation4 + $0x30] sm:$0xff] %vm299_vm0, %v4233_v61  ;;  %v9486_v61 = vld [vmem:[#allocation3 + $0x4b1] sm:$0xff] }
 0x65b   : > { %4236 = vst.msk [vmem:[#allocation4 + $0x8] sm:$0xff] %vm299_vm0, %v4228_v11  ;;  %6902 = vmatmul.msk.f32.gmra.mxu2 %vm991_vm11, %v4133_v4  ;;  %v9491_v11 = vld [vmem:[#allocation3 + $0x511] sm:$0xff] }
 0x65c   : > { %4284 = vst.msk [vmem:[#allocation4 + $0x8] sm:$0xff] %vm617_vm3, %v4262_v20  ;;  %4465 = vrot.lane.b32.xlu1 %v9403_v8, %s7051_s17  ;;  %v3717_v3 = vpop.f32.mrf.mxu0 }
 0x65d   : > { %4128 = vst.msk [vmem:[#allocation4 + $0x20] sm:$0xff] %vm961_vm10, %v4109_v10  ;;  %v3718_v40 = vadd.f32 %v9292_v42, %v3717_v3  ;;  %v9497_v10 = vld [vmem:[#allocation3 + $0x521] sm:$0xff] }
 0x65e   : > { %v4111_v17 = vpop.permute.xlu1 %4110 }
 0x65f   : > { %6899 = vst.msk [vmem:[%s8739_s23 + $0xb0] sm:$0xff] %vm2733_vm12, %v3718_v40  ;;  %4461 = vrot.lane.b32.xlu2 %v9411_v52, %s7051_s17  ;;  %v4134_v39 = vld [vmem:[#allocation4 + $0x10] sm:$0xff]  ;;  %v9505_v40 = vld [vmem:[#allocation3 + $0x541] sm:$0xff] }
 0x660   : > { %4129 = vst.msk [vmem:[#allocation4 + $0x28] sm:$0xff] %vm961_vm10, %v4111_v17  ;;  %4501 = vrot.lane.b32.xlu0 %v9148_v36, %s7052_s18 }
 0x661   : > { %v4268_v44 = vpop.permute.xlu2 %4267  ;;  %4237 = vst.msk [vmem:[#allocation4 + $0x10] sm:$0xff] %vm299_vm0, %v4229_v46  ;;  %v9511_v46 = vld [vmem:[#allocation3 + $0x551] sm:$0xff] }
 0x662   : > { %v4115_v37 = vpop.permute.xlu0 %4114 }
 0x663   : > { %4131 = vst.msk [vmem:[#allocation4 + $0x38] sm:$0xff] %vm961_vm10, %v4115_v37  ;;  %6903 = vmatmul.msk.f32.gmra.mxu2 %vm991_vm11, %v4134_v39  ;;  %v9515_v37 = vld [vmem:[#allocation3 + $0x531] sm:$0xff] }
 0x664   : > { %v4136_v45 = vld [vmem:[#allocation4 + $0x20] sm:$0xff]  ;;  %4503 = vrot.lane.b32.xlu1 %v9166_v32, %s7052_s18  ;;  %v3720_v58 = vpop.f32.mrf.mxu0 }
 0x665   : > { %4239 = vst.msk [vmem:[#allocation4 + $0x20] sm:$0xff] %vm299_vm0, %v4231_v54  ;;  %v3721_v1 = vadd.f32 %v9292_v42, %v3720_v58  ;;  %v4232_v32 = vld [vmem:[#allocation3 + $0x61] sm:$0xff] }
 0x666   : > { %4287 = vst.msk [vmem:[#allocation4 + $0x20] sm:$0xff] %vm617_vm3, %v4268_v44  ;;  %v4260_v36 = vpop.permute.xlu1 %4259  ;;  %v9526_v58 = vld [vmem:[#allocation3 + $0x581] sm:$0xff] }
 0x667   : > { %6900 = vst.msk [vmem:[%s8739_s23 + $0xb8] sm:$0xff] %vm2733_vm12, %v3721_v1  ;;  %4499 = vrot.lane.b32.xlu2 %v9142_v59, %s7052_s18  ;;  %v4137_v35 = vld [vmem:[#allocation4 + $0x28] sm:$0xff] }
 0x668   : > { %4283 = vst.msk [vmem:[#allocation4] sm:$0xff] %vm617_vm3, %v4260_v36  ;;  %4507 = vrot.lane.b32.xlu0 %v9162_v60, %s7052_s18  ;;  %v9530_v36 = vld [vmem:[#allocation3 + $0x561] sm:$0xff] }
 0x669   : > { %v4274_v47 = vpop.permute.xlu2 %4273  ;;  %4240 = vst.msk [vmem:[#allocation4 + $0x28] sm:$0xff] %vm299_vm0, %v4232_v32 }
 0x66a   : > { %v4139_v42 = vld [vmem:[#allocation4 + $0x38] sm:$0xff]  ;;  %v4264_v7 = vpop.permute.xlu0 %4263 }
 0x66b   : > { %4242 = vst.msk [vmem:[#allocation4 + $0x38] sm:$0xff] %vm299_vm0, %v4234_v34  ;;  %6904 = vmatmul.msk.f32.gmra.mxu2 %vm991_vm11, %v9378_v22  ;;  %v9464_v22 = vld [vmem:[#allocation3 + $0x4a1] sm:$0xff] }
 0x66c   : > { %4290 = vst.msk [vmem:[#allocation4 + $0x38] sm:$0xff] %vm617_vm3, %v4274_v47  ;;  %4509 = vrot.lane.b32.xlu1 %v9182_v26, %s7052_s18 }
 0x66d   : > { %4285 = vst.msk [vmem:[#allocation4 + $0x10] sm:$0xff] %vm617_vm3, %v4264_v7 }
 0x66e   : > { %v4266_v59 = vpop.permute.xlu1 %4265 }
 0x66f   : > { %4286 = vst.msk [vmem:[#allocation4 + $0x18] sm:$0xff] %vm617_vm3, %v4266_v59  ;;  %4505 = vrot.lane.b32.xlu2 %v9156_v30, %s7052_s18  ;;  %v9458_v30 = vld [vmem:[#allocation3 + $0x491] sm:$0xff]  ;;  %v4789_v59 = vld [vmem:[#allocation3 + $0x42] sm:$0xff] }
 0x670   : > { %4513 = vrot.lane.b32.xlu0 %v9178_v38, %s7052_s18 }
 0x671   : > { %v4312_v60 = vpop.permute.xlu2 %4311 }
 0x672   : > { %4333 = vst.msk [vmem:[#allocation4 + $0x10] sm:$0xff] %vm666_vm4, %v4312_v60  ;;  %v4270_v18 = vpop.permute.xlu0 %4269 }
 0x673   : > { %4288 = vst.msk [vmem:[#allocation4 + $0x28] sm:$0xff] %vm617_vm3, %v4270_v18  ;;  %6905 = vmatmul.msk.f32.gmra.mxu2 %vm991_vm11, %v4136_v45  ;;  %v4787_v18 = vld [vmem:[#allocation3 + $0x22] sm:$0xff] }
 0x674   : > { %4547 = vrot.lane.b32.xlu1 %v9450_v29, %s7053_s19 }
 0x676   : > { %v4272_v26 = vpop.permute.xlu1 %4271 }
 0x677   : > { %4289 = vst.msk [vmem:[#allocation4 + $0x30] sm:$0xff] %vm617_vm3, %v4272_v26  ;;  %4511 = vrot.lane.b32.xlu2 %v9172_v0, %s7052_s18  ;;  %v9469_v0 = vld [vmem:[#allocation3 + $0x481] sm:$0xff] }
 0x678   : > { %4551 = vrot.lane.b32.xlu0 %v9458_v30, %s7053_s19  ;;  %v4791_v26 = vld [vmem:[#allocation3 + $0x62] sm:$0xff] }
 0x679   : > { %v4318_v38 = vpop.permute.xlu2 %4317 }
 0x67a   : > { %4336 = vst.msk [vmem:[#allocation4 + $0x28] sm:$0xff] %vm666_vm4, %v4318_v38  ;;  %v4308_v5 = vpop.permute.xlu0 %4307 }
 0x67b   : > { %4331 = vst.msk [vmem:[#allocation4] sm:$0xff] %vm666_vm4, %v4308_v5  ;;  %6906 = vmatmul.msk.f32.gmra.mxu2 %vm991_vm11, %v4137_v35  ;;  %v4792_v5 = vld [vmem:[#allocation3 + $0x72] sm:$0xff] }
 0x67c   : > { %4553 = vrot.lane.b32.xlu1 %v9464_v22, %s7053_s19 }
 0x67e   : > { %v4310_v41 = vpop.permute.xlu1 %4309 }
 0x67f   : > { %4332 = vst.msk [vmem:[#allocation4 + $0x8] sm:$0xff] %vm666_vm4, %v4310_v41  ;;  %4549 = vrot.lane.b32.xlu2 %v9469_v0, %s7053_s19 }
 0x680   : > { %4557 = vrot.lane.b32.xlu0 %v9474_v16, %s7053_s19 }
 0x681   : > { %v4356_v63 = vpop.permute.xlu2 %4355 }
 0x682   : > { %4379 = vst.msk [vmem:[#allocation4] sm:$0xff] %vm715_vm5, %v4356_v63  ;;  %v4314_v28 = vpop.permute.xlu0 %4313  ;;  %v4790_v63 = vld [vmem:[#allocation3 + $0x52] sm:$0xff] }
 0x683   : > { %4334 = vst.msk [vmem:[#allocation4 + $0x18] sm:$0xff] %vm666_vm4, %v4314_v28  ;;  %6907 = vmatmul.msk.f32.gmra.mxu2 %vm991_vm11, %v9399_v48 }
 0x684   : > { %4559 = vrot.lane.b32.xlu1 %v9480_v55, %s7053_s19 }
 0x686   : > { %v4316_v20 = vpop.permute.xlu1 %4315 }
 0x687   : > { %4335 = vst.msk [vmem:[#allocation4 + $0x20] sm:$0xff] %vm666_vm4, %v4316_v20  ;;  %4555 = vrot.lane.b32.xlu2 %v9486_v61, %s7053_s19 }
 0x688   : > { %4595 = vrot.lane.b32.xlu0 %v9491_v11, %s7054_s20 }
 0x689   : > { %v4362_v4 = vpop.permute.xlu2 %4361 }
 0x68a   : > { %4382 = vst.msk [vmem:[#allocation4 + $0x18] sm:$0xff] %vm715_vm5, %v4362_v4  ;;  %v4320_v48 = vpop.permute.xlu0 %4319  ;;  %v9579_v4 = vld [vmem:[%s10711_s6] ss:$0 sm:$0xff] }
 0x68b   : > { %4337 = vst.msk [vmem:[#allocation4 + $0x30] sm:$0xff] %vm666_vm4, %v4320_v48  ;;  %6908 = vmatmul.msk.f32.gmra.mxu2 %vm991_vm11, %v4139_v42 }
 0x68c   : > { %4597 = vrot.lane.b32.xlu1 %v9497_v10, %s7054_s20 }
 0x68e   : > { %v4322_v3 = vpop.permute.xlu1 %4321 }
 0x68f   : > { %4338 = vst.msk [vmem:[#allocation4 + $0x38] sm:$0xff] %vm666_vm4, %v4322_v3  ;;  %4561 = vrot.lane.b32.xlu2 %v9208_v31, %s7053_s19  ;;  %v9520_v31 = vld [vmem:[#allocation3 + $0x571] sm:$0xff] }
 0x690   : > { %4601 = vrot.lane.b32.xlu0 %v9505_v40, %s7054_s20 }
 0x691   : > { %v4368_v17 = vpop.permute.xlu2 %4367 }
 0x692   : > { %4385 = vst.msk [vmem:[#allocation4 + $0x30] sm:$0xff] %vm715_vm5, %v4368_v17  ;;  %v4358_v39 = vpop.permute.xlu0 %4357 }
 0x693   : > { %4380 = vst.msk [vmem:[#allocation4 + $0x8] sm:$0xff] %vm715_vm5, %v4358_v39  ;;  %v4793_v39 = vld [vmem:[#allocation3 + $0x82] sm:$0xff] }
 0x694   : > { %4603 = vrot.lane.b32.xlu1 %v9511_v46, %s7054_s20 }
 0x696   : > { %v4360_v44 = vpop.permute.xlu1 %4359 }
 0x697   : > { %4381 = vst.msk [vmem:[#allocation4 + $0x10] sm:$0xff] %vm715_vm5, %v4360_v44  ;;  %4599 = vrot.lane.b32.xlu2 %v9515_v37, %s7054_s20  ;;  %v4643_v44 = vld [vmem:[%s10710_s5 + $0x40] sm:$0xff] }
 0x698   : > { %4607 = vrot.lane.b32.xlu0 %v9520_v31, %s7054_s20  ;;  %4679 = vmatpush.msra.mxu3 %v4643_v44 }
 0x699   : > { %v4406_v54 = vpop.permute.xlu2 %4405  ;;  %5174 = vmatpush.msrb.mxu0 %v4643_v44 }
 0x69a   : > { %4428 = vst.msk [vmem:[#allocation4 + $0x8] sm:$0xff] %vm764_vm6, %v4406_v54  ;;  %v4364_v45 = vpop.permute.xlu0 %4363  ;;  %v4642_v54 = vld [vmem:[%s10710_s5 + $0x38] sm:$0xff] }
 0x69b   : > { %4383 = vst.msk [vmem:[#allocation4 + $0x20] sm:$0xff] %vm715_vm5, %v4364_v45  ;;  %4680 = vmatpush.msra.mxu3 %v4642_v54  ;;  %5175 = vmatpush.msrb.mxu0 %v4642_v54  ;;  %v4641_v45 = vld [vmem:[%s10710_s5 + $0x30] sm:$0xff] }
 0x69c   : > { %4609 = vrot.lane.b32.xlu1 %v9526_v58, %s7054_s20 }
 0x69d   : > { %4681 = vmatpush.msra.mxu3 %v4641_v45  ;;  %5176 = vmatpush.msrb.mxu0 %v4641_v45  ;;  %v4934_v45 = vld [vmem:[#allocation3 + $0x232] sm:$0xff] }
 0x69e   : > { %v4366_v1 = vpop.permute.xlu1 %4365 }
 0x69f   : > { %4384 = vst.msk [vmem:[#allocation4 + $0x28] sm:$0xff] %vm715_vm5, %v4366_v1  ;;  %4605 = vrot.lane.b32.xlu2 %v9530_v36, %s7054_s20  ;;  %v4640_v1 = vld [vmem:[%s10710_s5 + $0x28] sm:$0xff] }
 0x6a0   : > { %4756 = vrot.lane.b32.xlu0 %v9241_v57, %s7047_s26  ;;  %4682 = vmatpush.msra.mxu3 %v4640_v1 }
 0x6a1   : > { %v4412_v35 = vpop.permute.xlu2 %4411  ;;  %5177 = vmatpush.msrb.mxu0 %v4640_v1 }
 0x6a2   : > { %4431 = vst.msk [vmem:[#allocation4 + $0x20] sm:$0xff] %vm764_vm6, %v4412_v35  ;;  %v4370_v32 = vpop.permute.xlu0 %4369 }
 0x6a3   : > { %4386 = vst.msk [vmem:[#allocation4 + $0x38] sm:$0xff] %vm715_vm5, %v4370_v32 }
 0x6a4   : > { %4758 = vrot.lane.b32.xlu1 %v9258_v33, %s7047_s26  ;;  %v4786_v33 = vld [vmem:[#allocation3 + $0x12] sm:$0xff] }
 0x6a6   : > { %v4404_v47 = vpop.permute.xlu1 %4403 }
 0x6a7   : > { %4427 = vst.msk [vmem:[#allocation4] sm:$0xff] %vm764_vm6, %v4404_v47  ;;  %4754 = vrot.lane.b32.xlu2 %v9235_v2, %s7047_s26 }
 0x6a8   : > { %4762 = vrot.lane.b32.xlu0 %v9254_v21, %s7047_s26 }
 0x6a9   : > { %v4418_v34 = vpop.permute.xlu2 %4417 }
 0x6aa   : > { %4434 = vst.msk [vmem:[#allocation4 + $0x38] sm:$0xff] %vm764_vm6, %v4418_v34  ;;  %v4408_v57 = vpop.permute.xlu0 %4407 }
 0x6ab   : > { %4429 = vst.msk [vmem:[#allocation4 + $0x10] sm:$0xff] %vm764_vm6, %v4408_v57 }
 0x6ac   : > { %4764 = vrot.lane.b32.xlu1 %v9273_v19, %s7047_s26  ;;  %v4788_v19 = vld [vmem:[#allocation3 + $0x32] sm:$0xff] }
 0x6ae   : > { %v4410_v42 = vpop.permute.xlu1 %4409 }
 0x6af   : > { %4430 = vst.msk [vmem:[#allocation4 + $0x18] sm:$0xff] %vm764_vm6, %v4410_v42  ;;  %4760 = vrot.lane.b32.xlu2 %v9248_v14, %s7047_s26  ;;  %v4636_v42 = vld [vmem:[%s10710_s5 + $0x8] sm:$0xff] }
 0x6b0   : > { %4768 = vrot.lane.b32.xlu0 %v9269_v24, %s7047_s26 }
 0x6b1   : > { %v4456_v2 = vpop.permute.xlu2 %4455 }
 0x6b2   : > { %4477 = vst.msk [vmem:[#allocation4 + $0x10] sm:$0xff] %vm813_vm7, %v4456_v2  ;;  %v4414_v21 = vpop.permute.xlu0 %4413 }
 0x6b3   : > { %4432 = vst.msk [vmem:[#allocation4 + $0x28] sm:$0xff] %vm764_vm6, %v4414_v21 }
 0x6b4   : > { %4802 = vrot.lane.b32.xlu1 %v4786_v33, %s7048_s14 }
 0x6b6   : > { %v4416_v7 = vpop.permute.xlu1 %4415 }
 0x6b7   : > { %4433 = vst.msk [vmem:[#allocation4 + $0x30] sm:$0xff] %vm764_vm6, %v4416_v7  ;;  %4766 = vrot.lane.b32.xlu2 %v9263_v53, %s7047_s26 }
 0x6b8   : > { %4806 = vrot.lane.b32.xlu0 %v4788_v19, %s7048_s14 }
 0x6b9   : > { %v4462_v14 = vpop.permute.xlu2 %4461 }
 0x6ba   : > { %4480 = vst.msk [vmem:[#allocation4 + $0x28] sm:$0xff] %vm813_vm7, %v4462_v14  ;;  %v4452_v24 = vpop.permute.xlu0 %4451 }
 0x6bb   : > { %4475 = vst.msk [vmem:[#allocation4] sm:$0xff] %vm813_vm7, %v4452_v24 }
 0x6bc   : > { %4808 = vrot.lane.b32.xlu1 %v4789_v59, %s7048_s14 }
 0x6be   : > { %v4454_v60 = vpop.permute.xlu1 %4453 }
 0x6bf   : > { %4476 = vst.msk [vmem:[#allocation4 + $0x8] sm:$0xff] %vm813_vm7, %v4454_v60  ;;  %4804 = vrot.lane.b32.xlu2 %v4787_v18, %s7048_s14 }
 0x6c0   : > { %4812 = vrot.lane.b32.xlu0 %v4791_v26, %s7048_s14 }
 0x6c1   : > { %v4500_v53 = vpop.permute.xlu2 %4499 }
 0x6c2   : > { %4523 = vst.msk [vmem:[#allocation4] sm:$0xff] %vm863_vm8, %v4500_v53  ;;  %v4458_v38 = vpop.permute.xlu0 %4457 }
 0x6c3   : > { %4478 = vst.msk [vmem:[#allocation4 + $0x18] sm:$0xff] %vm813_vm7, %v4458_v38  ;;  %v4933_v38 = vld [vmem:[#allocation3 + $0x222] sm:$0xff] }
 0x6c4   : > { %4814 = vrot.lane.b32.xlu1 %v4792_v5, %s7048_s14  ;;  %v9677_v5 = vld [vmem:[#allocation3 + $0xd1] sm:$0xff] }
 0x6c6   : > { %v4460_v41 = vpop.permute.xlu1 %4459 }
 0x6c7   : > { %4479 = vst.msk [vmem:[#allocation4 + $0x20] sm:$0xff] %vm813_vm7, %v4460_v41  ;;  %4810 = vrot.lane.b32.xlu2 %v4790_v63, %s7048_s14  ;;  %v4931_v63 = vld [vmem:[#allocation3 + $0x202] sm:$0xff] }
 0x6c8   : > { %4850 = vrot.lane.b32.xlu0 %v9308_v9, %s7049_s15 }
 0x6c9   : > { %v4506_v28 = vpop.permute.xlu2 %4505 }
 0x6ca   : > { %4526 = vst.msk [vmem:[#allocation4 + $0x18] sm:$0xff] %vm863_vm8, %v4506_v28  ;;  %v4464_v20 = vpop.permute.xlu0 %4463 }
 0x6cb   : > { %4481 = vst.msk [vmem:[#allocation4 + $0x30] sm:$0xff] %vm813_vm7, %v4464_v20  ;;  %v4935_v20 = vld [vmem:[#allocation3 + $0x242] sm:$0xff] }
 0x6cc   : > { %4852 = vrot.lane.b32.xlu1 %v9329_v23, %s7049_s15 }
 0x6cd   : > { %v4194_v48 = vpop.f32.mrf.mxu2 }
 0x6ce   : > { %v4466_v3 = vpop.permute.xlu1 %4465  ;;  %v4195_v17 = vadd.f32 %v9579_v4, %v4194_v48 }
 0x6cf   : > { %4482 = vst.msk [vmem:[#allocation4 + $0x38] sm:$0xff] %vm813_vm7, %v4466_v3  ;;  %4816 = vrot.lane.b32.xlu2 %v4793_v39, %s7048_s14  ;;  %v4722_v39 = vld [vmem:[#allocation3 + $0xb1] sm:$0xff] }
 0x6d0   : > { %6909 = vst.msk [vmem:[%s8739_s23 + $0xc0] sm:$0xff] %vm2733_vm12, %v4195_v17  ;;  %4856 = vrot.lane.b32.xlu0 %v9324_v12, %s7049_s15  ;;  %v9690_v17 = vld [vmem:[#allocation3 + $0x101] sm:$0xff] }
 0x6d1   : > { %v4512_v9 = vpop.permute.xlu2 %4511 }
 0x6d2   : > { %4529 = vst.msk [vmem:[#allocation4 + $0x30] sm:$0xff] %vm863_vm8, %v4512_v9  ;;  %v4502_v23 = vpop.permute.xlu0 %4501 }
 0x6d3   : > { %4524 = vst.msk [vmem:[#allocation4 + $0x8] sm:$0xff] %vm863_vm8, %v4502_v23  ;;  %v4936_v23 = vld [vmem:[#allocation3 + $0x252] sm:$0xff] }
 0x6d4   : > { %4858 = vrot.lane.b32.xlu1 %v9347_v51, %s7049_s15 }
 0x6d6   : > { %v4504_v12 = vpop.permute.xlu1 %4503 }
 0x6d7   : > { %4525 = vst.msk [vmem:[#allocation4 + $0x10] sm:$0xff] %vm863_vm8, %v4504_v12  ;;  %4854 = vrot.lane.b32.xlu2 %v9317_v13, %s7049_s15  ;;  %v4639_v13 = vld [vmem:[%s10710_s5 + $0x20] sm:$0xff] }
 0x6d8   : > { %4862 = vrot.lane.b32.xlu0 %v9342_v25, %s7049_s15  ;;  %v4638_v25 = vld [vmem:[%s10710_s5 + $0x18] sm:$0xff]  ;;  %4683 = vmatpush.msra.mxu3 %v4639_v13 }
 0x6d9   : > { %v4550_v51 = vpop.permute.xlu2 %4549  ;;  %5178 = vmatpush.msrb.mxu0 %v4639_v13 }
 0x6da   : > { %4572 = vst.msk [vmem:[#allocation4 + $0x8] sm:$0xff] %vm912_vm9, %v4550_v51  ;;  %v4508_v35 = vpop.permute.xlu0 %4507  ;;  %4684 = vmatpush.msra.mxu3 %v4638_v25 }
 0x6db   : > { %4527 = vst.msk [vmem:[#allocation4 + $0x20] sm:$0xff] %vm863_vm8, %v4508_v35  ;;  %5179 = vmatpush.msrb.mxu0 %v4638_v25  ;;  %v9702_v35 = vld [vmem:[#allocation3 + $0xc1] sm:$0xff] }
 0x6dc   : > { %4864 = vrot.lane.b32.xlu1 %v9367_v62, %s7049_s15  ;;  %v4637_v62 = vld [vmem:[%s10710_s5 + $0x10] sm:$0xff] }
 0x6dd   : > { %4685 = vmatpush.msra.mxu3 %v4637_v62  ;;  %5180 = vmatpush.msrb.mxu0 %v4637_v62  ;;  %v4937_v62 = vld [vmem:[#allocation3 + $0x262] sm:$0xff] }
 0x6de   : > { %v4510_v32 = vpop.permute.xlu1 %4509  ;;  %v4197_v47 = vpop.f32.mrf.mxu2 }
 0x6df   : > { %4528 = vst.msk [vmem:[#allocation4 + $0x28] sm:$0xff] %vm863_vm8, %v4510_v32  ;;  %v4198_v34 = vadd.f32 %v9579_v4, %v4197_v47  ;;  %4860 = vrot.lane.b32.xlu2 %v9335_v49, %s7049_s15  ;;  %4686 = vmatpush.msra.mxu3 %v4636_v42  ;;  %v9712_v32 = vld [vmem:[#allocation3 + $0xe1] sm:$0xff] }
 0x6e0   : > { %4900 = vrot.lane.b32.xlu0 %v9361_v15, %s7050_s16  ;;  %v4635_v15 = vld [vmem:[%s10710_s5] sm:$0xff]  ;;  %5181 = vmatpush.msrb.mxu0 %v4636_v42 }
 0x6e1   : > { %6910 = vst.msk [vmem:[%s8739_s23 + $0xc8] sm:$0xff] %vm2733_vm12, %v4198_v34  ;;  %v4556_v57 = vpop.permute.xlu2 %4555  ;;  %4687 = vmatpush.msra.mxu3 %v4635_v15 }
 0x6e2   : > { %4575 = vst.msk [vmem:[#allocation4 + $0x20] sm:$0xff] %vm912_vm9, %v4556_v57  ;;  %v4514_v49 = vpop.permute.xlu0 %4513  ;;  %5182 = vmatpush.msrb.mxu0 %v4635_v15  ;;  %v9730_v15 = vld [vmem:[#allocation3 + $0x111] sm:$0xff] }
 0x6e3   : > { %4530 = vst.msk [vmem:[#allocation4 + $0x38] sm:$0xff] %vm863_vm8, %v4514_v49  ;;  %v9722_v49 = vld [vmem:[#allocation3 + $0xf1] sm:$0xff] }
 0x6e4   : > { %4902 = vrot.lane.b32.xlu1 %v9388_v50, %s7050_s16 }
 0x6e6   : > { %v4548_v2 = vpop.permute.xlu1 %4547  ;;  %v4200_v21 = vpop.f32.mrf.mxu2 }
 0x6e7   : > { %4571 = vst.msk [vmem:[#allocation4] sm:$0xff] %vm912_vm9, %v4548_v2  ;;  %v4201_v33 = vadd.f32 %v9579_v4, %v4200_v21  ;;  %4898 = vrot.lane.b32.xlu2 %v9353_v43, %s7050_s16 }
 0x6e8   : > { %4906 = vrot.lane.b32.xlu0 %v9382_v27, %s7050_s16 }
 0x6e9   : > { %6911 = vst.msk [vmem:[%s8739_s23 + $0xd0] sm:$0xff] %vm2733_vm12, %v4201_v33  ;;  %v4562_v7 = vpop.permute.xlu2 %4561  ;;  %v9743_v33 = vld [vmem:[#allocation3 + $0x121] sm:$0xff] }
 0x6ea   : > { %4578 = vst.msk [vmem:[#allocation4 + $0x38] sm:$0xff] %vm912_vm9, %v4562_v7  ;;  %v4552_v50 = vpop.permute.xlu0 %4551 }
 0x6eb   : > { %4573 = vst.msk [vmem:[#allocation4 + $0x10] sm:$0xff] %vm912_vm9, %v4552_v50  ;;  %v9751_v50 = vld [vmem:[#allocation3 + $0x4e1] sm:$0xff] }
 0x6ec   : > { %4908 = vrot.lane.b32.xlu1 %v9411_v52, %s7050_s16  ;;  %v4930_v52 = vld [vmem:[#allocation3 + $0x1f2] sm:$0xff] }
 0x6ee   : > { %v4554_v19 = vpop.permute.xlu1 %4553  ;;  %v4203_v14 = vpop.f32.mrf.mxu2 }
 0x6ef   : > { %4574 = vst.msk [vmem:[#allocation4 + $0x18] sm:$0xff] %vm912_vm9, %v4554_v19  ;;  %v4204_v43 = vadd.f32 %v9579_v4, %v4203_v14  ;;  %4904 = vrot.lane.b32.xlu2 %v9373_v56, %s7050_s16 }
 0x6f0   : > { %4912 = vrot.lane.b32.xlu0 %v9403_v8, %s7050_s16  ;;  %v4932_v8 = vld [vmem:[#allocation3 + $0x212] sm:$0xff] }
 0x6f1   : > { %6912 = vst.msk [vmem:[%s8739_s23 + $0xd8] sm:$0xff] %vm2733_vm12, %v4204_v43  ;;  %v4600_v27 = vpop.permute.xlu2 %4599  ;;  %v5074_v43 = vld [vmem:[#allocation3 + $0x3d2] sm:$0xff] }
 0x6f2   : > { %4621 = vst.msk [vmem:[#allocation4 + $0x10] sm:$0xff] %vm961_vm10, %v4600_v27  ;;  %v4558_v24 = vpop.permute.xlu0 %4557 }
 0x6f3   : > { %4576 = vst.msk [vmem:[#allocation4 + $0x28] sm:$0xff] %vm912_vm9, %v4558_v24  ;;  %v5077_v24 = vld [vmem:[#allocation3 + $0x402] sm:$0xff] }
 0x6f4   : > { %4946 = vrot.lane.b32.xlu1 %v4930_v52, %s7051_s17 }
 0x6f6   : > { %v4560_v59 = vpop.permute.xlu1 %4559  ;;  %v4206_v60 = vpop.f32.mrf.mxu2 }
 0x6f7   : > { %4577 = vst.msk [vmem:[#allocation4 + $0x30] sm:$0xff] %vm912_vm9, %v4560_v59  ;;  %v4207_v56 = vadd.f32 %v9579_v4, %v4206_v60  ;;  %4910 = vrot.lane.b32.xlu2 %v9394_v6, %s7050_s16  ;;  %v5075_v59 = vld [vmem:[#allocation3 + $0x3e2] sm:$0xff] }
 0x6f8   : > { %4950 = vrot.lane.b32.xlu0 %v4932_v8, %s7051_s17  ;;  %v5080_v8 = vld [vmem:[#allocation3 + $0x432] sm:$0xff] }
 0x6f9   : > { %6913 = vst.msk [vmem:[%s8739_s23 + $0xe0] sm:$0xff] %vm2733_vm12, %v4207_v56  ;;  %v4606_v18 = vpop.permute.xlu2 %4605  ;;  %v9673_v26 = vld [vmem:[#allocation4 + $0x10] sm:$0xff] }
 0x6fa   : > { %4624 = vst.msk [vmem:[#allocation4 + $0x28] sm:$0xff] %vm961_vm10, %v4606_v18  ;;  %v4596_v53 = vpop.permute.xlu0 %4595 }
 0x6fb   : > { %4619 = vst.msk [vmem:[#allocation4] sm:$0xff] %vm961_vm10, %v4596_v53  ;;  %v5233_v53 = vld [vmem:[#allocation3 + $0x1f1] sm:$0xff] }
 0x6fc   : > { %4952 = vrot.lane.b32.xlu1 %v4933_v38, %s7051_s17  ;;  %4732 = vst.msk [vmem:[#allocation4 + $0x10] sm:$0xff] %vm299_vm0, %v9677_v5 }
 0x6fe   : > { %v4598_v6 = vpop.permute.xlu1 %4597  ;;  %v4209_v41 = vpop.f32.mrf.mxu2 }
 0x6ff   : > { %4620 = vst.msk [vmem:[#allocation4 + $0x8] sm:$0xff] %vm961_vm10, %v4598_v6  ;;  %v4210_v28 = vadd.f32 %v9579_v4, %v4209_v41  ;;  %4948 = vrot.lane.b32.xlu2 %v4931_v63, %s7051_s17  ;;  %v5234_v41 = vld [vmem:[#allocation3 + $0x201] sm:$0xff] }
 0x700   : > { %4956 = vrot.lane.b32.xlu0 %v4935_v20, %s7051_s17  ;;  %v5236_v20 = vld [vmem:[#allocation3 + $0x221] sm:$0xff] }
 0x701   : > { %6914 = vst.msk [vmem:[%s8739_s23 + $0xe8] sm:$0xff] %vm2733_vm12, %v4210_v28  ;;  %v4755_v48 = vpop.permute.xlu2 %4754  ;;  %v9688_v3 = vld [vmem:[#allocation4 + $0x28] sm:$0xff] }
 0x702   : > { %v4627_v9 = vld [vmem:[#allocation4] sm:$0xff]  ;;  %v4602_v44 = vpop.permute.xlu0 %4601  ;;  %4735 = vst.msk [vmem:[#allocation4 + $0x28] sm:$0xff] %vm299_vm0, %v9690_v17 }
 0x703   : > { %4730 = vst.msk [vmem:[#allocation4] sm:$0xff] %vm299_vm0, %v4722_v39  ;;  %6917 = vmatmul.msk.f32.vlgmr.msra.gmra.mxu3 %vm991_vm11, %v4627_v9  ;;  %v5081_v28 = vld [vmem:[#allocation3 + $0x442] sm:$0xff]  ;;  %v5237_v39 = vld [vmem:[#allocation3 + $0x231] sm:$0xff] }
 0x704   : > { %4778 = vst.msk [vmem:[#allocation4] sm:$0xff] %vm617_vm3, %v4755_v48  ;;  %4958 = vrot.lane.b32.xlu1 %v4936_v23, %s7051_s17  ;;  %v5239_v23 = vld [vmem:[#allocation3 + $0x251] sm:$0xff] }
 0x705   : > { %4622 = vst.msk [vmem:[#allocation4 + $0x18] sm:$0xff] %vm961_vm10, %v4602_v44  ;;  %v5235_v44 = vld [vmem:[#allocation3 + $0x211] sm:$0xff] }
 0x706   : > { %v4604_v54 = vpop.permute.xlu1 %4603  ;;  %v4212_v12 = vpop.f32.mrf.mxu2  ;;  %v4628_v51 = vld [vmem:[#allocation4 + $0x8] sm:$0xff] }
 0x707   : > { %4623 = vst.msk [vmem:[#allocation4 + $0x20] sm:$0xff] %vm961_vm10, %v4604_v54  ;;  %v4213_v1 = vadd.f32 %v9579_v4, %v4212_v12  ;;  %4954 = vrot.lane.b32.xlu2 %v4934_v45, %s7051_s17  ;;  %v5240_v45 = vld [vmem:[#allocation3 + $0x261] sm:$0xff] }
 0x708   : > { %4994 = vrot.lane.b32.xlu0 %v9450_v29, %s7052_s18  ;;  %4731 = vst.msk [vmem:[#allocation4 + $0x8] sm:$0xff] %vm299_vm0, %v9702_v35 }
 0x709   : > { %6915 = vst.msk [vmem:[%s8739_s23 + $0xf0] sm:$0xff] %vm2733_vm12, %v4213_v1  ;;  %v4761_v13 = vpop.permute.xlu2 %4760  ;;  %v5238_v1 = vld [vmem:[#allocation3 + $0x241] sm:$0xff] }
 0x70a   : > { %v4608_v25 = vpop.permute.xlu0 %4607 }
 0x70b   : > { %4625 = vst.msk [vmem:[#allocation4 + $0x30] sm:$0xff] %vm961_vm10, %v4608_v25  ;;  %6918 = vmatmul.msk.f32.gmra.mxu3 %vm991_vm11, %v4628_v51 }
 0x70c   : > { %v4630_v47 = vld [vmem:[#allocation4 + $0x18] sm:$0xff]  ;;  %4996 = vrot.lane.b32.xlu1 %v9469_v0, %s7052_s18 }
 0x70d   : > { %4733 = vst.msk [vmem:[#allocation4 + $0x18] sm:$0xff] %vm299_vm0, %v9712_v32 }
 0x70e   : > { %4781 = vst.msk [vmem:[#allocation4 + $0x18] sm:$0xff] %vm617_vm3, %v4761_v13  ;;  %v4610_v29 = vpop.permute.xlu1 %4609  ;;  %v4215_v34 = vpop.f32.mrf.mxu2  ;;  %v4631_v57 = vld [vmem:[#allocation4 + $0x20] sm:$0xff] }
 0x70f   : > { %4626 = vst.msk [vmem:[#allocation4 + $0x38] sm:$0xff] %vm961_vm10, %v4610_v29  ;;  %v4216_v42 = vadd.f32 %v9579_v4, %v4215_v34  ;;  %4960 = vrot.lane.b32.xlu2 %v4937_v62, %s7051_s17  ;;  %v9820_v13 = vld [vmem:[#allocation3 + $0x2a1] sm:$0xff]  ;;  %v9826_v29 = vld [vmem:[#allocation3 + $0x2b1] sm:$0xff] }
 0x710   : > { %5000 = vrot.lane.b32.xlu0 %v9464_v22, %s7052_s18  ;;  %4734 = vst.msk [vmem:[#allocation4 + $0x20] sm:$0xff] %vm299_vm0, %v9722_v49  ;;  %v9830_v62 = vld [vmem:[#allocation3 + $0x291] sm:$0xff] }
 0x711   : > { %6916 = vst.msk [vmem:[%s8739_s23 + $0xf8] sm:$0xff] %vm2733_vm12, %v4216_v42  ;;  %v4767_v0 = vpop.permute.xlu2 %4766 }
 0x712   : > { %v4633_v2 = vld [vmem:[#allocation4 + $0x30] sm:$0xff]  ;;  %v4757_v21 = vpop.permute.xlu0 %4756 }
 0x713   : > { %4736 = vst.msk [vmem:[#allocation4 + $0x30] sm:$0xff] %vm299_vm0, %v9730_v15  ;;  %6919 = vmatmul.msk.f32.gmra.mxu3 %vm991_vm11, %v9673_v26  ;;  %v5078_v26 = vld [vmem:[#allocation3 + $0x412] sm:$0xff] }
 0x714   : > { %4784 = vst.msk [vmem:[#allocation4 + $0x30] sm:$0xff] %vm617_vm3, %v4767_v0  ;;  %5002 = vrot.lane.b32.xlu1 %v9486_v61, %s7052_s18 }
 0x715   : > { %4779 = vst.msk [vmem:[#allocation4 + $0x8] sm:$0xff] %vm617_vm3, %v4757_v21 }
 0x716   : > { %v4759_v22 = vpop.permute.xlu1 %4758  ;;  %v4634_v4 = vld [vmem:[#allocation4 + $0x38] sm:$0xff] }
 0x717   : > { %4780 = vst.msk [vmem:[#allocation4 + $0x10] sm:$0xff] %vm617_vm3, %v4759_v22  ;;  %4998 = vrot.lane.b32.xlu2 %v9458_v30, %s7052_s18  ;;  %v9845_v22 = vld [vmem:[#allocation3 + $0x2c1] sm:$0xff] }
 0x718   : > { %5006 = vrot.lane.b32.xlu0 %v9480_v55, %s7052_s18  ;;  %4737 = vst.msk [vmem:[#allocation4 + $0x38] sm:$0xff] %vm299_vm0, %v9743_v33 }
 0x719   : > { %v4805_v7 = vpop.permute.xlu2 %4804 }
 0x71a   : > { %4827 = vst.msk [vmem:[#allocation4 + $0x8] sm:$0xff] %vm666_vm4, %v4805_v7  ;;  %v4763_v61 = vpop.permute.xlu0 %4762 }
 0x71b   : > { %4782 = vst.msk [vmem:[#allocation4 + $0x20] sm:$0xff] %vm617_vm3, %v4763_v61  ;;  %6920 = vmatmul.msk.f32.gmra.mxu3 %vm991_vm11, %v4630_v47 }
 0x71c   : > { %5008 = vrot.lane.b32.xlu1 %v9751_v50, %s7052_s18 }
 0x71e   : > { %v4765_v30 = vpop.permute.xlu1 %4764 }
 0x71f   : > { %4783 = vst.msk [vmem:[#allocation4 + $0x28] sm:$0xff] %vm617_vm3, %v4765_v30  ;;  %5004 = vrot.lane.b32.xlu2 %v9474_v16, %s7052_s18  ;;  %v5329_v30 = vld [vmem:[#allocation3 + $0x510] sm:$0xff] }
 0x720   : > { %5044 = vrot.lane.b32.xlu0 %v9497_v10, %s7053_s19 }
 0x721   : > { %v4811_v55 = vpop.permute.xlu2 %4810 }
 0x722   : > { %4830 = vst.msk [vmem:[#allocation4 + $0x20] sm:$0xff] %vm666_vm4, %v4811_v55  ;;  %v4769_v19 = vpop.permute.xlu0 %4768 }
 0x723   : > { %4785 = vst.msk [vmem:[#allocation4 + $0x38] sm:$0xff] %vm617_vm3, %v4769_v19  ;;  %6921 = vmatmul.msk.f32.gmra.mxu3 %vm991_vm11, %v4631_v57  ;;  %v9835_v57 = vld [vmem:[#allocation3 + $0x2d1] sm:$0xff] }
 0x724   : > { %5046 = vrot.lane.b32.xlu1 %v9515_v37, %s7053_s19  ;;  %v9857_v19 = vld [vmem:[#allocation3 + $0x2f1] sm:$0xff] }
 0x726   : > { %v4803_v14 = vpop.permute.xlu1 %4802 }
 0x727   : > { %4826 = vst.msk [vmem:[#allocation4] sm:$0xff] %vm666_vm4, %v4803_v14  ;;  %5042 = vrot.lane.b32.xlu2 %v9491_v11, %s7053_s19  ;;  %v5331_v14 = vld [vmem:[#allocation3 + $0x530] sm:$0xff] }
 0x728   : > { %5050 = vrot.lane.b32.xlu0 %v9511_v46, %s7053_s19 }
 0x729   : > { %v4817_v16 = vpop.permute.xlu2 %4816 }
 0x72a   : > { %4833 = vst.msk [vmem:[#allocation4 + $0x38] sm:$0xff] %vm666_vm4, %v4817_v16  ;;  %v4807_v10 = vpop.permute.xlu0 %4806 }
 0x72b   : > { %4828 = vst.msk [vmem:[#allocation4 + $0x10] sm:$0xff] %vm666_vm4, %v4807_v10  ;;  %6922 = vmatmul.msk.f32.gmra.mxu3 %vm991_vm11, %v9688_v3 }
 0x72c   : > { %5052 = vrot.lane.b32.xlu1 %v9530_v36, %s7053_s19 }
 0x72e   : > { %v4809_v37 = vpop.permute.xlu1 %4808 }
 0x72f   : > { %4829 = vst.msk [vmem:[#allocation4 + $0x18] sm:$0xff] %vm666_vm4, %v4809_v37  ;;  %5048 = vrot.lane.b32.xlu2 %v9505_v40, %s7053_s19  ;;  %v5076_v40 = vld [vmem:[#allocation3 + $0x3f2] sm:$0xff]  ;;  %v5332_v37 = vld [vmem:[#allocation3 + $0x540] sm:$0xff] }
 0x730   : > { %5056 = vrot.lane.b32.xlu0 %v9526_v58, %s7053_s19 }
 0x731   : > { %v4855_v11 = vpop.permute.xlu2 %4854 }
 0x732   : > { %4876 = vst.msk [vmem:[#allocation4 + $0x10] sm:$0xff] %vm715_vm5, %v4855_v11  ;;  %v4813_v46 = vpop.permute.xlu0 %4812 }
 0x733   : > { %4831 = vst.msk [vmem:[#allocation4 + $0x28] sm:$0xff] %vm666_vm4, %v4813_v46  ;;  %6923 = vmatmul.msk.f32.gmra.mxu3 %vm991_vm11, %v4633_v2  ;;  %v9841_v2 = vld [vmem:[#allocation3 + $0x2e1] sm:$0xff] }
 0x734   : > { %5090 = vrot.lane.b32.xlu1 %v5074_v43, %s7054_s20  ;;  %v5330_v46 = vld [vmem:[#allocation3 + $0x520] sm:$0xff] }
 0x735   : > { %v5334_v43 = vld [vmem:[#allocation3 + $0x560] sm:$0xff] }
 0x736   : > { %v4815_v36 = vpop.permute.xlu1 %4814 }
 0x737   : > { %4832 = vst.msk [vmem:[#allocation4 + $0x30] sm:$0xff] %vm666_vm4, %v4815_v36  ;;  %5054 = vrot.lane.b32.xlu2 %v9520_v31, %s7053_s19  ;;  %v5079_v31 = vld [vmem:[#allocation3 + $0x422] sm:$0xff] }
 0x738   : > { %5094 = vrot.lane.b32.xlu0 %v5076_v40, %s7054_s20 }
 0x739   : > { %v4861_v58 = vpop.permute.xlu2 %4860 }
 0x73a   : > { %4879 = vst.msk [vmem:[#allocation4 + $0x28] sm:$0xff] %vm715_vm5, %v4861_v58  ;;  %v4851_v27 = vpop.permute.xlu0 %4850  ;;  %v5335_v58 = vld [vmem:[#allocation3 + $0x570] sm:$0xff] }
 0x73b   : > { %4874 = vst.msk [vmem:[#allocation4] sm:$0xff] %vm715_vm5, %v4851_v27  ;;  %6924 = vmatmul.msk.f32.gmra.mxu3 %vm991_vm11, %v4634_v4  ;;  %v9850_v4 = vld [vmem:[#allocation3 + $0x301] sm:$0xff]  ;;  %v9874_v27 = vld [vmem:[%s10711_s6] ss:$0 sm:$0xff] }
 0x73c   : > { %5096 = vrot.lane.b32.xlu1 %v5077_v24, %s7054_s20 }
 0x73e   : > { %v4853_v52 = vpop.permute.xlu1 %4852 }
 0x73f   : > { %4875 = vst.msk [vmem:[#allocation4 + $0x8] sm:$0xff] %vm715_vm5, %v4853_v52  ;;  %5092 = vrot.lane.b32.xlu2 %v5075_v59, %s7054_s20  ;;  %v5333_v59 = vld [vmem:[#allocation3 + $0x550] sm:$0xff] }
 0x740   : > { %5100 = vrot.lane.b32.xlu0 %v5079_v31, %s7054_s20 }
 0x741   : > { %v4899_v60 = vpop.permute.xlu2 %4898 }
 0x742   : > { %4922 = vst.msk [vmem:[#allocation4] sm:$0xff] %vm764_vm6, %v4899_v60  ;;  %v4857_v56 = vpop.permute.xlu0 %4856  ;;  %v9880_v60 = vld [vmem:[#allocation3 + $0x3d1] sm:$0xff] }
 0x743   : > { %4877 = vst.msk [vmem:[#allocation4 + $0x18] sm:$0xff] %vm715_vm5, %v4857_v56 }
 0x744   : > { %5102 = vrot.lane.b32.xlu1 %v5080_v8, %s7054_s20 }
 0x746   : > { %v4859_v18 = vpop.permute.xlu1 %4858 }
 0x747   : > { %4878 = vst.msk [vmem:[#allocation4 + $0x20] sm:$0xff] %vm715_vm5, %v4859_v18  ;;  %5098 = vrot.lane.b32.xlu2 %v5078_v26, %s7054_s20  ;;  %v9888_v18 = vld [vmem:[#allocation3 + $0x3e1] sm:$0xff] }
 0x748   : > { %5249 = vrot.lane.b32.xlu0 %v5233_v53, %s7047_s26 }
 0x749   : > { %v4905_v38 = vpop.permute.xlu2 %4904 }
 0x74a   : > { %4925 = vst.msk [vmem:[#allocation4 + $0x18] sm:$0xff] %vm764_vm6, %v4905_v38  ;;  %v4863_v6 = vpop.permute.xlu0 %4862  ;;  %v5336_v38 = vld [vmem:[#allocation3 + $0x580] sm:$0xff] }
 0x74b   : > { %4880 = vst.msk [vmem:[#allocation4 + $0x30] sm:$0xff] %vm715_vm5, %v4863_v6 }
 0x74c   : > { %5251 = vrot.lane.b32.xlu1 %v5234_v41, %s7047_s26  ;;  %v9895_v41 = vld [vmem:[#allocation3 + $0x401] sm:$0xff] }
 0x74e   : > { %v4865_v63 = vpop.permute.xlu1 %4864 }
 0x74f   : > { %4881 = vst.msk [vmem:[#allocation4 + $0x38] sm:$0xff] %vm715_vm5, %v4865_v63  ;;  %5104 = vrot.lane.b32.xlu2 %v5081_v28, %s7054_s20 }
 0x750   : > { %5255 = vrot.lane.b32.xlu0 %v5236_v20, %s7047_s26  ;;  %v9903_v20 = vld [vmem:[#allocation3 + $0x411] sm:$0xff] }
 0x751   : > { %v4911_v48 = vpop.permute.xlu2 %4910 }
 0x752   : > { %4928 = vst.msk [vmem:[#allocation4 + $0x30] sm:$0xff] %vm764_vm6, %v4911_v48  ;;  %v4901_v3 = vpop.permute.xlu0 %4900 }
 0x753   : > { %4923 = vst.msk [vmem:[#allocation4 + $0x8] sm:$0xff] %vm764_vm6, %v4901_v3 }
 0x754   : > { %5257 = vrot.lane.b32.xlu1 %v5237_v39, %s7047_s26  ;;  %v9907_v39 = vld [vmem:[#allocation3 + $0x3f1] sm:$0xff] }
 0x756   : > { %v4903_v9 = vpop.permute.xlu1 %4902 }
 0x757   : > { %4924 = vst.msk [vmem:[#allocation4 + $0x10] sm:$0xff] %vm764_vm6, %v4903_v9  ;;  %5253 = vrot.lane.b32.xlu2 %v5235_v44, %s7047_s26  ;;  %v9913_v44 = vld [vmem:[#allocation3 + $0x431] sm:$0xff] }
 0x758   : > { %5261 = vrot.lane.b32.xlu0 %v5239_v23, %s7047_s26 }
 0x759   : > { %v4949_v54 = vpop.permute.xlu2 %4948 }
 0x75a   : > { %4971 = vst.msk [vmem:[#allocation4 + $0x8] sm:$0xff] %vm813_vm7, %v4949_v54  ;;  %v4907_v12 = vpop.permute.xlu0 %4906 }
 0x75b   : > { %4926 = vst.msk [vmem:[#allocation4 + $0x20] sm:$0xff] %vm764_vm6, %v4907_v12  ;;  %v9921_v12 = vld [vmem:[#allocation3 + $0x441] sm:$0xff] }
 0x75c   : > { %5263 = vrot.lane.b32.xlu1 %v5240_v45, %s7047_s26 }
 0x75e   : > { %v4909_v51 = vpop.permute.xlu1 %4908 }
 0x75f   : > { %4927 = vst.msk [vmem:[#allocation4 + $0x28] sm:$0xff] %vm764_vm6, %v4909_v51  ;;  %5259 = vrot.lane.b32.xlu2 %v5238_v1, %s7047_s26  ;;  %v9925_v1 = vld [vmem:[#allocation3 + $0x421] sm:$0xff] }
 0x760   : > { %5299 = vrot.lane.b32.xlu0 %v9820_v13, %s7048_s14 }
 0x761   : > { %v4955_v25 = vpop.permute.xlu2 %4954 }
 0x762   : > { %4974 = vst.msk [vmem:[#allocation4 + $0x20] sm:$0xff] %vm813_vm7, %v4955_v25  ;;  %v4913_v47 = vpop.permute.xlu0 %4912 }
 0x763   : > { %4929 = vst.msk [vmem:[#allocation4 + $0x38] sm:$0xff] %vm764_vm6, %v4913_v47  ;;  %v9931_v47 = vld [vmem:[#allocation3 + $0x481] sm:$0xff] }
 0x764   : > { %5301 = vrot.lane.b32.xlu1 %v9826_v29, %s7048_s14 }
 0x766   : > { %v4947_v34 = vpop.permute.xlu1 %4946 }
 0x767   : > { %4970 = vst.msk [vmem:[#allocation4] sm:$0xff] %vm813_vm7, %v4947_v34  ;;  %5297 = vrot.lane.b32.xlu2 %v9830_v62, %s7048_s14 }
 0x768   : > { %5305 = vrot.lane.b32.xlu0 %v9835_v57, %s7048_s14 }
 0x769   : > { %v4961_v42 = vpop.permute.xlu2 %4960 }
 0x76a   : > { %4977 = vst.msk [vmem:[#allocation4 + $0x38] sm:$0xff] %vm813_vm7, %v4961_v42  ;;  %v4951_v0 = vpop.permute.xlu0 %4950 }
 0x76b   : > { %4972 = vst.msk [vmem:[#allocation4 + $0x10] sm:$0xff] %vm813_vm7, %v4951_v0 }
 0x76c   : > { %5307 = vrot.lane.b32.xlu1 %v9841_v2, %s7048_s14 }
 0x76e   : > { %v4953_v21 = vpop.permute.xlu1 %4952 }
 0x76f   : > { %4973 = vst.msk [vmem:[#allocation4 + $0x18] sm:$0xff] %vm813_vm7, %v4953_v21  ;;  %5303 = vrot.lane.b32.xlu2 %v9845_v22, %s7048_s14  ;;  %v9939_v21 = vld [vmem:[#allocation3 + $0x491] sm:$0xff] }
 0x770   : > { %5311 = vrot.lane.b32.xlu0 %v9850_v4, %s7048_s14 }
 0x771   : > { %v4999_v7 = vpop.permute.xlu2 %4998 }
 0x772   : > { %5020 = vst.msk [vmem:[#allocation4 + $0x10] sm:$0xff] %vm863_vm8, %v4999_v7  ;;  %v4957_v61 = vpop.permute.xlu0 %4956  ;;  %v5218_v7 = vld [vmem:[#allocation3 + $0x340] sm:$0xff] }
 0x773   : > { %4975 = vst.msk [vmem:[#allocation4 + $0x28] sm:$0xff] %vm813_vm7, %v4957_v61 }
 0x774   : > { %5345 = vrot.lane.b32.xlu1 %v5329_v30, %s7049_s15 }
 0x776   : > { %v4959_v55 = vpop.permute.xlu1 %4958 }
 0x777   : > { %4976 = vst.msk [vmem:[#allocation4 + $0x30] sm:$0xff] %vm813_vm7, %v4959_v55  ;;  %5309 = vrot.lane.b32.xlu2 %v9857_v19, %s7048_s14  ;;  %v9944_v55 = vld [vmem:[#allocation3 + $0x471] sm:$0xff] }
 0x778   : > { %5349 = vrot.lane.b32.xlu0 %v5331_v14, %s7049_s15 }
 0x779   : > { %v5005_v16 = vpop.permute.xlu2 %5004 }
 0x77a   : > { %5023 = vst.msk [vmem:[#allocation4 + $0x28] sm:$0xff] %vm863_vm8, %v5005_v16  ;;  %v4995_v10 = vpop.permute.xlu0 %4994  ;;  %v9950_v16 = vld [vmem:[#allocation3 + $0x4b1] sm:$0xff] }
 0x77b   : > { %5018 = vst.msk [vmem:[#allocation4] sm:$0xff] %vm863_vm8, %v4995_v10 }
 0x77c   : > { %5351 = vrot.lane.b32.xlu1 %v5332_v37, %s7049_s15 }
 0x77e   : > { %v4997_v11 = vpop.permute.xlu1 %4996 }
 0x77f   : > { %5019 = vst.msk [vmem:[#allocation4 + $0x8] sm:$0xff] %vm863_vm8, %v4997_v11  ;;  %5347 = vrot.lane.b32.xlu2 %v5330_v46, %s7049_s15  ;;  %v9960_v46 = vld [vmem:[#allocation3 + $0x4c1] sm:$0xff] }
 0x780   : > { %5355 = vrot.lane.b32.xlu0 %v5334_v43, %s7049_s15  ;;  %v5221_v43 = vld [vmem:[#allocation3 + $0x370] sm:$0xff] }
 0x781   : > { %v5043_v36 = vpop.permute.xlu2 %5042 }
 0x782   : > { %5066 = vst.msk [vmem:[#allocation4] sm:$0xff] %vm912_vm9, %v5043_v36  ;;  %v5001_v40 = vpop.permute.xlu0 %5000 }
 0x783   : > { %5021 = vst.msk [vmem:[#allocation4 + $0x18] sm:$0xff] %vm863_vm8, %v5001_v40 }
 0x784   : > { %5357 = vrot.lane.b32.xlu1 %v5335_v58, %s7049_s15 }
 0x786   : > { %v5003_v24 = vpop.permute.xlu1 %5002  ;;  %v4689_v52 = vpop.f32.mrf.mxu3 }
 0x787   : > { %5022 = vst.msk [vmem:[#allocation4 + $0x20] sm:$0xff] %vm863_vm8, %v5003_v24  ;;  %v4690_v31 = vadd.f32 %v9874_v27, %v4689_v52  ;;  %5353 = vrot.lane.b32.xlu2 %v5333_v59, %s7049_s15  ;;  %v9965_v24 = vld [vmem:[#allocation3 + $0x4a1] sm:$0xff]  ;;  %v5217_v59 = vld [vmem:[#allocation3 + $0x330] sm:$0xff] }
 0x788   : > { %5393 = vrot.lane.b32.xlu0 %v9880_v60, %s7050_s16 }
 0x789   : > { %6925 = vst.msk [vmem:[%s8739_s23 + $0x100] sm:$0xff] %vm2733_vm12, %v4690_v31  ;;  %v5049_v56 = vpop.permute.xlu2 %5048 }
 0x78a   : > { %5069 = vst.msk [vmem:[#allocation4 + $0x18] sm:$0xff] %vm912_vm9, %v5049_v56  ;;  %v5007_v8 = vpop.permute.xlu0 %5006 }
 0x78b   : > { %5024 = vst.msk [vmem:[#allocation4 + $0x30] sm:$0xff] %vm863_vm8, %v5007_v8  ;;  %v5224_v8 = vld [vmem:[#allocation3 + $0x3a0] sm:$0xff] }
 0x78c   : > { %5395 = vrot.lane.b32.xlu1 %v9888_v18, %s7050_s16 }
 0x78e   : > { %v5009_v26 = vpop.permute.xlu1 %5008  ;;  %v4692_v53 = vpop.f32.mrf.mxu3 }
 0x78f   : > { %5025 = vst.msk [vmem:[#allocation4 + $0x38] sm:$0xff] %vm863_vm8, %v5009_v26  ;;  %v4693_v6 = vadd.f32 %v9874_v27, %v4692_v53  ;;  %5359 = vrot.lane.b32.xlu2 %v5336_v38, %s7049_s15  ;;  %v5219_v26 = vld [vmem:[#allocation3 + $0x350] sm:$0xff] }
 0x790   : > { %5399 = vrot.lane.b32.xlu0 %v9895_v41, %s7050_s16 }
 0x791   : > { %6926 = vst.msk [vmem:[%s8739_s23 + $0x108] sm:$0xff] %vm2733_vm12, %v4693_v6  ;;  %v5055_v63 = vpop.permute.xlu2 %5054  ;;  %v5474_v6 = vld [vmem:[#allocation3 + $0x160] sm:$0xff] }
 0x792   : > { %5072 = vst.msk [vmem:[#allocation4 + $0x30] sm:$0xff] %vm912_vm9, %v5055_v63  ;;  %v5045_v28 = vpop.permute.xlu0 %5044 }
 0x793   : > { %5067 = vst.msk [vmem:[#allocation4 + $0x8] sm:$0xff] %vm912_vm9, %v5045_v28  ;;  %v9984_v28 = vld [vmem:[#allocation3 + $0x4d1] sm:$0xff] }
 0x794   : > { %5401 = vrot.lane.b32.xlu1 %v9903_v20, %s7050_s16 }
 0x796   : > { %v5047_v48 = vpop.permute.xlu1 %5046  ;;  %v4695_v3 = vpop.f32.mrf.mxu3 }
 0x797   : > { %5068 = vst.msk [vmem:[#allocation4 + $0x10] sm:$0xff] %vm912_vm9, %v5047_v48  ;;  %v4696_v9 = vadd.f32 %v9874_v27, %v4695_v3  ;;  %5397 = vrot.lane.b32.xlu2 %v9907_v39, %s7050_s16 }
 0x798   : > { %5405 = vrot.lane.b32.xlu0 %v9913_v44, %s7050_s16 }
 0x799   : > { %6927 = vst.msk [vmem:[%s8739_s23 + $0x110] sm:$0xff] %vm2733_vm12, %v4696_v9  ;;  %v5093_v23 = vpop.permute.xlu2 %5092  ;;  %v5476_v9 = vld [vmem:[#allocation3 + $0x180] sm:$0xff] }
 0x79a   : > { %5115 = vst.msk [vmem:[#allocation4 + $0x8] sm:$0xff] %vm961_vm10, %v5093_v23  ;;  %v5051_v54 = vpop.permute.xlu0 %5050  ;;  %v5220_v23 = vld [vmem:[#allocation3 + $0x360] sm:$0xff] }
 0x79b   : > { %5070 = vst.msk [vmem:[#allocation4 + $0x20] sm:$0xff] %vm912_vm9, %v5051_v54 }
 0x79c   : > { %5407 = vrot.lane.b32.xlu1 %v9921_v12, %s7050_s16 }
 0x79e   : > { %v5053_v45 = vpop.permute.xlu1 %5052  ;;  %v4698_v51 = vpop.f32.mrf.mxu3 }
 0x79f   : > { %5071 = vst.msk [vmem:[#allocation4 + $0x28] sm:$0xff] %vm912_vm9, %v5053_v45  ;;  %v4699_v25 = vadd.f32 %v9874_v27, %v4698_v51  ;;  %5403 = vrot.lane.b32.xlu2 %v9925_v1, %s7050_s16  ;;  %v5477_v51 = vld [vmem:[#allocation3 + $0x190] sm:$0xff] }
 0x7a0   : > { %5443 = vrot.lane.b32.xlu0 %v9931_v47, %s7051_s17 }
 0x7a1   : > { %6928 = vst.msk [vmem:[%s8739_s23 + $0x118] sm:$0xff] %vm2733_vm12, %v4699_v25  ;;  %v5099_v34 = vpop.permute.xlu2 %5098  ;;  %v5123_v42 = vld [vmem:[#allocation4 + $0x8] sm:$0xff]  ;;  %v5222_v25 = vld [vmem:[#allocation3 + $0x380] sm:$0xff] }
 0x7a2   : > { %5118 = vst.msk [vmem:[#allocation4 + $0x20] sm:$0xff] %vm961_vm10, %v5099_v34  ;;  %v5057_v0 = vpop.permute.xlu0 %5056 }
 0x7a3   : > { %5073 = vst.msk [vmem:[#allocation4 + $0x38] sm:$0xff] %vm912_vm9, %v5057_v0 }
 0x7a4   : > { %5445 = vrot.lane.b32.xlu1 %v9939_v21, %s7051_s17  ;;  %5226 = vst.msk [vmem:[#allocation4 + $0x8] sm:$0xff] %vm299_vm0, %v5218_v7  ;;  %v5475_v7 = vld [vmem:[#allocation3 + $0x170] sm:$0xff] }
 0x7a6   : > { %v5091_v61 = vpop.permute.xlu1 %5090  ;;  %v4701_v30 = vpop.f32.mrf.mxu3 }
 0x7a7   : > { %5114 = vst.msk [vmem:[#allocation4] sm:$0xff] %vm961_vm10, %v5091_v61  ;;  %v4702_v14 = vadd.f32 %v9874_v27, %v4701_v30  ;;  %5441 = vrot.lane.b32.xlu2 %v9944_v55, %s7051_s17 }
 0x7a8   : > { %5449 = vrot.lane.b32.xlu0 %v9950_v16, %s7051_s17 }
 0x7a9   : > { %6929 = vst.msk [vmem:[%s8739_s23 + $0x120] sm:$0xff] %vm2733_vm12, %v4702_v14  ;;  %v5105_v10 = vpop.permute.xlu2 %5104  ;;  %v9956_v37 = vld [vmem:[#allocation4 + $0x20] sm:$0xff]  ;;  %v5479_v14 = vld [vmem:[#allocation3 + $0x1b0] sm:$0xff] }
 0x7aa   : > { %5121 = vst.msk [vmem:[#allocation4 + $0x38] sm:$0xff] %vm961_vm10, %v5105_v10  ;;  %v5095_v11 = vpop.permute.xlu0 %5094  ;;  %v5223_v10 = vld [vmem:[#allocation3 + $0x390] sm:$0xff] }
 0x7ab   : > { %5116 = vst.msk [vmem:[#allocation4 + $0x10] sm:$0xff] %vm961_vm10, %v5095_v11 }
 0x7ac   : > { %5451 = vrot.lane.b32.xlu1 %v9960_v46, %s7051_s17  ;;  %5229 = vst.msk [vmem:[#allocation4 + $0x20] sm:$0xff] %vm299_vm0, %v5221_v43 }
 0x7ae   : > { %v5097_v36 = vpop.permute.xlu1 %5096  ;;  %v4704_v40 = vpop.f32.mrf.mxu3  ;;  %v5122_v58 = vld [vmem:[#allocation4] sm:$0xff] }
 0x7af   : > { %5117 = vst.msk [vmem:[#allocation4 + $0x18] sm:$0xff] %vm961_vm10, %v5097_v36  ;;  %v4705_v52 = vadd.f32 %v9874_v27, %v4704_v40  ;;  %6933 = vmatmul.msk.f32.vlgmr.msrb.gmra.mxu0 %vm991_vm11, %v5122_v58  ;;  %5447 = vrot.lane.b32.xlu2 %v9965_v24, %s7051_s17  ;;  %v5480_v36 = vld [vmem:[#allocation3 + $0x1c0] sm:$0xff] }
 0x7b0   : > { %5455 = vrot.lane.b32.xlu0 %v9751_v50, %s7051_s17  ;;  %5225 = vst.msk [vmem:[#allocation4] sm:$0xff] %vm299_vm0, %v5217_v59  ;;  %v5478_v40 = vld [vmem:[#allocation3 + $0x1a0] sm:$0xff] }
 0x7b1   : > { %6930 = vst.msk [vmem:[%s8739_s23 + $0x128] sm:$0xff] %vm2733_vm12, %v4705_v52  ;;  %v5254_v31 = vpop.permute.xlu2 %5253  ;;  %v9977_v56 = vld [vmem:[#allocation4 + $0x38] sm:$0xff]  ;;  %v10013_v58 = vld [vmem:[#allocation3 + $0x21] sm:$0xff] }
 0x7b2   : > { %v5124_v53 = vld [vmem:[#allocation4 + $0x10] sm:$0xff]  ;;  %v5101_v38 = vpop.permute.xlu0 %5100  ;;  %5232 = vst.msk [vmem:[#allocation4 + $0x38] sm:$0xff] %vm299_vm0, %v5224_v8 }
 0x7b3   : > { %5227 = vst.msk [vmem:[#allocation4 + $0x10] sm:$0xff] %vm299_vm0, %v5219_v26  ;;  %v5481_v8 = vld [vmem:[#allocation3 + $0x1d0] sm:$0xff] }
 0x7b4   : > { %5275 = vst.msk [vmem:[#allocation4 + $0x10] sm:$0xff] %vm617_vm3, %v5254_v31  ;;  %5490 = vrot.lane.b32.xlu1 %v5474_v6, %s7052_s18  ;;  %v10019_v31 = vld [vmem:[#allocation3 + $0x31] sm:$0xff] }
 0x7b5   : > { %5119 = vst.msk [vmem:[#allocation4 + $0x28] sm:$0xff] %vm961_vm10, %v5101_v38 }
 0x7b6   : > { %v5103_v50 = vpop.permute.xlu1 %5102  ;;  %v4707_v63 = vpop.f32.mrf.mxu3  ;;  %v5125_v48 = vld [vmem:[#allocation4 + $0x18] sm:$0xff] }
 0x7b7   : > { %5120 = vst.msk [vmem:[#allocation4 + $0x30] sm:$0xff] %vm961_vm10, %v5103_v50  ;;  %v4708_v3 = vadd.f32 %v9874_v27, %v4707_v63  ;;  %6934 = vmatmul.msk.f32.gmra.mxu0 %vm991_vm11, %v5123_v42  ;;  %5453 = vrot.lane.b32.xlu2 %v9984_v28, %s7051_s17  ;;  %v10033_v50 = vld [vmem:[#allocation3 + $0x61] sm:$0xff] }
 0x7b8   : > { %5494 = vrot.lane.b32.xlu0 %v5476_v9, %s7052_s18  ;;  %5228 = vst.msk [vmem:[#allocation4 + $0x18] sm:$0xff] %vm299_vm0, %v5220_v23  ;;  %v5530_v9 = vld [vmem:[#allocation3 + $0x91] sm:$0xff] }
 0x7b9   : > { %6931 = vst.msk [vmem:[%s8739_s23 + $0x130] sm:$0xff] %vm2733_vm12, %v4708_v3  ;;  %v5260_v54 = vpop.permute.xlu2 %5259 }
 0x7ba   : > { %v5250_v45 = vpop.permute.xlu0 %5249 }
 0x7bb   : > { %5273 = vst.msk [vmem:[#allocation4] sm:$0xff] %vm617_vm3, %v5250_v45  ;;  %v10047_v45 = vld [vmem:[#allocation3 + $0x71] sm:$0xff] }
 0x7bc   : > { %v5127_v34 = vld [vmem:[#allocation4 + $0x28] sm:$0xff]  ;;  %5496 = vrot.lane.b32.xlu1 %v5477_v51, %s7052_s18 }
 0x7bd   : > { %5230 = vst.msk [vmem:[#allocation4 + $0x28] sm:$0xff] %vm299_vm0, %v5222_v25 }
 0x7be   : > { %5278 = vst.msk [vmem:[#allocation4 + $0x28] sm:$0xff] %vm617_vm3, %v5260_v54  ;;  %v5252_v42 = vpop.permute.xlu1 %5251  ;;  %v4710_v0 = vpop.f32.mrf.mxu3  ;;  %v5128_v61 = vld [vmem:[#allocation4 + $0x30] sm:$0xff] }
 0x7bf   : > { %5274 = vst.msk [vmem:[#allocation4 + $0x8] sm:$0xff] %vm617_vm3, %v5252_v42  ;;  %v4711_v30 = vadd.f32 %v9874_v27, %v4710_v0  ;;  %6935 = vmatmul.msk.f32.gmra.mxu0 %vm991_vm11, %v5124_v53  ;;  %5492 = vrot.lane.b32.xlu2 %v5475_v7, %s7052_s18  ;;  %v10027_v53 = vld [vmem:[#allocation3 + $0x51] sm:$0xff] }
 0x7c0   : > { %5500 = vrot.lane.b32.xlu0 %v5479_v14, %s7052_s18  ;;  %5231 = vst.msk [vmem:[#allocation4 + $0x30] sm:$0xff] %vm299_vm0, %v5223_v10  ;;  %v10118_v10 = vld [vmem:[#allocation3 + $0x371] sm:$0xff] }
 0x7c1   : > { %6932 = vst.msk [vmem:[%s8739_s23 + $0x138] sm:$0xff] %vm2733_vm12, %v4711_v30  ;;  %v5298_v11 = vpop.permute.xlu2 %5297 }
 0x7c2   : > { %5321 = vst.msk [vmem:[#allocation4] sm:$0xff] %vm666_vm4, %v5298_v11  ;;  %v5256_v43 = vpop.permute.xlu0 %5255 }
 0x7c3   : > { %5276 = vst.msk [vmem:[#allocation4 + $0x18] sm:$0xff] %vm617_vm3, %v5256_v43  ;;  %v10122_v43 = vld [vmem:[#allocation3 + $0x351] sm:$0xff] }
 0x7c4   : > { %5502 = vrot.lane.b32.xlu1 %v5480_v36, %s7052_s18 }
 0x7c6   : > { %v5258_v27 = vpop.permute.xlu1 %5257 }
 0x7c7   : > { %5277 = vst.msk [vmem:[#allocation4 + $0x20] sm:$0xff] %vm617_vm3, %v5258_v27  ;;  %6936 = vmatmul.msk.f32.gmra.mxu0 %vm991_vm11, %v5125_v48  ;;  %5498 = vrot.lane.b32.xlu2 %v5478_v40, %s7052_s18  ;;  %v5529_v48 = vld [vmem:[#allocation3 + $0x81] sm:$0xff] }
 0x7c8   : > { %5539 = vrot.lane.b32.xlu0 %v10013_v58, %s7053_s19  ;;  %v5786_v40 = vld [vmem:[#allocation3 + $0x3a1] sm:$0xff] }
 0x7c9   : > { %v5304_v52 = vpop.permute.xlu2 %5303 }
 0x7ca   : > { %5324 = vst.msk [vmem:[#allocation4 + $0x18] sm:$0xff] %vm666_vm4, %v5304_v52  ;;  %v5262_v59 = vpop.permute.xlu0 %5261  ;;  %v5636_v52 = vld [vmem:[%s10710_s5 + $0x40] sm:$0xff] }
 0x7cb   : > { %5279 = vst.msk [vmem:[#allocation4 + $0x30] sm:$0xff] %vm617_vm3, %v5262_v59  ;;  %5672 = vmatpush.msrb.mxu2 %v5636_v52  ;;  %6167 = vmatpush.msrb.mxu3 %v5636_v52 }
 0x7cc   : > { %5541 = vrot.lane.b32.xlu1 %v10019_v31, %s7053_s19  ;;  %6662 = vmatpush.msra.mxu0 %v5636_v52 }
 0x7ce   : > { %v5264_v26 = vpop.permute.xlu1 %5263 }
 0x7cf   : > { %5280 = vst.msk [vmem:[#allocation4 + $0x38] sm:$0xff] %vm617_vm3, %v5264_v26  ;;  %6937 = vmatmul.msk.f32.gmra.mxu0 %vm991_vm11, %v9956_v37  ;;  %5504 = vrot.lane.b32.xlu2 %v5481_v8, %s7052_s18  ;;  %v10037_v37 = vld [vmem:[#allocation3 + $0x41] sm:$0xff]  ;;  %v5635_v26 = vld [vmem:[%s10710_s5 + $0x38] sm:$0xff] }
 0x7d0   : > { %5545 = vrot.lane.b32.xlu0 %v10027_v53, %s7053_s19  ;;  %v10134_v8 = vld [vmem:[#allocation3 + $0x381] sm:$0xff]  ;;  %5673 = vmatpush.msrb.mxu2 %v5635_v26 }
 0x7d1   : > { %v5310_v38 = vpop.permute.xlu2 %5309  ;;  %6168 = vmatpush.msrb.mxu3 %v5635_v26  ;;  %6663 = vmatpush.msra.mxu0 %v5635_v26 }
 0x7d2   : > { %5327 = vst.msk [vmem:[#allocation4 + $0x30] sm:$0xff] %vm666_vm4, %v5310_v38  ;;  %v5300_v6 = vpop.permute.xlu0 %5299  ;;  %v5634_v38 = vld [vmem:[%s10710_s5 + $0x30] sm:$0xff] }
 0x7d3   : > { %5322 = vst.msk [vmem:[#allocation4 + $0x8] sm:$0xff] %vm666_vm4, %v5300_v6  ;;  %5674 = vmatpush.msrb.mxu2 %v5634_v38  ;;  %6169 = vmatpush.msrb.mxu3 %v5634_v38 }
 0x7d4   : > { %5547 = vrot.lane.b32.xlu1 %v10033_v50, %s7053_s19  ;;  %6664 = vmatpush.msra.mxu0 %v5634_v38  ;;  %v10259_v38 = vld [vmem:[#allocation3 + $0x531] sm:$0xff] }
 0x7d6   : > { %v5302_v63 = vpop.permute.xlu1 %5301 }
 0x7d7   : > { %5323 = vst.msk [vmem:[#allocation4 + $0x10] sm:$0xff] %vm666_vm4, %v5302_v63  ;;  %6938 = vmatmul.msk.f32.gmra.mxu0 %vm991_vm11, %v5127_v34  ;;  %5543 = vrot.lane.b32.xlu2 %v10037_v37, %s7053_s19  ;;  %v5633_v63 = vld [vmem:[%s10710_s5 + $0x28] sm:$0xff] }
 0x7d8   : > { %5551 = vrot.lane.b32.xlu0 %v5529_v48, %s7053_s19  ;;  %5675 = vmatpush.msrb.mxu2 %v5633_v63 }
 0x7d9   : > { %v5348_v3 = vpop.permute.xlu2 %5347  ;;  %6170 = vmatpush.msrb.mxu3 %v5633_v63  ;;  %6665 = vmatpush.msra.mxu0 %v5633_v63 }
 0x7da   : > { %5370 = vst.msk [vmem:[#allocation4 + $0x8] sm:$0xff] %vm715_vm5, %v5348_v3  ;;  %v5306_v23 = vpop.permute.xlu0 %5305 }
 0x7db   : > { %5325 = vst.msk [vmem:[#allocation4 + $0x20] sm:$0xff] %vm666_vm4, %v5306_v23 }
 0x7dc   : > { %5553 = vrot.lane.b32.xlu1 %v5530_v9, %s7053_s19  ;;  %v5631_v9 = vld [vmem:[%s10710_s5 + $0x18] sm:$0xff] }
 0x7de   : > { %v5308_v54 = vpop.permute.xlu1 %5307 }
 0x7df   : > { %5326 = vst.msk [vmem:[#allocation4 + $0x28] sm:$0xff] %vm666_vm4, %v5308_v54  ;;  %6939 = vmatmul.msk.f32.gmra.mxu0 %vm991_vm11, %v5128_v61  ;;  %5549 = vrot.lane.b32.xlu2 %v10047_v45, %s7053_s19  ;;  %v10105_v61 = vld [vmem:[#allocation3 + $0x341] sm:$0xff]  ;;  %v10171_v54 = vld [vmem:[%s10711_s6] ss:$0 sm:$0xff] }
 0x7e0   : > { %5590 = vrot.lane.b32.xlu0 %v9677_v5, %s7054_s20 }
 0x7e1   : > { %v5354_v51 = vpop.permute.xlu2 %5353 }
 0x7e2   : > { %5373 = vst.msk [vmem:[#allocation4 + $0x20] sm:$0xff] %vm715_vm5, %v5354_v51  ;;  %v5312_v25 = vpop.permute.xlu0 %5311  ;;  %v5628_v51 = vld [vmem:[%s10710_s5] sm:$0xff] }
 0x7e3   : > { %5328 = vst.msk [vmem:[#allocation4 + $0x38] sm:$0xff] %vm666_vm4, %v5312_v25 }
 0x7e4   : > { %5592 = vrot.lane.b32.xlu1 %v9712_v32, %s7054_s20  ;;  %v5579_v32 = vld [vmem:[#allocation3 + $0x131] sm:$0xff] }
 0x7e6   : > { %v5346_v34 = vpop.permute.xlu1 %5345 }
 0x7e7   : > { %5369 = vst.msk [vmem:[#allocation4] sm:$0xff] %vm715_vm5, %v5346_v34  ;;  %6940 = vmatmul.msk.f32.gmra.mxu0 %vm991_vm11, %v9977_v56  ;;  %5588 = vrot.lane.b32.xlu2 %v9702_v35, %s7054_s20 }
 0x7e8   : > { %5596 = vrot.lane.b32.xlu0 %v9690_v17, %s7054_s20 }
 0x7e9   : > { %v5360_v5 = vpop.permute.xlu2 %5359 }
 0x7ea   : > { %5376 = vst.msk [vmem:[#allocation4 + $0x38] sm:$0xff] %vm715_vm5, %v5360_v5  ;;  %v5350_v42 = vpop.permute.xlu0 %5349 }
 0x7eb   : > { %5371 = vst.msk [vmem:[#allocation4 + $0x10] sm:$0xff] %vm715_vm5, %v5350_v42 }
 0x7ec   : > { %5598 = vrot.lane.b32.xlu1 %v9730_v15, %s7054_s20 }
 0x7ee   : > { %v5352_v0 = vpop.permute.xlu1 %5351 }
 0x7ef   : > { %5372 = vst.msk [vmem:[#allocation4 + $0x18] sm:$0xff] %vm715_vm5, %v5352_v0  ;;  %5594 = vrot.lane.b32.xlu2 %v9722_v49, %s7054_s20 }
 0x7f0   : > { %5602 = vrot.lane.b32.xlu0 %v5579_v32, %s7054_s20 }
 0x7f1   : > { %v5398_v35 = vpop.permute.xlu2 %5397 }
 0x7f2   : > { %5419 = vst.msk [vmem:[#allocation4 + $0x10] sm:$0xff] %vm764_vm6, %v5398_v35  ;;  %v5356_v17 = vpop.permute.xlu0 %5355 }
 0x7f3   : > { %5374 = vst.msk [vmem:[#allocation4 + $0x28] sm:$0xff] %vm715_vm5, %v5356_v17 }
 0x7f4   : > { %5747 = vrot.lane.b32.xlu1 %v9830_v62, %s7047_s26 }
 0x7f6   : > { %v5358_v56 = vpop.permute.xlu1 %5357 }
 0x7f7   : > { %5375 = vst.msk [vmem:[#allocation4 + $0x30] sm:$0xff] %vm715_vm5, %v5358_v56  ;;  %5600 = vrot.lane.b32.xlu2 %v9743_v33, %s7054_s20 }
 0x7f8   : > { %5751 = vrot.lane.b32.xlu0 %v9826_v29, %s7047_s26 }
 0x7f9   : > { %v5404_v49 = vpop.permute.xlu2 %5403 }
 0x7fa   : > { %5422 = vst.msk [vmem:[#allocation4 + $0x28] sm:$0xff] %vm764_vm6, %v5404_v49  ;;  %v5394_v15 = vpop.permute.xlu0 %5393 }
 0x7fb   : > { %5417 = vst.msk [vmem:[#allocation4] sm:$0xff] %vm764_vm6, %v5394_v15 }
 0x7fc   : > { %5753 = vrot.lane.b32.xlu1 %v9845_v22, %s7047_s26  ;;  %v10099_v22 = vld [vmem:[#allocation3 + $0x331] sm:$0xff] }
 0x7fe   : > { %v5396_v7 = vpop.permute.xlu1 %5395 }
 0x7ff   : > { %5418 = vst.msk [vmem:[#allocation4 + $0x8] sm:$0xff] %vm764_vm6, %v5396_v7  ;;  %5749 = vrot.lane.b32.xlu2 %v9820_v13, %s7047_s26 }
 0x800   : > { %5757 = vrot.lane.b32.xlu0 %v9841_v2, %s7047_s26 }
 0x801   : > { %v5442_v33 = vpop.permute.xlu2 %5441 }
 0x802   : > { %5465 = vst.msk [vmem:[#allocation4] sm:$0xff] %vm813_vm7, %v5442_v33  ;;  %v5400_v29 = vpop.permute.xlu0 %5399  ;;  %v10224_v33 = vld [vmem:[#allocation3 + $0x511] sm:$0xff] }
 0x803   : > { %5420 = vst.msk [vmem:[#allocation4 + $0x18] sm:$0xff] %vm764_vm6, %v5400_v29 }
 0x804   : > { %5759 = vrot.lane.b32.xlu1 %v9857_v19, %s7047_s26 }
 0x806   : > { %v5402_v62 = vpop.permute.xlu1 %5401 }
 0x807   : > { %5421 = vst.msk [vmem:[#allocation4 + $0x20] sm:$0xff] %vm764_vm6, %v5402_v62  ;;  %5755 = vrot.lane.b32.xlu2 %v9835_v57, %s7047_s26  ;;  %v10112_v57 = vld [vmem:[#allocation3 + $0x361] sm:$0xff] }
 0x808   : > { %5795 = vrot.lane.b32.xlu0 %v10099_v22, %s7048_s14  ;;  %v10232_v62 = vld [vmem:[#allocation3 + $0x521] sm:$0xff] }
 0x809   : > { %v5448_v13 = vpop.permute.xlu2 %5447 }
 0x80a   : > { %5468 = vst.msk [vmem:[#allocation4 + $0x18] sm:$0xff] %vm813_vm7, %v5448_v13  ;;  %v5406_v2 = vpop.permute.xlu0 %5405 }
 0x80b   : > { %5423 = vst.msk [vmem:[#allocation4 + $0x30] sm:$0xff] %vm764_vm6, %v5406_v2 }
 0x80c   : > { %5797 = vrot.lane.b32.xlu1 %v10105_v61, %s7048_s14 }
 0x80e   : > { %v5408_v19 = vpop.permute.xlu1 %5407 }
 0x80f   : > { %5424 = vst.msk [vmem:[#allocation4 + $0x38] sm:$0xff] %vm764_vm6, %v5408_v19  ;;  %5761 = vrot.lane.b32.xlu2 %v9850_v4, %s7047_s26  ;;  %v5785_v4 = vld [vmem:[#allocation3 + $0x391] sm:$0xff] }
 0x810   : > { %5801 = vrot.lane.b32.xlu0 %v10112_v57, %s7048_s14 }
 0x811   : > { %v5454_v30 = vpop.permute.xlu2 %5453 }
 0x812   : > { %5471 = vst.msk [vmem:[#allocation4 + $0x30] sm:$0xff] %vm813_vm7, %v5454_v30  ;;  %v5444_v14 = vpop.permute.xlu0 %5443  ;;  %v10238_v30 = vld [vmem:[#allocation3 + $0x4e1] sm:$0xff] }
 0x813   : > { %5466 = vst.msk [vmem:[#allocation4 + $0x8] sm:$0xff] %vm813_vm7, %v5444_v14  ;;  %v10244_v14 = vld [vmem:[#allocation3 + $0x541] sm:$0xff] }
 0x814   : > { %5803 = vrot.lane.b32.xlu1 %v10118_v10, %s7048_s14 }
 0x816   : > { %v5446_v11 = vpop.permute.xlu1 %5445 }
 0x817   : > { %5467 = vst.msk [vmem:[#allocation4 + $0x10] sm:$0xff] %vm813_vm7, %v5446_v11  ;;  %5799 = vrot.lane.b32.xlu2 %v10122_v43, %s7048_s14 }
 0x818   : > { %5807 = vrot.lane.b32.xlu0 %v5785_v4, %s7048_s14 }
 0x819   : > { %v5493_v36 = vpop.permute.xlu2 %5492 }
 0x81a   : > { %5515 = vst.msk [vmem:[#allocation4 + $0x8] sm:$0xff] %vm863_vm8, %v5493_v36  ;;  %v5450_v27 = vpop.permute.xlu0 %5449 }
 0x81b   : > { %5469 = vst.msk [vmem:[#allocation4 + $0x20] sm:$0xff] %vm813_vm7, %v5450_v27  ;;  %v10253_v27 = vld [vmem:[#allocation3 + $0x551] sm:$0xff] }
 0x81c   : > { %5809 = vrot.lane.b32.xlu1 %v5786_v40, %s7048_s14  ;;  %v5718_v40 = vld [vmem:[#allocation3 + $0x221] sm:$0xff] }
 0x81e   : > { %v5452_v59 = vpop.permute.xlu1 %5451 }
 0x81f   : > { %5470 = vst.msk [vmem:[#allocation4 + $0x28] sm:$0xff] %vm813_vm7, %v5452_v59  ;;  %5805 = vrot.lane.b32.xlu2 %v10134_v8, %s7048_s14 }
 0x820   : > { %5845 = vrot.lane.b32.xlu0 %v9888_v18, %s7049_s15  ;;  %v5632_v18 = vld [vmem:[%s10710_s5 + $0x20] sm:$0xff] }
 0x821   : > { %v5499_v6 = vpop.permute.xlu2 %5498  ;;  %5676 = vmatpush.msrb.mxu2 %v5632_v18  ;;  %6171 = vmatpush.msrb.mxu3 %v5632_v18 }
 0x822   : > { %5518 = vst.msk [vmem:[#allocation4 + $0x20] sm:$0xff] %vm863_vm8, %v5499_v6  ;;  %v5456_v48 = vpop.permute.xlu0 %5455  ;;  %6666 = vmatpush.msra.mxu0 %v5632_v18  ;;  %v10265_v6 = vld [vmem:[#allocation3 + $0x571] sm:$0xff] }
 0x823   : > { %5472 = vst.msk [vmem:[#allocation4 + $0x38] sm:$0xff] %vm813_vm7, %v5456_v48  ;;  %5677 = vmatpush.msrb.mxu2 %v5631_v9  ;;  %6172 = vmatpush.msrb.mxu3 %v5631_v9  ;;  %v5721_v18 = vld [vmem:[#allocation3 + $0x251] sm:$0xff] }
 0x824   : > { %5847 = vrot.lane.b32.xlu1 %v9907_v39, %s7049_s15  ;;  %v5630_v39 = vld [vmem:[%s10710_s5 + $0x10] sm:$0xff]  ;;  %6667 = vmatpush.msra.mxu0 %v5631_v9 }
 0x825   : > { %5678 = vmatpush.msrb.mxu2 %v5630_v39  ;;  %6173 = vmatpush.msrb.mxu3 %v5630_v39 }
 0x826   : > { %v5491_v3 = vpop.permute.xlu1 %5490  ;;  %6668 = vmatpush.msra.mxu0 %v5630_v39 }
 0x827   : > { %5514 = vst.msk [vmem:[#allocation4] sm:$0xff] %vm863_vm8, %v5491_v3  ;;  %5843 = vrot.lane.b32.xlu2 %v9880_v60, %s7049_s15  ;;  %v5629_v60 = vld [vmem:[%s10710_s5 + $0x8] sm:$0xff] }
 0x828   : > { %5851 = vrot.lane.b32.xlu0 %v9903_v20, %s7049_s15  ;;  %5679 = vmatpush.msrb.mxu2 %v5629_v60  ;;  %v5716_v3 = vld [vmem:[#allocation3 + $0x201] sm:$0xff] }
 0x829   : > { %v5505_v23 = vpop.permute.xlu2 %5504  ;;  %6174 = vmatpush.msrb.mxu3 %v5629_v60  ;;  %6669 = vmatpush.msra.mxu0 %v5629_v60 }
 0x82a   : > { %5521 = vst.msk [vmem:[#allocation4 + $0x38] sm:$0xff] %vm863_vm8, %v5505_v23  ;;  %v5495_v20 = vpop.permute.xlu0 %5494  ;;  %5680 = vmatpush.msrb.mxu2 %v5628_v51  ;;  %v10274_v23 = vld [vmem:[#allocation3 + $0x581] sm:$0xff] }
 0x82b   : > { %5516 = vst.msk [vmem:[#allocation4 + $0x10] sm:$0xff] %vm863_vm8, %v5495_v20  ;;  %6175 = vmatpush.msrb.mxu3 %v5628_v51  ;;  %6670 = vmatpush.msra.mxu0 %v5628_v51 }
 0x82c   : > { %5853 = vrot.lane.b32.xlu1 %v9925_v1, %s7049_s15  ;;  %v5184_v25 = vpop.f32.mrf.mxu0 }
 0x82d   : > { %v5185_v34 = vadd.f32 %v10171_v54, %v5184_v25  ;;  %v10282_v25 = vld [vmem:[#allocation3 + $0x561] sm:$0xff] }
 0x82e   : > { %v5497_v5 = vpop.permute.xlu1 %5496 }
 0x82f   : > { %6941 = vst.msk [vmem:[%s8739_s23 + $0x140] sm:$0xff] %vm2733_vm12, %v5185_v34  ;;  %5849 = vrot.lane.b32.xlu2 %v9895_v41, %s7049_s15 }
 0x830   : > { %5517 = vst.msk [vmem:[#allocation4 + $0x18] sm:$0xff] %vm863_vm8, %v5497_v5  ;;  %5857 = vrot.lane.b32.xlu0 %v9921_v12, %s7049_s15  ;;  %v5717_v5 = vld [vmem:[#allocation3 + $0x211] sm:$0xff] }
 0x831   : > { %v5544_v1 = vpop.permute.xlu2 %5543 }
 0x832   : > { %5565 = vst.msk [vmem:[#allocation4 + $0x10] sm:$0xff] %vm912_vm9, %v5544_v1  ;;  %v5501_v42 = vpop.permute.xlu0 %5500 }
 0x833   : > { %5519 = vst.msk [vmem:[#allocation4 + $0x28] sm:$0xff] %vm863_vm8, %v5501_v42 }
 0x834   : > { %5891 = vrot.lane.b32.xlu1 %v9944_v55, %s7050_s16  ;;  %v5187_v32 = vpop.f32.mrf.mxu0 }
 0x835   : > { %v5188_v41 = vadd.f32 %v10171_v54, %v5187_v32  ;;  %v5719_v32 = vld [vmem:[#allocation3 + $0x231] sm:$0xff] }
 0x836   : > { %v5503_v0 = vpop.permute.xlu1 %5502 }
 0x837   : > { %6942 = vst.msk [vmem:[%s8739_s23 + $0x148] sm:$0xff] %vm2733_vm12, %v5188_v41  ;;  %5855 = vrot.lane.b32.xlu2 %v9913_v44, %s7049_s15 }
 0x838   : > { %5520 = vst.msk [vmem:[#allocation4 + $0x30] sm:$0xff] %vm863_vm8, %v5503_v0  ;;  %5895 = vrot.lane.b32.xlu0 %v9939_v21, %s7050_s16 }
 0x839   : > { %v5550_v12 = vpop.permute.xlu2 %5549 }
 0x83a   : > { %5568 = vst.msk [vmem:[#allocation4 + $0x28] sm:$0xff] %vm912_vm9, %v5550_v12  ;;  %v5540_v35 = vpop.permute.xlu0 %5539 }
 0x83b   : > { %5563 = vst.msk [vmem:[#allocation4] sm:$0xff] %vm912_vm9, %v5540_v35 }
 0x83c   : > { %5897 = vrot.lane.b32.xlu1 %v9965_v24, %s7050_s16  ;;  %v5190_v17 = vpop.f32.mrf.mxu0 }
 0x83d   : > { %v5191_v56 = vadd.f32 %v10171_v54, %v5190_v17 }
 0x83e   : > { %v5542_v49 = vpop.permute.xlu1 %5541 }
 0x83f   : > { %6943 = vst.msk [vmem:[%s8739_s23 + $0x150] sm:$0xff] %vm2733_vm12, %v5191_v56  ;;  %5893 = vrot.lane.b32.xlu2 %v9931_v47, %s7050_s16  ;;  %v5722_v56 = vld [vmem:[#allocation3 + $0x261] sm:$0xff] }
 0x840   : > { %5564 = vst.msk [vmem:[#allocation4 + $0x8] sm:$0xff] %vm912_vm9, %v5542_v49  ;;  %5901 = vrot.lane.b32.xlu0 %v9960_v46, %s7050_s16 }
 0x841   : > { %v5589_v44 = vpop.permute.xlu2 %5588 }
 0x842   : > { %5612 = vst.msk [vmem:[#allocation4] sm:$0xff] %vm961_vm10, %v5589_v44  ;;  %v5546_v21 = vpop.permute.xlu0 %5545 }
 0x843   : > { %5566 = vst.msk [vmem:[#allocation4 + $0x18] sm:$0xff] %vm912_vm9, %v5546_v21 }
 0x844   : > { %5903 = vrot.lane.b32.xlu1 %v9984_v28, %s7050_s16  ;;  %v5193_v24 = vpop.f32.mrf.mxu0 }
 0x845   : > { %v5194_v15 = vadd.f32 %v10171_v54, %v5193_v24  ;;  %v6020_v24 = vld [vmem:[#allocation3 + $0xd1] sm:$0xff] }
 0x846   : > { %v5548_v7 = vpop.permute.xlu1 %5547 }
 0x847   : > { %6944 = vst.msk [vmem:[%s8739_s23 + $0x158] sm:$0xff] %vm2733_vm12, %v5194_v15  ;;  %5899 = vrot.lane.b32.xlu2 %v9950_v16, %s7050_s16  ;;  %v5715_v16 = vld [vmem:[#allocation3 + $0x1f1] sm:$0xff]  ;;  %v6019_v15 = vld [vmem:[#allocation3 + $0xc1] sm:$0xff] }
 0x848   : > { %5567 = vst.msk [vmem:[#allocation4 + $0x20] sm:$0xff] %vm912_vm9, %v5548_v7  ;;  %5939 = vrot.lane.b32.xlu0 %v10224_v33, %s7051_s17 }
 0x849   : > { %v5595_v46 = vpop.permute.xlu2 %5594  ;;  %v5620_v29 = vld [vmem:[#allocation4] sm:$0xff] }
 0x84a   : > { %5615 = vst.msk [vmem:[#allocation4 + $0x18] sm:$0xff] %vm961_vm10, %v5595_v46  ;;  %v5552_v28 = vpop.permute.xlu0 %5551  ;;  %6949 = vmatmul.msk.f32.vlgmr.msrb.gmra.mxu2 %vm991_vm11, %v5620_v29  ;;  %v6274_v46 = vld [vmem:[#allocation3 + $0x1f2] sm:$0xff] }
 0x84b   : > { %5569 = vst.msk [vmem:[#allocation4 + $0x30] sm:$0xff] %vm912_vm9, %v5552_v28  ;;  %v10330_v28 = vld [vmem:[#allocation3 + $0x171] sm:$0xff] }
 0x84c   : > { %5941 = vrot.lane.b32.xlu1 %v10232_v62, %s7051_s17  ;;  %v5196_v13 = vpop.f32.mrf.mxu0  ;;  %5723 = vst.msk [vmem:[#allocation4] sm:$0xff] %vm299_vm0, %v5715_v16 }
 0x84d   : > { %v5197_v2 = vadd.f32 %v10171_v54, %v5196_v13  ;;  %v6418_v13 = vld [vmem:[#allocation3 + $0x3d2] sm:$0xff] }
 0x84e   : > { %v5554_v19 = vpop.permute.xlu1 %5553 }
 0x84f   : > { %6945 = vst.msk [vmem:[%s8739_s23 + $0x160] sm:$0xff] %vm2733_vm12, %v5197_v2  ;;  %5905 = vrot.lane.b32.xlu2 %v10238_v30, %s7050_s16 }
 0x850   : > { %5570 = vst.msk [vmem:[#allocation4 + $0x38] sm:$0xff] %vm912_vm9, %v5554_v19  ;;  %5945 = vrot.lane.b32.xlu0 %v10244_v14, %s7051_s17  ;;  %v10345_v19 = vld [vmem:[#allocation3 + $0xe1] sm:$0xff] }
 0x851   : > { %v5601_v11 = vpop.permute.xlu2 %5600  ;;  %v10249_v4 = vld [vmem:[#allocation4 + $0x18] sm:$0xff] }
 0x852   : > { %5618 = vst.msk [vmem:[#allocation4 + $0x30] sm:$0xff] %vm961_vm10, %v5601_v11  ;;  %v5591_v36 = vpop.permute.xlu0 %5590 }
 0x853   : > { %5613 = vst.msk [vmem:[#allocation4 + $0x8] sm:$0xff] %vm961_vm10, %v5591_v36 }
 0x854   : > { %5947 = vrot.lane.b32.xlu1 %v10253_v27, %s7051_s17  ;;  %v5199_v52 = vpop.f32.mrf.mxu0  ;;  %5726 = vst.msk [vmem:[#allocation4 + $0x18] sm:$0xff] %vm299_vm0, %v5718_v40 }
 0x855   : > { %v5200_v59 = vadd.f32 %v10171_v54, %v5199_v52 }
 0x856   : > { %v5593_v26 = vpop.permute.xlu1 %5592 }
 0x857   : > { %6946 = vst.msk [vmem:[%s8739_s23 + $0x168] sm:$0xff] %vm2733_vm12, %v5200_v59  ;;  %5943 = vrot.lane.b32.xlu2 %v10259_v38, %s7051_s17  ;;  %v6069_v59 = vld [vmem:[#allocation3 + $0x181] sm:$0xff] }
 0x858   : > { %5614 = vst.msk [vmem:[#allocation4 + $0x10] sm:$0xff] %vm961_vm10, %v5593_v26  ;;  %5951 = vrot.lane.b32.xlu0 %v10265_v6, %s7051_s17 }
 0x859   : > { %v5750_v63 = vpop.permute.xlu2 %5749  ;;  %v10270_v48 = vld [vmem:[#allocation4 + $0x30] sm:$0xff] }
 0x85a   : > { %v5621_v9 = vld [vmem:[#allocation4 + $0x8] sm:$0xff]  ;;  %v5597_v39 = vpop.permute.xlu0 %5596  ;;  %5729 = vst.msk [vmem:[#allocation4 + $0x30] sm:$0xff] %vm299_vm0, %v5721_v18 }
 0x85b   : > { %5724 = vst.msk [vmem:[#allocation4 + $0x8] sm:$0xff] %vm299_vm0, %v5716_v3  ;;  %6950 = vmatmul.msk.f32.gmra.mxu2 %vm991_vm11, %v5621_v9  ;;  %v10373_v3 = vld [vmem:[#allocation3 + $0xf1] sm:$0xff]  ;;  %v6419_v9 = vld [vmem:[#allocation3 + $0x3e2] sm:$0xff] }
 0x85c   : > { %5772 = vst.msk [vmem:[#allocation4 + $0x8] sm:$0xff] %vm617_vm3, %v5750_v63  ;;  %5953 = vrot.lane.b32.xlu1 %v10274_v23, %s7051_s17  ;;  %v5202_v60 = vpop.f32.mrf.mxu0 }
 0x85d   : > { %5616 = vst.msk [vmem:[#allocation4 + $0x20] sm:$0xff] %vm961_vm10, %v5597_v39  ;;  %v5203_v20 = vadd.f32 %v10171_v54, %v5202_v60  ;;  %v10379_v39 = vld [vmem:[#allocation3 + $0x191] sm:$0xff] }
 0x85e   : > { %v5599_v51 = vpop.permute.xlu1 %5598 }
 0x85f   : > { %6947 = vst.msk [vmem:[%s8739_s23 + $0x170] sm:$0xff] %vm2733_vm12, %v5203_v20  ;;  %5949 = vrot.lane.b32.xlu2 %v10282_v25, %s7051_s17  ;;  %v5622_v34 = vld [vmem:[#allocation4 + $0x10] sm:$0xff] }
 0x860   : > { %5617 = vst.msk [vmem:[#allocation4 + $0x28] sm:$0xff] %vm961_vm10, %v5599_v51  ;;  %5989 = vrot.lane.b32.xlu0 %v10019_v31, %s7052_s18  ;;  %v6563_v51 = vld [vmem:[#allocation3 + $0x32] sm:$0xff] }
 0x861   : > { %v5756_v1 = vpop.permute.xlu2 %5755  ;;  %5725 = vst.msk [vmem:[#allocation4 + $0x10] sm:$0xff] %vm299_vm0, %v5717_v5  ;;  %v6276_v5 = vld [vmem:[#allocation3 + $0x212] sm:$0xff] }
 0x862   : > { %v5603_v42 = vpop.permute.xlu0 %5602 }
 0x863   : > { %5619 = vst.msk [vmem:[#allocation4 + $0x38] sm:$0xff] %vm961_vm10, %v5603_v42  ;;  %6951 = vmatmul.msk.f32.gmra.mxu2 %vm991_vm11, %v5622_v34 }
 0x864   : > { %v5624_v41 = vld [vmem:[#allocation4 + $0x20] sm:$0xff]  ;;  %5991 = vrot.lane.b32.xlu1 %v10037_v37, %s7052_s18  ;;  %v5205_v0 = vpop.f32.mrf.mxu0 }
 0x865   : > { %5727 = vst.msk [vmem:[#allocation4 + $0x20] sm:$0xff] %vm299_vm0, %v5719_v32  ;;  %v5206_v12 = vadd.f32 %v10171_v54, %v5205_v0  ;;  %v5720_v37 = vld [vmem:[#allocation3 + $0x241] sm:$0xff]  ;;  %v6324_v32 = vld [vmem:[#allocation3 + $0x491] sm:$0xff] }
 0x866   : > { %5775 = vst.msk [vmem:[#allocation4 + $0x20] sm:$0xff] %vm617_vm3, %v5756_v1  ;;  %v5748_v31 = vpop.permute.xlu1 %5747  ;;  %v6420_v0 = vld [vmem:[#allocation3 + $0x3f2] sm:$0xff] }
 0x867   : > { %6948 = vst.msk [vmem:[%s8739_s23 + $0x178] sm:$0xff] %vm2733_vm12, %v5206_v12  ;;  %5987 = vrot.lane.b32.xlu2 %v10013_v58, %s7052_s18  ;;  %v5625_v35 = vld [vmem:[#allocation4 + $0x28] sm:$0xff] }
 0x868   : > { %5771 = vst.msk [vmem:[#allocation4] sm:$0xff] %vm617_vm3, %v5748_v31  ;;  %5995 = vrot.lane.b32.xlu0 %v10033_v50, %s7052_s18  ;;  %v6067_v50 = vld [vmem:[#allocation3 + $0x161] sm:$0xff] }
 0x869   : > { %v5762_v17 = vpop.permute.xlu2 %5761  ;;  %5728 = vst.msk [vmem:[#allocation4 + $0x28] sm:$0xff] %vm299_vm0, %v5720_v37 }
 0x86a   : > { %v5627_v54 = vld [vmem:[#allocation4 + $0x38] sm:$0xff]  ;;  %v5752_v49 = vpop.permute.xlu0 %5751 }
 0x86b   : > { %5730 = vst.msk [vmem:[#allocation4 + $0x38] sm:$0xff] %vm299_vm0, %v5722_v56  ;;  %6952 = vmatmul.msk.f32.gmra.mxu2 %vm991_vm11, %v10249_v4 }
 0x86c   : > { %5778 = vst.msk [vmem:[#allocation4 + $0x38] sm:$0xff] %vm617_vm3, %v5762_v17  ;;  %5997 = vrot.lane.b32.xlu1 %v10047_v45, %s7052_s18  ;;  %v10407_v17 = vld [vmem:[#allocation3 + $0x1a1] sm:$0xff] }
 0x86d   : > { %5773 = vst.msk [vmem:[#allocation4 + $0x10] sm:$0xff] %vm617_vm3, %v5752_v49 }
 0x86e   : > { %v5754_v58 = vpop.permute.xlu1 %5753 }
 0x86f   : > { %5774 = vst.msk [vmem:[#allocation4 + $0x18] sm:$0xff] %vm617_vm3, %v5754_v58  ;;  %5993 = vrot.lane.b32.xlu2 %v10027_v53, %s7052_s18  ;;  %v10422_v58 = vld [vmem:[%s10711_s6] ss:$0 sm:$0xff] }
 0x870   : > { %6083 = vrot.lane.b32.xlu0 %v6067_v50, %s7054_s20 }
 0x871   : > { %v5800_v44 = vpop.permute.xlu2 %5799 }
 0x872   : > { %5821 = vst.msk [vmem:[#allocation4 + $0x10] sm:$0xff] %vm666_vm4, %v5800_v44  ;;  %v5758_v21 = vpop.permute.xlu0 %5757 }
 0x873   : > { %5776 = vst.msk [vmem:[#allocation4 + $0x28] sm:$0xff] %vm617_vm3, %v5758_v21  ;;  %6953 = vmatmul.msk.f32.gmra.mxu2 %vm991_vm11, %v5624_v41 }
 0x874   : > { %6037 = vrot.lane.b32.xlu1 %v6020_v24, %s7053_s19 }
 0x876   : > { %v5760_v45 = vpop.permute.xlu1 %5759 }
 0x877   : > { %5777 = vst.msk [vmem:[#allocation4 + $0x30] sm:$0xff] %vm617_vm3, %v5760_v45  ;;  %6035 = vrot.lane.b32.xlu2 %v6019_v15, %s7053_s19  ;;  %v6564_v45 = vld [vmem:[#allocation3 + $0x42] sm:$0xff] }
 0x878   : > { %6242 = vrot.lane.b32.xlu0 %v10099_v22, %s7047_s26 }
 0x879   : > { %v5806_v53 = vpop.permute.xlu2 %5805 }
 0x87a   : > { %5824 = vst.msk [vmem:[#allocation4 + $0x28] sm:$0xff] %vm666_vm4, %v5806_v53  ;;  %v5796_v7 = vpop.permute.xlu0 %5795  ;;  %v6421_v53 = vld [vmem:[#allocation3 + $0x402] sm:$0xff] }
 0x87b   : > { %5819 = vst.msk [vmem:[#allocation4] sm:$0xff] %vm666_vm4, %v5796_v7  ;;  %6954 = vmatmul.msk.f32.gmra.mxu2 %vm991_vm11, %v5625_v35 }
 0x87c   : > { %6290 = vrot.lane.b32.xlu1 %v6274_v46, %s7048_s14  ;;  %v6325_v46 = vld [vmem:[#allocation3 + $0x4a1] sm:$0xff] }
 0x87e   : > { %v5798_v29 = vpop.permute.xlu1 %5797 }
 0x87f   : > { %5820 = vst.msk [vmem:[#allocation4 + $0x8] sm:$0xff] %vm666_vm4, %v5798_v29  ;;  %6085 = vrot.lane.b32.xlu2 %v10330_v28, %s7054_s20  ;;  %v10438_v29 = vld [vmem:[#allocation3 + $0x111] sm:$0xff] }
 0x880   : > { %6386 = vrot.lane.b32.xlu0 %v10224_v33, %s7050_s16 }
 0x881   : > { %v5844_v22 = vpop.permute.xlu2 %5843 }
 0x882   : > { %5867 = vst.msk [vmem:[#allocation4] sm:$0xff] %vm715_vm5, %v5844_v22  ;;  %v5802_v16 = vpop.permute.xlu0 %5801 }
 0x883   : > { %5822 = vst.msk [vmem:[#allocation4 + $0x18] sm:$0xff] %vm666_vm4, %v5802_v16  ;;  %6955 = vmatmul.msk.f32.gmra.mxu2 %vm991_vm11, %v10270_v48 }
 0x884   : > { %6434 = vrot.lane.b32.xlu1 %v6418_v13, %s7051_s17 }
 0x886   : > { %v5804_v2 = vpop.permute.xlu1 %5803 }
 0x887   : > { %5823 = vst.msk [vmem:[#allocation4 + $0x20] sm:$0xff] %vm666_vm4, %v5804_v2  ;;  %6338 = vrot.lane.b32.xlu2 %v9944_v55, %s7049_s15  ;;  %v6562_v55 = vld [vmem:[#allocation3 + $0x22] sm:$0xff]  ;;  %v6565_v2 = vld [vmem:[#allocation3 + $0x52] sm:$0xff] }
 0x888   : > { %6039 = vrot.lane.b32.xlu0 %v10345_v19, %s7053_s19 }
 0x889   : > { %v5850_v33 = vpop.permute.xlu2 %5849 }
 0x88a   : > { %5870 = vst.msk [vmem:[#allocation4 + $0x18] sm:$0xff] %vm715_vm5, %v5850_v33  ;;  %v5808_v11 = vpop.permute.xlu0 %5807 }
 0x88b   : > { %5825 = vst.msk [vmem:[#allocation4 + $0x30] sm:$0xff] %vm666_vm4, %v5808_v11  ;;  %6956 = vmatmul.msk.f32.gmra.mxu2 %vm991_vm11, %v5627_v54  ;;  %v10411_v54 = vld [vmem:[#allocation3 + $0x101] sm:$0xff] }
 0x88c   : > { %6530 = vrot.lane.b32.xlu1 %v6067_v50, %s7053_s19  ;;  %v6277_v50 = vld [vmem:[#allocation3 + $0x222] sm:$0xff] }
 0x88e   : > { %v5810_v4 = vpop.permute.xlu1 %5809 }
 0x88f   : > { %5826 = vst.msk [vmem:[#allocation4 + $0x38] sm:$0xff] %vm666_vm4, %v5810_v4  ;;  %6482 = vrot.lane.b32.xlu2 %v6019_v15, %s7052_s18 }
 0x890   : > { %6578 = vrot.lane.b32.xlu0 %v6562_v55, %s7054_s20  ;;  %v10455_v55 = vld [vmem:[#allocation3 + $0x1b1] sm:$0xff] }
 0x891   : > { %v5856_v36 = vpop.permute.xlu2 %5855 }
 0x892   : > { %5873 = vst.msk [vmem:[#allocation4 + $0x30] sm:$0xff] %vm715_vm5, %v5856_v36  ;;  %v5846_v40 = vpop.permute.xlu0 %5845 }
 0x893   : > { %5868 = vst.msk [vmem:[#allocation4 + $0x8] sm:$0xff] %vm715_vm5, %v5846_v40  ;;  %v6326_v40 = vld [vmem:[#allocation3 + $0x4b1] sm:$0xff] }
 0x894   : > { %6244 = vrot.lane.b32.xlu1 %v10105_v61, %s7047_s26  ;;  %v6275_v61 = vld [vmem:[#allocation3 + $0x202] sm:$0xff] }
 0x896   : > { %v5848_v52 = vpop.permute.xlu1 %5847 }
 0x897   : > { %5869 = vst.msk [vmem:[#allocation4 + $0x10] sm:$0xff] %vm715_vm5, %v5848_v52  ;;  %6087 = vrot.lane.b32.xlu2 %v6069_v59, %s7054_s20 }
 0x898   : > { %6340 = vrot.lane.b32.xlu0 %v9931_v47, %s7049_s15 }
 0x899   : > { %v5894_v26 = vpop.permute.xlu2 %5893 }
 0x89a   : > { %5916 = vst.msk [vmem:[#allocation4 + $0x8] sm:$0xff] %vm764_vm6, %v5894_v26  ;;  %v5852_v63 = vpop.permute.xlu0 %5851 }
 0x89b   : > { %5871 = vst.msk [vmem:[#allocation4 + $0x20] sm:$0xff] %vm715_vm5, %v5852_v63 }
 0x89c   : > { %6388 = vrot.lane.b32.xlu1 %v10232_v62, %s7050_s16 }
 0x89e   : > { %v5854_v48 = vpop.permute.xlu1 %5853 }
 0x89f   : > { %5872 = vst.msk [vmem:[#allocation4 + $0x28] sm:$0xff] %vm715_vm5, %v5854_v48  ;;  %6292 = vrot.lane.b32.xlu2 %v6275_v61, %s7048_s14  ;;  %v6278_v61 = vld [vmem:[#allocation3 + $0x232] sm:$0xff] }
 0x8a0   : > { %6484 = vrot.lane.b32.xlu0 %v6020_v24, %s7052_s18 }
 0x8a1   : > { %v5900_v18 = vpop.permute.xlu2 %5899 }
 0x8a2   : > { %5919 = vst.msk [vmem:[#allocation4 + $0x20] sm:$0xff] %vm764_vm6, %v5900_v18  ;;  %v5858_v47 = vpop.permute.xlu0 %5857 }
 0x8a3   : > { %5874 = vst.msk [vmem:[#allocation4 + $0x38] sm:$0xff] %vm715_vm5, %v5858_v47  ;;  %v5977_v47 = vld [vmem:[#allocation3 + $0x81] sm:$0xff] }
 0x8a4   : > { %6041 = vrot.lane.b32.xlu1 %v10373_v3, %s7053_s19 }
 0x8a6   : > { %v5892_v62 = vpop.permute.xlu1 %5891 }
 0x8a7   : > { %5915 = vst.msk [vmem:[#allocation4] sm:$0xff] %vm764_vm6, %v5892_v62  ;;  %6436 = vrot.lane.b32.xlu2 %v6419_v9, %s7051_s17 }
 0x8a8   : > { %6089 = vrot.lane.b32.xlu0 %v10379_v39, %s7054_s20 }
 0x8a9   : > { %v5906_v60 = vpop.permute.xlu2 %5905 }
 0x8aa   : > { %5922 = vst.msk [vmem:[#allocation4 + $0x38] sm:$0xff] %vm764_vm6, %v5906_v60  ;;  %v5896_v20 = vpop.permute.xlu0 %5895 }
 0x8ab   : > { %5917 = vst.msk [vmem:[#allocation4 + $0x10] sm:$0xff] %vm764_vm6, %v5896_v20  ;;  %v6422_v20 = vld [vmem:[#allocation3 + $0x412] sm:$0xff] }
 0x8ac   : > { %6580 = vrot.lane.b32.xlu1 %v6563_v51, %s7054_s20 }
 0x8ae   : > { %v5898_v34 = vpop.permute.xlu1 %5897 }
 0x8af   : > { %5918 = vst.msk [vmem:[#allocation4 + $0x18] sm:$0xff] %vm764_vm6, %v5898_v34  ;;  %6532 = vrot.lane.b32.xlu2 %v10330_v28, %s7053_s19 }
 0x8b0   : > { %6294 = vrot.lane.b32.xlu0 %v6276_v5, %s7048_s14 }
 0x8b1   : > { %v5944_v1 = vpop.permute.xlu2 %5943 }
 0x8b2   : > { %5965 = vst.msk [vmem:[#allocation4 + $0x10] sm:$0xff] %vm813_vm7, %v5944_v1  ;;  %v5902_v42 = vpop.permute.xlu0 %5901  ;;  %v10491_v1 = vld [vmem:[#allocation3 + $0x1c1] sm:$0xff] }
 0x8b3   : > { %5920 = vst.msk [vmem:[#allocation4 + $0x28] sm:$0xff] %vm764_vm6, %v5902_v42 }
 0x8b4   : > { %6342 = vrot.lane.b32.xlu1 %v6324_v32, %s7049_s15 }
 0x8b6   : > { %v5904_v41 = vpop.permute.xlu1 %5903 }
 0x8b7   : > { %5921 = vst.msk [vmem:[#allocation4 + $0x30] sm:$0xff] %vm764_vm6, %v5904_v41  ;;  %6246 = vrot.lane.b32.xlu2 %v10122_v43, %s7047_s26  ;;  %v10496_v41 = vld [vmem:[#allocation3 + $0x121] sm:$0xff] }
 0x8b8   : > { %6438 = vrot.lane.b32.xlu0 %v6420_v0, %s7051_s17 }
 0x8b9   : > { %v5950_v12 = vpop.permute.xlu2 %5949 }
 0x8ba   : > { %5968 = vst.msk [vmem:[#allocation4 + $0x28] sm:$0xff] %vm813_vm7, %v5950_v12  ;;  %v5940_v31 = vpop.permute.xlu0 %5939 }
 0x8bb   : > { %5963 = vst.msk [vmem:[#allocation4] sm:$0xff] %vm813_vm7, %v5940_v31 }
 0x8bc   : > { %6486 = vrot.lane.b32.xlu1 %v10345_v19, %s7052_s18 }
 0x8be   : > { %v5942_v35 = vpop.permute.xlu1 %5941 }
 0x8bf   : > { %5964 = vst.msk [vmem:[#allocation4 + $0x8] sm:$0xff] %vm813_vm7, %v5942_v35  ;;  %6390 = vrot.lane.b32.xlu2 %v10259_v38, %s7050_s16  ;;  %v6279_v35 = vld [vmem:[#allocation3 + $0x242] sm:$0xff] }
 0x8c0   : > { %6534 = vrot.lane.b32.xlu0 %v6069_v59, %s7053_s19 }
 0x8c1   : > { %v5988_v43 = vpop.permute.xlu2 %5987 }
 0x8c2   : > { %6011 = vst.msk [vmem:[#allocation4] sm:$0xff] %vm863_vm8, %v5988_v43  ;;  %v5946_v37 = vpop.permute.xlu0 %5945 }
 0x8c3   : > { %5966 = vst.msk [vmem:[#allocation4 + $0x18] sm:$0xff] %vm813_vm7, %v5946_v37  ;;  %v6212_v37 = vld [vmem:[#allocation3 + $0x2b1] sm:$0xff] }
 0x8c4   : > { %6091 = vrot.lane.b32.xlu1 %v10407_v17, %s7054_s20 }
 0x8c6   : > { %v5948_v56 = vpop.permute.xlu1 %5947 }
 0x8c7   : > { %5967 = vst.msk [vmem:[#allocation4 + $0x20] sm:$0xff] %vm813_vm7, %v5948_v56  ;;  %6043 = vrot.lane.b32.xlu2 %v10411_v54, %s7053_s19 }
 0x8c8   : > { %6248 = vrot.lane.b32.xlu0 %v10112_v57, %s7047_s26 }
 0x8c9   : > { %v5994_v38 = vpop.permute.xlu2 %5993 }
 0x8ca   : > { %6014 = vst.msk [vmem:[#allocation4 + $0x18] sm:$0xff] %vm863_vm8, %v5994_v38  ;;  %v5952_v49 = vpop.permute.xlu0 %5951 }
 0x8cb   : > { %5969 = vst.msk [vmem:[#allocation4 + $0x30] sm:$0xff] %vm813_vm7, %v5952_v49 }
 0x8cc   : > { %6296 = vrot.lane.b32.xlu1 %v6277_v50, %s7048_s14 }
 0x8cd   : > { %v5682_v44 = vpop.f32.mrf.mxu2 }
 0x8ce   : > { %v5954_v21 = vpop.permute.xlu1 %5953  ;;  %v5683_v24 = vadd.f32 %v10422_v58, %v5682_v44  ;;  %v6423_v44 = vld [vmem:[#allocation3 + $0x422] sm:$0xff] }
 0x8cf   : > { %5970 = vst.msk [vmem:[#allocation4 + $0x38] sm:$0xff] %vm813_vm7, %v5954_v21  ;;  %6582 = vrot.lane.b32.xlu2 %v6564_v45, %s7054_s20  ;;  %v6327_v45 = vld [vmem:[#allocation3 + $0x4c1] sm:$0xff] }
 0x8d0   : > { %6957 = vst.msk [vmem:[%s8739_s23 + $0x180] sm:$0xff] %vm2733_vm12, %v5683_v24  ;;  %6392 = vrot.lane.b32.xlu0 %v10244_v14, %s7050_s16 }
 0x8d1   : > { %v6036_v57 = vpop.permute.xlu2 %6035 }
 0x8d2   : > { %6059 = vst.msk [vmem:[#allocation4] sm:$0xff] %vm912_vm9, %v6036_v57  ;;  %v5990_v15 = vpop.permute.xlu0 %5989 }
 0x8d3   : > { %6012 = vst.msk [vmem:[#allocation4 + $0x8] sm:$0xff] %vm863_vm8, %v5990_v15  ;;  %v10529_v15 = vld [vmem:[#allocation3 + $0x131] sm:$0xff] }
 0x8d4   : > { %6440 = vrot.lane.b32.xlu1 %v6421_v53, %s7051_s17 }
 0x8d6   : > { %v5992_v7 = vpop.permute.xlu1 %5991 }
 0x8d7   : > { %6013 = vst.msk [vmem:[#allocation4 + $0x10] sm:$0xff] %vm863_vm8, %v5992_v7  ;;  %6344 = vrot.lane.b32.xlu2 %v6325_v46, %s7049_s15  ;;  %v10536_v7 = vld [vmem:[#allocation3 + $0x1d1] sm:$0xff] }
 0x8d8   : > { %6045 = vrot.lane.b32.xlu0 %v10438_v29, %s7053_s19 }
 0x8d9   : > { %v6086_v14 = vpop.permute.xlu2 %6085 }
 0x8da   : > { %v5996_v28 = vpop.permute.xlu0 %5995 }
 0x8db   : > { %6015 = vst.msk [vmem:[#allocation4 + $0x20] sm:$0xff] %vm863_vm8, %v5996_v28  ;;  %v6567_v28 = vld [vmem:[#allocation3 + $0x72] sm:$0xff] }
 0x8dc   : > { %6536 = vrot.lane.b32.xlu1 %v10379_v39, %s7053_s19 }
 0x8de   : > { %v5998_v22 = vpop.permute.xlu1 %5997  ;;  %v5685_v16 = vpop.f32.mrf.mxu2 }
 0x8df   : > { %6016 = vst.msk [vmem:[#allocation4 + $0x28] sm:$0xff] %vm863_vm8, %v5998_v22  ;;  %v5686_v13 = vadd.f32 %v10422_v58, %v5685_v16  ;;  %6488 = vrot.lane.b32.xlu2 %v10373_v3, %s7052_s18  ;;  %v6280_v16 = vld [vmem:[#allocation3 + $0x252] sm:$0xff] }
 0x8e0   : > { %6584 = vrot.lane.b32.xlu0 %v6565_v2, %s7054_s20 }
 0x8e1   : > { %6958 = vst.msk [vmem:[%s8739_s23 + $0x188] sm:$0xff] %vm2733_vm12, %v5686_v13  ;;  %v6339_v19 = vpop.permute.xlu2 %6338 }
 0x8e2   : > { %v6084_v33 = vpop.permute.xlu0 %6083 }
 0x8e3   : > { %6107 = vst.msk [vmem:[#allocation4] sm:$0xff] %vm961_vm10, %v6084_v33  ;;  %v6328_v33 = vld [vmem:[#allocation3 + $0x4d1] sm:$0xff] }
 0x8e4   : > { %6250 = vrot.lane.b32.xlu1 %v10118_v10, %s7047_s26  ;;  %v6210_v10 = vld [vmem:[#allocation3 + $0x291] sm:$0xff] }
 0x8e6   : > { %v6038_v11 = vpop.permute.xlu1 %6037  ;;  %v5688_v4 = vpop.f32.mrf.mxu2 }
 0x8e7   : > { %6060 = vst.msk [vmem:[#allocation4 + $0x8] sm:$0xff] %vm912_vm9, %v6038_v11  ;;  %v5689_v36 = vadd.f32 %v10422_v58, %v5688_v4  ;;  %6093 = vrot.lane.b32.xlu2 %v10455_v55, %s7054_s20  ;;  %v6213_v11 = vld [vmem:[#allocation3 + $0x2c1] sm:$0xff] }
 0x8e8   : > { %6108 = vst.msk [vmem:[#allocation4 + $0x8] sm:$0xff] %vm961_vm10, %v6086_v14  ;;  %6346 = vrot.lane.b32.xlu0 %v6326_v40, %s7049_s15  ;;  %v6424_v40 = vld [vmem:[#allocation3 + $0x432] sm:$0xff] }
 0x8e9   : > { %6959 = vst.msk [vmem:[%s8739_s23 + $0x190] sm:$0xff] %vm2733_vm12, %v5689_v36  ;;  %v6483_v52 = vpop.permute.xlu2 %6482  ;;  %v6232_v36 = vld [vmem:[#allocation3 + $0x391] sm:$0xff] }
 0x8ea   : > { %v6243_v59 = vpop.permute.xlu0 %6242  ;;  %v6115_v26 = vld [vmem:[#allocation4] sm:$0xff] }
 0x8eb   : > { %6218 = vst.msk [vmem:[#allocation4] sm:$0xff] %vm299_vm0, %v6210_v10  ;;  %6965 = vmatmul.msk.f32.vlgmr.msrb.gmra.mxu3 %vm991_vm11, %v6115_v26  ;;  %v6568_v26 = vld [vmem:[#allocation3 + $0x82] sm:$0xff] }
 0x8ec   : > { %6266 = vst.msk [vmem:[#allocation4] sm:$0xff] %vm617_vm3, %v6243_v59  ;;  %6394 = vrot.lane.b32.xlu1 %v10253_v27, %s7050_s16  ;;  %v6211_v27 = vld [vmem:[#allocation3 + $0x2a1] sm:$0xff] }
 0x8ee   : > { %v6291_v63 = vpop.permute.xlu1 %6290  ;;  %v5691_v48 = vpop.f32.mrf.mxu2 }
 0x8ef   : > { %6314 = vst.msk [vmem:[#allocation4] sm:$0xff] %vm666_vm4, %v6291_v63  ;;  %v5692_v18 = vadd.f32 %v10422_v58, %v5691_v48  ;;  %6298 = vrot.lane.b32.xlu2 %v6278_v61, %s7048_s14  ;;  %v6116_v3 = vld [vmem:[#allocation4 + $0x8] sm:$0xff] }
 0x8f0   : > { %6362 = vst.msk [vmem:[#allocation4] sm:$0xff] %vm715_vm5, %v6339_v19  ;;  %5999 = vrot.lane.b32.xlu0 %v5977_v47, %s7052_s18  ;;  %v6233_v61 = vld [vmem:[#allocation3 + $0x3a1] sm:$0xff] }
 0x8f1   : > { %6960 = vst.msk [vmem:[%s8739_s23 + $0x198] sm:$0xff] %vm2733_vm12, %v5692_v18  ;;  %v6088_v62 = vpop.permute.xlu2 %6087 }
 0x8f2   : > { %v6387_v9 = vpop.permute.xlu0 %6386  ;;  %6219 = vst.msk [vmem:[#allocation4 + $0x8] sm:$0xff] %vm299_vm0, %v6211_v27 }
 0x8f3   : > { %6410 = vst.msk [vmem:[#allocation4] sm:$0xff] %vm764_vm6, %v6387_v9  ;;  %6966 = vmatmul.msk.f32.gmra.mxu3 %vm991_vm11, %v6116_v3  ;;  %v6281_v9 = vld [vmem:[#allocation3 + $0x262] sm:$0xff] }
 0x8f4   : > { %6490 = vrot.lane.b32.xlu1 %v10411_v54, %s7052_s18  ;;  %v6566_v54 = vld [vmem:[#allocation3 + $0x62] sm:$0xff] }
 0x8f6   : > { %v6435_v39 = vpop.permute.xlu1 %6434  ;;  %v5694_v60 = vpop.f32.mrf.mxu2 }
 0x8f7   : > { %6458 = vst.msk [vmem:[#allocation4] sm:$0xff] %vm813_vm7, %v6435_v39  ;;  %v5695_v51 = vadd.f32 %v10422_v58, %v5694_v60  ;;  %6442 = vrot.lane.b32.xlu2 %v6422_v20, %s7051_s17  ;;  %v6425_v20 = vld [vmem:[#allocation3 + $0x442] sm:$0xff] }
 0x8f8   : > { %6506 = vst.msk [vmem:[#allocation4] sm:$0xff] %vm863_vm8, %v6483_v52  ;;  %6538 = vrot.lane.b32.xlu0 %v10407_v17, %s7053_s19 }
 0x8f9   : > { %6961 = vst.msk [vmem:[%s8739_s23 + $0x1a0] sm:$0xff] %vm2733_vm12, %v5695_v51  ;;  %v6293_v34 = vpop.permute.xlu2 %6292 }
 0x8fa   : > { %v6040_v5 = vpop.permute.xlu0 %6039 }
 0x8fb   : > { %6061 = vst.msk [vmem:[#allocation4 + $0x10] sm:$0xff] %vm912_vm9, %v6040_v5  ;;  %v6569_v5 = vld [vmem:[#allocation3 + $0x92] sm:$0xff] }
 0x8fc   : > { %6109 = vst.msk [vmem:[#allocation4 + $0x10] sm:$0xff] %vm961_vm10, %v6088_v62  ;;  %6095 = vrot.lane.b32.xlu1 %v10491_v1, %s7054_s20 }
 0x8fe   : > { %v6531_v42 = vpop.permute.xlu1 %6530  ;;  %v5697_v32 = vpop.f32.mrf.mxu2 }
 0x8ff   : > { %6554 = vst.msk [vmem:[#allocation4] sm:$0xff] %vm912_vm9, %v6531_v42  ;;  %v5698_v0 = vadd.f32 %v10422_v58, %v5697_v32  ;;  %6047 = vrot.lane.b32.xlu2 %v10496_v41, %s7053_s19 }
 0x900   : > { %6252 = vrot.lane.b32.xlu0 %v10134_v8, %s7047_s26 }
 0x901   : > { %6962 = vst.msk [vmem:[%s8739_s23 + $0x1a8] sm:$0xff] %vm2733_vm12, %v5698_v0  ;;  %v6437_v12 = vpop.permute.xlu2 %6436  ;;  %v6215_v0 = vld [vmem:[#allocation3 + $0x2e1] sm:$0xff] }
 0x902   : > { %v6579_v31 = vpop.permute.xlu0 %6578 }
 0x903   : > { %6602 = vst.msk [vmem:[#allocation4] sm:$0xff] %vm961_vm10, %v6579_v31  ;;  %v6117_v43 = vld [vmem:[#allocation4 + $0x10] sm:$0xff] }
 0x904   : > { %6300 = vrot.lane.b32.xlu1 %v6279_v35, %s7048_s14  ;;  %6967 = vmatmul.msk.f32.gmra.mxu3 %vm991_vm11, %v6117_v43  ;;  %6220 = vst.msk [vmem:[#allocation4 + $0x10] sm:$0xff] %vm299_vm0, %v6212_v37 }
 0x906   : > { %v6245_v17 = vpop.permute.xlu1 %6244  ;;  %v5700_v56 = vpop.f32.mrf.mxu2 }
 0x907   : > { %6267 = vst.msk [vmem:[#allocation4 + $0x8] sm:$0xff] %vm617_vm3, %v6245_v17  ;;  %v5701_v8 = vadd.f32 %v10422_v58, %v5700_v56  ;;  %6586 = vrot.lane.b32.xlu2 %v6566_v54, %s7054_s20 }
 0x908   : > { %6315 = vst.msk [vmem:[#allocation4 + $0x8] sm:$0xff] %vm666_vm4, %v6293_v34  ;;  %6396 = vrot.lane.b32.xlu0 %v10282_v25, %s7050_s16 }
 0x909   : > { %6963 = vst.msk [vmem:[%s8739_s23 + $0x1b0] sm:$0xff] %vm2733_vm12, %v5701_v8  ;;  %v6533_v38 = vpop.permute.xlu2 %6532 }
 0x90a   : > { %v6341_v49 = vpop.permute.xlu0 %6340  ;;  %v6610_v50 = vld [vmem:[#allocation4] sm:$0xff] }
 0x90b   : > { %6363 = vst.msk [vmem:[#allocation4 + $0x8] sm:$0xff] %vm715_vm5, %v6341_v49  ;;  %6981 = vmatmul.msk.f32.vlgmr.msra.gmra.mxu0 %vm991_vm11, %v6610_v50  ;;  %v10610_v49 = vld [vmem:[%s10711_s6] ss:$0 sm:$0xff] }
 0x90c   : > { %6444 = vrot.lane.b32.xlu1 %v6423_v44, %s7051_s17 }
 0x90e   : > { %v6389_v21 = vpop.permute.xlu1 %6388  ;;  %v5703_v24 = vpop.f32.mrf.mxu2 }
 0x90f   : > { %6411 = vst.msk [vmem:[#allocation4 + $0x8] sm:$0xff] %vm764_vm6, %v6389_v21  ;;  %v5704_v25 = vadd.f32 %v10422_v58, %v5703_v24  ;;  %6348 = vrot.lane.b32.xlu2 %v6327_v45, %s7049_s15  ;;  %v5978_v58 = vld [vmem:[#allocation3 + $0x91] sm:$0xff] }
 0x910   : > { %6459 = vst.msk [vmem:[#allocation4 + $0x8] sm:$0xff] %vm813_vm7, %v6437_v12  ;;  %6492 = vrot.lane.b32.xlu0 %v10438_v29, %s7052_s18 }
 0x911   : > { %6964 = vst.msk [vmem:[%s8739_s23 + $0x1b8] sm:$0xff] %vm2733_vm12, %v5704_v25  ;;  %v6247_v57 = vpop.permute.xlu2 %6246 }
 0x912   : > { %6268 = vst.msk [vmem:[#allocation4 + $0x10] sm:$0xff] %vm617_vm3, %v6247_v57  ;;  %v6485_v53 = vpop.permute.xlu0 %6484 }
 0x913   : > { %6507 = vst.msk [vmem:[#allocation4 + $0x8] sm:$0xff] %vm863_vm8, %v6485_v53 }
 0x914   : > { %6555 = vst.msk [vmem:[#allocation4 + $0x8] sm:$0xff] %vm912_vm9, %v6533_v38  ;;  %6049 = vrot.lane.b32.xlu1 %v10529_v15, %s7053_s19 }
 0x916   : > { %v6042_v46 = vpop.permute.xlu1 %6041 }
 0x917   : > { %6062 = vst.msk [vmem:[#allocation4 + $0x18] sm:$0xff] %vm912_vm9, %v6042_v46  ;;  %6001 = vrot.lane.b32.xlu2 %v5978_v58, %s7052_s18  ;;  %v6216_v46 = vld [vmem:[#allocation3 + $0x2f1] sm:$0xff] }
 0x918   : > { %6097 = vrot.lane.b32.xlu0 %v10536_v7, %s7054_s20 }
 0x919   : > { %v6391_v29 = vpop.permute.xlu2 %6390 }
 0x91a   : > { %v6090_v14 = vpop.permute.xlu0 %6089 }
 0x91b   : > { %6110 = vst.msk [vmem:[#allocation4 + $0x18] sm:$0xff] %vm961_vm10, %v6090_v14 }
 0x91c   : > { %6588 = vrot.lane.b32.xlu1 %v6567_v28, %s7054_s20 }
 0x91e   : > { %v6581_v22 = vpop.permute.xlu1 %6580 }
 0x91f   : > { %6603 = vst.msk [vmem:[#allocation4 + $0x8] sm:$0xff] %vm961_vm10, %v6581_v22  ;;  %6540 = vrot.lane.b32.xlu2 %v10455_v55, %s7053_s19 }
 0x920   : > { %6302 = vrot.lane.b32.xlu0 %v6280_v16, %s7048_s14  ;;  %v10635_v16 = vld [vmem:[%s10711_s6] ss:$0 sm:$0xff] }
 0x921   : > { %v6044_v13 = vpop.permute.xlu2 %6043 }
 0x922   : > { %6063 = vst.msk [vmem:[#allocation4 + $0x20] sm:$0xff] %vm912_vm9, %v6044_v13  ;;  %v6295_v2 = vpop.permute.xlu0 %6294  ;;  %v6118_v19 = vld [vmem:[#allocation4 + $0x18] sm:$0xff] }
 0x923   : > { %6316 = vst.msk [vmem:[#allocation4 + $0x10] sm:$0xff] %vm666_vm4, %v6295_v2  ;;  %6968 = vmatmul.msk.f32.gmra.mxu3 %vm991_vm11, %v6118_v19 }
 0x924   : > { %6350 = vrot.lane.b32.xlu1 %v6328_v33, %s7049_s15  ;;  %6221 = vst.msk [vmem:[#allocation4 + $0x18] sm:$0xff] %vm299_vm0, %v6213_v11 }
 0x926   : > { %v6343_v4 = vpop.permute.xlu1 %6342  ;;  %v6611_v55 = vld [vmem:[#allocation4 + $0x8] sm:$0xff] }
 0x927   : > { %6364 = vst.msk [vmem:[#allocation4 + $0x10] sm:$0xff] %vm715_vm5, %v6343_v4  ;;  %6982 = vmatmul.msk.f32.gmra.mxu0 %vm991_vm11, %v6611_v55  ;;  %6254 = vrot.lane.b32.xlu2 %v6232_v36, %s7047_s26 }
 0x928   : > { %6412 = vst.msk [vmem:[#allocation4 + $0x10] sm:$0xff] %vm764_vm6, %v6391_v29  ;;  %6446 = vrot.lane.b32.xlu0 %v6424_v40, %s7051_s17 }
 0x929   : > { %v6583_v52 = vpop.permute.xlu2 %6582 }
 0x92a   : > { %v6439_v10 = vpop.permute.xlu0 %6438 }
 0x92b   : > { %6460 = vst.msk [vmem:[#allocation4 + $0x10] sm:$0xff] %vm813_vm7, %v6439_v10  ;;  %v6217_v10 = vld [vmem:[#allocation3 + $0x301] sm:$0xff] }
 0x92c   : > { %6494 = vrot.lane.b32.xlu1 %v10496_v41, %s7052_s18 }
 0x92e   : > { %v6487_v59 = vpop.permute.xlu1 %6486 }
 0x92f   : > { %6508 = vst.msk [vmem:[#allocation4 + $0x10] sm:$0xff] %vm863_vm8, %v6487_v59  ;;  %6398 = vrot.lane.b32.xlu2 %v10265_v6, %s7050_s16 }
 0x930   : > { %6590 = vrot.lane.b32.xlu0 %v6568_v26, %s7054_s20 }
 0x931   : > { %v6345_v63 = vpop.permute.xlu2 %6344 }
 0x932   : > { %v6535_v48 = vpop.permute.xlu0 %6534 }
 0x933   : > { %6556 = vst.msk [vmem:[#allocation4 + $0x10] sm:$0xff] %vm912_vm9, %v6535_v48 }
 0x934   : > { %6604 = vst.msk [vmem:[#allocation4 + $0x10] sm:$0xff] %vm961_vm10, %v6583_v52  ;;  %6256 = vrot.lane.b32.xlu1 %v6233_v61, %s7047_s26 }
 0x936   : > { %v6092_v18 = vpop.permute.xlu1 %6091 }
 0x937   : > { %6111 = vst.msk [vmem:[#allocation4 + $0x20] sm:$0xff] %vm961_vm10, %v6092_v18  ;;  %6542 = vrot.lane.b32.xlu2 %v10491_v1, %s7053_s19 }
 0x938   : > { %6352 = vrot.lane.b32.xlu0 %v10238_v30, %s7049_s15  ;;  %v6214_v30 = vld [vmem:[#allocation3 + $0x2d1] sm:$0xff] }
 0x939   : > { %v6489_v6 = vpop.permute.xlu2 %6488 }
 0x93a   : > { %v6249_v47 = vpop.permute.xlu0 %6248 }
 0x93b   : > { %6269 = vst.msk [vmem:[#allocation4 + $0x18] sm:$0xff] %vm617_vm3, %v6249_v47  ;;  %v6612_v3 = vld [vmem:[#allocation4 + $0x10] sm:$0xff] }
 0x93c   : > { %6400 = vrot.lane.b32.xlu1 %v10274_v23, %s7050_s16  ;;  %6983 = vmatmul.msk.f32.gmra.mxu0 %vm991_vm11, %v6612_v3 }
 0x93e   : > { %v6297_v62 = vpop.permute.xlu1 %6296  ;;  %v6119_v27 = vld [vmem:[#allocation4 + $0x20] sm:$0xff] }
 0x93f   : > { %6317 = vst.msk [vmem:[#allocation4 + $0x18] sm:$0xff] %vm666_vm4, %v6297_v62  ;;  %6969 = vmatmul.msk.f32.gmra.mxu3 %vm991_vm11, %v6119_v27  ;;  %6304 = vrot.lane.b32.xlu2 %v6281_v9, %s7048_s14 }
 0x940   : > { %6365 = vst.msk [vmem:[#allocation4 + $0x18] sm:$0xff] %vm715_vm5, %v6345_v63  ;;  %6496 = vrot.lane.b32.xlu0 %v10529_v15, %s7052_s18 }
 0x941   : > { %v6094_v39 = vpop.permute.xlu2 %6093  ;;  %6222 = vst.msk [vmem:[#allocation4 + $0x20] sm:$0xff] %vm299_vm0, %v6214_v30 }
 0x942   : > { %v6393_v23 = vpop.permute.xlu0 %6392 }
 0x943   : > { %6413 = vst.msk [vmem:[#allocation4 + $0x18] sm:$0xff] %vm764_vm6, %v6393_v23 }
 0x944   : > { %6544 = vrot.lane.b32.xlu1 %v10536_v7, %s7053_s19 }
 0x946   : > { %v6441_v60 = vpop.permute.xlu1 %6440 }
 0x947   : > { %6461 = vst.msk [vmem:[#allocation4 + $0x18] sm:$0xff] %vm813_vm7, %v6441_v60  ;;  %6448 = vrot.lane.b32.xlu2 %v6425_v20, %s7051_s17 }
 0x948   : > { %6509 = vst.msk [vmem:[#allocation4 + $0x18] sm:$0xff] %vm863_vm8, %v6489_v6 }
 0x949   : > { %v6299_v51 = vpop.permute.xlu2 %6298 }
 0x94a   : > { %v6046_v34 = vpop.permute.xlu0 %6045 }
 0x94b   : > { %6064 = vst.msk [vmem:[#allocation4 + $0x28] sm:$0xff] %vm912_vm9, %v6046_v34 }
 0x94c   : > { %6112 = vst.msk [vmem:[#allocation4 + $0x28] sm:$0xff] %vm961_vm10, %v6094_v39 }
 0x94e   : > { %v6537_v1 = vpop.permute.xlu1 %6536 }
 0x94f   : > { %6557 = vst.msk [vmem:[#allocation4 + $0x18] sm:$0xff] %vm912_vm9, %v6537_v1  ;;  %6592 = vrot.lane.b32.xlu2 %v6569_v5, %s7054_s20 }
 0x951   : > { %v6443_v42 = vpop.permute.xlu2 %6442 }
 0x952   : > { %v6585_v32 = vpop.permute.xlu0 %6584 }
 0x953   : > { %6605 = vst.msk [vmem:[#allocation4 + $0x18] sm:$0xff] %vm961_vm10, %v6585_v32  ;;  %v6120_v41 = vld [vmem:[#allocation4 + $0x28] sm:$0xff] }
 0x954   : > { %6970 = vmatmul.msk.f32.gmra.mxu3 %vm991_vm11, %v6120_v41  ;;  %6223 = vst.msk [vmem:[#allocation4 + $0x28] sm:$0xff] %vm299_vm0, %v6215_v0 }
 0x956   : > { %v6251_v12 = vpop.permute.xlu1 %6250 }
 0x957   : > { %6270 = vst.msk [vmem:[#allocation4 + $0x20] sm:$0xff] %vm617_vm3, %v6251_v12 }
 0x958   : > { %6318 = vst.msk [vmem:[#allocation4 + $0x20] sm:$0xff] %vm666_vm4, %v6299_v51 }
 0x959   : > { %v6048_v31 = vpop.permute.xlu2 %6047 }
 0x95a   : > { %v6347_v35 = vpop.permute.xlu0 %6346  ;;  %v6613_v43 = vld [vmem:[#allocation4 + $0x18] sm:$0xff] }
 0x95b   : > { %6366 = vst.msk [vmem:[#allocation4 + $0x20] sm:$0xff] %vm715_vm5, %v6347_v35  ;;  %6984 = vmatmul.msk.f32.gmra.mxu0 %vm991_vm11, %v6613_v43 }
 0x95e   : > { %v6395_v37 = vpop.permute.xlu1 %6394 }
 0x95f   : > { %6414 = vst.msk [vmem:[#allocation4 + $0x20] sm:$0xff] %vm764_vm6, %v6395_v37 }
 0x960   : > { %6462 = vst.msk [vmem:[#allocation4 + $0x20] sm:$0xff] %vm813_vm7, %v6443_v42 }
 0x961   : > { %v6587_v17 = vpop.permute.xlu2 %6586 }
 0x962   : > { %v6000_v56 = vpop.permute.xlu0 %5999 }
 0x963   : > { %6017 = vst.msk [vmem:[#allocation4 + $0x30] sm:$0xff] %vm863_vm8, %v6000_v56 }
 0x964   : > { %6065 = vst.msk [vmem:[#allocation4 + $0x30] sm:$0xff] %vm912_vm9, %v6048_v31 }
 0x966   : > { %v6491_v54 = vpop.permute.xlu1 %6490 }
 0x967   : > { %6510 = vst.msk [vmem:[#allocation4 + $0x20] sm:$0xff] %vm863_vm8, %v6491_v54 }
 0x969   : > { %v6349_v8 = vpop.permute.xlu2 %6348 }
 0x96a   : > { %v6539_v38 = vpop.permute.xlu0 %6538 }
 0x96b   : > { %6558 = vst.msk [vmem:[#allocation4 + $0x20] sm:$0xff] %vm912_vm9, %v6539_v38 }
 0x96c   : > { %6606 = vst.msk [vmem:[#allocation4 + $0x20] sm:$0xff] %vm961_vm10, %v6587_v17 }
 0x96e   : > { %v6096_v50 = vpop.permute.xlu1 %6095  ;;  %v6177_v44 = vpop.f32.mrf.mxu3 }
 0x96f   : > { %6113 = vst.msk [vmem:[#allocation4 + $0x30] sm:$0xff] %vm961_vm10, %v6096_v50  ;;  %v6178_v21 = vadd.f32 %v10610_v49, %v6177_v44 }
 0x971   : > { %6973 = vst.msk [vmem:[%s8739_s23 + $0x1c0] sm:$0xff] %vm2733_vm12, %v6178_v21  ;;  %v6002_v24 = vpop.permute.xlu2 %6001 }
 0x972   : > { %6018 = vst.msk [vmem:[#allocation4 + $0x38] sm:$0xff] %vm863_vm8, %v6002_v24  ;;  %v6253_v45 = vpop.permute.xlu0 %6252 }
 0x973   : > { %6271 = vst.msk [vmem:[#allocation4 + $0x28] sm:$0xff] %vm617_vm3, %v6253_v45  ;;  %v6614_v25 = vld [vmem:[#allocation4 + $0x20] sm:$0xff] }
 0x974   : > { %6985 = vmatmul.msk.f32.gmra.mxu0 %vm991_vm11, %v6614_v25 }
 0x976   : > { %v6301_v57 = vpop.permute.xlu1 %6300  ;;  %v6180_v15 = vpop.f32.mrf.mxu3  ;;  %v6121_v53 = vld [vmem:[#allocation4 + $0x30] sm:$0xff] }
 0x977   : > { %6319 = vst.msk [vmem:[#allocation4 + $0x28] sm:$0xff] %vm666_vm4, %v6301_v57  ;;  %v6181_v58 = vadd.f32 %v10610_v49, %v6180_v15  ;;  %6971 = vmatmul.msk.f32.gmra.mxu3 %vm991_vm11, %v6121_v53 }
 0x978   : > { %6367 = vst.msk [vmem:[#allocation4 + $0x28] sm:$0xff] %vm715_vm5, %v6349_v8 }
 0x979   : > { %6974 = vst.msk [vmem:[%s8739_s23 + $0x1c8] sm:$0xff] %vm2733_vm12, %v6181_v58  ;;  %v6541_v7 = vpop.permute.xlu2 %6540 }
 0x97a   : > { %v6397_v29 = vpop.permute.xlu0 %6396  ;;  %6224 = vst.msk [vmem:[#allocation4 + $0x30] sm:$0xff] %vm299_vm0, %v6216_v46 }
 0x97b   : > { %6415 = vst.msk [vmem:[#allocation4 + $0x28] sm:$0xff] %vm764_vm6, %v6397_v29 }
 0x97e   : > { %v6445_v14 = vpop.permute.xlu1 %6444 }
 0x97f   : > { %6463 = vst.msk [vmem:[#allocation4 + $0x28] sm:$0xff] %vm813_vm7, %v6445_v14 }
 0x981   : > { %v6255_v28 = vpop.permute.xlu2 %6254 }
 0x982   : > { %6272 = vst.msk [vmem:[#allocation4 + $0x30] sm:$0xff] %vm617_vm3, %v6255_v28  ;;  %v6493_v22 = vpop.permute.xlu0 %6492 }
 0x983   : > { %6511 = vst.msk [vmem:[#allocation4 + $0x28] sm:$0xff] %vm863_vm8, %v6493_v22 }
 0x984   : > { %6559 = vst.msk [vmem:[#allocation4 + $0x28] sm:$0xff] %vm912_vm9, %v6541_v7 }
 0x986   : > { %v6050_v13 = vpop.permute.xlu1 %6049 }
 0x987   : > { %6066 = vst.msk [vmem:[#allocation4 + $0x38] sm:$0xff] %vm912_vm9, %v6050_v13  ;;  %v6183_v2 = vpop.f32.mrf.mxu3 }
 0x988   : > { %v6184_v19 = vadd.f32 %v10610_v49, %v6183_v2  ;;  %v6672_v33 = vpop.f32.mrf.mxu0 }
 0x989   : > { %v6673_v11 = vadd.f32 %v10635_v16, %v6672_v33  ;;  %v6399_v36 = vpop.permute.xlu2 %6398 }
 0x98a   : > { %6975 = vst.msk [vmem:[%s8739_s23 + $0x1d0] sm:$0xff] %vm2733_vm12, %v6184_v19  ;;  %v6098_v4 = vpop.permute.xlu0 %6097 }
 0x98b   : > { %6989 = vst.msk [vmem:[%s8739_s23 + $0x200] sm:$0xff] %vm2733_vm12, %v6673_v11 }
 0x98c   : > { %6114 = vst.msk [vmem:[#allocation4 + $0x38] sm:$0xff] %vm961_vm10, %v6098_v4 }
 0x98e   : > { %v6589_v55 = vpop.permute.xlu1 %6588 }
 0x98f   : > { %6607 = vst.msk [vmem:[#allocation4 + $0x28] sm:$0xff] %vm961_vm10, %v6589_v55 }
 0x991   : > { %v6543_v63 = vpop.permute.xlu2 %6542 }
 0x992   : > { %v6303_v40 = vpop.permute.xlu0 %6302 }
 0x993   : > { %6320 = vst.msk [vmem:[#allocation4 + $0x30] sm:$0xff] %vm666_vm4, %v6303_v40  ;;  %v6122_v52 = vld [vmem:[#allocation4 + $0x38] sm:$0xff] }
 0x994   : > { %6972 = vmatmul.msk.f32.gmra.mxu3 %vm991_vm11, %v6122_v52  ;;  %6225 = vst.msk [vmem:[#allocation4 + $0x38] sm:$0xff] %vm299_vm0, %v6217_v10 }
 0x996   : > { %v6351_v59 = vpop.permute.xlu1 %6350  ;;  %v6615_v26 = vld [vmem:[#allocation4 + $0x28] sm:$0xff] }
 0x997   : > { %6368 = vst.msk [vmem:[#allocation4 + $0x30] sm:$0xff] %vm715_vm5, %v6351_v59  ;;  %6986 = vmatmul.msk.f32.gmra.mxu0 %vm991_vm11, %v6615_v26 }
 0x998   : > { %6416 = vst.msk [vmem:[#allocation4 + $0x30] sm:$0xff] %vm764_vm6, %v6399_v36 }
 0x999   : > { %v6305_v6 = vpop.permute.xlu2 %6304 }
 0x99a   : > { %v6447_v48 = vpop.permute.xlu0 %6446 }
 0x99b   : > { %6464 = vst.msk [vmem:[#allocation4 + $0x30] sm:$0xff] %vm813_vm7, %v6447_v48 }
 0x99e   : > { %v6495_v61 = vpop.permute.xlu1 %6494 }
 0x99f   : > { %6512 = vst.msk [vmem:[#allocation4 + $0x30] sm:$0xff] %vm863_vm8, %v6495_v61 }
 0x9a0   : > { %6560 = vst.msk [vmem:[#allocation4 + $0x30] sm:$0xff] %vm912_vm9, %v6543_v63 }
 0x9a1   : > { %v6449_v23 = vpop.permute.xlu2 %6448 }
 0x9a2   : > { %v6591_v18 = vpop.permute.xlu0 %6590 }
 0x9a3   : > { %6608 = vst.msk [vmem:[#allocation4 + $0x30] sm:$0xff] %vm961_vm10, %v6591_v18 }
 0x9a4   : > { %v6675_v47 = vpop.f32.mrf.mxu0 }
 0x9a5   : > { %v6676_v3 = vadd.f32 %v10635_v16, %v6675_v47 }
 0x9a6   : > { %v6257_v62 = vpop.permute.xlu1 %6256  ;;  %v6186_v27 = vpop.f32.mrf.mxu3 }
 0x9a7   : > { %6990 = vst.msk [vmem:[%s8739_s23 + $0x208] sm:$0xff] %vm2733_vm12, %v6676_v3  ;;  %v6187_v9 = vadd.f32 %v10610_v49, %v6186_v27 }
 0x9a8   : > { %6273 = vst.msk [vmem:[#allocation4 + $0x38] sm:$0xff] %vm617_vm3, %v6257_v62 }
 0x9a9   : > { %6321 = vst.msk [vmem:[#allocation4 + $0x38] sm:$0xff] %vm666_vm4, %v6305_v6  ;;  %v6593_v51 = vpop.permute.xlu2 %6592 }
 0x9aa   : > { %6976 = vst.msk [vmem:[%s8739_s23 + $0x1d8] sm:$0xff] %vm2733_vm12, %v6187_v9  ;;  %v6353_v30 = vpop.permute.xlu0 %6352  ;;  %v6616_v39 = vld [vmem:[#allocation4 + $0x30] sm:$0xff] }
 0x9ab   : > { %6369 = vst.msk [vmem:[#allocation4 + $0x38] sm:$0xff] %vm715_vm5, %v6353_v30  ;;  %6987 = vmatmul.msk.f32.gmra.mxu0 %vm991_vm11, %v6616_v39 }
 0x9ae   : > { %v6401_v60 = vpop.permute.xlu1 %6400 }
 0x9af   : > { %6417 = vst.msk [vmem:[#allocation4 + $0x38] sm:$0xff] %vm764_vm6, %v6401_v60 }
 0x9b0   : > { %6465 = vst.msk [vmem:[#allocation4 + $0x38] sm:$0xff] %vm813_vm7, %v6449_v23 }
 0x9b2   : > { %v6497_v20 = vpop.permute.xlu0 %6496 }
 0x9b3   : > { %6513 = vst.msk [vmem:[#allocation4 + $0x38] sm:$0xff] %vm863_vm8, %v6497_v20 }
 0x9b6   : > { %v6545_v34 = vpop.permute.xlu1 %6544 }
 0x9b7   : > { %6561 = vst.msk [vmem:[#allocation4 + $0x38] sm:$0xff] %vm912_vm9, %v6545_v34 }
 0x9b8   : > { %6609 = vst.msk [vmem:[#allocation4 + $0x38] sm:$0xff] %vm961_vm10, %v6593_v51 }
 0x9b9   : > { %v6678_v5 = vpop.f32.mrf.mxu0 }
 0x9ba   : > { %v6679_v1 = vadd.f32 %v10635_v16, %v6678_v5 }
 0x9bc   : > { %6991 = vst.msk [vmem:[%s8739_s23 + $0x210] sm:$0xff] %vm2733_vm12, %v6679_v1 }
 0x9bf   : > { %v6617_v42 = vld [vmem:[#allocation4 + $0x38] sm:$0xff] }
 0x9c0   : > { %6988 = vmatmul.msk.f32.gmra.mxu0 %vm991_vm11, %v6617_v42 }
 0x9c2   : > { %v6189_v32 = vpop.f32.mrf.mxu3 }
 0x9c3   : > { %v6190_v41 = vadd.f32 %v10610_v49, %v6189_v32 }
 0x9c5   : > { %6977 = vst.msk [vmem:[%s8739_s23 + $0x1e0] sm:$0xff] %vm2733_vm12, %v6190_v41 }
 0x9d7   : > { %v6192_v0 = vpop.f32.mrf.mxu3 }
 0x9d8   : > { %v6193_v12 = vadd.f32 %v10610_v49, %v6192_v0  ;;  %v6681_v31 = vpop.f32.mrf.mxu0 }
 0x9d9   : > { %v6682_v35 = vadd.f32 %v10635_v16, %v6681_v31 }
 0x9da   : > { %6978 = vst.msk [vmem:[%s8739_s23 + $0x1e8] sm:$0xff] %vm2733_vm12, %v6193_v12 }
 0x9db   : > { %6992 = vst.msk [vmem:[%s8739_s23 + $0x218] sm:$0xff] %vm2733_vm12, %v6682_v35 }
 0x9f1   : > { %v6684_v43 = vpop.f32.mrf.mxu0 }
 0x9f2   : > { %v6685_v37 = vadd.f32 %v10635_v16, %v6684_v43 }
 0x9f4   : > { %6993 = vst.msk [vmem:[%s8739_s23 + $0x220] sm:$0xff] %vm2733_vm12, %v6685_v37 }
 0x9fa   : > { %v6195_v17 = vpop.f32.mrf.mxu3 }
 0x9fb   : > { %v6196_v56 = vadd.f32 %v10610_v49, %v6195_v17 }
 0x9fd   : > { %6979 = vst.msk [vmem:[%s8739_s23 + $0x1f0] sm:$0xff] %vm2733_vm12, %v6196_v56 }
 0xa14   : > { %v6687_v54 = vpop.f32.mrf.mxu0 }
 0xa15   : > { %v6688_v8 = vadd.f32 %v10635_v16, %v6687_v54 }
 0xa17   : > { %6994 = vst.msk [vmem:[%s8739_s23 + $0x228] sm:$0xff] %vm2733_vm12, %v6688_v8  ;;  %v6198_v38 = vpop.f32.mrf.mxu3 }
 0xa18   : > { %v6199_v50 = vadd.f32 %v10610_v49, %v6198_v38 }
 0xa1a   : > { %6980 = vst.msk [vmem:[%s8739_s23 + $0x1f8] sm:$0xff] %vm2733_vm12, %v6199_v50 }
 0xa28   : > { %v6690_v44 = vpop.f32.mrf.mxu0 }
 0xa29   : > { %v6691_v21 = vadd.f32 %v10635_v16, %v6690_v44 }
 0xa2b   : > { %6995 = vst.msk [vmem:[%s8739_s23 + $0x230] sm:$0xff] %vm2733_vm12, %v6691_v21 }
 0xa3d   : > { %v6693_v24 = vpop.f32.mrf.mxu0 }
 0xa3e   : > { %v6694_v45 = vadd.f32 %v10635_v16, %v6693_v24 }
 0xa40   : > { %6996 = vst.msk [vmem:[%s8739_s23 + $0x238] sm:$0xff] %vm2733_vm12, %v6694_v45 }
 0xa41 PF: > { %s17_s24 = sadd.s32 1, %s7044_s24  }
 0xa42   : > { %p14_p4 = scmp.ge.s32.totalorder %s17_s24, 4  }
 0xa44   :  { %16 = sbr.rel (!%p14_p4) target bundleno = 1 (0x1), region = 108 }

</bundles_post_ra>
